<compile_context>
chip_gen: v5e
topology: v5e:2x2
jax: 0.10.0
libtpu: 0.0.40
codegen_flags: <defaults>
</compile_context>

<pallas_src>
import functools
import math

import jax
import jax.numpy as jnp
from jax.experimental import pallas as pl
from jax.experimental.pallas import tpu as pltpu


_TAN_3PI_8 = 2.414213562373095
_TAN_PI_8 = 0.4142135623730950
_HALF_PI = math.pi / 2


# ----------------------------------------------------------------------------
# atan2 built from Mosaic-safe primitives (mul/add/cmp/select) plus ONE
# approximate EUP reciprocal.  Cephes atanf argument reduction rewritten on
# (|y|, |x|) so the per-branch divides collapse into a single num * recip(den).
# ----------------------------------------------------------------------------
def _atan_poly(x):
    z = x * x
    return ((((8.05374449538e-2 * z - 1.38776856032e-1) * z
              + 1.99777106478e-1) * z - 3.33329491539e-1) * z * x + x)


def _atan2(y, x):
    ax = jnp.abs(x)
    ay = jnp.abs(y)
    big = ay > jnp.float32(_TAN_3PI_8) * ax          # |y/x| > tan(3pi/8)
    mid = ay > jnp.float32(_TAN_PI_8) * ax           # |y/x| > tan(pi/8)
    # reduced argument per branch:  big: -ax/ay   mid: (ay-ax)/(ay+ax)   else: ay/ax
    num = jnp.where(big, -ax, jnp.where(mid, ay - ax, ay))
    den = jnp.where(big, ay, jnp.where(mid, ay + ax, ax))
    inv = pl.reciprocal(jnp.maximum(den, jnp.float32(1e-30)), approx=True)
    xr = num * inv
    off = jnp.where(big, jnp.float32(_HALF_PI),
                    jnp.where(mid, jnp.float32(math.pi / 4), jnp.float32(0.0)))
    base = off + _atan_poly(xr)
    base = jnp.where(x < 0.0, jnp.float32(math.pi) - base, base)
    return jnp.where(y < 0.0, -base, base)


# ----------------------------------------------------------------------------
# Pallas kernel: everything on flat lane-dense slabs, single merged output.
# ----------------------------------------------------------------------------
def _euler_kernel(r2_ref, p2_ref,
                  wbig_ref, bbig_ref,
                  wim_ref, bim_ref,
                  apair_ref, g_ref, b_ref,
                  o_ref, *, outshape2, apply_norm):
    r2 = r2_ref[...]                                  # (tb, inshape)
    p2 = p2_ref[...]                                  # (tb, inshape)

    # ---- polar transform on full-width input slabs --------------------------
    lam = r2 * r2 + p2 * p2 + jnp.float32(1e-8)
    loglam = 0.5 * jnp.log(lam)
    theta = _atan2(p2, r2)

    # ---- explicit interaction: one kron-expanded matmul ----------------------
    # W_big lays the result out as [lam_pre | lam_pre | th | th - pi/2] so the
    # exp / cos slices fall on 128-lane vreg boundaries.
    mix_in = jnp.concatenate([loglam, theta], axis=1)             # (tb, 2*in)
    big = (jnp.dot(mix_in, wbig_ref[...], preferred_element_type=jnp.float32)
           + bbig_ref[...])                                       # (tb, 4*out)
    lam_dup = jnp.exp(big[:, :outshape2])                         # [lam  | lam ]
    trig = jnp.cos(big[:, outshape2:])                            # [cos t | sin t]

    # ---- implicit interaction: fused Linear + ReLU -> [r_lin | p_lin] -------
    lin_in = jnp.concatenate([r2, p2], axis=1)                    # (tb, 2*in)
    lin = jnp.maximum(
        jnp.dot(lin_in, wim_ref[...], preferred_element_type=jnp.float32)
        + bim_ref[...], 0.0)                                      # (tb, 2*out)

    # ---- recombine in Cartesian form (one full-width FMA-style pass) --------
    out = lin + lam_dup * trig                                    # [o_r | o_p]

    # ---- per-segment LayerNorm via block-diagonal averaging matmul ----------
    if apply_norm:
        apair = apair_ref[...]                                    # (2*out, 2*out)
        mu = jnp.dot(out, apair, preferred_element_type=jnp.float32)
        xc = out - mu
        var = jnp.dot(xc * xc, apair, preferred_element_type=jnp.float32)
        out = (xc * jax.lax.rsqrt(var + jnp.float32(1e-5))
               * g_ref[...] + b_ref[...])

    o_ref[...] = out.astype(o_ref.dtype)


# ----------------------------------------------------------------------------
# Wrapper
# ----------------------------------------------------------------------------
def _round_up(x, m):
    return ((x + m - 1) // m) * m


def euler_interaction_forward(r, p, params, *, apply_norm=True, block_b=None):
    B, nf_in, d = r.shape
    inshape = nf_in * d
    w_ord = params["inter_orders"].astype(jnp.float32)            # (nf_in, nf_out)
    nf_out = w_ord.shape[1]
    outshape = nf_out * d

    # ---- parameter re-layout (tiny, plain-JAX glue) ---------------------------
    eye_d = jnp.eye(d, dtype=jnp.float32)
    W_exp = jnp.kron(w_ord, eye_d)                                 # (in, out)
    blam = jnp.transpose(params["bias_lam"][0]).reshape(1, outshape)
    bth = jnp.transpose(params["bias_theta"][0]).reshape(1, outshape)
    Zio = jnp.zeros((inshape, outshape), jnp.float32)
    # [loglam | theta] @ W_big + b_big  ->  [lam | lam | th | th - pi/2]
    W_big = jnp.block([[W_exp, W_exp, Zio, Zio],
                       [Zio, Zio, W_exp, W_exp]])                  # (2*in, 4*out)
    b_big = jnp.concatenate(
        [blam, blam, bth, bth - jnp.float32(_HALF_PI)], axis=1)    # (1, 4*out)

    wim_t = jnp.transpose(params["im_weight"]).astype(jnp.float32)  # (in, out)
    W_im_pair = jnp.block([[wim_t, Zio], [Zio, wim_t]])            # (2*in, 2*out)
    bim = params["im_bias"].reshape(1, outshape).astype(jnp.float32)
    b_im_pair = jnp.concatenate([bim, bim], axis=1)                # (1, 2*out)

    A_avg = jnp.kron(jnp.eye(nf_out, dtype=jnp.float32),
                     jnp.full((d, d), 1.0 / d, jnp.float32))       # (out, out)
    Zoo = jnp.zeros((outshape, outshape), jnp.float32)
    A_pair = jnp.block([[A_avg, Zoo], [Zoo, A_avg]])               # (2*out, 2*out)
    g_pair = jnp.concatenate(
        [jnp.tile(params["norm_r_weight"].astype(jnp.float32), nf_out),
         jnp.tile(params["norm_p_weight"].astype(jnp.float32), nf_out)]
    ).reshape(1, 2 * outshape)
    b_pair = jnp.concatenate(
        [jnp.tile(params["norm_r_bias"].astype(jnp.float32), nf_out),
         jnp.tile(params["norm_p_bias"].astype(jnp.float32), nf_out)]
    ).reshape(1, 2 * outshape)

    r2 = r.reshape(B, inshape).astype(jnp.float32)
    p2 = p.reshape(B, inshape).astype(jnp.float32)

    # ---- batch tiling ---------------------------------------------------------
    if block_b is None:
        # >=2 grid steps so both v7x TensorCores get work; capped at 2048 rows
        # (well under the 32 MiB scoped VMEM ceiling on v7x, big enough to
        # amortize per-step pipeline overhead on single-TC v5e/v6e).
        tb = _round_up(max((B + 1) // 2, 8), 8)
        tb = min(tb, 2048)
    else:
        tb = _round_up(max(int(block_b), 1), 8)      # (8,128) divisibility rule
    Bp = _round_up(B, tb)
    if Bp != B:
        pad = Bp - B
        r2 = jnp.pad(r2, ((0, pad), (0, 0)))         # padded rows are numerically safe
        p2 = jnp.pad(p2, ((0, pad), (0, 0)))
    grid = (Bp // tb,)

    bmap = lambda i: (i, 0)
    pmap = lambda i: (0, 0)

    kernel = functools.partial(_euler_kernel, outshape2=2 * outshape,
                               apply_norm=apply_norm)

    in_specs = [
        pl.BlockSpec((tb, inshape), bmap),                 # r flat
        pl.BlockSpec((tb, inshape), bmap),                 # p flat
        pl.BlockSpec((2 * inshape, 4 * outshape), pmap),   # W_big (kron-expanded)
        pl.BlockSpec((1, 4 * outshape), pmap),             # [blam|blam|bth|bth-pi/2]
        pl.BlockSpec((2 * inshape, 2 * outshape), pmap),   # blockdiag(Wim, Wim)
        pl.BlockSpec((1, 2 * outshape), pmap),             # [bim | bim]
        pl.BlockSpec((2 * outshape, 2 * outshape), pmap),  # blockdiag(A_avg, A_avg)
        pl.BlockSpec((1, 2 * outshape), pmap),             # [gamma_r | gamma_p]
        pl.BlockSpec((1, 2 * outshape), pmap),             # [beta_r | beta_p]
    ]
    out_specs = pl.BlockSpec((tb, 2 * outshape), bmap)
    out_shape = jax.ShapeDtypeStruct((Bp, 2 * outshape), r.dtype)

    o_flat = pl.pallas_call(
        kernel,
        out_shape=out_shape,
        grid_spec=pltpu.PrefetchScalarGridSpec(
            num_scalar_prefetch=0, grid=grid,
            in_specs=in_specs, out_specs=out_specs),
        compiler_params=pltpu.CompilerParams(
            dimension_semantics=("parallel",),
            vmem_limit_bytes=32 * 1024 * 1024),
    )(r2, p2, W_big, b_big, W_im_pair, b_im_pair, A_pair, g_pair, b_pair)

    o_flat = o_flat[:B]
    o_r = o_flat[:, :outshape].reshape(B, nf_out, d)
    o_p = o_flat[:, outshape:].reshape(B, nf_out, d)
    return o_r, o_p


# ----------------------------------------------------------------------------
# Pure-JAX reference (mirrors the PyTorch forward, eval mode)
# ----------------------------------------------------------------------------
def euler_reference(r, p, params, apply_norm=True):
    B, nf_in, d = r.shape
    w_ord = params["inter_orders"]
    lam = r ** 2 + p ** 2 + 1e-8
    theta = jnp.arctan2(p, r)
    lam = 0.5 * jnp.log(lam.reshape(B, -1, d))
    theta = theta.reshape(B, -1, d)
    lam = jnp.swapaxes(lam, -2, -1)
    theta = jnp.swapaxes(theta, -2, -1)
    lam = lam @ w_ord + params["bias_lam"]
    theta = theta @ w_ord + params["bias_theta"]
    lam = jnp.exp(lam)
    lam = jnp.swapaxes(lam, -2, -1)
    theta = jnp.swapaxes(theta, -2, -1)
    rf = r.reshape(B, -1) @ params["im_weight"].T + params["im_bias"]
    pf = p.reshape(B, -1) @ params["im_weight"].T + params["im_bias"]
    rf = jax.nn.relu(rf).reshape(B, -1, d)
    pf = jax.nn.relu(pf).reshape(B, -1, d)
    o_r = rf + lam * jnp.cos(theta)
    o_p = pf + lam * jnp.sin(theta)
    if apply_norm:
        def ln(x, g, b):
            mu = x.mean(-1, keepdims=True)
            var = ((x - mu) ** 2).mean(-1, keepdims=True)
            return (x - mu) / jnp.sqrt(var + 1e-5) * g + b
        o_r = ln(o_r, params["norm_r_weight"], params["norm_r_bias"])
        o_p = ln(o_p, params["norm_p_weight"], params["norm_p_bias"])
    return o_r, o_p


if __name__ == "__main__":
    # Small shapes consistent with the module: feature_dim=16, 8 input fields,
    # 4 output fields -> inshape=128, outshape=64, batch=256 (2 grid steps).
    B, nf_in, nf_out, d = 256, 8, 4, 16
    inshape, outshape = nf_in * d, nf_out * d

    key = jax.random.PRNGKey(0)
    ks = jax.random.split(key, 8)
    r = jax.random.normal(ks[0], (B, nf_in, d), jnp.float32)
    p = jax.random.normal(ks[1], (B, nf_in, d), jnp.float32)

    # Deterministic parameter init mirroring the module's __init__.
    if inshape == outshape:
        inter = jnp.eye(nf_in, nf_out, dtype=jnp.float32)
    else:
        inter = jax.nn.softmax(
            jax.random.normal(ks[2], (nf_in, nf_out), jnp.float32) / 0.01, axis=0)
    bound = math.sqrt(6.0 / (inshape + outshape))          # xavier_uniform
    w_im = jax.random.uniform(ks[3], (outshape, inshape), jnp.float32, -bound, bound)
    bb = 1.0 / math.sqrt(inshape)                          # default Linear bias init
    b_im = jax.random.uniform(ks[4], (outshape,), jnp.float32, -bb, bb)
    bias_lam = 0.01 * jax.random.normal(ks[5], (1, d, nf_out), jnp.float32)
    bias_theta = 0.01 * jax.random.normal(ks[6], (1, d, nf_out), jnp.float32)

    params = dict(
        inter_orders=inter, im_weight=w_im, im_bias=b_im,
        bias_lam=bias_lam, bias_theta=bias_theta,
        norm_r_weight=jnp.ones((d,), jnp.float32),
        norm_r_bias=jnp.zeros((d,), jnp.float32),
        norm_p_weight=jnp.ones((d,), jnp.float32),
        norm_p_bias=jnp.zeros((d,), jnp.float32),
    )

    o_r, o_p = euler_interaction_forward(r, p, params, apply_norm=True)
    jax.block_until_ready((o_r, o_p))

    ref_r, ref_p = euler_reference(r, p, params, apply_norm=True)
    err = max(float(jnp.max(jnp.abs(o_r - ref_r))),
              float(jnp.max(jnp.abs(o_p - ref_p))))
    assert err < 1e-2, f"max abs err {err}"
    print("KERNEL_OK")
</pallas_src>

<mosaic_0001>
module attributes {stable_mosaic.version = 11 : i64} {
  func.func @_euler_kernel(%arg0: i32, %arg1: memref<128x128xf32, #tpu.memory_space<vmem>>, %arg2: memref<128x128xf32, #tpu.memory_space<vmem>>, %arg3: memref<256x256xf32, #tpu.memory_space<vmem>>, %arg4: memref<1x256xf32, #tpu.memory_space<vmem>>, %arg5: memref<256x128xf32, #tpu.memory_space<vmem>>, %arg6: memref<1x128xf32, #tpu.memory_space<vmem>>, %arg7: memref<128x128xf32, #tpu.memory_space<vmem>>, %arg8: memref<1x128xf32, #tpu.memory_space<vmem>>, %arg9: memref<1x128xf32, #tpu.memory_space<vmem>>, %arg10: memref<128x128xf32, #tpu.memory_space<vmem>>) attributes {dimension_semantics = [#tpu.dimension_semantics<parallel>], iteration_bounds = array<i64: 2>, scalar_prefetch = 0 : i64, scratch_operands = 0 : i64, tpu.core_type = #tpu.core_type<tc>, window_params = [{transform_indices = @transform_0, window_bounds = array<i64: 128, 128>}, {transform_indices = @transform_1, window_bounds = array<i64: 128, 128>}, {pipeline_mode = #tpu.pipeline_mode<synchronous>, transform_indices = @transform_2, window_bounds = array<i64: 256, 256>}, {pipeline_mode = #tpu.pipeline_mode<synchronous>, transform_indices = @transform_3, window_bounds = array<i64: 1, 256>}, {pipeline_mode = #tpu.pipeline_mode<synchronous>, transform_indices = @transform_4, window_bounds = array<i64: 256, 128>}, {pipeline_mode = #tpu.pipeline_mode<synchronous>, transform_indices = @transform_5, window_bounds = array<i64: 1, 128>}, {pipeline_mode = #tpu.pipeline_mode<synchronous>, transform_indices = @transform_6, window_bounds = array<i64: 128, 128>}, {pipeline_mode = #tpu.pipeline_mode<synchronous>, transform_indices = @transform_7, window_bounds = array<i64: 1, 128>}, {pipeline_mode = #tpu.pipeline_mode<synchronous>, transform_indices = @transform_8, window_bounds = array<i64: 1, 128>}, {transform_indices = @transform_9, window_bounds = array<i64: 128, 128>}]} {
    %c0 = arith.constant 0 : index
    %c0_0 = arith.constant 0 : index
    %0 = vector.load %arg1[%c0, %c0_0] : memref<128x128xf32, #tpu.memory_space<vmem>>, vector<128x128xf32>
    %c0_1 = arith.constant 0 : index
    %c0_2 = arith.constant 0 : index
    %1 = vector.load %arg2[%c0_1, %c0_2] : memref<128x128xf32, #tpu.memory_space<vmem>>, vector<128x128xf32>
    %2 = arith.mulf %0, %0 : vector<128x128xf32>
    %3 = arith.mulf %1, %1 : vector<128x128xf32>
    %4 = arith.addf %2, %3 : vector<128x128xf32>
    %cst = arith.constant 9.99999993E-9 : f32
    %5 = vector.broadcast %cst : f32 to vector<128x128xf32>
    %6 = arith.addf %4, %5 : vector<128x128xf32>
    %7 = math.log %6 : vector<128x128xf32>
    %cst_3 = arith.constant 5.000000e-01 : f32
    %8 = vector.broadcast %cst_3 : f32 to vector<128x128xf32>
    %9 = arith.mulf %8, %7 : vector<128x128xf32>
    %10 = math.absf %0 : vector<128x128xf32>
    %11 = math.absf %1 : vector<128x128xf32>
    %cst_4 = arith.constant 2.41421366 : f32
    %12 = vector.broadcast %cst_4 : f32 to vector<128x128xf32>
    %13 = arith.mulf %12, %10 : vector<128x128xf32>
    %14 = arith.cmpf ogt, %11, %13 : vector<128x128xf32>
    %cst_5 = arith.constant 0.414213568 : f32
    %15 = vector.broadcast %cst_5 : f32 to vector<128x128xf32>
    %16 = arith.mulf %15, %10 : vector<128x128xf32>
    %17 = arith.cmpf ogt, %11, %16 : vector<128x128xf32>
    %cst_6 = arith.constant 0.000000e+00 : f32
    %18 = vector.broadcast %cst_6 : f32 to vector<128x128xf32>
    %19 = arith.subf %18, %10 : vector<128x128xf32>
    %20 = arith.subf %11, %10 : vector<128x128xf32>
    %21 = arith.select %17, %20, %11 : vector<128x128xi1>, vector<128x128xf32>
    %22 = arith.select %14, %19, %21 : vector<128x128xi1>, vector<128x128xf32>
    %23 = arith.addf %11, %10 : vector<128x128xf32>
    %24 = arith.select %17, %23, %10 : vector<128x128xi1>, vector<128x128xf32>
    %25 = arith.select %14, %11, %24 : vector<128x128xi1>, vector<128x128xf32>
    %cst_7 = arith.constant 1.000000e-30 : f32
    %26 = vector.broadcast %cst_7 : f32 to vector<128x128xf32>
    %27 = arith.maximumf %25, %26 : vector<128x128xf32>
    %28 = tpu.reciprocal %27 {approx = true} : vector<128x128xf32> -> vector<128x128xf32>
    %29 = arith.mulf %22, %28 : vector<128x128xf32>
    %cst_8 = arith.constant 0.785398185 : f32
    %cst_9 = arith.constant 0.000000e+00 : f32
    %30 = vector.broadcast %cst_8 : f32 to vector<128x128xf32>
    %31 = vector.broadcast %cst_9 : f32 to vector<128x128xf32>
    %32 = arith.select %17, %30, %31 : vector<128x128xi1>, vector<128x128xf32>
    %cst_10 = arith.constant 1.57079637 : f32
    %33 = vector.broadcast %cst_10 : f32 to vector<128x128xf32>
    %34 = arith.select %14, %33, %32 : vector<128x128xi1>, vector<128x128xf32>
    %35 = arith.mulf %29, %29 : vector<128x128xf32>
    %cst_11 = arith.constant 0.0805374458 : f32
    %36 = vector.broadcast %cst_11 : f32 to vector<128x128xf32>
    %37 = arith.mulf %36, %35 : vector<128x128xf32>
    %cst_12 = arith.constant 0.138776854 : f32
    %38 = vector.broadcast %cst_12 : f32 to vector<128x128xf32>
    %39 = arith.subf %37, %38 : vector<128x128xf32>
    %40 = arith.mulf %39, %35 : vector<128x128xf32>
    %cst_13 = arith.constant 0.199777111 : f32
    %41 = vector.broadcast %cst_13 : f32 to vector<128x128xf32>
    %42 = arith.addf %40, %41 : vector<128x128xf32>
    %43 = arith.mulf %42, %35 : vector<128x128xf32>
    %cst_14 = arith.constant 0.333329499 : f32
    %44 = vector.broadcast %cst_14 : f32 to vector<128x128xf32>
    %45 = arith.subf %43, %44 : vector<128x128xf32>
    %46 = arith.mulf %45, %35 : vector<128x128xf32>
    %47 = arith.mulf %46, %29 : vector<128x128xf32>
    %48 = arith.addf %47, %29 : vector<128x128xf32>
    %49 = arith.addf %34, %48 : vector<128x128xf32>
    %cst_15 = arith.constant 0.000000e+00 : f32
    %50 = vector.broadcast %cst_15 : f32 to vector<128x128xf32>
    %51 = arith.cmpf olt, %0, %50 : vector<128x128xf32>
    %cst_16 = arith.constant 3.14159274 : f32
    %52 = vector.broadcast %cst_16 : f32 to vector<128x128xf32>
    %53 = arith.subf %52, %49 : vector<128x128xf32>
    %54 = arith.select %51, %53, %49 : vector<128x128xi1>, vector<128x128xf32>
    %cst_17 = arith.constant 0.000000e+00 : f32
    %55 = vector.broadcast %cst_17 : f32 to vector<128x128xf32>
    %56 = arith.cmpf olt, %1, %55 : vector<128x128xf32>
    %cst_18 = arith.constant 0.000000e+00 : f32
    %57 = vector.broadcast %cst_18 : f32 to vector<128x128xf32>
    %58 = arith.subf %57, %54 : vector<128x128xf32>
    %59 = arith.select %56, %58, %54 : vector<128x128xi1>, vector<128x128xf32>
    %60 = tpu.concatenate %9, %59 in 1 : vector<128x128xf32>, vector<128x128xf32> -> vector<128x256xf32>
    %c0_19 = arith.constant 0 : index
    %c0_20 = arith.constant 0 : index
    %61 = vector.load %arg3[%c0_19, %c0_20] : memref<256x256xf32, #tpu.memory_space<vmem>>, vector<256x256xf32>
    %cst_21 = arith.constant dense<0.000000e+00> : vector<128x256xf32>
    %62 = tpu.matmul %60, %61, %cst_21 {dimension_numbers = #tpu.dot_dimension_numbers<[1], [0], [0], [1], [0, 0, 1, 1], [], []>} : vector<128x256xf32>, vector<256x256xf32>, vector<128x256xf32> -> vector<128x256xf32>
    %c0_22 = arith.constant 0 : index
    %c0_23 = arith.constant 0 : index
    %63 = vector.load %arg4[%c0_22, %c0_23] : memref<1x256xf32, #tpu.memory_space<vmem>>, vector<1x256xf32>
    %64 = vector.broadcast %63 : vector<1x256xf32> to vector<128x256xf32>
    %65 = arith.addf %62, %64 : vector<128x256xf32>
    %66 = vector.extract_strided_slice %65 {offsets = [0, 0], sizes = [128, 128], strides = [1, 1]} : vector<128x256xf32> to vector<128x128xf32>
    %67 = math.exp %66 : vector<128x128xf32>
    %68 = vector.extract_strided_slice %65 {offsets = [0, 128], sizes = [128, 128], strides = [1, 1]} : vector<128x256xf32> to vector<128x128xf32>
    %69 = math.cos %68 : vector<128x128xf32>
    %70 = tpu.concatenate %0, %1 in 1 : vector<128x128xf32>, vector<128x128xf32> -> vector<128x256xf32>
    %c0_24 = arith.constant 0 : index
    %c0_25 = arith.constant 0 : index
    %71 = vector.load %arg5[%c0_24, %c0_25] : memref<256x128xf32, #tpu.memory_space<vmem>>, vector<256x128xf32>
    %cst_26 = arith.constant dense<0.000000e+00> : vector<128x128xf32>
    %72 = tpu.matmul %70, %71, %cst_26 {dimension_numbers = #tpu.dot_dimension_numbers<[1], [0], [0], [1], [0, 0, 1, 1], [], []>} : vector<128x256xf32>, vector<256x128xf32>, vector<128x128xf32> -> vector<128x128xf32>
    %c0_27 = arith.constant 0 : index
    %c0_28 = arith.constant 0 : index
    %73 = vector.load %arg6[%c0_27, %c0_28] : memref<1x128xf32, #tpu.memory_space<vmem>>, vector<1x128xf32>
    %74 = vector.broadcast %73 : vector<1x128xf32> to vector<128x128xf32>
    %75 = arith.addf %72, %74 : vector<128x128xf32>
    %cst_29 = arith.constant 0.000000e+00 : f32
    %76 = vector.broadcast %cst_29 : f32 to vector<128x128xf32>
    %77 = arith.maximumf %75, %76 : vector<128x128xf32>
    %78 = arith.mulf %67, %69 : vector<128x128xf32>
    %79 = arith.addf %77, %78 : vector<128x128xf32>
    %c0_30 = arith.constant 0 : index
    %c0_31 = arith.constant 0 : index
    %80 = vector.load %arg7[%c0_30, %c0_31] : memref<128x128xf32, #tpu.memory_space<vmem>>, vector<128x128xf32>
    %cst_32 = arith.constant dense<0.000000e+00> : vector<128x128xf32>
    %81 = tpu.matmul %79, %80, %cst_32 {dimension_numbers = #tpu.dot_dimension_numbers<[1], [0], [0], [1], [0, 0, 1, 1], [], []>} : vector<128x128xf32>, vector<128x128xf32>, vector<128x128xf32> -> vector<128x128xf32>
    %82 = arith.subf %79, %81 : vector<128x128xf32>
    %83 = arith.mulf %82, %82 : vector<128x128xf32>
    %cst_33 = arith.constant dense<0.000000e+00> : vector<128x128xf32>
    %84 = tpu.matmul %83, %80, %cst_33 {dimension_numbers = #tpu.dot_dimension_numbers<[1], [0], [0], [1], [0, 0, 1, 1], [], []>} : vector<128x128xf32>, vector<128x128xf32>, vector<128x128xf32> -> vector<128x128xf32>
    %cst_34 = arith.constant 9.99999974E-6 : f32
    %85 = vector.broadcast %cst_34 : f32 to vector<128x128xf32>
    %86 = arith.addf %84, %85 : vector<128x128xf32>
    %87 = math.rsqrt %86 : vector<128x128xf32>
    %88 = arith.mulf %82, %87 : vector<128x128xf32>
    %c0_35 = arith.constant 0 : index
    %c0_36 = arith.constant 0 : index
    %89 = vector.load %arg8[%c0_35, %c0_36] : memref<1x128xf32, #tpu.memory_space<vmem>>, vector<1x128xf32>
    %90 = vector.broadcast %89 : vector<1x128xf32> to vector<128x128xf32>
    %91 = arith.mulf %88, %90 : vector<128x128xf32>
    %c0_37 = arith.constant 0 : index
    %c0_38 = arith.constant 0 : index
    %92 = vector.load %arg9[%c0_37, %c0_38] : memref<1x128xf32, #tpu.memory_space<vmem>>, vector<1x128xf32>
    %93 = vector.broadcast %92 : vector<1x128xf32> to vector<128x128xf32>
    %94 = arith.addf %91, %93 : vector<128x128xf32>
    %c0_39 = arith.constant 0 : index
    %c0_40 = arith.constant 0 : index
    %95 = vector.load %arg10[%c0_39, %c0_40] : memref<128x128xf32, #tpu.memory_space<vmem>>, vector<128x128xf32>
    tpu.vector_store %arg10[%c0_39, %c0_40], %94 {strides = array<i32>} : memref<128x128xf32, #tpu.memory_space<vmem>>, vector<128x128xf32>,
    return
  }
  func.func @transform_0(%arg0: i32) -> (i32, i32) {
    %c0_i32 = arith.constant 0 : i32
    %c0_i32_0 = arith.constant 0 : i32
    return %arg0, %c0_i32 : i32, i32
  }
  func.func @transform_1(%arg0: i32) -> (i32, i32) {
    %c0_i32 = arith.constant 0 : i32
    %c0_i32_0 = arith.constant 0 : i32
    return %arg0, %c0_i32 : i32, i32
  }
  func.func @transform_2(%arg0: i32) -> (i32, i32) {
    %c0_i32 = arith.constant 0 : i32
    %c0_i32_0 = arith.constant 0 : i32
    %c0_i32_1 = arith.constant 0 : i32
    return %c0_i32, %c0_i32_0 : i32, i32
  }
  func.func @transform_3(%arg0: i32) -> (i32, i32) {
    %c0_i32 = arith.constant 0 : i32
    %c0_i32_0 = arith.constant 0 : i32
    %c0_i32_1 = arith.constant 0 : i32
    return %c0_i32, %c0_i32_0 : i32, i32
  }
  func.func @transform_4(%arg0: i32) -> (i32, i32) {
    %c0_i32 = arith.constant 0 : i32
    %c0_i32_0 = arith.constant 0 : i32
    %c0_i32_1 = arith.constant 0 : i32
    return %c0_i32, %c0_i32_0 : i32, i32
  }
  func.func @transform_5(%arg0: i32) -> (i32, i32) {
    %c0_i32 = arith.constant 0 : i32
    %c0_i32_0 = arith.constant 0 : i32
    %c0_i32_1 = arith.constant 0 : i32
    return %c0_i32, %c0_i32_0 : i32, i32
  }
  func.func @transform_6(%arg0: i32) -> (i32, i32) {
    %c0_i32 = arith.constant 0 : i32
    %c0_i32_0 = arith.constant 0 : i32
    %c0_i32_1 = arith.constant 0 : i32
    return %c0_i32, %c0_i32_0 : i32, i32
  }
  func.func @transform_7(%arg0: i32) -> (i32, i32) {
    %c0_i32 = arith.constant 0 : i32
    %c0_i32_0 = arith.constant 0 : i32
    %c0_i32_1 = arith.constant 0 : i32
    return %c0_i32, %c0_i32_0 : i32, i32
  }
  func.func @transform_8(%arg0: i32) -> (i32, i32) {
    %c0_i32 = arith.constant 0 : i32
    %c0_i32_0 = arith.constant 0 : i32
    %c0_i32_1 = arith.constant 0 : i32
    return %c0_i32, %c0_i32_0 : i32, i32
  }
  func.func @transform_9(%arg0: i32) -> (i32, i32) {
    %c0_i32 = arith.constant 0 : i32
    %c0_i32_0 = arith.constant 0 : i32
    return %arg0, %c0_i32 : i32, i32
  }
}

</mosaic_0001>

<bundles_post_ra>
// kernel: tpu_custom_call.1
= control target key start
LH: loop header
LB: loop body
LE: loop exit
PB: predicated region body
PF: predicated region fallthrough
CT: control target
= control target key end

     0   :  { %s10158_s0 = inlined_call_operand.hbm [shape: f32[256,128], index: 0, kind: input, shape index: {}]   ;;  %s10159_s1 = inlined_call_operand.hbm [shape: f32[256,128], index: 1, kind: input, shape index: {}]   ;;  %s10160_s2 = inlined_call_operand.hbm [shape: f32[256,256], index: 2, kind: input, shape index: {}]   ;;  %s10161_s3 = inlined_call_operand.vmem [shape: f32[1,256], index: 3, kind: input, shape index: {}]   ;;  %s10162_s4 = inlined_call_operand.hbm [shape: f32[256,128], index: 4, kind: input, shape index: {}]   ;;  %s10163_s5 = inlined_call_operand.vmem [shape: f32[1,128], index: 5, kind: input, shape index: {}]   ;;  %s10164_s6 = inlined_call_operand.hbm [shape: f32[128,128], index: 6, kind: input, shape index: {}]   ;;  %s10165_s7 = inlined_call_operand.vmem [shape: f32[1,128], index: 7, kind: input, shape index: {}]   ;;  %s10166_s8 = inlined_call_operand.vmem [shape: f32[1,128], index: 8, kind: input, shape index: {}]   ;;  %s10167_s9 = inlined_call_operand.hbm [shape: f32[256,128], index: 9, kind: output, shape index: {}]  }
   0x1   :  { %10366 = sst [smem:[#allocation151_spill]] %s10158_s0 }
   0x2   :  { %10367 = sst [smem:[#allocation152_spill]] %s10160_s2 }
   0x3   :  { %10368 = sst [smem:[#allocation153_spill]] %s10162_s4 }
   0x4   :  { %10369 = sst [smem:[#allocation154_spill]] %s10164_s6 }
   0x5   :  { %14 = vsyncpa [#allocation3], 0 }
   0x6   :  { %16 = vsyncpa [#allocation3 + $0x1], 0 }
   0x7   :  { %17 = vsyncpa [#allocation6], 0 }
   0x8   :  { %19 = vsyncpa [#allocation6 + $0x1], 0 }
   0x9   :  { %20 = vsyncpa [#allocation9], 0 }
   0xa   :  { %21 = vsyncpa [#allocation4], 0 }
   0xb   :  { %23 = vsyncpa [#allocation4 + $0x1], 0  ;;  %s5406_s30 = smov 0   ;;  %s5408_s10 = smov 0  }
   0xc   :  { %s5410_s11 = smov 0   ;;  %s5412_s12 = smov 0  }
   0xd LB: > { %10370 = sst [smem:[#allocation17_spill]] %s5333_s11  ;;  %s5427_s13 = sadd.s32 4294967295, %s5337_s12   ;;  %s5337_s12 = sphi %s5412_s12, %s10860_s12   ;;  %s5333_s11 = sphi %s5410_s11, %s10862_s11   ;;  %s5329_s10 = sphi %s5408_s10, %s10864_s10   ;;  %s5325_s30 = sphi %s5406_s30, %s10863_s30  }
   0xe   : > { %s4741_s14 = sadd.s32 4294967294, %s5337_s12   ;;  %p49_p0 = scmp.ne.s32.totalorder %s5329_s10, %s5325_s30 }
   0xf   : > { %p50_p1 = scmp.eq.s32.totalorder %s5427_s13, 0  ;;  %p246_p2 = scmp.eq.s32.totalorder %s5427_s13, 1 }
  0x10   : > { %p252_p3 = scmp.eq.s32.totalorder %s4741_s14, 1  ;;  %p4742_p5 = scmp.ge.s32.totalorder %s5337_s12, 1 }
  0x11   : > { %p5436_p4 = por %p50_p1, %p49_p0  ;;  %p259_p7 = scmp.lt.s32.totalorder %s5337_s12, 3 }
  0x12   : > { %p5441_p6 = por %p252_p3, %p49_p0  ;;  %s10373_s2 = sld [smem:[#allocation152_spill]] }
  0x13   : > { %p5449_p8 = pnand %p4742_p5, %p259_p7  ;;  %s5339_s21 = smov [#allocation7]  }
  0x14   : > { %s272_s22 = sshll.u32 %s5339_s21, 4  ;;  %s10376_s4 = sld [smem:[#allocation153_spill]]  ;;  %s273_s22 = int_to_ptr.vmem [resolvable:$true] %s272_s22 }
  0x15   : > { %p4866_p9 = pneg %p5449_p8  ;;  %s5340_s27 = smov 256  }
  0x16   : > { %s5341_s28 = smov 16   ;;  %s5342_s29 = smov [#allocation8]  }
  0x17   : > { %p5457_p10 = pnand %p4866_p9, %p50_p1  ;;  %s289_s14 = sshll.u32 %s5342_s29, 4  ;;  %s290_s14 = int_to_ptr.vmem [resolvable:$true] %s289_s14 }
  0x18   : > { %s270_s19 = sshll.u32 %s10373_s2, 4  ;;  %s10168_s17 = smov 128   ;;  %s271_s19 = int_to_ptr.hbm [resolvable:$true] %s270_s19 }
  0x19   : > { %4869 = dma.hbm_to_vmem [thread:$0]  (!%p5457_p10), %s271_s19, 8192, %s273_s22, [#allocation6], %s5340_s27, %s5340_s27, %s5341_s28  }
  0x1a   : > { %s287_s26 = sshll.u32 %s10376_s4, 4  ;;  %s10170_s18 = smov 8   ;;  %s288_s26 = int_to_ptr.hbm [resolvable:$true] %s287_s26 }
  0x1b   : > { %4872 = dma.hbm_to_vmem [thread:$0]  (!%p5457_p10), %s288_s26, 4096, %s290_s14, [#allocation9], %s10168_s17, %s10168_s17, %s10170_s18  }
  0x1c   : > { %s10377_s6 = sld [smem:[#allocation154_spill]]  ;;  %s5345_s22 = smov [#allocation10]  }
  0x1d   : > { %s306_s25 = sshll.u32 %s5345_s22, 4  ;;  %s5481_s27 = sadd.s32 1, %s5337_s12   ;;  %s307_s25 = int_to_ptr.vmem [resolvable:$true] %s306_s25 }
  0x1e   : > { %10378 = sst [smem:[#allocation18_spill]] %s5481_s27  ;;  %s33_s26 = ssub.s32 %s5337_s12, %s5481_s27 }
  0x1f   : > { %s36_s28 = sadd.s32 1, %s5333_s11  ;;  %p34_p12 = scmp.eq.s32.totalorder %s33_s26, 0 }
  0x20   : > { %p43_p13 = scmp.ne.s32.totalorder %s5333_s11, %s5329_s10  ;;  %p44_p0 = scmp.eq.s32.totalorder %s5337_s12, 0 }
  0x21   : > { %p4890_p3 = scmp.lt.s32.totalorder %s5337_s12, 2  ;;  %s326_s14 = sand.u32 1, %s5333_s11  }
  0x22   : > { %s304_s19 = sshll.u32 %s10377_s6, 4  ;;  %p45_p5 = por %p44_p0, %p43_p13  ;;  %s305_s19 = int_to_ptr.hbm [resolvable:$true] %s304_s19 }
  0x23   : > { %4875 = dma.hbm_to_vmem [thread:$0]  (!%p5457_p10), %s305_s19, 2048, %s307_s25, [#allocation9], %s10168_s17, %s10168_s17, %s10170_s18  }
  0x24   : > { %s5491_s29 = scalar_select %p34_p12, %s5333_s11, %s36_s28  }
  0x25   : > { %p5495_p7 = por %p246_p2, %p43_p13  ;;  %s4845_s21 = sshll.u32 %s5337_s12, 7 }
  0x26   : > { %10379 = sst [smem:[#allocation19_spill]] %s5491_s29  ;;  %s4747_s24 = sshll.u32 %s326_s14, 7 }
  0x27   : > { %s10381_s0 = sld [smem:[#allocation151_spill]]  ;;  %s330_s17 = scalar_lea.vmem [#allocation2], %s4747_s24 }
  0x28   : > { %s338_s18 = sshll.u32 %s330_s17, 4  ;;  %p5506_p9 = pnand %p4890_p3, %p45_p5  ;;  %s339_s18 = int_to_ptr.vmem [resolvable:$true] %s338_s18 }
  0x29   : > { %s357_s6 = scalar_lea.hbm %s10159_s1, %s4845_s21  ;;  %s352_s29 = scalar_lea.vmem [#allocation5], %s4747_s24 }
  0x2a   : > { %s5513_s11 = sshll.u32 %s352_s29, 4  ;;  %s358_s19 = sshll.u32 %s357_s6, 4  ;;  %s359_s19 = int_to_ptr.hbm [resolvable:$true] %s358_s19  ;;  %s361_s11 = int_to_ptr.vmem [resolvable:$true] %s5513_s11 }
  0x2b   : > { %s327_s22 = scalar_lea.sflag [#allocation3], %s326_s14  ;;  %p5203_p10 = pneg %p5506_p9 }
  0x2d   : > { %s335_s25 = scalar_lea.hbm %s10381_s0, %s4845_s21  ;;  %s5206_s4 = scalar_lea.hbm %s10381_s0, 256 }
  0x2e   : > { %s336_s26 = sshll.u32 %s335_s25, 4  ;;  %s337_s26 = int_to_ptr.hbm [resolvable:$true] %s336_s26 }
  0x2f   : > { %s5199_s25 = sshra.s32 %s337_s26, 4  ;;  %s5200_s25 = int_to_ptr.hbm [resolvable:$true] %s5199_s25 }
  0x30   : > { %s5201_s17 = scalar_lea.hbm %s5200_s25, 128  ;;  %p5207_p0 = scmp.lt.s32.totalorder %s5200_s25, %s10381_s0 }
  0x31   : > { %p5202_p2 = scmp.ne.s32.totalorder %s5200_s25, %s5201_s17  ;;  %p5208_p3 = scmp.lt.s32.totalorder %s5206_s4, %s5201_s17 }
  0x33   : > { %p5204_p12 = pnand %p5203_p10, %p5202_p2  ;;  %p5209_p5 = por %p5208_p3, %p5207_p0 }
  0x35   : > { %p5205_p13 = pneg %p5204_p12 }
  0x37   : > { %p5210_p11 = pnand %p5209_p5, %p5205_p13 }
  0x39   : > { %5213 = shalt.err (!%p5210_p11)
}
  0x3a   : > { %s10383_s6 = smov 8   ;;  %s10384_s29 = smov 128  }
  0x3b   : > { %4879 = dma.hbm_to_vmem [thread:$0]  (!%p5506_p9), %s337_s26, 2048, %s339_s18, %s327_s22, %s10384_s29, %s10384_s29, %s10383_s6  }
  0x3c   : > { %s348_s27 = sand.u32 1, %s5337_s12   ;;  %s5229_s2 = sshra.s32 %s359_s19, 4  ;;  %s5230_s2 = int_to_ptr.hbm [resolvable:$true] %s5229_s2 }
  0x3d   : > { %s349_s14 = scalar_lea.sflag [#allocation6], %s348_s27  ;;  %s5231_s25 = scalar_lea.hbm %s5230_s2, 128 }
  0x3e   : > { %p5232_p2 = scmp.ne.s32.totalorder %s5230_s2, %s5231_s25  ;;  %s5236_s21 = scalar_lea.hbm %s10159_s1, 256 }
  0x3f   : > { %p5237_p13 = scmp.lt.s32.totalorder %s5230_s2, %s10159_s1  ;;  %p5238_p0 = scmp.lt.s32.totalorder %s5236_s21, %s5231_s25 }
  0x40   : > { %p5234_p11 = pnand %p5232_p2, %p5203_p10 }
  0x41   : > { %p5239_p3 = por %p5238_p0, %p5237_p13 }
  0x42   : > { %p5235_p12 = pneg %p5234_p11 }
  0x44   : > { %p5240_p5 = pnand %p5239_p3, %p5235_p12 }
  0x46   : > { %5243 = shalt.err (!%p5240_p5)
}
  0x47   : > { %4882 = dma.hbm_to_vmem [thread:$0]  (!%p5506_p9), %s359_s19, 2048, %s361_s11, %s349_s14, %s10384_s29, %s10384_s29, %s10383_s6  }
  0x48   : > { %372 = sbr.rel (%p5449_p8) target bundleno = 1271 (0x4f7), region = 56 }
  0x4d   : > { %s5550_s18 = sand.u32 1, %s5329_s10  }
  0x4e   : > { %s5553_s0 = sshll.u32 %s5550_s18, 7  ;;  %s375_s26 = scalar_lea.sflag [#allocation3], %s5550_s18 }
  0x4f   : > { %s5557_s22 = scalar_lea.vmem [#allocation2], %s5553_s0 }
  0x50   : > { %5304 = dma.done.wait (%p5436_p4), %s375_s26, 2048  }
  0x51   : > { %5306 = vsyncadd (%p5436_p4), %s375_s26, 4294965248  ;;  %s384_s11 = sand.u32 1, %s5427_s13   ;;  %s5565_s28 = scalar_lea.vmem [#allocation5], %s5553_s0 }
  0x52   : > { %s385_s20 = scalar_lea.sflag [#allocation6], %s384_s11 }
  0x53   : > { %5308 = dma.done.wait (%p5436_p4), %s385_s20, 2048  }
  0x54   : > { %5310 = vsyncadd (%p5436_p4), %s385_s20, 4294965248 }
  0x55   : > { %5312 = dma.done.wait (%p50_p1), [#allocation6], 8192  }
  0x56   : > { %5314 = vsyncadd (%p50_p1), [#allocation6], 4294959104 }
  0x57   : > { %5316 = dma.done.wait (%p50_p1), [#allocation9], 6144  }
  0x58   : > { %5318 = vsyncadd (%p50_p1), [#allocation9], 4294961152  ;;  %v1181_v0 = vld [vmem:[#allocation7 + $0xf0] sm:$0xff]  ;;  %v1182_v1 = vld [vmem:[#allocation7 + $0xf8] sm:$0xff]  ;;  %s10056_s26 = scalar_lea.vmem [#allocation11], %s5553_s0  ;;  %s4847_s0 = sshll.u32 %s5427_s13, 7 }
  0x59   : > { %v1179_v2 = vld [vmem:[#allocation7 + $0xe0] sm:$0xff]  ;;  %1221 = vmatpush.msra.mxu0 %v1181_v0  ;;  %1351 = vmatpush.msra.mxu2 %v1182_v1  ;;  %v1213_v3 = vld [vmem:[#allocation7 + $0x1f0] sm:$0xff]  ;;  %v1180_v4 = vld [vmem:[#allocation7 + $0xe8] sm:$0xff]  ;;  %s4613_s20 = scalar_lea.hbm %s10167_s9, %s4847_s0  ;;  %s4602_s15 = scalar_lea.sflag [#allocation4], %s5550_s18 }
  0x5a   : > { %v1214_v5 = vld [vmem:[#allocation7 + $0x1f8] sm:$0xff]  ;;  %1286 = vmatpush.msra.mxu1 %v1213_v3  ;;  %v1177_v6 = vld [vmem:[#allocation7 + $0xd0] sm:$0xff]  ;;  %v1211_v7 = vld [vmem:[#allocation7 + $0x1e0] sm:$0xff]  ;;  %s4616_s13 = sshll.u32 %s4613_s20, 4  ;;  %s5279_s14 = scalar_lea.hbm %s10167_s9, 256  ;;  %s4617_s13 = int_to_ptr.hbm [resolvable:$true] %s4616_s13 }
  0x5b   : > { %1416 = vmatpush.msra.mxu3 %v1214_v5  ;;  %v1178_v8 = vld [vmem:[#allocation7 + $0xd8] sm:$0xff]  ;;  %1222 = vmatpush.msra.mxu0 %v1179_v2  ;;  %v1212_v9 = vld [vmem:[#allocation7 + $0x1e8] sm:$0xff]  ;;  %v1209_v10 = vld [vmem:[#allocation7 + $0x1d0] sm:$0xff]  ;;  %s5273_s19 = sshra.s32 %s4617_s13, 4  ;;  %s5274_s19 = int_to_ptr.hbm [resolvable:$true] %s5273_s19 }
  0x5c   : > { %1352 = vmatpush.msra.mxu2 %v1180_v4  ;;  %1287 = vmatpush.msra.mxu1 %v1211_v7  ;;  %v1175_v11 = vld [vmem:[#allocation7 + $0xc0] sm:$0xff]  ;;  %v1176_v12 = vld [vmem:[#allocation7 + $0xc8] sm:$0xff]  ;;  %v1210_v13 = vld [vmem:[#allocation7 + $0x1d8] sm:$0xff]  ;;  %s5275_s6 = scalar_lea.hbm %s5274_s19, 128  ;;  %p5280_p9 = scmp.lt.s32.totalorder %s5274_s19, %s10167_s9 }
  0x5d   : > { %1417 = vmatpush.msra.mxu3 %v1212_v9  ;;  %1223 = vmatpush.msra.mxu0 %v1177_v6  ;;  %v1207_v14 = vld [vmem:[#allocation7 + $0x1c0] sm:$0xff]  ;;  %v1208_v15 = vld [vmem:[#allocation7 + $0x1c8] sm:$0xff]  ;;  %v1173_v16 = vld [vmem:[#allocation7 + $0xb0] sm:$0xff]  ;;  %p5276_p1 = scmp.ne.s32.totalorder %s5274_s19, %s5275_s6  ;;  %p5281_p10 = scmp.lt.s32.totalorder %s5279_s14, %s5275_s6 }
  0x5e   : > { %1353 = vmatpush.msra.mxu2 %v1178_v8  ;;  %1288 = vmatpush.msra.mxu1 %v1209_v10  ;;  %v1174_v17 = vld [vmem:[#allocation7 + $0xb8] sm:$0xff]  ;;  %v1205_v18 = vld [vmem:[#allocation7 + $0x1b0] sm:$0xff]  ;;  %v1171_v20 = vld [vmem:[#allocation7 + $0xa0] sm:$0xff] }
  0x5f   : > { %1418 = vmatpush.msra.mxu3 %v1210_v13  ;;  %1224 = vmatpush.msra.mxu0 %v1175_v11  ;;  %v1206_v19 = vld [vmem:[#allocation7 + $0x1b8] sm:$0xff]  ;;  %v1172_v21 = vld [vmem:[#allocation7 + $0xa8] sm:$0xff]  ;;  %v1203_v22 = vld [vmem:[#allocation7 + $0x1a0] sm:$0xff]  ;;  %p5277_p4 = pnand %p5276_p1, %p5495_p7  ;;  %p5282_p2 = por %p5281_p10, %p5280_p9 }
  0x60   : > { %1354 = vmatpush.msra.mxu2 %v1176_v12  ;;  %1289 = vmatpush.msra.mxu1 %v1207_v14  ;;  %v1204_v23 = vld [vmem:[#allocation7 + $0x1a8] sm:$0xff]  ;;  %v1169_v24 = vld [vmem:[#allocation7 + $0x90] sm:$0xff]  ;;  %v1170_v25 = vld [vmem:[#allocation7 + $0x98] sm:$0xff] }
  0x61   : > { %1419 = vmatpush.msra.mxu3 %v1208_v15  ;;  %1225 = vmatpush.msra.mxu0 %v1173_v16  ;;  %v1201_v26 = vld [vmem:[#allocation7 + $0x190] sm:$0xff]  ;;  %v1202_v27 = vld [vmem:[#allocation7 + $0x198] sm:$0xff]  ;;  %v1167_v28 = vld [vmem:[#allocation7 + $0x80] sm:$0xff]  ;;  %p5278_p8 = pneg %p5277_p4 }
  0x62   : > { %1355 = vmatpush.msra.mxu2 %v1174_v17  ;;  %1290 = vmatpush.msra.mxu1 %v1205_v18  ;;  %v1168_v29 = vld [vmem:[#allocation7 + $0x88] sm:$0xff]  ;;  %v1199_v30 = vld [vmem:[#allocation7 + $0x180] sm:$0xff]  ;;  %v1165_v32 = vld [vmem:[#allocation7 + $0x70] sm:$0xff] }
  0x63   : > { %1420 = vmatpush.msra.mxu3 %v1206_v19  ;;  %1226 = vmatpush.msra.mxu0 %v1171_v20  ;;  %v1200_v31 = vld [vmem:[#allocation7 + $0x188] sm:$0xff]  ;;  %v1166_v33 = vld [vmem:[#allocation7 + $0x78] sm:$0xff]  ;;  %v1197_v34 = vld [vmem:[#allocation7 + $0x170] sm:$0xff]  ;;  %p5283_p11 = pnand %p5282_p2, %p5278_p8 }
  0x64   : > { %1356 = vmatpush.msra.mxu2 %v1172_v21  ;;  %1291 = vmatpush.msra.mxu1 %v1203_v22  ;;  %v1198_v35 = vld [vmem:[#allocation7 + $0x178] sm:$0xff]  ;;  %v1163_v36 = vld [vmem:[#allocation7 + $0x60] sm:$0xff]  ;;  %v1164_v37 = vld [vmem:[#allocation7 + $0x68] sm:$0xff] }
  0x65   : > { %1421 = vmatpush.msra.mxu3 %v1204_v23  ;;  %1227 = vmatpush.msra.mxu0 %v1169_v24  ;;  %v1195_v38 = vld [vmem:[#allocation7 + $0x160] sm:$0xff]  ;;  %v1196_v39 = vld [vmem:[#allocation7 + $0x168] sm:$0xff]  ;;  %v1161_v40 = vld [vmem:[#allocation7 + $0x50] sm:$0xff] }
  0x66   : > { %1357 = vmatpush.msra.mxu2 %v1170_v25  ;;  %1292 = vmatpush.msra.mxu1 %v1201_v26  ;;  %v1162_v41 = vld [vmem:[#allocation7 + $0x58] sm:$0xff]  ;;  %v1159_v42 = vld [vmem:[#allocation7 + $0x40] sm:$0xff]  ;;  %v1193_v43 = vld [vmem:[#allocation7 + $0x150] sm:$0xff] }
  0x67   : > { %1422 = vmatpush.msra.mxu3 %v1202_v27  ;;  %1228 = vmatpush.msra.mxu0 %v1167_v28  ;;  %v1194_v44 = vld [vmem:[#allocation7 + $0x158] sm:$0xff]  ;;  %v1160_v45 = vld [vmem:[#allocation7 + $0x48] sm:$0xff]  ;;  %v1157_v46 = vld [vmem:[#allocation7 + $0x30] sm:$0xff] }
  0x68   : > { %1358 = vmatpush.msra.mxu2 %v1168_v29  ;;  %1293 = vmatpush.msra.mxu1 %v1199_v30  ;;  %v5580_v47 = vld [vmem:[%s5557_s22] sm:$0xff]  ;;  %v1192_v49 = vld [vmem:[#allocation7 + $0x148] sm:$0xff]  ;;  %v1158_v53 = vld [vmem:[#allocation7 + $0x38] sm:$0xff] }
  0x69   : > { %1423 = vmatpush.msra.mxu3 %v1200_v31  ;;  %1229 = vmatpush.msra.mxu0 %v1165_v32  ;;  %v1191_v48 = vld [vmem:[#allocation7 + $0x140] sm:$0xff]  ;;  %v479_v51 = vmul.f32 %v5580_v47, %v5580_v47  ;;  %v5588_v52 = vand.u32 2147483647, %v5580_v47  ;;  %v5596_v56 = vld [vmem:[%s5557_s22 + $0x8] sm:$0xff]  ;;  %v1189_v58 = vld [vmem:[#allocation7 + $0x130] sm:$0xff]  ;;  %vm1055_vm8 = vcmp.lt.f32.partialorder %v5580_v47, 0.0 }
  0x6a   : > { %1359 = vmatpush.msra.mxu2 %v1166_v33  ;;  %1294 = vmatpush.msra.mxu1 %v1197_v34  ;;  %v5583_v50 = vld [vmem:[%s5565_s28] sm:$0xff]  ;;  %v5599_v57 = vld [vmem:[%s5565_s28 + $0x8] sm:$0xff]  ;;  %v1190_v59 = vld [vmem:[#allocation7 + $0x138] sm:$0xff]  ;;  %v5610_v3 = vand.u32 2147483647, %v5596_v56  ;;  %v480_v12 = vmul.f32 %v5596_v56, %v5596_v56  ;;  %vm1056_vm12 = vcmp.lt.f32.partialorder %v5596_v56, 0.0 }
  0x6b   : > { %1424 = vmatpush.msra.mxu3 %v1198_v35  ;;  %1230 = vmatpush.msra.mxu0 %v1163_v36  ;;  %v495_v54 = vmul.f32 %v5583_v50, %v5583_v50  ;;  %v5593_v55 = vand.u32 2147483647, %v5583_v50  ;;  %v5602_v60 = vmul.f32 2.4142137, %v5588_v52  ;;  %v5605_v61 = vmul.f32 0.41421357, %v5588_v52 }
  0x6c   : > { %1360 = vmatpush.msra.mxu2 %v1164_v37  ;;  %1295 = vmatpush.msra.mxu1 %v1195_v38  ;;  %v1155_v62 = vld [vmem:[#allocation7 + $0x20] sm:$0xff]  ;;  %v1156_v63 = vld [vmem:[#allocation7 + $0x28] sm:$0xff]  ;;  %v1153_v0 = vld [vmem:[#allocation7 + $0x10] sm:$0xff]  ;;  %v5619_v7 = vand.u32 2147483647, %v5599_v57  ;;  %v496_v19 = vmul.f32 %v5599_v57, %v5599_v57  ;;  %v687_v23 = vsub.f32 0.0, %v5588_v52 }
  0x6d   : > { %1425 = vmatpush.msra.mxu3 %v1196_v39  ;;  %1231 = vmatpush.msra.mxu0 %v1161_v40  ;;  %v511_v1 = vadd.f32 %v495_v54, %v479_v51  ;;  %v751_v2 = vadd.f32 %v5593_v55, %v5588_v52  ;;  %v1187_v4 = vld [vmem:[#allocation7 + $0x120] sm:$0xff]  ;;  %v1188_v5 = vld [vmem:[#allocation7 + $0x128] sm:$0xff]  ;;  %vm639_vm0 = vcmp.gt.f32.partialorder %v5593_v55, %v5602_v60  ;;  %v1154_v8 = vld [vmem:[#allocation7 + $0x18] sm:$0xff]  ;;  %v5637_v20 = vmul.f32 2.4142137, %v5610_v3 }
  0x6e   : > { %1361 = vmatpush.msra.mxu2 %v1162_v41  ;;  %1296 = vmatpush.msra.mxu1 %v1193_v43  ;;  %vm671_vm1 = vcmp.gt.f32.partialorder %v5593_v55, %v5605_v61  ;;  %v703_v6 = vsub.f32 %v5593_v55, %v5588_v52  ;;  %v1185_v9 = vld [vmem:[#allocation7 + $0x110] sm:$0xff]  ;;  %v1186_v13 = vld [vmem:[#allocation7 + $0x118] sm:$0xff]  ;;  %v1151_v16 = vld [vmem:[#allocation7] sm:$0xff]  ;;  %v5645_v25 = vmul.f32 0.41421357, %v5610_v3  ;;  %v752_v26 = vadd.f32 %v5619_v7, %v5610_v3 }
  0x6f   : > { %1426 = vmatpush.msra.mxu3 %v1194_v44  ;;  %1232 = vmatpush.msra.mxu0 %v1159_v42  ;;  %v527_v10 = vadd.f32 1e-08, %v511_v1  ;;  %v767_v11 = vsel %vm671_vm1, %v751_v2, %v5588_v52  ;;  %v5632_v15 = vld [vmem:[%s5557_s22 + $0x10] sm:$0xff]  ;;  %v1152_v17 = vld [vmem:[#allocation7 + $0x8] sm:$0xff]  ;;  %v3992_v21 = vld [vmem:[#allocation8 + $0x78] sm:$0xff]  ;;  %v512_v28 = vadd.f32 %v496_v19, %v480_v12  ;;  %vm640_vm2 = vcmp.gt.f32.partialorder %v5619_v7, %v5637_v20 }
  0x70   : > { %1362 = vmatpush.msra.mxu2 %v1160_v45  ;;  %1297 = vmatpush.msra.mxu1 %v1191_v48  ;;  %v783_v14 = vsel %vm639_vm0, %v5593_v55, %v767_v11  ;;  %v1183_v22 = vld [vmem:[#allocation7 + $0x100] sm:$0xff]  ;;  %v719_v24 = vsel %vm671_vm1, %v703_v6, %v5593_v55  ;;  %v1184_v27 = vld [vmem:[#allocation7 + $0x108] sm:$0xff]  ;;  %v5652_v29 = vand.u32 2147483647, %v5632_v15  ;;  %vm672_vm3 = vcmp.gt.f32.partialorder %v5619_v7, %v5645_v25  ;;  %v5657_v30 = vld [vmem:[%s5565_s28 + $0x10] sm:$0xff] }
  0x71   : > { %1427 = vmatpush.msra.mxu3 %v1192_v49  ;;  %1233 = vmatpush.msra.mxu0 %v1157_v46  ;;  %4947 = vlog2.f32 %v527_v10  ;;  %v799_v18 = vmax.f32 %v783_v14, 1e-30  ;;  %v528_v31 = vadd.f32 1e-08, %v512_v28  ;;  %v704_v32 = vsub.f32 %v5619_v7, %v5610_v3  ;;  %v5677_v38 = vld [vmem:[%s5557_s22 + $0x18] sm:$0xff]  ;;  %v3991_v45 = vld [vmem:[#allocation8 + $0x70] sm:$0xff] }
  0x72   : > { %1363 = vmatpush.msra.mxu2 %v1158_v53  ;;  %1298 = vmatpush.msra.mxu1 %v1189_v58  ;;  %v768_v33 = vsel %vm672_vm3, %v752_v26, %v5610_v3  ;;  %v481_v34 = vmul.f32 %v5632_v15, %v5632_v15  ;;  %v735_v35 = vsel %vm639_vm0, %v687_v23, %v719_v24  ;;  %v5680_v41 = vand.u32 2147483647, %v5657_v30  ;;  %v4008_v44 = vld [vmem:[#allocation8 + $0xf8] sm:$0xff]  ;;  %v4007_v24 = vld [vmem:[#allocation8 + $0xf0] sm:$0xff]  ;;  %v3990_v26 = vld [vmem:[#allocation8 + $0x68] sm:$0xff] }
  0x73   : > { %1428 = vmatpush.msra.mxu3 %v1190_v59  ;;  %1234 = vmatpush.msra.mxu0 %v1155_v62  ;;  %4949 = vrcp.f32 %v799_v18  ;;  %v784_v36 = vsel %vm640_vm2, %v5619_v7, %v768_v33  ;;  %v497_v37 = vmul.f32 %v5657_v30, %v5657_v30  ;;  %v5683_v42 = vmul.f32 2.4142137, %v5652_v29  ;;  %v5696_v59 = vld [vmem:[%s5565_s28 + $0x18] sm:$0xff]  ;;  %v5773_v60 = vld [vmem:[%s5565_s28 + $0x20] sm:$0xff] }
  0x74   : > { %1364 = vmatpush.msra.mxu2 %v1156_v63  ;;  %1299 = vmatpush.msra.mxu1 %v1187_v4  ;;  %4951 = vlog2.f32 %v528_v31  ;;  %v800_v40 = vmax.f32 %v784_v36, 1e-30  ;;  %v688_v46 = vsub.f32 0.0, %v5610_v3  ;;  %v720_v51 = vsel %vm672_vm3, %v704_v32, %v5619_v7 }
  0x75   : > { %1429 = vmatpush.msra.mxu3 %v1188_v5  ;;  %1235 = vmatpush.msra.mxu0 %v1153_v0  ;;  %v513_v48 = vadd.f32 %v497_v37, %v481_v34  ;;  %v5691_v52 = vmul.f32 0.41421357, %v5652_v29  ;;  %v5699_v62 = vand.u32 2147483647, %v5677_v38  ;;  %vm641_vm4 = vcmp.gt.f32.partialorder %v5680_v41, %v5683_v42  ;;  %v5762_v34 = vld [vmem:[%s5557_s22 + $0x20] sm:$0xff] }
  0x76   : > { %1365 = vmatpush.msra.mxu2 %v1154_v8  ;;  %1300 = vmatpush.msra.mxu1 %v1185_v9  ;;  %4953 = vrcp.f32 %v800_v40  ;;  %v753_v63 = vadd.f32 %v5680_v41, %v5652_v29  ;;  %v736_v1 = vsel %vm640_vm2, %v688_v46, %v720_v51  ;;  %v705_v2 = vsub.f32 %v5680_v41, %v5652_v29 }
  0x77   : > { %1430 = vmatpush.msra.mxu3 %v1186_v13  ;;  %1236 = vmatpush.msra.mxu0 %v1151_v16  ;;  %v4948_v39 = vpop.eup %4947  ;;  %v529_v58 = vadd.f32 1e-08, %v513_v48  ;;  %vm673_vm5 = vcmp.gt.f32.partialorder %v5680_v41, %v5691_v52  ;;  %v482_v5 = vmul.f32 %v5677_v38, %v5677_v38  ;;  %v498_v6 = vmul.f32 %v5696_v59, %v5696_v59 }
  0x78   : > { %1366 = vmatpush.msra.mxu2 %v1152_v17  ;;  %1301 = vmatpush.msra.mxu1 %v1183_v22  ;;  %v544_v43 = vmul.f32 0.6931472, %v4948_v39  ;;  %v769_v4 = vsel %vm673_vm5, %v753_v63, %v5652_v29  ;;  %v5725_v8 = vand.u32 2147483647, %v5696_v59  ;;  %v5733_v12 = vmul.f32 0.41421357, %v5699_v62 }
  0x79   : > { %4013 = vmatpush.msrb.mxu0 %v3992_v21  ;;  %1431 = vmatpush.msra.mxu3 %v1184_v27  ;;  %v4950_v49 = vpop.eup %4949  ;;  %4955 = vlog2.f32 %v529_v58  ;;  %v785_v11 = vsel %vm641_vm4, %v5680_v41, %v769_v4  ;;  %v5346_v14 = vmov 0.0   ;;  %v514_v18 = vadd.f32 %v498_v6, %v482_v5  ;;  %v4006_v6 = vld [vmem:[#allocation8 + $0xe8] sm:$0xff] }
  0x7a   : > { %4078 = vmatpush.msrb.mxu1 %v4008_v44  ;;  %v575_v53 = vmul.f32 0.5, %v544_v43  ;;  %v5693_v54 = vmul.f32 %v4950_v49, %v735_v35  ;;  %v4952_v3 = vpop.eup %4951  ;;  %v847_v16 = vsel %vm671_vm1, 0.7853982, %v5346_v14  ;;  %v801_v17 = vmax.f32 %v785_v11, 1e-30 }
  0x7b   : > { %4014 = vmatpush.msrb.mxu0 %v3991_v45  ;;  %v546_v10 = vmul.f32 0.6931472, %v4952_v3  ;;  %v5740_v19 = vmul.f32 2.4142137, %v5699_v62  ;;  %v689_v27 = vsub.f32 0.0, %v5652_v29  ;;  %v721_v61 = vsel %vm673_vm5, %v705_v2, %v5680_v41  ;;  %v5850_v41 = vld [vmem:[%s5565_s28 + $0x28] sm:$0xff] }
  0x7c   : > { %1237 = vmatmul.f32.vlgmr.msra.gmra.mxu0 %v575_v53  ;;  %1367 = vmatmul.f32.vlgmr.msra.gmra.mxu2 %v575_v53  ;;  %v5709_v0 = vmul.f32 %v5693_v54, %v5693_v54  ;;  %v4954_v13 = vpop.eup %4953  ;;  %4957 = vrcp.f32 %v801_v17  ;;  %v530_v28 = vadd.f32 1e-08, %v514_v18  ;;  %v5752_v32 = vsel %vm639_vm0, 1.5707964, %v847_v16 }
  0x7d   : > { %v576_v22 = vmul.f32 0.5, %v546_v10  ;;  %v5742_v23 = vmul.f32 %v4954_v13, %v736_v1  ;;  %4079 = vmatpush.msrb.mxu1 %v4007_v24  ;;  %4015 = vmatpush.msrb.mxu0 %v3990_v26  ;;  %vm674_vm6 = vcmp.gt.f32.partialorder %v5725_v8, %v5733_v12  ;;  %v848_v35 = vsel %vm672_vm3, 0.7853982, %v5346_v14 }
  0x7e   : > { %v895_v9 = vmul.f32 0.080537446, %v5709_v0  ;;  %4959 = vlog2.f32 %v530_v28  ;;  %vm642_vm7 = vcmp.gt.f32.partialorder %v5725_v8, %v5740_v19  ;;  %v754_v55 = vadd.f32 %v5725_v8, %v5699_v62 }
  0x7f   : > { %v4956_v31 = vpop.eup %4955  ;;  %v5757_v29 = vmul.f32 %v5742_v23, %v5742_v23  ;;  %v737_v25 = vsel %vm641_vm4, %v689_v27, %v721_v61  ;;  %v706_v40 = vsub.f32 %v5725_v8, %v5699_v62  ;;  %v483_v44 = vmul.f32 %v5762_v34, %v5762_v34  ;;  %4080 = vmatpush.msrb.mxu1 %v4006_v6 }
  0x80   : > { %v4760_v21 = vadd.f32 -0.13877685, %v895_v9  ;;  %v548_v39 = vmul.f32 0.6931472, %v4956_v31  ;;  %v770_v43 = vsel %vm674_vm6, %v754_v55, %v5699_v62  ;;  %v5788_v45 = vand.u32 2147483647, %v5762_v34 }
  0x81   : > { %v896_v37 = vmul.f32 0.080537446, %v5757_v29  ;;  %v849_v49 = vsel %vm673_vm5, 0.7853982, %v5346_v14  ;;  %v786_v51 = vsel %vm642_vm7, %v5725_v8, %v770_v43  ;;  %v690_v58 = vsub.f32 0.0, %v5699_v62  ;;  %v3989_v9 = vld [vmem:[#allocation8 + $0x60] sm:$0xff] }
  0x82   : > { %v927_v33 = vmul.f32 %v4760_v21, %v5709_v0  ;;  %v4958_v53 = vpop.eup %4957  ;;  %v802_v63 = vmax.f32 %v786_v51, 1e-30  ;;  %v499_v1 = vmul.f32 %v5773_v60, %v5773_v60  ;;  %v5803_v2 = vand.u32 2147483647, %v5773_v60  ;;  %4016 = vmatpush.msrb.mxu0 %v3989_v9  ;;  %v5847_v55 = vld [vmem:[%s5557_s22 + $0x28] sm:$0xff] }
  0x83   : > { %v4761_v48 = vadd.f32 -0.13877685, %v896_v37  ;;  %v577_v52 = vmul.f32 0.5, %v548_v39  ;;  %v5806_v5 = vmul.f32 %v4958_v53, %v737_v25  ;;  %v722_v62 = vsel %vm674_vm6, %v706_v40, %v5725_v8  ;;  %v5988_v8 = vld [vmem:[%s5557_s22 + $0x38] sm:$0xff] }
  0x84   : > { %v943_v36 = vadd.f32 0.19977711, %v927_v33  ;;  %1240 = vmatmul.f32.gmra.mxu0 %v576_v22  ;;  %1370 = vmatmul.f32.gmra.mxu2 %v576_v22  ;;  %v4960_v10 = vpop.eup %4959  ;;  %4961 = vrcp.f32 %v802_v63  ;;  %v515_v11 = vadd.f32 %v499_v1, %v483_v44  ;;  %v5814_v13 = vmul.f32 0.41421357, %v5788_v45 }
  0x85   : > { %v928_v4 = vmul.f32 %v4761_v48, %v5757_v29  ;;  %v5819_v18 = vmul.f32 %v5806_v5, %v5806_v5  ;;  %v5822_v21 = vmul.f32 2.4142137, %v5788_v45  ;;  %v864_v22 = vsel %vm640_vm2, 1.5707964, %v848_v35  ;;  %v3988_v48 = vld [vmem:[#allocation8 + $0x58] sm:$0xff] }
  0x86   : > { %v959_v46 = vmul.f32 %v943_v36, %v5709_v0  ;;  %v550_v24 = vmul.f32 0.6931472, %v4960_v10  ;;  %v531_v26 = vadd.f32 1e-08, %v515_v11  ;;  %vm1103_vm9 = vcmp.lt.f32.partialorder %v5583_v50, 0.0  ;;  %4017 = vmatpush.msrb.mxu0 %v3988_v48 }
  0x87   : > { %v944_v17 = vadd.f32 0.19977711, %v928_v4  ;;  %v897_v61 = vmul.f32 0.080537446, %v5819_v18  ;;  %vm675_vm10 = vcmp.gt.f32.partialorder %v5803_v2, %v5814_v13  ;;  %v5836_v7 = vsel %vm641_vm4, 1.5707964, %v849_v49 }
  0x88   : > { %v4776_v3 = vadd.f32 -0.3333295, %v959_v46  ;;  %v738_v20 = vsel %vm642_vm7, %v690_v58, %v722_v62  ;;  %4963 = vlog2.f32 %v531_v26  ;;  %v755_v28 = vadd.f32 %v5803_v2, %v5788_v45  ;;  %v4005_v46 = vld [vmem:[#allocation8 + $0xe0] sm:$0xff] }
  0x89   : > { %v4762_v35 = vadd.f32 -0.13877685, %v897_v61  ;;  %vm643_vm11 = vcmp.gt.f32.partialorder %v5803_v2, %v5822_v21  ;;  %v578_v36 = vmul.f32 0.5, %v550_v24  ;;  %v500_v39 = vmul.f32 %v5850_v41, %v5850_v41  ;;  %4081 = vmatpush.msrb.mxu1 %v4005_v46 }
  0x8a   : > { %v991_v16 = vmul.f32 %v4776_v3, %v5709_v0  ;;  %v960_v0 = vmul.f32 %v944_v17, %v5757_v29  ;;  %v4962_v42 = vpop.eup %4961  ;;  %v771_v37 = vsel %vm675_vm10, %v755_v28, %v5788_v45  ;;  %v691_v49 = vsub.f32 0.0, %v5788_v45 }
  0x8b   : > { %v929_v43 = vmul.f32 %v4762_v35, %v5819_v18  ;;  %v5864_v44 = vmul.f32 %v4962_v42, %v738_v20  ;;  %v707_v51 = vsub.f32 %v5803_v2, %v5788_v45  ;;  %vm1104_vm13 = vcmp.lt.f32.partialorder %v5599_v57, 0.0 }
  0x8c   : > { %v1007_v27 = vmul.f32 %v991_v16, %v5693_v54  ;;  %1243 = vmatmul.f32.gmra.mxu0 %v577_v52  ;;  %1373 = vmatmul.f32.gmra.mxu2 %v577_v52  ;;  %v4777_v33 = vadd.f32 -0.3333295, %v960_v0  ;;  %v5880_v45 = vand.u32 2147483647, %v5847_v55  ;;  %v5883_v52 = vand.u32 2147483647, %v5850_v41 }
  0x8d   : > { %v945_v63 = vadd.f32 0.19977711, %v929_v43  ;;  %v5877_v1 = vmul.f32 %v5864_v44, %v5864_v44  ;;  %v723_v47 = vsel %vm675_vm10, %v707_v51, %v5803_v2  ;;  %vm1057_vm14 = vcmp.lt.f32.partialorder %v5632_v15, 0.0  ;;  %v5937_v51 = vld [vmem:[%s5565_s28 + $0x30] sm:$0xff] }
  0x8e   : > { %v1023_v31 = vadd.f32 %v1007_v27, %v5693_v54  ;;  %v484_v54 = vmul.f32 %v5847_v55, %v5847_v55  ;;  %v992_v40 = vmul.f32 %v4777_v33, %v5757_v29  ;;  %v4964_v3 = vpop.eup %4963  ;;  %v5897_v61 = vmul.f32 2.4142137, %v5880_v45 }
  0x8f   : > { %v961_v10 = vmul.f32 %v945_v63, %v5819_v18  ;;  %v898_v62 = vmul.f32 0.080537446, %v5877_v1  ;;  %v552_v16 = vmul.f32 0.6931472, %v4964_v3  ;;  %v739_v50 = vsel %vm643_vm11, %v691_v49, %v723_v47 }
  0x90   : > { %v1039_v25 = vadd.f32 %v1023_v31, %v5752_v32  ;;  %v787_v32 = vsel %vm643_vm11, %v5803_v2, %v771_v37  ;;  %v516_v53 = vadd.f32 %v500_v39, %v484_v54  ;;  %v1008_v58 = vmul.f32 %v992_v40, %v5742_v23  ;;  %v3987_v37 = vld [vmem:[#allocation8 + $0x50] sm:$0xff]  ;;  %v6063_v2 = vld [vmem:[%s5565_s28 + $0x40] sm:$0xff] }
  0x91   : > { %v803_v4 = vmax.f32 %v787_v32, 1e-30  ;;  %v4778_v26 = vadd.f32 -0.3333295, %v961_v10  ;;  %v4763_v27 = vadd.f32 -0.13877685, %v898_v62  ;;  %vm644_vm15 = vcmp.gt.f32.partialorder %v5883_v52, %v5897_v61  ;;  %4018 = vmatpush.msrb.mxu0 %v3987_v37 }
  0x92   : > { %v1071_v29 = vsub.f32 3.1415927, %v1039_v25  ;;  %v1024_v9 = vadd.f32 %v1008_v58, %v5742_v23  ;;  %v532_v17 = vadd.f32 1e-08, %v516_v53  ;;  %v579_v0 = vmul.f32 0.5, %v552_v16  ;;  %v5919_v54 = vld [vmem:[%s5557_s22 + $0x30] sm:$0xff] }
  0x93   : > { %4965 = vrcp.f32 %v803_v4  ;;  %v930_v28 = vmul.f32 %v4763_v27, %v5877_v1  ;;  %v5902_v31 = vmul.f32 0.41421357, %v5880_v45  ;;  %v756_v33 = vadd.f32 %v5883_v52, %v5880_v45  ;;  %v6000_v37 = vld [vmem:[%s5565_s28 + $0x38] sm:$0xff] }
  0x94   : > { %v1087_v6 = vsel %vm1055_vm8, %v1071_v29, %v1039_v25  ;;  %1246 = vmatmul.f32.gmra.mxu0 %v578_v36  ;;  %1376 = vmatmul.f32.gmra.mxu2 %v578_v36  ;;  %v1040_v24 = vadd.f32 %v1024_v9, %v864_v22  ;;  %4967 = vlog2.f32 %v532_v17  ;;  %v993_v22 = vmul.f32 %v4778_v26, %v5819_v18  ;;  %v4004_v36 = vld [vmem:[#allocation8 + $0xd8] sm:$0xff] }
  0x95   : > { %v1119_v11 = vsub.f32 0.0, %v1087_v6  ;;  %vm1105_vm0 = vcmp.lt.f32.partialorder %v5657_v30, 0.0  ;;  %v946_v42 = vadd.f32 0.19977711, %v930_v28  ;;  %vm676_vm1 = vcmp.gt.f32.partialorder %v5883_v52, %v5902_v31  ;;  %4082 = vmatpush.msrb.mxu1 %v4004_v36 }
  0x96   : > { %v1072_v20 = vsub.f32 3.1415927, %v1040_v24  ;;  %v1009_v35 = vmul.f32 %v993_v22, %v5806_v5  ;;  %v850_v56 = vsel %vm674_vm6, 0.7853982, %v5346_v14  ;;  %v708_v40 = vsub.f32 %v5883_v52, %v5880_v45 }
  0x97   : > { %v1135_v23 = vsel %vm1103_vm9, %v1119_v11, %v1087_v6  ;;  %v772_v43 = vsel %vm676_vm1, %v756_v33, %v5880_v45  ;;  %v962_v48 = vmul.f32 %v946_v42, %v5877_v1  ;;  %v692_v12 = vsub.f32 0.0, %v5880_v45  ;;  %v3986_v42 = vld [vmem:[#allocation8 + $0x48] sm:$0xff] }
  0x98   : > { %1302 = vmatmul.f32.vlgmr.msra.gmra.mxu1 %v1135_v23  ;;  %1432 = vmatmul.f32.vlgmr.msra.gmra.mxu3 %v1135_v23  ;;  %v1088_v18 = vsel %vm1056_vm12, %v1072_v20, %v1040_v24  ;;  %v1025_v46 = vadd.f32 %v1009_v35, %v5806_v5  ;;  %v788_v29 = vsel %vm644_vm15, %v5883_v52, %v772_v43  ;;  %v5948_v58 = vand.u32 2147483647, %v5919_v54  ;;  %v4003_v35 = vld [vmem:[#allocation8 + $0xd0] sm:$0xff] }
  0x99   : > { %v4966_v39 = vpop.eup %4965  ;;  %v1120_v25 = vsub.f32 0.0, %v1088_v18  ;;  %v485_v5 = vmul.f32 %v5919_v54, %v5919_v54  ;;  %v4779_v3 = vadd.f32 -0.3333295, %v962_v48  ;;  %v724_v45 = vsel %vm676_vm1, %v708_v40, %v5883_v52  ;;  %4083 = vmatpush.msrb.mxu1 %v4003_v35  ;;  %4019 = vmatpush.msrb.mxu0 %v3986_v42 }
  0x9a   : > { %v5933_v49 = vmul.f32 %v4966_v39, %v739_v50  ;;  %v4968_v32 = vpop.eup %4967  ;;  %v1041_v63 = vadd.f32 %v1025_v46, %v5836_v7  ;;  %v804_v6 = vmax.f32 %v788_v29, 1e-30  ;;  %v501_v9 = vmul.f32 %v5937_v51, %v5937_v51 }
  0x9b   : > { %v1136_v53 = vsel %vm1104_vm13, %v1120_v25, %v1088_v18  ;;  %v554_v57 = vmul.f32 0.6931472, %v4968_v32  ;;  %v5962_v10 = vand.u32 2147483647, %v5937_v51  ;;  %v994_v62 = vmul.f32 %v4779_v3, %v5877_v1 }
  0x9c   : > { %1249 = vmatmul.f32.gmra.mxu0 %v579_v0  ;;  %1379 = vmatmul.f32.gmra.mxu2 %v579_v0  ;;  %v5953_v4 = vmul.f32 %v5933_v49, %v5933_v49  ;;  %v1073_v7 = vsub.f32 3.1415927, %v1041_v63  ;;  %4969 = vrcp.f32 %v804_v6  ;;  %v517_v17 = vadd.f32 %v501_v9, %v485_v5  ;;  %v6038_v9 = vld [vmem:[%s5557_s22 + $0x40] sm:$0xff] }
  0x9d   : > { %v580_v16 = vmul.f32 0.5, %v554_v57  ;;  %v5967_v24 = vmul.f32 2.4142137, %v5948_v58  ;;  %v5970_v26 = vmul.f32 0.41421357, %v5948_v58  ;;  %v1010_v1 = vmul.f32 %v994_v62, %v5864_v44 }
  0x9e   : > { %v899_v11 = vmul.f32 0.080537446, %v5953_v4  ;;  %v1089_v27 = vsel %vm1057_vm14, %v1073_v7, %v1041_v63  ;;  %v866_v47 = vsel %vm642_vm7, 1.5707964, %v850_v56  ;;  %v740_v20 = vsel %vm644_vm15, %v692_v12, %v724_v45 }
  0x9f   : > { %v1121_v0 = vsub.f32 0.0, %v1089_v27  ;;  %v533_v22 = vadd.f32 1e-08, %v517_v17  ;;  %vm645_vm2 = vcmp.gt.f32.partialorder %v5962_v10, %v5967_v24  ;;  %v1026_v28 = vadd.f32 %v1010_v1, %v5864_v44 }
  0xa0   : > { %1305 = vmatmul.f32.gmra.mxu1 %v1136_v53  ;;  %1435 = vmatmul.f32.gmra.mxu3 %v1136_v53  ;;  %v4764_v23 = vadd.f32 -0.13877685, %v899_v11  ;;  %vm677_vm3 = vcmp.gt.f32.partialorder %v5962_v10, %v5970_v26  ;;  %v757_v50 = vadd.f32 %v5962_v10, %v5948_v58  ;;  %v486_v44 = vmul.f32 %v5988_v8, %v5988_v8 }
  0xa1   : > { %v1137_v19 = vsel %vm1105_vm0, %v1121_v0, %v1089_v27  ;;  %4971 = vlog2.f32 %v533_v22  ;;  %v1042_v33 = vadd.f32 %v1026_v28, %v866_v47  ;;  %vm1058_vm4 = vcmp.lt.f32.partialorder %v5677_v38, 0.0  ;;  %v4002_v22 = vld [vmem:[#allocation8 + $0xc8] sm:$0xff]  ;;  %v3985_v28 = vld [vmem:[#allocation8 + $0x40] sm:$0xff] }
  0xa2   : > { %v931_v15 = vmul.f32 %v4764_v23, %v5953_v4  ;;  %v709_v36 = vsub.f32 %v5962_v10, %v5948_v58  ;;  %v4970_v30 = vpop.eup %4969  ;;  %vm1106_vm5 = vcmp.lt.f32.partialorder %v5696_v59, 0.0  ;;  %v851_v39 = vsel %vm675_vm10, 0.7853982, %v5346_v14  ;;  %4084 = vmatpush.msrb.mxu1 %v4002_v22  ;;  %4020 = vmatpush.msrb.mxu0 %v3985_v28  ;;  %v4001_v22 = vld [vmem:[#allocation8 + $0xc0] sm:$0xff]  ;;  %v3984_v28 = vld [vmem:[#allocation8 + $0x38] sm:$0xff] }
  0xa3   : > { %v773_v25 = vsel %vm677_vm3, %v757_v50, %v5948_v58  ;;  %v502_v56 = vmul.f32 %v6000_v37, %v6000_v37  ;;  %v1074_v40 = vsub.f32 3.1415927, %v1042_v33  ;;  %v6014_v46 = vmul.f32 %v4970_v30, %v740_v20 }
  0xa4   : > { %1252 = vmatmul.f32.gmra.mxu0 %v580_v16  ;;  %1382 = vmatmul.f32.gmra.mxu2 %v580_v16  ;;  %v947_v18 = vadd.f32 0.19977711, %v931_v15  ;;  %v789_v13 = vsel %vm645_vm2, %v5962_v10, %v773_v25  ;;  %v693_v48 = vsub.f32 0.0, %v5948_v58  ;;  %v6022_v53 = vand.u32 2147483647, %v5988_v8 }
  0xa5   : > { %v805_v12 = vmax.f32 %v789_v13, 1e-30  ;;  %v518_v32 = vadd.f32 %v502_v56, %v486_v44  ;;  %v1090_v29 = vsel %vm1058_vm4, %v1074_v40, %v1042_v33  ;;  %v6028_v63 = vmul.f32 %v6014_v46, %v6014_v46  ;;  %4085 = vmatpush.msrb.mxu1 %v4001_v22  ;;  %4021 = vmatpush.msrb.mxu0 %v3984_v28 }
  0xa6   : > { %v963_v43 = vmul.f32 %v947_v18, %v5953_v4  ;;  %v725_v3 = vsel %vm677_vm3, %v709_v36, %v5962_v10  ;;  %v1122_v58 = vsub.f32 0.0, %v1090_v29  ;;  %v6035_v6 = vand.u32 2147483647, %v6000_v37  ;;  %v6202_v10 = vld [vmem:[%s5557_s22 + $0x50] sm:$0xff] }
  0xa7   : > { %v4972_v57 = vpop.eup %4971  ;;  %4973 = vrcp.f32 %v805_v12  ;;  %v534_v45 = vadd.f32 1e-08, %v518_v32  ;;  %v900_v7 = vmul.f32 0.080537446, %v6028_v63  ;;  %v6043_v11 = vmul.f32 2.4142137, %v6022_v53 }
  0xa8   : > { %1308 = vmatmul.f32.gmra.mxu1 %v1137_v19  ;;  %1438 = vmatmul.f32.gmra.mxu3 %v1137_v19  ;;  %v4780_v5 = vadd.f32 -0.3333295, %v963_v43  ;;  %v556_v62 = vmul.f32 0.6931472, %v4972_v57  ;;  %v1138_v16 = vsel %vm1106_vm5, %v1122_v58, %v1090_v29  ;;  %v867_v17 = vsel %vm643_vm11, 1.5707964, %v851_v39 }
  0xa9   : > { %4975 = vlog2.f32 %v534_v45  ;;  %v6051_v27 = vmul.f32 0.41421357, %v6022_v53  ;;  %vm1059_vm6 = vcmp.lt.f32.partialorder %v5762_v34, 0.0  ;;  %v741_v23 = vsel %vm645_vm2, %v693_v48, %v725_v3 }
  0xaa   : > { %v995_v38 = vmul.f32 %v4780_v5, %v5953_v4  ;;  %v4765_v4 = vadd.f32 -0.13877685, %v900_v7  ;;  %v581_v1 = vmul.f32 0.5, %v556_v62  ;;  %v758_v59 = vadd.f32 %v6035_v6, %v6022_v53  ;;  %v6130_v62 = vld [vmem:[%s5557_s22 + $0x48] sm:$0xff] }
  0xab   : > { %vm678_vm7 = vcmp.gt.f32.partialorder %v6035_v6, %v6051_v27  ;;  %v6066_v21 = vand.u32 2147483647, %v6038_v9  ;;  %vm1107_vm8 = vcmp.lt.f32.partialorder %v5773_v60, 0.0  ;;  %vm646_vm9 = vcmp.gt.f32.partialorder %v6035_v6, %v6043_v11 }
  0xac   : > { %v1011_v47 = vmul.f32 %v995_v38, %v5933_v49  ;;  %v932_v20 = vmul.f32 %v4765_v4, %v6028_v63  ;;  %v852_v19 = vsel %vm676_vm1, 0.7853982, %v5346_v14  ;;  %1255 = vmatmul.f32.gmra.mxu0 %v581_v1  ;;  %1385 = vmatmul.f32.gmra.mxu2 %v581_v1  ;;  %v774_v50 = vsel %vm678_vm7, %v758_v59, %v6022_v53 }
  0xad   : > { %v4974_v15 = vpop.eup %4973  ;;  %v487_v44 = vmul.f32 %v6038_v9, %v6038_v9  ;;  %v6088_v31 = vand.u32 2147483647, %v6063_v2  ;;  %v790_v36 = vsel %vm646_vm9, %v6035_v6, %v774_v50  ;;  %v503_v30 = vmul.f32 %v6063_v2, %v6063_v2 }
  0xae   : > { %v1027_v0 = vadd.f32 %v1011_v47, %v5933_v49  ;;  %v710_v49 = vsub.f32 %v6035_v6, %v6022_v53  ;;  %v948_v18 = vadd.f32 0.19977711, %v932_v20  ;;  %v6085_v35 = vmul.f32 %v4974_v15, %v741_v23 }
  0xaf   : > { %v4976_v42 = vpop.eup %4975  ;;  %v6097_v39 = vmul.f32 2.4142137, %v6066_v21  ;;  %v6100_v25 = vmul.f32 0.41421357, %v6066_v21  ;;  %v868_v48 = vsel %vm644_vm15, 1.5707964, %v852_v19  ;;  %v519_v29 = vadd.f32 %v503_v30, %v487_v44 }
  0xb0   : > { %1311 = vmatmul.f32.gmra.mxu1 %v1138_v16  ;;  %1441 = vmatmul.f32.gmra.mxu3 %v1138_v16  ;;  %v1043_v33 = vadd.f32 %v1027_v0, %v867_v17  ;;  %v964_v40 = vmul.f32 %v948_v18, %v6028_v63  ;;  %v6105_v43 = vmul.f32 %v6085_v35, %v6085_v35  ;;  %v558_v13 = vmul.f32 0.6931472, %v4976_v42  ;;  %v6136_v17 = vld [vmem:[%s5565_s28 + $0x48] sm:$0xff] }
  0xb1   : > { %v694_v12 = vsub.f32 0.0, %v6022_v53  ;;  %v806_v32 = vmax.f32 %v790_v36, 1e-30  ;;  %v726_v38 = vsel %vm678_vm7, %v710_v49, %v6035_v6  ;;  %v535_v52 = vadd.f32 1e-08, %v519_v29 }
  0xb2   : > { %v1075_v56 = vsub.f32 3.1415927, %v1043_v33  ;;  %v4781_v3 = vadd.f32 -0.3333295, %v964_v40  ;;  %v901_v57 = vmul.f32 0.080537446, %v6105_v43  ;;  %vm647_vm10 = vcmp.gt.f32.partialorder %v6088_v31, %v6097_v39 }
  0xb3   : > { %v582_v58 = vmul.f32 0.5, %v558_v13  ;;  %4977 = vrcp.f32 %v806_v32  ;;  %vm679_vm11 = vcmp.gt.f32.partialorder %v6088_v31, %v6100_v25  ;;  %v711_v7 = vsub.f32 %v6088_v31, %v6066_v21  ;;  %v6336_v39 = vld [vmem:[%s5557_s22 + $0x60] sm:$0xff] }
  0xb4   : > { %v1091_v5 = vsel %vm1059_vm6, %v1075_v56, %v1043_v33  ;;  %v996_v61 = vmul.f32 %v4781_v3, %v6028_v63  ;;  %v4766_v53 = vadd.f32 -0.13877685, %v901_v57  ;;  %4979 = vlog2.f32 %v535_v52 }
  0xb5   : > { %v1123_v45 = vsub.f32 0.0, %v1091_v5  ;;  %1258 = vmatmul.f32.gmra.mxu0 %v582_v58  ;;  %1388 = vmatmul.f32.gmra.mxu2 %v582_v58  ;;  %v759_v63 = vadd.f32 %v6088_v31, %v6066_v21  ;;  %vm1060_vm12 = vcmp.lt.f32.partialorder %v5847_v55, 0.0  ;;  %v488_v47 = vmul.f32 %v6130_v62, %v6130_v62 }
  0xb6   : > { %v1012_v16 = vmul.f32 %v996_v61, %v6014_v46  ;;  %v933_v60 = vmul.f32 %v4766_v53, %v6105_v43  ;;  %v853_v4 = vsel %vm677_vm3, 0.7853982, %v5346_v14  ;;  %v742_v1 = vsel %vm646_vm9, %v694_v12, %v726_v38  ;;  %v4000_v61 = vld [vmem:[#allocation8 + $0xb8] sm:$0xff]  ;;  %v3983_v53 = vld [vmem:[#allocation8 + $0x30] sm:$0xff] }
  0xb7   : > { %v1139_v34 = vsel %vm1107_vm8, %v1123_v45, %v1091_v5  ;;  %v775_v23 = vsel %vm679_vm11, %v759_v63, %v6066_v21  ;;  %v504_v59 = vmul.f32 %v6136_v17, %v6136_v17  ;;  %v695_v26 = vsub.f32 0.0, %v6066_v21  ;;  %4086 = vmatpush.msrb.mxu1 %v4000_v61  ;;  %4022 = vmatpush.msrb.mxu0 %v3983_v53  ;;  %v3982_v61 = vld [vmem:[#allocation8 + $0x28] sm:$0xff] }
  0xb8   : > { %1314 = vmatmul.f32.gmra.mxu1 %v1139_v34  ;;  %1444 = vmatmul.f32.gmra.mxu3 %v1139_v34  ;;  %v1028_v0 = vadd.f32 %v1012_v16, %v6014_v46  ;;  %v949_v20 = vadd.f32 0.19977711, %v933_v60  ;;  %v791_v15 = vsel %vm647_vm10, %v6088_v31, %v775_v23  ;;  %v727_v49 = vsel %vm679_vm11, %v711_v7, %v6088_v31 }
  0xb9   : > { %v4978_v19 = vpop.eup %4977  ;;  %v807_v50 = vmax.f32 %v791_v15, 1e-30  ;;  %v520_v46 = vadd.f32 %v504_v59, %v488_v47  ;;  %v6164_v44 = vand.u32 2147483647, %v6130_v62  ;;  %v6170_v42 = vand.u32 2147483647, %v6136_v17  ;;  %4023 = vmatpush.msrb.mxu0 %v3982_v61 }
  0xba   : > { %v1044_v33 = vadd.f32 %v1028_v0, %v868_v48  ;;  %v965_v21 = vmul.f32 %v949_v20, %v6105_v43  ;;  %v6167_v18 = vmul.f32 %v4978_v19, %v742_v1  ;;  %v4980_v36 = vpop.eup %4979  ;;  %vm1108_vm13 = vcmp.lt.f32.partialorder %v5850_v41, 0.0 }
  0xbb   : > { %4981 = vrcp.f32 %v807_v50  ;;  %v536_v30 = vadd.f32 1e-08, %v520_v46  ;;  %v6173_v56 = vmul.f32 2.4142137, %v6164_v44  ;;  %v6176_v40 = vmul.f32 0.41421357, %v6164_v44 }
  0xbc   : > { %v1076_v13 = vsub.f32 3.1415927, %v1044_v33  ;;  %v4782_v12 = vadd.f32 -0.3333295, %v965_v21  ;;  %v6180_v48 = vmul.f32 %v6167_v18, %v6167_v18  ;;  %v560_v32 = vmul.f32 0.6931472, %v4980_v36 }
  0xbd   : > { %4983 = vlog2.f32 %v536_v30  ;;  %vm680_vm14 = vcmp.gt.f32.partialorder %v6170_v42, %v6176_v40  ;;  %v869_v45 = vsel %vm645_vm2, 1.5707964, %v853_v4  ;;  %v743_v38 = vsel %vm647_vm10, %v695_v26, %v727_v49  ;;  %v6222_v4 = vld [vmem:[%s5565_s28 + $0x50] sm:$0xff] }
  0xbe   : > { %v1092_v29 = vsel %vm1060_vm12, %v1076_v13, %v1044_v33  ;;  %v997_v5 = vmul.f32 %v4782_v12, %v6105_v43  ;;  %v902_v3 = vmul.f32 0.080537446, %v6180_v48  ;;  %v583_v57 = vmul.f32 0.5, %v560_v32 }
  0xbf   : > { %v1124_v58 = vsub.f32 0.0, %v1092_v29  ;;  %v760_v52 = vadd.f32 %v6170_v42, %v6164_v44  ;;  %vm1061_vm15 = vcmp.lt.f32.partialorder %v5919_v54, 0.0  ;;  %vm648_vm0 = vcmp.gt.f32.partialorder %v6170_v42, %v6173_v56 }
  0xc0   : > { %v1013_v55 = vmul.f32 %v997_v5, %v6085_v35  ;;  %v4767_v43 = vadd.f32 -0.13877685, %v902_v3  ;;  %1261 = vmatmul.f32.gmra.mxu0 %v583_v57  ;;  %1391 = vmatmul.f32.gmra.mxu2 %v583_v57  ;;  %v854_v7 = vsel %vm678_vm7, 0.7853982, %v5346_v14  ;;  %v712_v63 = vsub.f32 %v6170_v42, %v6164_v44 }
  0xc1   : > { %v4982_v24 = vpop.eup %4981  ;;  %v1140_v34 = vsel %vm1108_vm13, %v1124_v58, %v1092_v29  ;;  %v776_v16 = vsel %vm680_vm14, %v760_v52, %v6164_v44  ;;  %v696_v27 = vsub.f32 0.0, %v6164_v44  ;;  %v489_v59 = vmul.f32 %v6202_v10, %v6202_v10 }
  0xc2   : > { %1317 = vmatmul.f32.gmra.mxu1 %v1140_v34  ;;  %1447 = vmatmul.f32.gmra.mxu3 %v1140_v34  ;;  %v1029_v41 = vadd.f32 %v1013_v55, %v6085_v35  ;;  %v934_v60 = vmul.f32 %v4767_v43, %v6180_v48  ;;  %v6218_v47 = vmul.f32 %v4982_v24, %v743_v38  ;;  %v6233_v0 = vand.u32 2147483647, %v6202_v10  ;;  %v3999_v43 = vld [vmem:[#allocation8 + $0xb0] sm:$0xff] }
  0xc3   : > { %v4984_v1 = vpop.eup %4983  ;;  %v792_v23 = vsel %vm648_vm0, %v6170_v42, %v776_v16  ;;  %v505_v35 = vmul.f32 %v6222_v4, %v6222_v4  ;;  %v728_v15 = vsel %vm680_vm14, %v712_v63, %v6170_v42  ;;  %v6244_v50 = vand.u32 2147483647, %v6222_v4  ;;  %4087 = vmatpush.msrb.mxu1 %v3999_v43 }
  0xc4   : > { %v1045_v20 = vadd.f32 %v1029_v41, %v869_v45  ;;  %v950_v22 = vadd.f32 0.19977711, %v934_v60  ;;  %v6237_v28 = vmul.f32 %v6218_v47, %v6218_v47  ;;  %v562_v26 = vmul.f32 0.6931472, %v4984_v1  ;;  %v6273_v45 = vld [vmem:[%s5565_s28 + $0x58] sm:$0xff] }
  0xc5   : > { %v808_v19 = vmax.f32 %v792_v23, 1e-30  ;;  %v521_v49 = vadd.f32 %v505_v35, %v489_v59  ;;  %v6249_v30 = vmul.f32 2.4142137, %v6233_v0  ;;  %v6252_v13 = vmul.f32 0.41421357, %v6233_v0 }
  0xc6   : > { %v1077_v46 = vsub.f32 3.1415927, %v1045_v20  ;;  %v966_v44 = vmul.f32 %v950_v22, %v6180_v48  ;;  %v903_v33 = vmul.f32 0.080537446, %v6237_v28  ;;  %v584_v21 = vmul.f32 0.5, %v562_v26 }
  0xc7   : > { %4985 = vrcp.f32 %v808_v19  ;;  %v537_v36 = vadd.f32 1e-08, %v521_v49  ;;  %vm1109_vm1 = vcmp.lt.f32.partialorder %v5937_v51, 0.0  ;;  %v870_v3 = vsel %vm646_vm9, 1.5707964, %v854_v7  ;;  %v6270_v51 = vld [vmem:[%s5557_s22 + $0x58] sm:$0xff] }
  0xc8   : > { %v1093_v12 = vsel %vm1061_vm15, %v1077_v46, %v1045_v20  ;;  %v4783_v32 = vadd.f32 -0.3333295, %v966_v44  ;;  %v4768_v29 = vadd.f32 -0.13877685, %v903_v33  ;;  %1264 = vmatmul.f32.gmra.mxu0 %v584_v21  ;;  %1394 = vmatmul.f32.gmra.mxu2 %v584_v21  ;;  %v744_v57 = vsel %vm648_vm0, %v696_v27, %v728_v15 }
  0xc9   : > { %v1125_v5 = vsub.f32 0.0, %v1093_v12  ;;  %4987 = vlog2.f32 %v537_v36  ;;  %vm649_vm2 = vcmp.gt.f32.partialorder %v6244_v50, %v6249_v30  ;;  %vm681_vm3 = vcmp.gt.f32.partialorder %v6244_v50, %v6252_v13 }
  0xca   : > { %v998_v54 = vmul.f32 %v4783_v32, %v6180_v48  ;;  %v935_v58 = vmul.f32 %v4768_v29, %v6237_v28  ;;  %v761_v11 = vadd.f32 %v6244_v50, %v6233_v0  ;;  %v490_v38 = vmul.f32 %v6270_v51, %v6270_v51 }
  0xcb   : > { %v1141_v6 = vsel %vm1109_vm1, %v1125_v5, %v1093_v12  ;;  %v506_v48 = vmul.f32 %v6273_v45, %v6273_v45  ;;  %vm1062_vm4 = vcmp.lt.f32.partialorder %v5988_v8, 0.0  ;;  %v855_v24 = vsel %vm679_vm11, 0.7853982, %v5346_v14 }
  0xcc   : > { %1320 = vmatmul.f32.gmra.mxu1 %v1141_v6  ;;  %1450 = vmatmul.f32.gmra.mxu3 %v1141_v6  ;;  %v1014_v52 = vmul.f32 %v998_v54, %v6167_v18  ;;  %v951_v55 = vadd.f32 0.19977711, %v935_v58  ;;  %v713_v34 = vsub.f32 %v6244_v50, %v6233_v0  ;;  %v777_v7 = vsel %vm681_vm3, %v761_v11, %v6233_v0  ;;  %v6350_v58 = vld [vmem:[%s5565_s28 + $0x60] sm:$0xff] }
  0xcd   : > { %v4986_v53 = vpop.eup %4985  ;;  %v522_v63 = vadd.f32 %v506_v48, %v490_v38  ;;  %v793_v25 = vsel %vm649_vm2, %v6244_v50, %v777_v7  ;;  %vm1110_vm5 = vcmp.lt.f32.partialorder %v6000_v37, 0.0  ;;  %v697_v1 = vsub.f32 0.0, %v6233_v0 }
  0xce   : > { %v1030_v16 = vadd.f32 %v1014_v52, %v6167_v18  ;;  %v967_v41 = vmul.f32 %v951_v55, %v6237_v28  ;;  %v6295_v60 = vmul.f32 %v4986_v53, %v744_v57  ;;  %v809_v23 = vmax.f32 %v793_v25, 1e-30  ;;  %v3981_v57 = vld [vmem:[#allocation8 + $0x20] sm:$0xff] }
  0xcf   : > { %v4988_v27 = vpop.eup %4987  ;;  %v538_v59 = vadd.f32 1e-08, %v522_v63  ;;  %v729_v26 = vsel %vm681_vm3, %v713_v34, %v6244_v50  ;;  %v6312_v15 = vand.u32 2147483647, %v6270_v51  ;;  %v6315_v0 = vand.u32 2147483647, %v6273_v45  ;;  %4024 = vmatpush.msrb.mxu0 %v3981_v57 }
  0xd0   : > { %v1046_v35 = vadd.f32 %v1030_v16, %v870_v3  ;;  %v4784_v20 = vadd.f32 -0.3333295, %v967_v41  ;;  %v6305_v18 = vmul.f32 %v6295_v60, %v6295_v60  ;;  %v564_v22 = vmul.f32 0.6931472, %v4988_v27  ;;  %v3998_v3 = vld [vmem:[#allocation8 + $0xa8] sm:$0xff] }
  0xd1   : > { %4989 = vrcp.f32 %v809_v23  ;;  %v871_v33 = vsel %vm647_vm10, 1.5707964, %v855_v24  ;;  %v6323_v21 = vmul.f32 2.4142137, %v6312_v15  ;;  %v6326_v36 = vmul.f32 0.41421357, %v6312_v15  ;;  %4088 = vmatpush.msrb.mxu1 %v3998_v3 }
  0xd2   : > { %v1078_v19 = vsub.f32 3.1415927, %v1046_v35  ;;  %v999_v49 = vmul.f32 %v4784_v20, %v6237_v28  ;;  %v904_v46 = vmul.f32 0.080537446, %v6305_v18  ;;  %v585_v44 = vmul.f32 0.5, %v564_v22 }
  0xd3   : > { %4991 = vlog2.f32 %v538_v59  ;;  %v856_v28 = vsel %vm680_vm14, 0.7853982, %v5346_v14  ;;  %vm1063_vm6 = vcmp.lt.f32.partialorder %v6038_v9, 0.0  ;;  %vm1111_vm7 = vcmp.lt.f32.partialorder %v6063_v2, 0.0  ;;  %v6412_v2 = vld [vmem:[%s5557_s22 + $0x68] sm:$0xff] }
  0xd4   : > { %v1094_v12 = vsel %vm1062_vm4, %v1078_v19, %v1046_v35  ;;  %v1015_v32 = vmul.f32 %v999_v49, %v6218_v47  ;;  %v4769_v31 = vadd.f32 -0.13877685, %v904_v46  ;;  %1267 = vmatmul.f32.gmra.mxu0 %v585_v44  ;;  %1397 = vmatmul.f32.gmra.mxu2 %v585_v44  ;;  %v745_v8 = vsel %vm649_vm2, %v697_v1, %v729_v26 }
  0xd5   : > { %v1126_v29 = vsub.f32 0.0, %v1094_v12  ;;  %vm682_vm8 = vcmp.gt.f32.partialorder %v6315_v0, %v6326_v36  ;;  %v762_v54 = vadd.f32 %v6315_v0, %v6312_v15  ;;  %vm650_vm9 = vcmp.gt.f32.partialorder %v6315_v0, %v6323_v21 }
  0xd6   : > { %v1031_v5 = vadd.f32 %v1015_v32, %v6218_v47  ;;  %v936_v40 = vmul.f32 %v4769_v31, %v6305_v18  ;;  %v872_v47 = vsel %vm648_vm0, 1.5707964, %v856_v28  ;;  %v6360_v38 = vand.u32 2147483647, %v6336_v39 }
  0xd7   : > { %v4990_v6 = vpop.eup %4989  ;;  %v1142_v11 = vsel %vm1110_vm5, %v1126_v29, %v1094_v12  ;;  %v714_v37 = vsub.f32 %v6315_v0, %v6312_v15  ;;  %v778_v42 = vsel %vm682_vm8, %v762_v54, %v6312_v15  ;;  %v491_v56 = vmul.f32 %v6336_v39, %v6336_v39  ;;  %v6415_v12 = vld [vmem:[%s5565_s28 + $0x68] sm:$0xff] }
  0xd8   : > { %1323 = vmatmul.f32.gmra.mxu1 %v1142_v11  ;;  %1453 = vmatmul.f32.gmra.mxu3 %v1142_v11  ;;  %v1047_v48 = vadd.f32 %v1031_v5, %v871_v33  ;;  %v952_v52 = vadd.f32 0.19977711, %v936_v40  ;;  %v6362_v55 = vmul.f32 %v4990_v6, %v745_v8  ;;  %v507_v61 = vmul.f32 %v6350_v58, %v6350_v58 }
  0xd9   : > { %v4992_v43 = vpop.eup %4991  ;;  %v6375_v53 = vand.u32 2147483647, %v6350_v58  ;;  %v794_v16 = vsel %vm650_vm9, %v6315_v0, %v778_v42  ;;  %v6387_v25 = vmul.f32 2.4142137, %v6360_v38  ;;  %v6390_v27 = vmul.f32 0.41421357, %v6360_v38 }
  0xda   : > { %v1079_v24 = vsub.f32 3.1415927, %v1047_v48  ;;  %v968_v34 = vmul.f32 %v952_v52, %v6305_v18  ;;  %v6380_v7 = vmul.f32 %v6362_v55, %v6362_v55  ;;  %v566_v63 = vmul.f32 0.6931472, %v4992_v43  ;;  %v3997_v52 = vld [vmem:[#allocation8 + $0xa0] sm:$0xff] }
  0xdb   : > { %v523_v41 = vadd.f32 %v507_v61, %v491_v56  ;;  %v810_v22 = vmax.f32 %v794_v16, 1e-30  ;;  %v698_v46 = vsub.f32 0.0, %v6312_v15  ;;  %vm683_vm10 = vcmp.gt.f32.partialorder %v6375_v53, %v6390_v27  ;;  %4089 = vmatpush.msrb.mxu1 %v3997_v52 }
  0xdc   : > { %v1095_v1 = vsel %vm1063_vm6, %v1079_v24, %v1047_v48  ;;  %v4785_v23 = vadd.f32 -0.3333295, %v968_v34  ;;  %v905_v59 = vmul.f32 0.080537446, %v6380_v7  ;;  %v586_v35 = vmul.f32 0.5, %v566_v63 }
  0xdd   : > { %v1127_v20 = vsub.f32 0.0, %v1095_v1  ;;  %v539_v26 = vadd.f32 1e-08, %v523_v41  ;;  %4993 = vrcp.f32 %v810_v22  ;;  %vm651_vm11 = vcmp.gt.f32.partialorder %v6375_v53, %v6387_v25  ;;  %v3977_v25 = vld [vmem:[#allocation8] sm:$0xff] }
  0xde   : > { %v1000_v19 = vmul.f32 %v4785_v23, %v6305_v18  ;;  %v4770_v49 = vadd.f32 -0.13877685, %v905_v59  ;;  %1270 = vmatmul.f32.gmra.mxu0 %v586_v35  ;;  %1400 = vmatmul.f32.gmra.mxu2 %v586_v35  ;;  %v763_v18 = vadd.f32 %v6375_v53, %v6360_v38  ;;  %v730_v15 = vsel %vm682_vm8, %v714_v37, %v6315_v0  ;;  %v3980_v37 = vld [vmem:[#allocation8 + $0x18] sm:$0xff] }
  0xdf   : > { %v1143_v9 = vsel %vm1111_vm7, %v1127_v20, %v1095_v1  ;;  %4995 = vlog2.f32 %v539_v26  ;;  %v715_v32 = vsub.f32 %v6375_v53, %v6360_v38  ;;  %v492_v31 = vmul.f32 %v6412_v2, %v6412_v2  ;;  %4025 = vmatpush.msrb.mxu0 %v3980_v37  ;;  %v6472_v20 = vld [vmem:[%s5557_s22 + $0x70] sm:$0xff] }
  0xe0   : > { %1326 = vmatmul.f32.gmra.mxu1 %v1143_v9  ;;  %1456 = vmatmul.f32.gmra.mxu3 %v1143_v9  ;;  %v1016_v44 = vmul.f32 %v1000_v19, %v6295_v60  ;;  %v937_v33 = vmul.f32 %v4770_v49, %v6380_v7  ;;  %v779_v28 = vsel %vm683_vm10, %v763_v18, %v6360_v38  ;;  %vm1064_vm12 = vcmp.lt.f32.partialorder %v6130_v62, 0.0 }
  0xe1   : > { %v508_v29 = vmul.f32 %v6415_v12, %v6415_v12  ;;  %v795_v40 = vsel %vm651_vm11, %v6375_v53, %v779_v28  ;;  %v746_v3 = vsel %vm650_vm9, %v698_v46, %v730_v15  ;;  %v6437_v6 = vand.u32 2147483647, %v6412_v2 }
  0xe2   : > { %v1032_v8 = vadd.f32 %v1016_v44, %v6295_v60  ;;  %v953_v5 = vadd.f32 0.19977711, %v937_v33  ;;  %v811_v57 = vmax.f32 %v795_v40, 1e-30  ;;  %vm1112_vm13 = vcmp.lt.f32.partialorder %v6136_v17, 0.0  ;;  %v3996_v33 = vld [vmem:[#allocation8 + $0x98] sm:$0xff] }
  0xe3   : > { %v524_v54 = vadd.f32 %v508_v29, %v492_v31  ;;  %v857_v60 = vsel %vm681_vm3, 0.7853982, %v5346_v14  ;;  %v4994_v43 = vpop.eup %4993  ;;  %v699_v42 = vsub.f32 0.0, %v6360_v38  ;;  %v6453_v63 = vand.u32 2147483647, %v6415_v12  ;;  %v3979_v17 = vld [vmem:[#allocation8 + $0x10] sm:$0xff]  ;;  %4090 = vmatpush.msrb.mxu1 %v3996_v33 }
  0xe4   : > { %v1048_v11 = vadd.f32 %v1032_v8, %v872_v47  ;;  %v969_v48 = vmul.f32 %v953_v5, %v6380_v7  ;;  %v731_v47 = vsel %vm683_vm10, %v715_v32, %v6375_v53  ;;  %4997 = vrcp.f32 %v811_v57  ;;  %v6501_v32 = vld [vmem:[%s5565_s28 + $0x70] sm:$0xff]  ;;  %4026 = vmatpush.msrb.mxu0 %v3979_v17  ;;  %v3978_v33 = vld [vmem:[#allocation8 + $0x8] sm:$0xff] }
  0xe5   : > { %v540_v56 = vadd.f32 1e-08, %v524_v54  ;;  %v4996_v61 = vpop.eup %4995  ;;  %v6450_v34 = vmul.f32 %v4994_v43, %v746_v3  ;;  %v6456_v38 = vmul.f32 2.4142137, %v6437_v6  ;;  %v6459_v41 = vmul.f32 0.41421357, %v6437_v6 }
  0xe6   : > { %v1080_v13 = vsub.f32 3.1415927, %v1048_v11  ;;  %v4786_v24 = vadd.f32 -0.3333295, %v969_v48  ;;  %v568_v16 = vmul.f32 0.6931472, %v4996_v61  ;;  %v747_v50 = vsel %vm651_vm11, %v699_v42, %v731_v47  ;;  %4027 = vmatpush.msrb.mxu0 %v3978_v33 }
  0xe7   : > { %4999 = vlog2.f32 %v540_v56  ;;  %v873_v23 = vsel %vm649_vm2, 1.5707964, %v857_v60  ;;  %v6469_v35 = vmul.f32 %v6450_v34, %v6450_v34  ;;  %v858_v26 = vsel %vm682_vm8, 0.7853982, %v5346_v14  ;;  %v3994_v53 = vld [vmem:[#allocation8 + $0x88] sm:$0xff] }
  0xe8   : > { %v1096_v1 = vsel %vm1064_vm12, %v1080_v13, %v1048_v11  ;;  %v1001_v59 = vmul.f32 %v4786_v24, %v6380_v7  ;;  %v587_v62 = vmul.f32 0.5, %v568_v16  ;;  %vm684_vm14 = vcmp.gt.f32.partialorder %v6453_v63, %v6459_v41  ;;  %4028 = vmatpush.msrb.mxu0 %v3977_v25 }
  0xe9   : > { %v1128_v22 = vsub.f32 0.0, %v1096_v1  ;;  %v906_v7 = vmul.f32 0.080537446, %v6469_v35  ;;  %v764_v19 = vadd.f32 %v6453_v63, %v6437_v6  ;;  %vm1065_vm15 = vcmp.lt.f32.partialorder %v6202_v10, 0.0  ;;  %v6545_v10 = vld [vmem:[%s5557_s22 + $0x78] sm:$0xff] }
  0xea   : > { %v1017_v30 = vmul.f32 %v1001_v59, %v6362_v55  ;;  %v4998_v49 = vpop.eup %4997  ;;  %1273 = vmatmul.f32.gmra.mxu0 %v587_v62  ;;  %1403 = vmatmul.f32.gmra.mxu2 %v587_v62  ;;  %vm652_vm0 = vcmp.gt.f32.partialorder %v6453_v63, %v6456_v38  ;;  %v6493_v46 = vand.u32 2147483647, %v6472_v20  ;;  %v716_v15 = vsub.f32 %v6453_v63, %v6437_v6  ;;  %v6663_v38 = vld [vmem:[%s10161_s3] sm:$0x3] }
  0xeb   : > { %v1144_v36 = vsel %vm1112_vm13, %v1128_v22, %v1096_v1  ;;  %v4771_v18 = vadd.f32 -0.13877685, %v906_v7  ;;  %v6496_v44 = vmul.f32 %v4998_v49, %v747_v50  ;;  %v6506_v31 = vsel %vm650_vm9, 1.5707964, %v858_v26 }
  0xec   : > { %1329 = vmatmul.f32.gmra.mxu1 %v1144_v36  ;;  %1459 = vmatmul.f32.gmra.mxu3 %v1144_v36  ;;  %v1033_v9 = vadd.f32 %v1017_v30, %v6362_v55  ;;  %v780_v55 = vsel %vm684_vm14, %v764_v19, %v6437_v6  ;;  %v493_v29 = vmul.f32 %v6472_v20, %v6472_v20  ;;  %v6526_v54 = vand.u32 2147483647, %v6501_v32  ;;  %v6560_v30 = vld [vmem:[%s5565_s28 + $0x78] sm:$0xff] }
  0xed   : > { %v5000_v28 = vpop.eup %4999  ;;  %v509_v8 = vmul.f32 %v6501_v32, %v6501_v32  ;;  %v938_v40 = vmul.f32 %v4771_v18, %v6469_v35  ;;  %v6519_v0 = vmul.f32 %v6496_v44, %v6496_v44  ;;  %v796_v3 = vsel %vm652_vm0, %v6453_v63, %v780_v55  ;;  %v3995_v18 = vld [vmem:[#allocation8 + $0x90] sm:$0xff] }
  0xee   : > { %v1049_v5 = vadd.f32 %v1033_v9, %v873_v23  ;;  %v570_v21 = vmul.f32 0.6931472, %v5000_v28  ;;  %v6529_v11 = vmul.f32 2.4142137, %v6493_v46  ;;  %vm1113_vm1 = vcmp.lt.f32.partialorder %v6222_v4, 0.0  ;;  %4091 = vmatpush.msrb.mxu1 %v3995_v18 }
  0xef   : > { %v525_v57 = vadd.f32 %v509_v8, %v493_v29  ;;  %v954_v48 = vadd.f32 0.19977711, %v938_v40  ;;  %v907_v52 = vmul.f32 0.080537446, %v6519_v0  ;;  %v812_v43 = vmax.f32 %v796_v3, 1e-30 }
  0xf0   : > { %v1081_v60 = vsub.f32 3.1415927, %v1049_v5  ;;  %v588_v37 = vmul.f32 0.5, %v570_v21  ;;  %v700_v13 = vsub.f32 0.0, %v6437_v6  ;;  %v732_v16 = vsel %vm684_vm14, %v716_v15, %v6453_v63  ;;  %4092 = vmatpush.msrb.mxu1 %v3994_v53 }
  0xf1   : > { %v541_v42 = vadd.f32 1e-08, %v525_v57  ;;  %v970_v56 = vmul.f32 %v954_v48, %v6469_v35  ;;  %v4772_v61 = vadd.f32 -0.13877685, %v907_v52  ;;  %5001 = vrcp.f32 %v812_v43 }
  0xf2   : > { %v1097_v47 = vsel %vm1065_vm15, %v1081_v60, %v1049_v5  ;;  %1276 = vmatmul.f32.gmra.mxu0 %v588_v37  ;;  %1406 = vmatmul.f32.gmra.mxu2 %v588_v37  ;;  %v6542_v1 = vmul.f32 0.41421357, %v6493_v46  ;;  %vm653_vm2 = vcmp.gt.f32.partialorder %v6526_v54, %v6529_v11  ;;  %v765_v22 = vadd.f32 %v6526_v54, %v6493_v46 }
  0xf3   : > { %v1129_v24 = vsub.f32 0.0, %v1097_v47  ;;  %v4787_v23 = vadd.f32 -0.3333295, %v970_v56  ;;  %v939_v59 = vmul.f32 %v4772_v61, %v6519_v0  ;;  %5003 = vlog2.f32 %v541_v42 }
  0xf4   : > { %vm685_vm3 = vcmp.gt.f32.partialorder %v6526_v54, %v6542_v1  ;;  %v494_v26 = vmul.f32 %v6545_v10, %v6545_v10  ;;  %v6563_v7 = vand.u32 2147483647, %v6545_v10  ;;  %v859_v4 = vsel %vm683_vm10, 0.7853982, %v5346_v14 }
  0xf5   : > { %v1145_v6 = vsel %vm1113_vm1, %v1129_v24, %v1097_v47  ;;  %v1002_v62 = vmul.f32 %v4787_v23, %v6469_v35  ;;  %v955_v50 = vadd.f32 0.19977711, %v939_v59  ;;  %v748_v19 = vsel %vm652_vm0, %v700_v13, %v732_v16 }
  0xf6   : > { %1332 = vmatmul.f32.gmra.mxu1 %v1145_v6  ;;  %1462 = vmatmul.f32.gmra.mxu3 %v1145_v6  ;;  %v781_v35 = vsel %vm685_vm3, %v765_v22, %v6493_v46  ;;  %v510_v49 = vmul.f32 %v6560_v30, %v6560_v30  ;;  %v717_v27 = vsub.f32 %v6526_v54, %v6493_v46  ;;  %v701_v28 = vsub.f32 0.0, %v6493_v46 }
  0xf7   : > { %v1018_v36 = vmul.f32 %v1002_v62, %v6450_v34  ;;  %v971_v9 = vmul.f32 %v955_v50, %v6519_v0  ;;  %v797_v17 = vsel %vm653_vm2, %v6526_v54, %v781_v35  ;;  %v5002_v15 = vpop.eup %5001  ;;  %v6588_v8 = vand.u32 2147483647, %v6560_v30 }
  0xf8   : > { %v813_v55 = vmax.f32 %v797_v17, 1e-30  ;;  %v526_v29 = vadd.f32 %v510_v49, %v494_v26  ;;  %v6591_v3 = vmul.f32 %v5002_v15, %v748_v19  ;;  %v6594_v57 = vmul.f32 0.41421357, %v6563_v7 }
  0xf9   : > { %v5004_v5 = vpop.eup %5003  ;;  %v1034_v40 = vadd.f32 %v1018_v36, %v6450_v34  ;;  %v4788_v21 = vadd.f32 -0.3333295, %v971_v9  ;;  %v6597_v52 = vmul.f32 2.4142137, %v6563_v7  ;;  %v733_v34 = vsel %vm685_vm3, %v717_v27, %v6526_v54 }
  0xfa   : > { %v572_v60 = vmul.f32 0.6931472, %v5004_v5  ;;  %5005 = vrcp.f32 %v813_v55  ;;  %v542_v48 = vadd.f32 1e-08, %v526_v29  ;;  %v892_v43 = vmul.f32 %v6591_v3, %v6591_v3 }
  0xfb   : > { %v1050_v46 = vadd.f32 %v1034_v40, %v6506_v31  ;;  %v1003_v37 = vmul.f32 %v4788_v21, %v6519_v0  ;;  %vm1066_vm4 = vcmp.lt.f32.partialorder %v6270_v51, 0.0  ;;  %vm686_vm5 = vcmp.gt.f32.partialorder %v6588_v8, %v6594_v57 }
  0xfc   : > { %v589_v42 = vmul.f32 0.5, %v572_v60  ;;  %5007 = vlog2.f32 %v542_v48  ;;  %v908_v61 = vmul.f32 0.080537446, %v892_v43  ;;  %v875_v31 = vsel %vm651_vm11, 1.5707964, %v859_v4  ;;  %v3993_v60 = vld [vmem:[#allocation8 + $0x80] sm:$0xff] }
  0xfd   : > { %v1082_v47 = vsub.f32 3.1415927, %v1050_v46  ;;  %v1019_v56 = vmul.f32 %v1003_v37, %v6496_v44  ;;  %v749_v0 = vsel %vm653_vm2, %v701_v28, %v733_v34  ;;  %vm654_vm6 = vcmp.gt.f32.partialorder %v6588_v8, %v6597_v52  ;;  %4093 = vmatpush.msrb.mxu1 %v3993_v60 }
  0xfe   : > { %1279 = vmatmul.f32.gmra.mxu0 %v589_v42  ;;  %1409 = vmatmul.f32.gmra.mxu2 %v589_v42  ;;  %v766_v51 = vadd.f32 %v6588_v8, %v6563_v7  ;;  %vm1114_vm7 = vcmp.lt.f32.partialorder %v6273_v45, 0.0  ;;  %v4773_v16 = vadd.f32 -0.13877685, %v908_v61  ;;  %v718_v6 = vsub.f32 %v6588_v8, %v6563_v7 }
  0xff   : > { %v1098_v13 = vsel %vm1066_vm4, %v1082_v47, %v1050_v46  ;;  %v1035_v24 = vadd.f32 %v1019_v56, %v6496_v44  ;;  %vm1067_vm8 = vcmp.lt.f32.partialorder %v6336_v39, 0.0  ;;  %vm1115_vm9 = vcmp.lt.f32.partialorder %v6350_v58, 0.0 }
 0x100   : > { %v5006_v23 = vpop.eup %5005  ;;  %v1130_v59 = vsub.f32 0.0, %v1098_v13  ;;  %v782_v22 = vsel %vm686_vm5, %v766_v51, %v6563_v7  ;;  %v940_v62 = vmul.f32 %v4773_v16, %v892_v43  ;;  %v702_v33 = vsub.f32 0.0, %v6563_v7 }
 0x101   : > { %v1051_v26 = vadd.f32 %v1035_v24, %v875_v31  ;;  %v845_v50 = vmul.f32 %v5006_v23, %v749_v0  ;;  %v798_v44 = vsel %vm654_vm6, %v6588_v8, %v782_v22  ;;  %v734_v27 = vsel %vm686_vm5, %v718_v6, %v6588_v8  ;;  %v5075_v0 = vld [vmem:[%s5557_s22] sm:$0xff] }
 0x102   : > { %v5008_v4 = vpop.eup %5007  ;;  %v1146_v19 = vsel %vm1114_vm7, %v1130_v59, %v1098_v13  ;;  %v814_v35 = vmax.f32 %v798_v44, 1e-30  ;;  %v956_v36 = vadd.f32 0.19977711, %v940_v62  ;;  %v750_v58 = vsel %vm654_vm6, %v702_v33, %v734_v27 }
 0x103   : > { %1335 = vmatmul.f32.gmra.mxu1 %v1146_v19  ;;  %1465 = vmatmul.f32.gmra.mxu3 %v1146_v19  ;;  %v1083_v49 = vsub.f32 3.1415927, %v1051_v26  ;;  %v893_v9 = vmul.f32 %v845_v50, %v845_v50  ;;  %v574_v18 = vmul.f32 0.6931472, %v5008_v4  ;;  %v860_v7 = vsel %vm684_vm14, 0.7853982, %v5346_v14 }
 0x104   : > { %5009 = vrcp.f32 %v814_v35  ;;  %v972_v17 = vmul.f32 %v956_v36, %v892_v43  ;;  %v876_v42 = vsel %vm652_vm0, 1.5707964, %v860_v7  ;;  %vm1068_vm10 = vcmp.lt.f32.partialorder %v6412_v2, 0.0 }
 0x105   : > { %v1099_v45 = vsel %vm1067_vm8, %v1083_v49, %v1051_v26  ;;  %v909_v39 = vmul.f32 0.080537446, %v893_v9  ;;  %v590_v15 = vmul.f32 0.5, %v574_v18  ;;  %v861_v51 = vsel %vm685_vm3, 0.7853982, %v5346_v14 }
 0x106   : > { %v1131_v28 = vsub.f32 0.0, %v1099_v45  ;;  %v4789_v55 = vadd.f32 -0.3333295, %v972_v17  ;;  %v6666_v16 = vperm.slane %v6663_v38, 1  ;;  %vm1116_vm11 = vcmp.lt.f32.partialorder %v6415_v12, 0.0  ;;  %v5076_v12 = vld [vmem:[%s5557_s22 + $0x8] sm:$0xff] }
 0x107   : > { %v4774_v29 = vadd.f32 -0.13877685, %v909_v39  ;;  %1282 = vmatmul.f32.gmra.mxu0 %v590_v15  ;;  %1412 = vmatmul.f32.gmra.mxu2 %v590_v15  ;;  %v877_v23 = vsel %vm653_vm2, 1.5707964, %v861_v51  ;;  %vm1069_vm12 = vcmp.lt.f32.partialorder %v6472_v20, 0.0  ;;  %vm1117_vm13 = vcmp.lt.f32.partialorder %v6501_v32, 0.0 }
 0x108   : > { %v1147_v5 = vsel %vm1115_vm9, %v1131_v28, %v1099_v45  ;;  %v1004_v40 = vmul.f32 %v4789_v55, %v892_v43  ;;  %v5077_v15 = vld [vmem:[%s5557_s22 + $0x10] sm:$0xff]  ;;  %vm1070_vm14 = vcmp.lt.f32.partialorder %v6545_v10, 0.0  ;;  %vm1118_vm0 = vcmp.lt.f32.partialorder %v6560_v30, 0.0 }
 0x109   : > { %v941_v21 = vmul.f32 %v4774_v29, %v893_v9  ;;  %v10182_v60 = vmov 2475754826   ;;  %v10186_v51 = vmov 1326507024  }
 0x10a   : > { %v5010_v48 = vpop.eup %5009  ;;  %v1020_v46 = vmul.f32 %v1004_v40, %v6591_v3  ;;  %v10190_v40 = vmov 683565275  }
 0x10b   : > { %1338 = vmatmul.f32.gmra.mxu1 %v1147_v5  ;;  %1468 = vmatmul.f32.gmra.mxu3 %v1147_v5  ;;  %v957_v37 = vadd.f32 0.19977711, %v941_v21  ;;  %v846_v34 = vmul.f32 %v5010_v48, %v750_v58  ;;  %v10180_v48 = vmov 2131351028  }
 0x10c   : > { %v1036_v47 = vadd.f32 %v1020_v46, %v6591_v3  ;;  %v1368_v3 = vpop.f32.mrf.mxu2 }
 0x10d   : > { %v973_v41 = vmul.f32 %v957_v37, %v893_v9  ;;  %v894_v56 = vmul.f32 %v846_v34, %v846_v34  ;;  %v1369_v59 = vadd.f32 %v1368_v3, %v6666_v16  ;;  %v10192_v37 = vmov 2102212464  }
 0x10e   : > { %v1052_v43 = vadd.f32 %v1036_v47, %v876_v42  ;;  %v10188_v42 = vmov 920167782  }
 0x10f   : > { %v4790_v61 = vadd.f32 -0.3333295, %v973_v41  ;;  %v910_v31 = vmul.f32 0.080537446, %v894_v56  ;;  %4029 = vmatmul.f32.vlgmr.msrb.gmra.mxu0 %v5075_v0 }
 0x110   : > { %v1084_v13 = vsub.f32 3.1415927, %v1052_v43 }
 0x111   : > { %v1005_v24 = vmul.f32 %v4790_v61, %v893_v9  ;;  %v4775_v63 = vadd.f32 -0.13877685, %v910_v31  ;;  %v5078_v61 = vld [vmem:[%s5557_s22 + $0x18] sm:$0xff] }
 0x112   : > { %v1100_v53 = vsel %vm1068_vm10, %v1084_v13, %v1052_v43 }
 0x113   : > { %v1021_v2 = vmul.f32 %v1005_v24, %v845_v50  ;;  %v942_v25 = vmul.f32 %v4775_v63, %v894_v56  ;;  %v1132_v1 = vsub.f32 0.0, %v1100_v53 }
 0x114   : > { %v1371_v3 = vpop.f32.mrf.mxu2 }
 0x115   : > { %v1037_v6 = vadd.f32 %v1021_v2, %v845_v50  ;;  %v958_v22 = vadd.f32 0.19977711, %v942_v25  ;;  %v1148_v26 = vsel %vm1116_vm11, %v1132_v1, %v1100_v53  ;;  %v862_v50 = vsel %vm686_vm5, 0.7853982, %v5346_v14 }
 0x116   : > { %1341 = vmatmul.f32.gmra.mxu1 %v1148_v26  ;;  %1471 = vmatmul.f32.gmra.mxu3 %v1148_v26  ;;  %v878_v45 = vsel %vm654_vm6, 1.5707964, %v862_v50 }
 0x117   : > { %v1053_v44 = vadd.f32 %v1037_v6, %v877_v23  ;;  %v974_v4 = vmul.f32 %v958_v22, %v894_v56  ;;  %4032 = vmatmul.f32.gmra.mxu0 %v5076_v12  ;;  %v1372_v22 = vadd.f32 %v1371_v3, %v6666_v16 }
 0x119   : > { %v1085_v35 = vsub.f32 3.1415927, %v1053_v44  ;;  %v4791_v49 = vadd.f32 -0.3333295, %v974_v4 }
 0x11b   : > { %v1433_v62 = vpop.f32.mrf.mxu3  ;;  %v1101_v11 = vsel %vm1069_vm12, %v1085_v35, %v1053_v44  ;;  %v1006_v36 = vmul.f32 %v4791_v49, %v894_v56 }
 0x11c   : > { %v6673_v19 = vadd.f32 %v1433_v62, %v1369_v59  ;;  %v1133_v9 = vsub.f32 0.0, %v1101_v11 }
 0x11d   : > { %v1022_v33 = vmul.f32 %v1006_v36, %v846_v34 }
 0x11e   : > { %10385 = vst [vmem:[#allocation20_spill] sm:$0xff] %v6673_v19  ;;  %v1516_v54 = vand.u32 2139095040, %v6673_v19  ;;  %v1513_v20 = vand.u32 2147483647, %v6673_v19  ;;  %v1149_v27 = vsel %vm1117_vm13, %v1133_v9, %v1101_v11  ;;  %v5079_v9 = vld [vmem:[%s5557_s22 + $0x20] sm:$0xff] }
 0x11f   : > { %1344 = vmatmul.f32.gmra.mxu1 %v1149_v27  ;;  %1474 = vmatmul.f32.gmra.mxu3 %v1149_v27  ;;  %v1038_v32 = vadd.f32 %v1022_v33, %v846_v34 }
 0x120   : > { %v1517_v18 = vshrl.u32 %v1516_v54, 23  ;;  %4035 = vmatmul.f32.gmra.mxu0 %v5077_v15  ;;  %v1520_v14 = vand.u32 8388607, %v1513_v20 }
 0x121   : > { %v1054_v57 = vadd.f32 %v1038_v32, %v878_v45 }
 0x122   : > { %v4792_v17 = vadd.s32 4294967169, %v1517_v18  ;;  %v1521_v29 = vor.u32 8388608, %v1520_v14  ;;  %v5080_v18 = vld [vmem:[%s5565_s28] sm:$0xff] }
 0x123   : > { %v1086_v28 = vsub.f32 3.1415927, %v1054_v57  ;;  %v1436_v49 = vpop.f32.mrf.mxu3 }
 0x124   : > { %v1523_v39 = vadd.s32 1, %v4792_v17  ;;  %v6720_v63 = vshll.u32 %v1521_v29, 8  ;;  %v6748_v17 = vadd.f32 %v1436_v49, %v1372_v22 }
 0x125   : > { %v1102_v52 = vsel %vm1070_vm14, %v1086_v28, %v1054_v57  ;;  %v6750_v57 = vpop.f32.mrf.mxu0 }
 0x126   : > { %vm1524_vm15 = vcmp.gt.s32.totalorder %v1523_v39, 0  ;;  %v1134_v58 = vsub.f32 0.0, %v1102_v52  ;;  %v1562_v44 = vand.u32 65535, %v6720_v63  ;;  %v1563_v4 = vshrl.u32 %v6720_v63, 16  ;;  %10386 = vst [vmem:[#allocation21_spill] sm:$0xff] %v6748_v17 }
 0x127   : > { %v1525_v55 = vsel %vm1524_vm15, %v1523_v39, 0 }
 0x128   : > { %v1527_v8 = vand.u32 31, %v1525_v55  ;;  %v6692_v5 = vshrl.u32 %v1525_v55, 5  ;;  %v1150_v41 = vsel %vm1118_vm0, %v1134_v58, %v1102_v52  ;;  %4038 = vmatmul.f32.gmra.mxu0 %v5078_v61 }
 0x129   : > { %1347 = vmatmul.f32.gmra.mxu1 %v1150_v41  ;;  %1477 = vmatmul.f32.gmra.mxu3 %v1150_v41 }
 0x12a   : > { %v6694_v7 = vsub.s32 32, %v1527_v8  ;;  %v1530_v21 = vshll.u32 %v10190_v40, %v1527_v8  ;;  %v1533_v10 = vshll.u32 %v10182_v60, %v1527_v8  ;;  %v1536_v46 = vshll.u32 %v10180_v48, %v1527_v8 }
 0x12b   : > { %v1539_v34 = vshll.u32 %v10192_v37, %v1527_v8  ;;  %v1542_v47 = vshll.u32 %v10188_v42, %v1527_v8  ;;  %vm1545_vm1 = vcmp.lt.s32.totalorder %v6692_v5, 1  ;;  %vm1548_vm2 = vcmp.lt.s32.totalorder %v6692_v5, 4 }
 0x12c   : > { %v1531_v56 = vshrl.u32 %v10182_v60, %v6694_v7  ;;  %v1534_v43 = vshrl.u32 %v10180_v48, %v6694_v7  ;;  %v1537_v31 = vshrl.u32 %v10192_v37, %v6694_v7  ;;  %v1540_v0 = vshrl.u32 %v10188_v42, %v6694_v7 }
 0x12d   : > { %v1543_v30 = vshrl.u32 %v10186_v51, %v6694_v7  ;;  %vm1547_vm3 = vcmp.lt.s32.totalorder %v6692_v5, 3  ;;  %vm1546_vm4 = vcmp.lt.s32.totalorder %v6692_v5, 2  ;;  %v1529_v58 = vshrl.u32 %v10190_v40, %v6694_v7 }
 0x12e   : > { %v6715_v13 = vor.u32 %v1531_v56, %v1530_v21  ;;  %v6717_v24 = vor.u32 %v1534_v43, %v1533_v10  ;;  %v1538_v53 = vor.u32 %v1537_v31, %v1536_v46  ;;  %v1541_v2 = vor.u32 %v1540_v0, %v1539_v34  ;;  %v6758_v56 = vpop.f32.mrf.mxu1  ;;  %v5081_v31 = vld [vmem:[%s5557_s22 + $0x28] sm:$0xff] }
 0x12f   : > { %v1544_v25 = vor.u32 %v1543_v30, %v1542_v47  ;;  %v1670_v10 = vand.u32 2139095040, %v6748_v17  ;;  %v10178_v34 = vmov 0  }
 0x130   : > { %v1553_v1 = vsel %vm1545_vm1, %v6715_v13, %v6717_v24  ;;  %v1554_v23 = vsel %vm1548_vm2, %v1541_v2, 920167782  ;;  %v1557_v59 = vsel %vm1545_vm1, %v6717_v24, %v1538_v53  ;;  %4041 = vmatmul.f32.gmra.mxu0 %v5079_v9  ;;  %v1550_v46 = vsel %vm1548_vm2, %v1538_v53, 2102212464 }
 0x131   : > { %v1558_v6 = vsel %vm1548_vm2, %v1544_v25, 1326507024  ;;  %v1555_v26 = vsel %vm1547_vm3, %v1538_v53, %v1554_v23  ;;  %4094 = vmatmul.f32.vlgmr.msrb.gmra.mxu1 %v5080_v18  ;;  %v5082_v53 = vld [vmem:[%s5565_s28 + $0x8] sm:$0xff]  ;;  %v1549_v22 = vsel %vm1545_vm1, %v1529_v58, %v6715_v13 }
 0x132   : > { %v1559_v62 = vsel %vm1547_vm3, %v1541_v2, %v1558_v6  ;;  %v1556_v12 = vsel %vm1546_vm4, %v1553_v1, %v1555_v26  ;;  %v1671_v6 = vshrl.u32 %v1670_v10, 23  ;;  %v1551_v26 = vsel %vm1547_vm3, %v6717_v24, %v1550_v46 }
 0x133   : > { %v1560_v35 = vsel %vm1546_vm4, %v1557_v59, %v1559_v62  ;;  %v1586_v50 = vand.u32 65535, %v1556_v12  ;;  %v1587_v36 = vshrl.u32 %v1556_v12, 16  ;;  %v6773_v12 = vpop.f32.mrf.mxu0  ;;  %v1552_v49 = vsel %vm1546_vm4, %v1549_v22, %v1551_v26  ;;  %v5089_v22 = vld [vmem:[%s5557_s22 + $0x48] sm:$0xff] }
 0x134   : > { %v1564_v54 = vand.u32 65535, %v1560_v35  ;;  %v1565_v11 = vshrl.u32 %v1560_v35, 16  ;;  %v4795_v13 = vadd.s32 4294967169, %v1671_v6 }
 0x135   : > { %v1588_v32 = vmul.u32 %v1586_v50, %v1562_v44  ;;  %v1589_v39 = vmul.u32 %v1587_v36, %v1562_v44  ;;  %v1590_v15 = vmul.u32 %v1586_v50, %v1563_v4  ;;  %v1591_v8 = vmul.u32 %v1587_v36, %v1563_v4  ;;  %v5084_v50 = vld [vmem:[%s5565_s28 + $0x10] sm:$0xff] }
 0x136   : > { %v1566_v33 = vmul.u32 %v1564_v54, %v1562_v44  ;;  %v1567_v27 = vmul.u32 %v1565_v11, %v1562_v44  ;;  %v1568_v45 = vmul.u32 %v1564_v54, %v1563_v4  ;;  %v1569_v14 = vmul.u32 %v1565_v11, %v1563_v4  ;;  %v5083_v11 = vld [vmem:[%s5557_s22 + $0x30] sm:$0xff]  ;;  %v6784_v9 = vpop.f32.mrf.mxu1 }
 0x137   : > { %v1592_v52 = vshll.u32 %v1589_v39, 16  ;;  %v1594_v29 = vshll.u32 %v1590_v15, 16  ;;  %v1593_v30 = vshrl.u32 %v1589_v39, 16  ;;  %v1595_v23 = vshrl.u32 %v1590_v15, 16  ;;  %v1374_v39 = vpop.f32.mrf.mxu2 }
 0x138   : > { %v1570_v28 = vshll.u32 %v1567_v27, 16  ;;  %v1572_v55 = vshll.u32 %v1568_v45, 16  ;;  %v1571_v43 = vshrl.u32 %v1567_v27, 16  ;;  %4044 = vmatmul.f32.gmra.mxu0 %v5081_v31  ;;  %v1573_v2 = vshrl.u32 %v1568_v45, 16  ;;  %v4206_v45 = vld [vmem:[#allocation10 + $0x78] sm:$0xff] }
 0x139   : > { %vm1596_vm6 = vc.u32 %v1588_v32, %v1592_v52  ;;  %v1598_v41 = vadd.s32 %v1592_v52, %v1588_v32  ;;  %4097 = vmatmul.f32.gmra.mxu1 %v5082_v53  ;;  %v1606_v36 = vmul.u32 %v6720_v63, %v1552_v49  ;;  %v1677_v5 = vadd.s32 1, %v4795_v13  ;;  %v4205_v32 = vld [vmem:[#allocation10 + $0x70] sm:$0xff]  ;;  %4207 = vmatpush.msrb.mxu2 %v4206_v45  ;;  %v4204_v63 = vld [vmem:[#allocation10 + $0x68] sm:$0xff] }
 0x13a   : > { %vm1574_vm5 = vc.u32 %v1566_v33, %v1570_v28  ;;  %v1576_v21 = vadd.s32 %v1570_v28, %v1566_v33  ;;  %v1597_v7 = vsel %vm1596_vm6, 1, %v10178_v34  ;;  %4304 = vmatpush.msrb.mxu3 %v4206_v45 }
 0x13b   : > { %v1575_v47 = vsel %vm1574_vm5, 1, %v10178_v34  ;;  %v1599_v3 = vadd.s32 %v1597_v7, %v1591_v8  ;;  %vm1600_vm8 = vc.u32 %v1598_v41, %v1594_v29  ;;  %v6771_v44 = vadd.s32 %v1598_v41, %v1594_v29  ;;  %v6786_v15 = vpop.f32.mrf.mxu0  ;;  %4208 = vmatpush.msrb.mxu2 %v4205_v32  ;;  %v1439_v29 = vpop.f32.mrf.mxu3 }
 0x13c   : > { %v1577_v61 = vadd.s32 %v1575_v47, %v1569_v14  ;;  %vm1578_vm7 = vc.u32 %v1576_v21, %v1572_v55  ;;  %v1601_v1 = vsel %vm1600_vm8, 1, %v10178_v34  ;;  %vm1678_vm10 = vcmp.gt.s32.totalorder %v1677_v5, 0  ;;  %v5085_v14 = vld [vmem:[%s5557_s22 + $0x38] sm:$0xff]  ;;  %4305 = vmatpush.msrb.mxu3 %v4205_v32  ;;  %v5087_v47 = vld [vmem:[%s5557_s22 + $0x40] sm:$0xff] }
 0x13d   : > { %v1579_v0 = vsel %vm1578_vm7, 1, %v10178_v34  ;;  %v1603_v59 = vadd.s32 %v1601_v1, %v1599_v3  ;;  %v5086_v55 = vld [vmem:[%s5565_s28 + $0x18] sm:$0xff]  ;;  %v1375_v8 = vadd.f32 %v1374_v39, %v6666_v16  ;;  %v1679_v52 = vsel %vm1678_vm10, %v1677_v5, 0  ;;  %4209 = vmatpush.msrb.mxu2 %v4204_v63 }
 0x13e   : > { %v1581_v25 = vadd.s32 %v1579_v0, %v1577_v61  ;;  %v6793_v58 = vpop.f32.mrf.mxu1  ;;  %4306 = vmatpush.msrb.mxu3 %v4204_v63  ;;  %v1681_v10 = vand.u32 31, %v1679_v52  ;;  %v6815_v1 = vperm.slane %v6663_v38, 0  ;;  %vm10296_vm7 = vcmp.lt.s32.totalorder %v6673_v19, 0 }
 0x13f   : > { %v1604_v4 = vadd.s32 %v1603_v59, %v1593_v30  ;;  %v6796_v46 = vadd.f32 %v1439_v29, %v1375_v8  ;;  %v6818_v59 = vshrl.u32 %v1679_v52, 5  ;;  %v1377_v49 = vpop.f32.mrf.mxu2  ;;  %vm7059_vm8 = vcmp.le.f32.partialorder %v1513_v20, 0.7853982 }
 0x140   : > { %v1582_v62 = vadd.s32 %v1581_v25, %v1571_v43  ;;  %4047 = vmatmul.f32.gmra.mxu0 %v5083_v11  ;;  %v5088_v43 = vld [vmem:[%s5565_s28 + $0x20] sm:$0xff]  ;;  %v6802_v61 = vsub.s32 32, %v1681_v10  ;;  %v1696_v30 = vshll.u32 %v10188_v42, %v1681_v10  ;;  %10389 = vst [vmem:[#allocation24_spill] sm:$0xff] %v6815_v1  ;;  %v1687_v6 = vshll.u32 %v10182_v60, %v1681_v10 }
 0x141   : > { %v1605_v54 = vadd.s32 %v1604_v4, %v1595_v23  ;;  %4100 = vmatmul.f32.gmra.mxu1 %v5084_v50  ;;  %10388 = vst [vmem:[#allocation23_spill] sm:$0xff] %v6796_v46  ;;  %v1824_v31 = vand.u32 2139095040, %v6796_v46  ;;  %v4203_v25 = vld [vmem:[#allocation10 + $0x60] sm:$0xff]  ;;  %v10176_v23 = vand.u32 2147483647, %v6748_v17  ;;  %v1690_v4 = vshll.u32 %v10180_v48, %v1681_v10 }
 0x142   : > { %v6775_v35 = vadd.s32 %v1582_v62, %v1573_v2  ;;  %v1697_v3 = vshrl.u32 %v10186_v51, %v6802_v61  ;;  %4210 = vmatpush.msrb.mxu2 %v4203_v25  ;;  %4307 = vmatpush.msrb.mxu3 %v4203_v25  ;;  %v1688_v62 = vshrl.u32 %v10180_v48, %v6802_v61  ;;  %vm1702_vm12 = vcmp.lt.s32.totalorder %v6818_v59, 4 }
 0x143   : > { %v1609_v24 = vadd.s32 1, %v1605_v54  ;;  %v6804_v7 = vpop.f32.mrf.mxu0  ;;  %v1825_v53 = vshrl.u32 %v1824_v31, 23  ;;  %v1691_v38 = vshrl.u32 %v10192_v37, %v6802_v61  ;;  %v1693_v13 = vshll.u32 %v10192_v37, %v1681_v10  ;;  %v1442_v63 = vpop.f32.mrf.mxu3 }
 0x144   : > { %vm1608_vm9 = vc.u32 %v6775_v35, %v6771_v44  ;;  %v1694_v11 = vshrl.u32 %v10188_v42, %v6802_v61  ;;  %v1378_v45 = vadd.f32 %v1377_v49, %v6666_v16  ;;  %v1685_v39 = vshrl.u32 %v10182_v60, %v6802_v61 }
 0x145   : > { %v1610_v18 = vsel %vm1608_vm9, %v1609_v24, %v1605_v54  ;;  %v5090_v54 = vld [vmem:[%s5565_s28 + $0x28] sm:$0xff]  ;;  %v1698_v24 = vor.u32 %v1697_v3, %v1696_v30  ;;  %v4798_v50 = vadd.s32 4294967169, %v1825_v53  ;;  %vm1699_vm13 = vcmp.lt.s32.totalorder %v6818_v59, 1  ;;  %v5092_v3 = vld [vmem:[%s5565_s28 + $0x30] sm:$0xff] }
 0x146   : > { %v1611_v33 = vadd.s32 %v1610_v18, %v1606_v36  ;;  %v6812_v2 = vpop.f32.mrf.mxu1  ;;  %v1239_v36 = vadd.f32 %v6750_v57, %v6815_v1  ;;  %v1674_v18 = vand.u32 8388607, %v10176_v23  ;;  %v1689_v57 = vor.u32 %v1688_v62, %v1687_v6 }
 0x147   : > { %vm1701_vm14 = vcmp.lt.s32.totalorder %v6818_v59, 3  ;;  %v1831_v8 = vadd.s32 1, %v4798_v50  ;;  %vm1700_vm15 = vcmp.lt.s32.totalorder %v6818_v59, 2  ;;  %v1683_v6 = vshrl.u32 %v10190_v40, %v6802_v61 }
 0x148   : > { %v1612_v27 = vadd.s32 536870912, %v1611_v33  ;;  %4050 = vmatmul.f32.gmra.mxu0 %v5085_v14  ;;  %v1692_v14 = vor.u32 %v1691_v38, %v1690_v4  ;;  %v1675_v52 = vor.u32 8388608, %v1674_v18  ;;  %v1304_v53 = vadd.f32 %v6758_v56, %v1239_v36 }
 0x149   : > { %4103 = vmatmul.f32.gmra.mxu1 %v5086_v55  ;;  %v1695_v55 = vor.u32 %v1694_v11, %v1693_v13  ;;  %vm1832_vm0 = vcmp.gt.s32.totalorder %v1831_v8, 0  ;;  %v1607_v59 = vadd.s32 %v6771_v44, %v6775_v35 }
 0x14a   : > { %v6789_v28 = vshrl.u32 %v1612_v27, 30  ;;  %v1684_v27 = vshll.u32 %v10190_v40, %v1681_v10  ;;  %v6851_v10 = vadd.f32 %v1442_v63, %v1378_v45  ;;  %v1833_v38 = vsel %vm1832_vm0, %v1831_v8, 0  ;;  %v4202_v45 = vld [vmem:[#allocation10 + $0x58] sm:$0xff] }
 0x14b   : > { %v6841_v32 = vpop.f32.mrf.mxu0  ;;  %v1708_v25 = vsel %vm1702_vm12, %v1695_v55, 920167782  ;;  %v1481_v49 = vmul.f32 1.442695, %v1304_v53  ;;  %v10175_v63 = vand.u32 2147483647, %v6796_v46  ;;  %4211 = vmatpush.msrb.mxu2 %v4202_v45  ;;  %v1248_v8 = vadd.f32 %v6804_v7, %v6815_v1  ;;  %4308 = vmatpush.msrb.mxu3 %v4202_v45 }
 0x14c   : > { %10387 = vst [vmem:[#allocation22_spill] sm:$0xff] %v6789_v28  ;;  %v1614_v21 = vshll.u32 %v6789_v28, 30  ;;  %v1686_v31 = vor.u32 %v1685_v39, %v1684_v27  ;;  %v1978_v56 = vand.u32 2139095040, %v6851_v10  ;;  %v1709_v61 = vsel %vm1701_vm14, %v1692_v14, %v1708_v25  ;;  %v1380_v27 = vpop.f32.mrf.mxu2  ;;  %v5093_v39 = vld [vmem:[%s5557_s22 + $0x58] sm:$0xff] }
 0x14d   : > { %10390 = vst [vmem:[#allocation25_spill] sm:$0xff] %v6851_v10  ;;  %5011 = vpow2.f32 %v1481_v49  ;;  %v6952_v45 = vshrl.u32 %v1833_v38, 5  ;;  %v1251_v34 = vadd.f32 %v6841_v32, %v6815_v1 }
 0x14e   : > { %v6799_v41 = vsub.s32 %v1611_v33, %v1614_v21  ;;  %v1242_v33 = vadd.f32 %v6773_v12, %v6815_v1  ;;  %v1712_v12 = vsel %vm1702_vm12, %v1698_v24, 1326507024  ;;  %v1245_v21 = vadd.f32 %v6786_v15, %v6815_v1 }
 0x14f   : > { %v1713_v30 = vsel %vm1701_vm14, %v1695_v55, %v1712_v12  ;;  %v1707_v4 = vsel %vm1699_vm13, %v1686_v31, %v1689_v57  ;;  %v5094_v55 = vld [vmem:[%s5565_s28 + $0x38] sm:$0xff]  ;;  %vm1856_vm3 = vcmp.lt.s32.totalorder %v6952_v45, 4  ;;  %vm1853_vm4 = vcmp.lt.s32.totalorder %v6952_v45, 1 }
 0x150   : > { %4053 = vmatmul.f32.gmra.mxu0 %v5087_v47  ;;  %v1617_v0 = vsub.s32 0, %v6799_v41  ;;  %vm1616_vm11 = vcmp.lt.s32.totalorder %v6799_v41, 0  ;;  %v6853_v47 = vpop.f32.mrf.mxu1  ;;  %v1307_v15 = vadd.f32 %v6784_v9, %v1242_v33  ;;  %v1310_v62 = vadd.f32 %v6793_v58, %v1245_v21 }
 0x151   : > { %4106 = vmatmul.f32.gmra.mxu1 %v5088_v43  ;;  %v5091_v43 = vld [vmem:[%s5557_s22 + $0x50] sm:$0xff]  ;;  %v1704_v9 = vsel %vm1702_vm12, %v1692_v14, 2102212464  ;;  %v1703_v58 = vsel %vm1699_vm13, %v1683_v6, %v1686_v31  ;;  %v6896_v18 = vsel %vm1700_vm15, %v1707_v4, %v1709_v61  ;;  %v1835_v33 = vand.u32 31, %v1833_v38 }
 0x152   : > { %v1618_v26 = vsel %vm1616_vm11, %v1617_v0, %v6799_v41  ;;  %v1711_v0 = vsel %vm1699_vm13, %v1689_v57, %v1692_v14  ;;  %v1705_v36 = vsel %vm1701_vm14, %v1689_v57, %v1704_v9  ;;  %10394 = vst [vmem:[#allocation29_spill] sm:$0xff] %v6896_v18  ;;  %v1485_v14 = vmul.f32 1.442695, %v1310_v62 }
 0x153   : > { %v1619_v5 = vclz %v1618_v26  ;;  %v6872_v26 = vsel %vm1700_vm15, %v1711_v0, %v1713_v30  ;;  %v6882_v13 = vpop.f32.mrf.mxu0  ;;  %v1381_v31 = vadd.f32 %v1380_v27, %v6666_v16  ;;  %v6919_v30 = vsub.s32 32, %v1835_v33  ;;  %v6945_v61 = vpop.eup %5011 }
 0x154   : > { %10392 = vst [vmem:[#allocation27_spill] sm:$0xff] %v6872_v26  ;;  %v1719_v50 = vshrl.u32 %v6872_v26, 16  ;;  %v10177_v57 = vand.u32 65535, %v6872_v26  ;;  %v1313_v9 = vadd.f32 %v6812_v2, %v1248_v8  ;;  %v1850_v2 = vshll.u32 %v10188_v42, %v1835_v33 }
 0x155   : > { %v4793_v29 = vadd.s32 4294967294, %v1619_v5  ;;  %v1979_v5 = vshrl.u32 %v1978_v56, 23  ;;  %10402 = vst [vmem:[#allocation37_spill] sm:$0xff] %v6945_v61  ;;  %v1838_v8 = vshll.u32 %v10190_v40, %v1835_v33  ;;  %v1842_v38 = vshrl.u32 %v10180_v48, %v6919_v30 }
 0x156   : > { %vm1855_vm5 = vcmp.lt.s32.totalorder %v6952_v45, 3  ;;  %vm1854_vm6 = vcmp.lt.s32.totalorder %v6952_v45, 2  ;;  %v10414_v45 = vmov 0 }
 0x157   : > { %vm4794_vm1 = vcmp.lt.s32.totalorder %v4793_v29, 0  ;;  %v4801_v7 = vadd.s32 4294967169, %v1979_v5  ;;  %v5095_v5 = vld [vmem:[%s5557_s22 + $0x60] sm:$0xff]  ;;  %v10415_v45 = vsel %vm7059_vm8, 4294967295, %v10414_v45 }
 0x158   : > { %4056 = vmatmul.f32.gmra.mxu0 %v5089_v22  ;;  %v6868_v22 = vshll.u32 %v1675_v52, 8  ;;  %v6884_v11 = vsel %vm4794_vm1, 0, %v4793_v29  ;;  %v6905_v52 = vpop.f32.mrf.mxu1  ;;  %v6909_v29 = vsel %vm1700_vm15, %v1703_v58, %v1705_v36  ;;  %v1848_v58 = vshrl.u32 %v10188_v42, %v6919_v30  ;;  %10416 = vst [vmem:[#allocation49_spill] sm:$0xff] %v10415_v45 }
 0x159   : > { %4109 = vmatmul.f32.gmra.mxu1 %v5090_v54  ;;  %v1483_v54 = vmul.f32 1.442695, %v1307_v15  ;;  %v1627_v12 = vsub.s32 4294967266, %v6884_v11  ;;  %10395 = vst [vmem:[#allocation30_spill] sm:$0xff] %v6909_v29  ;;  %v1828_v15 = vand.u32 8388607, %v10175_v63 }
 0x15a   : > { %10391 = vst [vmem:[#allocation26_spill] sm:$0xff] %v6868_v22  ;;  %v6889_v24 = vand.u32 65535, %v6868_v22  ;;  %v6917_v0 = vshrl.u32 %v6868_v22, 16  ;;  %v1623_v49 = vsub.s32 32, %v6884_v11  ;;  %v10442_v29 = vmov 2102212464  }
 0x15b   : > { %5013 = vpow2.f32 %v1483_v54  ;;  %v1628_v25 = vadd.s32 127, %v1627_v12  ;;  %v1847_v54 = vshll.u32 %v10192_v37, %v1835_v33  ;;  %v1256_v36 = vpop.f32.mrf.mxu0  ;;  %v1829_v27 = vor.u32 8388608, %v1828_v15 }
 0x15c   : > { %10393 = vst [vmem:[#allocation28_spill] sm:$0xff] %v6889_v24  ;;  %v6912_v21 = vmul.u32 %v1719_v50, %v6889_v24  ;;  %5015 = vpow2.f32 %v1485_v14  ;;  %v6929_v6 = vmul.u32 %v10177_v57, %v6889_v24  ;;  %v6932_v62 = vmul.u32 %v1719_v50, %v6917_v0  ;;  %v5096_v14 = vld [vmem:[%s5565_s28 + $0x40] sm:$0xff] }
 0x15d   : > { %10397 = vst [vmem:[#allocation32_spill] sm:$0xff] %v6917_v0  ;;  %v1985_v50 = vadd.s32 1, %v4801_v7  ;;  %v1629_v12 = vshll.u32 %v1628_v25, 23  ;;  %v1841_v7 = vshll.u32 %v10182_v60, %v1835_v33  ;;  %v1844_v15 = vshll.u32 %v10180_v48, %v1835_v33 }
 0x15e   : > { %10396 = vst [vmem:[#allocation31_spill] sm:$0xff] %v6912_v21  ;;  %v10185_v44 = vshll.u32 %v6912_v21, 16  ;;  %v1625_v25 = vshrl.u32 %v1607_v59, %v1623_v49  ;;  %v1849_v63 = vor.u32 %v1848_v58, %v1847_v54  ;;  %v1487_v57 = vmul.f32 1.442695, %v1313_v9 }
 0x15f   : > { %10398 = vst [vmem:[#allocation33_spill] sm:$0xff] %v6929_v6  ;;  %vm1986_vm2 = vcmp.gt.s32.totalorder %v1985_v50, 0  ;;  %v1624_v33 = vshll.u32 %v6799_v41, %v6884_v11  ;;  %v1630_v48 = vor.u32 4788187, %v1629_v12  ;;  %v1843_v59 = vor.u32 %v1842_v38, %v1841_v7  ;;  %v5097_v41 = vld [vmem:[%s5557_s22 + $0x68] sm:$0xff] }
 0x160   : > { %4059 = vmatmul.f32.gmra.mxu0 %v5091_v43  ;;  %v1741_v43 = vshrl.u32 %v6896_v18, 16  ;;  %10399 = vst [vmem:[#allocation34_spill] sm:$0xff] %v6932_v62  ;;  %v1321_v56 = vpop.f32.mrf.mxu1  ;;  %v1987_v54 = vsel %vm1986_vm2, %v1985_v50, 0  ;;  %v1862_v9 = vsel %vm1856_vm3, %v1849_v63, 920167782  ;;  %v1837_v11 = vshrl.u32 %v10190_v40, %v6919_v30 }
 0x161   : > { %4112 = vmatmul.f32.gmra.mxu1 %v5092_v3  ;;  %v1445_v3 = vpop.f32.mrf.mxu3  ;;  %v6989_v50 = vshll.u32 %v1829_v27, 8  ;;  %v1989_v7 = vand.u32 31, %v1987_v54  ;;  %5017 = vpow2.f32 %v1487_v57 }
 0x162   : > { %v6940_v35 = vmul.u32 %v1741_v43, %v6889_v24  ;;  %v6943_v4 = vadd.f32 %v1445_v3, %v1381_v31  ;;  %v1839_v31 = vshrl.u32 %v10182_v60, %v6919_v30 }
 0x163   : > { %10405 = vst [vmem:[#allocation40_spill] sm:$0xff] %v6989_v50 }
 0x164   : > { %10400 = vst [vmem:[#allocation35_spill] sm:$0xff] %v6940_v35  ;;  %v2132_v23 = vand.u32 2139095040, %v6943_v4  ;;  %v1840_v60 = vor.u32 %v1839_v31, %v1838_v8  ;;  %v5098_v8 = vld [vmem:[%s5565_s28 + $0x48] sm:$0xff]  ;;  %v1631_v31 = vand.u32 2147483647, %v1630_v48 }
 0x165   : > { %10401 = vst [vmem:[#allocation36_spill] sm:$0xff] %v6943_v4 }
 0x166   : > { %v2133_v32 = vshrl.u32 %v2132_v23, 23  ;;  %v10184_v23 = vand.u32 2147483647, %v6851_v10  ;;  %v10439_v10 = vmov 920167782  }
 0x168   : > { %4062 = vmatmul.f32.gmra.mxu0 %v5093_v39  ;;  %v1851_v39 = vshrl.u32 %v10186_v51, %v6919_v30 }
 0x169   : > { %4115 = vmatmul.f32.gmra.mxu1 %v5094_v55  ;;  %v6958_v55 = vpop.eup %5013 }
 0x16a   : > { %10403 = vst [vmem:[#allocation38_spill] sm:$0xff] %v6958_v55  ;;  %v6964_v3 = vpop.eup %5015  ;;  %v1852_v53 = vor.u32 %v1851_v39, %v1850_v2  ;;  %v1383_v2 = vpop.f32.mrf.mxu2  ;;  %v4201_v39 = vld [vmem:[#allocation10 + $0x50] sm:$0xff] }
 0x16b   : > { %10404 = vst [vmem:[#allocation39_spill] sm:$0xff] %v6964_v3  ;;  %4212 = vmatpush.msrb.mxu2 %v4201_v39  ;;  %4309 = vmatpush.msrb.mxu3 %v4201_v39  ;;  %v1982_v39 = vand.u32 8388607, %v10184_v23 }
 0x16c   : > { %v1866_v12 = vsel %vm1856_vm3, %v1852_v53, 1326507024  ;;  %v1861_v53 = vsel %vm1853_vm4, %v1840_v60, %v1843_v59 }
 0x16d   : > { %v1867_v38 = vsel %vm1855_vm5, %v1849_v63, %v1866_v12  ;;  %v5099_v12 = vld [vmem:[%s5557_s22 + $0x70] sm:$0xff] }
 0x170   : > { %4065 = vmatmul.f32.gmra.mxu0 %v5095_v5  ;;  %v1845_v5 = vshrl.u32 %v10192_v37, %v6919_v30 }
 0x171   : > { %4118 = vmatmul.f32.gmra.mxu1 %v5096_v14  ;;  %v1257_v14 = vadd.f32 %v1256_v36, %v6815_v1  ;;  %v1626_v36 = vor.u32 %v1625_v25, %v1624_v33  ;;  %v7014_v25 = vmul.u32 %v1741_v43, %v6917_v0  ;;  %v1857_v33 = vsel %vm1853_vm4, %v1837_v11, %v1840_v60 }
 0x172   : > { %v1846_v49 = vor.u32 %v1845_v5, %v1844_v15  ;;  %v4804_v15 = vadd.s32 4294967169, %v2133_v32  ;;  %v1448_v5 = vpop.f32.mrf.mxu3  ;;  %v1990_v32 = vsub.s32 32, %v1989_v7  ;;  %v7032_v43 = vand.u32 65535, %v6989_v50 }
 0x173   : > { %v6979_v58 = vadd.f32 %v1321_v56, %v1257_v14  ;;  %v1316_v56 = vadd.f32 %v6853_v47, %v1251_v34  ;;  %v1384_v34 = vadd.f32 %v1383_v2, %v6666_v16  ;;  %v1633_v47 = vcvt.s32.f32 %v1626_v36  ;;  %10407 = vst [vmem:[#allocation42_spill] sm:$0xff] %v7014_v25  ;;  %v1259_v2 = vpop.f32.mrf.mxu0 }
 0x174   : > { %v1858_v30 = vsel %vm1856_vm3, %v1846_v49, 2102212464  ;;  %v1863_v27 = vsel %vm1855_vm5, %v1846_v49, %v1862_v9  ;;  %v1865_v48 = vsel %vm1853_vm4, %v1843_v59, %v1846_v49  ;;  %v7009_v14 = vadd.s32 %v10185_v44, %v6929_v6  ;;  %10410 = vst [vmem:[#allocation45_spill] sm:$0xff] %v7032_v43 }
 0x175   : > { %v1254_v49 = vadd.f32 %v6882_v13, %v6815_v1  ;;  %v1634_v63 = vmul.f32 %v1633_v47, %v1631_v31  ;;  %v1859_v36 = vsel %vm1855_vm5, %v1843_v59, %v1858_v30  ;;  %v7024_v9 = vsel %vm1854_vm6, %v1861_v53, %v1863_v27  ;;  %v5100_v53 = vld [vmem:[%s5565_s28 + $0x50] sm:$0xff] }
 0x176   : > { %10406 = vst [vmem:[#allocation41_spill] sm:$0xff] %v7009_v14  ;;  %v7029_v60 = vsel %vm1854_vm6, %v1865_v48, %v1867_v38  ;;  %v7034_v13 = vadd.f32 %v1448_v5, %v1384_v34  ;;  %v7037_v59 = vshrl.u32 %v6989_v50, 16  ;;  %v2139_v11 = vadd.s32 1, %v4804_v15  ;;  %v1324_v48 = vpop.f32.mrf.mxu1 }
 0x177   : > { %10408 = vst [vmem:[#allocation43_spill] sm:$0xff] %v7024_v9  ;;  %v7050_v57 = vadd.f32 %v6905_v52, %v1254_v49  ;;  %v1260_v30 = vadd.f32 %v1259_v2, %v6815_v1  ;;  %v1635_v27 = vxor.u32 2147483648, %v1634_v63  ;;  %v2004_v34 = vshll.u32 %v10188_v42, %v1989_v7 }
 0x178   : > { %4068 = vmatmul.f32.gmra.mxu0 %v5097_v41  ;;  %10409 = vst [vmem:[#allocation44_spill] sm:$0xff] %v7029_v60  ;;  %v7041_v41 = vmul.f32 1.442695, %v1316_v56  ;;  %v1873_v56 = vshrl.u32 %v7029_v60, 16  ;;  %v2005_v47 = vshrl.u32 %v10186_v51, %v1990_v32  ;;  %v7063_v52 = vshrl.u32 %v1987_v54, 5 }
 0x179   : > { %4121 = vmatmul.f32.gmra.mxu1 %v5098_v8  ;;  %10411 = vst [vmem:[#allocation46_spill] sm:$0xff] %v7034_v13  ;;  %v7046_v8 = vsel %vm1854_vm6, %v1857_v33, %v1859_v36  ;;  %v2001_v38 = vshll.u32 %v10192_v37, %v1989_v7  ;;  %v2002_v15 = vshrl.u32 %v10188_v42, %v1990_v32  ;;  %v2286_v5 = vand.u32 2139095040, %v7034_v13 }
 0x17a   : > { %10412 = vst [vmem:[#allocation47_spill] sm:$0xff] %v7037_v59  ;;  %v1992_v33 = vshll.u32 %v10190_v40, %v1989_v7  ;;  %v10417_v49 = vmov 2475754826   ;;  %v10418_v2 = vmov 2131351028   ;;  %vm2140_vm9 = vcmp.gt.s32.totalorder %v2139_v11, 0  ;;  %v1451_v17 = vpop.f32.mrf.mxu3 }
 0x17b   : > { %10413 = vst [vmem:[#allocation48_spill] sm:$0xff] %v7046_v8  ;;  %v1995_v36 = vshll.u32 %v10417_v49, %v1989_v7  ;;  %v1993_v20 = vshrl.u32 %v10417_v49, %v1990_v32  ;;  %v1996_v54 = vshrl.u32 %v10418_v2, %v1990_v32  ;;  %v1999_v23 = vshrl.u32 %v10192_v37, %v1990_v32 }
 0x17c   : > { %v7076_v44 = vadd.f32 %v1324_v48, %v1260_v30  ;;  %v1983_v40 = vor.u32 8388608, %v1982_v39  ;;  %v2006_v31 = vor.u32 %v2005_v47, %v2004_v34  ;;  %vm2010_vm10 = vcmp.lt.s32.totalorder %v7063_v52, 4  ;;  %v4200_v39 = vld [vmem:[#allocation10 + $0x48] sm:$0xff]  ;;  %v5101_v34 = vld [vmem:[%s5557_s22 + $0x78] sm:$0xff] }
 0x17d   : > { %v2287_v3 = vshrl.u32 %v2286_v5, 23  ;;  %v1636_v55 = vsel %vm10296_vm7, %v1635_v27, %v1634_v63  ;;  %v10194_v37 = vand.u32 65535, %v7029_v60  ;;  %v7086_v30 = vmul.u32 %v1873_v56, %v7032_v43  ;;  %4213 = vmatpush.msrb.mxu2 %v4200_v39  ;;  %4310 = vmatpush.msrb.mxu3 %v4200_v39 }
 0x17e   : > { %v10421_v48 = vshrl.u32 %v7024_v9, 16  ;;  %v10423_v47 = vmov 683565275   ;;  %vm2007_vm11 = vcmp.lt.s32.totalorder %v7063_v52, 1  ;;  %vm2009_vm12 = vcmp.lt.s32.totalorder %v7063_v52, 3 }
 0x17f   : > { %10420 = vst [vmem:[#allocation51_spill] sm:$0xff] %v7086_v30  ;;  %v2020_v63 = vsel %vm2010_vm10, %v2006_v31, 1326507024  ;;  %v7116_v31 = vmul.u32 %v10194_v37, %v7032_v43  ;;  %vm2008_vm13 = vcmp.lt.s32.totalorder %v7063_v52, 2  ;;  %v1386_v37 = vpop.f32.mrf.mxu2  ;;  %5019 = vpow2.f32 %v7041_v41 }
 0x180   : > { %4071 = vmatmul.f32.gmra.mxu0 %v5099_v12  ;;  %v1998_v12 = vshll.u32 %v10418_v2, %v1989_v7  ;;  %v2003_v7 = vor.u32 %v2002_v15, %v2001_v38  ;;  %v7091_v42 = vmul.u32 %v10421_v48, %v7032_v43  ;;  %v1994_v38 = vor.u32 %v1993_v20, %v1992_v33  ;;  %v5102_v48 = vld [vmem:[%s5565_s28 + $0x58] sm:$0xff] }
 0x181   : > { %4124 = vmatmul.f32.gmra.mxu1 %v5100_v53  ;;  %v7071_v53 = vpop.eup %5017  ;;  %v1997_v15 = vor.u32 %v1996_v54, %v1995_v36  ;;  %v7106_v33 = vshll.u32 %v1983_v40, 8  ;;  %v7111_v36 = vsel %vm7059_vm8, %v6673_v19, %v1636_v55  ;;  %10426 = vst [vmem:[#allocation55_spill] sm:$0xff] %v7116_v31  ;;  %v10428_v20 = vshrl.u32 %v7024_v9, 16  ;;  %v4199_v9 = vld [vmem:[#allocation10 + $0x40] sm:$0xff] }
 0x182   : > { %10419 = vst [vmem:[#allocation50_spill] sm:$0xff] %v7071_v53  ;;  %v2141_v53 = vsel %vm2140_vm9, %v2139_v11, 0  ;;  %v1991_v11 = vshrl.u32 %v10423_v47, %v1990_v32  ;;  %v2000_v5 = vor.u32 %v1999_v23, %v1998_v12  ;;  %v2016_v32 = vsel %vm2010_vm10, %v2003_v7, 920167782  ;;  %4214 = vmatpush.msrb.mxu2 %v4199_v9  ;;  %4311 = vmatpush.msrb.mxu3 %v4199_v9 }
 0x183   : > { %10422 = vst [vmem:[#allocation52_spill] sm:$0xff] %v7091_v42  ;;  %v7099_v27 = vand.u32 31, %v2141_v53  ;;  %v4807_v23 = vadd.s32 4294967169, %v2287_v3  ;;  %v2021_v55 = vsel %vm2009_vm12, %v2003_v7, %v2020_v63  ;;  %v2015_v39 = vsel %vm2007_vm11, %v1994_v38, %v1997_v15 }
 0x184   : > { %10424 = vst [vmem:[#allocation53_spill] sm:$0xff] %v7106_v33  ;;  %v2011_v40 = vsel %vm2007_vm11, %v1991_v11, %v1994_v38  ;;  %v2019_v3 = vsel %vm2007_vm11, %v1997_v15, %v2000_v5  ;;  %v7135_v11 = vmul.u32 %v1873_v56, %v7037_v59  ;;  %v7140_v12 = vmul.u32 %v10428_v20, %v7037_v59 }
 0x185   : > { %10425 = vst [vmem:[#allocation54_spill] sm:$0xff] %v7111_v36  ;;  %v2144_v51 = vsub.s32 32, %v7099_v27  ;;  %v2293_v7 = vadd.s32 1, %v4807_v23  ;;  %v10430_v38 = vshll.u32 %v7086_v30, 16  ;;  %v7153_v56 = vand.u32 65535, %v7106_v33 }
 0x186   : > { %10427 = vst [vmem:[#allocation56_spill] sm:$0xff] %v7135_v11  ;;  %v7156_v63 = vshrl.u32 %v7106_v33, 16  ;;  %v7160_v41 = vmul.f32 %v7111_v36, %v7111_v36  ;;  %v1387_v20 = vadd.f32 %v1386_v37, %v6666_v16  ;;  %v2158_v46 = vshll.u32 %v10439_v10, %v7099_v27 }
 0x187   : > { %10429 = vst [vmem:[#allocation57_spill] sm:$0xff] %v7140_v12  ;;  %v10440_v8 = vmov 1326507024   ;;  %v5103_v12 = vld [vmem:[%s5565_s28 + $0x60] sm:$0xff]  ;;  %v7179_v52 = vshrl.u32 %v2141_v53, 5  ;;  %vm2294_vm14 = vcmp.gt.s32.totalorder %v2293_v7, 0  ;;  %v2152_v53 = vshll.u32 %v10418_v2, %v7099_v27 }
 0x188   : > { %4074 = vmatmul.f32.gmra.mxu0 %v5101_v34  ;;  %v2012_v34 = vsel %vm2010_vm10, %v2000_v5, 2102212464  ;;  %10433 = vst [vmem:[#allocation60_spill] sm:$0xff] %v7153_v56  ;;  %v2159_v50 = vshrl.u32 %v10440_v8, %v2144_v51  ;;  %v7194_v22 = vadd.f32 %v1451_v17, %v1387_v20  ;;  %v2146_v33 = vshll.u32 %v10423_v47, %v7099_v27 }
 0x189   : > { %4127 = vmatmul.f32.gmra.mxu1 %v5102_v48  ;;  %v2013_v54 = vsel %vm2009_vm12, %v1997_v15, %v2012_v34  ;;  %v2017_v48 = vsel %vm2009_vm12, %v2000_v5, %v2016_v32  ;;  %v7146_v15 = vadd.s32 %v10430_v38, %v7116_v31  ;;  %v7150_v5 = vsel %vm2008_vm13, %v2019_v3, %v2021_v55  ;;  %v1262_v34 = vpop.f32.mrf.mxu0  ;;  %v4198_v31 = vld [vmem:[#allocation10 + $0x38] sm:$0xff] }
 0x18a   : > { %10432 = vst [vmem:[#allocation59_spill] sm:$0xff] %v7150_v5  ;;  %v7164_v32 = vsel %vm2008_vm13, %v2011_v40, %v2013_v54  ;;  %v7168_v23 = vsel %vm2008_vm13, %v2015_v39, %v2017_v48  ;;  %v10438_v55 = vand.u32 2147483647, %v6943_v4  ;;  %v2027_v40 = vshrl.u32 %v7150_v5, 16  ;;  %v1327_v54 = vpop.f32.mrf.mxu1  ;;  %v7188_v4 = vpop.eup %5019  ;;  %4215 = vmatpush.msrb.mxu2 %v4198_v31  ;;  %4312 = vmatpush.msrb.mxu3 %v4198_v31 }
 0x18b   : > { %10431 = vst [vmem:[#allocation58_spill] sm:$0xff] %v7146_v15  ;;  %v1263_v37 = vadd.f32 %v1262_v34, %v6815_v1  ;;  %v2049_v48 = vshrl.u32 %v7168_v23, 16  ;;  %v2149_v3 = vshll.u32 %v10417_v49, %v7099_v27  ;;  %v2153_v34 = vshrl.u32 %v10442_v29, %v2144_v51 }
 0x18c   : > { %10434 = vst [vmem:[#allocation61_spill] sm:$0xff] %v7156_v63  ;;  %v2136_v38 = vand.u32 8388607, %v10438_v55  ;;  %v2160_v42 = vor.u32 %v2159_v50, %v2158_v46  ;;  %v7199_v55 = vmul.u32 %v2027_v40, %v7153_v56  ;;  %vm2164_vm15 = vcmp.lt.s32.totalorder %v7179_v52, 4 }
 0x18d   : > { %10435 = vst [vmem:[#allocation62_spill] sm:$0xff] %v7160_v41  ;;  %v7196_v11 = vadd.f32 %v1327_v54, %v1263_v37  ;;  %v2147_v17 = vshrl.u32 %v10417_v49, %v2144_v51  ;;  %v1491_v46 = vmul.f32 1.442695, %v7050_v57  ;;  %v2154_v20 = vor.u32 %v2153_v34, %v2152_v53  ;;  %v7211_v54 = vpop.f32.mrf.mxu2  ;;  %v5104_v34 = vld [vmem:[%s5565_s28 + $0x68] sm:$0xff] }
 0x18e   : > { %10436 = vst [vmem:[#allocation63_spill] sm:$0xff] %v7164_v32  ;;  %v2137_v39 = vor.u32 8388608, %v2136_v38  ;;  %v2156_v32 = vshrl.u32 %v10439_v10, %v2144_v51  ;;  %v2440_v37 = vand.u32 2139095040, %v7194_v22  ;;  %v10445_v43 = vand.u32 65535, %v7150_v5 }
 0x18f   : > { %10437 = vst [vmem:[#allocation64_spill] sm:$0xff] %v7168_v23  ;;  %v2295_v23 = vsel %vm2294_vm14, %v2293_v7, 0  ;;  %vm2161_vm0 = vcmp.lt.s32.totalorder %v7179_v52, 1  ;;  %vm2163_vm1 = vcmp.lt.s32.totalorder %v7179_v52, 3  ;;  %v2174_v57 = vsel %vm2164_vm15, %v2160_v42, 1326507024 }
 0x190   : > { %10441 = vst [vmem:[#allocation65_spill] sm:$0xff] %v7188_v4  ;;  %v2155_v4 = vshll.u32 %v10442_v29, %v7099_v27  ;;  %v2297_v38 = vand.u32 31, %v2295_v23  ;;  %v7216_v15 = vmul.u32 %v10445_v43, %v7153_v56  ;;  %v7224_v53 = vshll.u32 %v2137_v39, 8  ;;  %v7236_v39 = vpop.f32.mrf.mxu3 }
 0x191   : > { %4130 = vmatmul.f32.gmra.mxu1 %v5103_v12  ;;  %v2150_v12 = vshrl.u32 %v10418_v2, %v2144_v51  ;;  %10443 = vst [vmem:[#allocation66_spill] sm:$0xff] %v7194_v22  ;;  %v2148_v43 = vor.u32 %v2147_v17, %v2146_v33  ;;  %vm2162_vm2 = vcmp.lt.s32.totalorder %v7179_v52, 2  ;;  %v2166_v50 = vsel %vm2164_vm15, %v2154_v20, 2102212464 }
 0x192   : > { %10444 = vst [vmem:[#allocation67_spill] sm:$0xff] %v7199_v55  ;;  %v10448_v5 = vand.u32 2147483647, %v7034_v13  ;;  %v7239_v9 = vmul.u32 %v2027_v40, %v7156_v63  ;;  %v7242_v33 = vmul.u32 %v2049_v48, %v7153_v56  ;;  %v7245_v17 = vmul.u32 %v2049_v48, %v7156_v63 }
 0x193   : > { %v2151_v7 = vor.u32 %v2150_v12, %v2149_v3  ;;  %10446 = vst [vmem:[#allocation68_spill] sm:$0xff] %v7216_v15  ;;  %v2145_v3 = vshrl.u32 %v10423_v47, %v2144_v51  ;;  %v2157_v12 = vor.u32 %v2156_v32, %v2155_v4  ;;  %v2298_v4 = vsub.s32 32, %v2297_v38 }
 0x194   : > { %10447 = vst [vmem:[#allocation69_spill] sm:$0xff] %v7224_v53  ;;  %v2290_v42 = vand.u32 8388607, %v10448_v5  ;;  %v2441_v32 = vshrl.u32 %v2440_v37, 23  ;;  %5021 = vpow2.f32 %v1491_v46  ;;  %v7252_v37 = vand.u32 65535, %v7224_v53 }
 0x195   : > { %v2173_v27 = vsel %vm2161_vm0, %v2151_v7, %v2154_v20  ;;  %v2175_v51 = vsel %vm2163_vm1, %v2157_v12, %v2174_v57  ;;  %10449 = vst [vmem:[#allocation70_spill] sm:$0xff] %v7239_v9  ;;  %v2165_v5 = vsel %vm2161_vm0, %v2145_v3, %v2148_v43  ;;  %v2167_v57 = vsel %vm2163_vm1, %v2151_v7, %v2166_v50 }
 0x196   : > { %10450 = vst [vmem:[#allocation71_spill] sm:$0xff] %v7242_v33  ;;  %v10454_v40 = vshll.u32 %v7199_v55, 16  ;;  %v2170_v48 = vsel %vm2164_vm15, %v2157_v12, 920167782  ;;  %v7266_v46 = vsel %vm2162_vm2, %v2173_v27, %v2175_v51  ;;  %v2291_v50 = vor.u32 8388608, %v2290_v42 }
 0x197   : > { %10451 = vst [vmem:[#allocation72_spill] sm:$0xff] %v7245_v17  ;;  %v2169_v3 = vsel %vm2161_vm0, %v2148_v43, %v2151_v7  ;;  %v2312_v17 = vshll.u32 %v10439_v10, %v2297_v38  ;;  %v2313_v33 = vshrl.u32 %v10440_v8, %v2298_v4  ;;  %v4810_v56 = vadd.s32 4294967169, %v2441_v32  ;;  %v1392_v32 = vpop.f32.mrf.mxu2 }
 0x198   : > { %10452 = vst [vmem:[#allocation73_spill] sm:$0xff] %v7252_v37  ;;  %v7260_v13 = vadd.s32 %v10454_v40, %v7216_v15  ;;  %v7274_v40 = vsel %vm2162_vm2, %v2165_v5, %v2167_v57  ;;  %v7276_v9 = vshrl.u32 %v2295_v23, 5  ;;  %v2309_v12 = vshll.u32 %v10442_v29, %v2297_v38 }
 0x199   : > { %4133 = vmatmul.f32.gmra.mxu1 %v5104_v34  ;;  %v7255_v34 = vshrl.u32 %v7224_v53, 16  ;;  %10456 = vst [vmem:[#allocation76_spill] sm:$0xff] %v7266_v46  ;;  %v2310_v27 = vshrl.u32 %v10439_v10, %v2298_v4  ;;  %v2171_v42 = vsel %vm2163_vm1, %v2154_v20, %v2170_v48  ;;  %v2306_v43 = vshll.u32 %v10418_v2, %v2297_v38 }
 0x19a   : > { %10455 = vst [vmem:[#allocation75_spill] sm:$0xff] %v7260_v13  ;;  %v2307_v51 = vshrl.u32 %v10442_v29, %v2298_v4  ;;  %v5105_v13 = vld [vmem:[%s5565_s28 + $0x70] sm:$0xff]  ;;  %v7286_v5 = vpop.eup %5021  ;;  %v2300_v23 = vshll.u32 %v10423_v47, %v2297_v38  ;;  %v2301_v57 = vshrl.u32 %v10417_v49, %v2298_v4  ;;  %v2303_v63 = vshll.u32 %v10417_v49, %v2297_v38  ;;  %v1330_v38 = vpop.f32.mrf.mxu1 }
 0x19b   : > { %10453 = vst [vmem:[#allocation74_spill] sm:$0xff] %v7255_v34  ;;  %v2304_v15 = vshrl.u32 %v10418_v2, %v2298_v4  ;;  %v2314_v20 = vor.u32 %v2313_v33, %v2312_v17  ;;  %v7292_v48 = vshll.u32 %v2291_v50, 8  ;;  %v1493_v7 = vmul.f32 1.442695, %v6979_v58  ;;  %v1457_v50 = vpop.f32.mrf.mxu3 }
 0x19c   : > { %10457 = vst [vmem:[#allocation77_spill] sm:$0xff] %v7274_v40  ;;  %v2447_v55 = vadd.s32 1, %v4810_v56  ;;  %v7297_v60 = vsel %vm2162_vm2, %v2169_v3, %v2171_v42  ;;  %vm2318_vm3 = vcmp.lt.s32.totalorder %v7276_v9, 4  ;;  %v10228_v59 = vand.u32 65535, %v7266_v46 }
 0x19d   : > { %10458 = vst [vmem:[#allocation78_spill] sm:$0xff] %v7286_v5  ;;  %v1393_v5 = vadd.f32 %v1392_v32, %v6666_v16  ;;  %v2299_v33 = vshrl.u32 %v10423_v47, %v2298_v4  ;;  %v2308_v17 = vor.u32 %v2307_v51, %v2306_v43  ;;  %v10461_v58 = vshrl.u32 %v7266_v46, 16  ;;  %v1265_v51 = vpop.f32.mrf.mxu0 }
 0x19e   : > { %10459 = vst [vmem:[#allocation79_spill] sm:$0xff] %v7292_v48  ;;  %v2302_v52 = vor.u32 %v2301_v57, %v2300_v23  ;;  %v2305_v3 = vor.u32 %v2304_v15, %v2303_v63  ;;  %vm2315_vm4 = vcmp.lt.s32.totalorder %v7276_v9, 1  ;;  %vm2317_vm5 = vcmp.lt.s32.totalorder %v7276_v9, 3  ;;  %v5106_v57 = vld [vmem:[%s5565_s28 + $0x78] sm:$0xff]  ;;  %s4614_s28 = sshll.u32 %s10056_s26, 4  ;;  %s4615_s28 = int_to_ptr.vmem [resolvable:$true] %s4614_s28 }
 0x19f   : > { %10460 = vst [vmem:[#allocation80_spill] sm:$0xff] %v7297_v60  ;;  %v7308_v56 = vmul.u32 %v10461_v58, %v7252_v37  ;;  %v2328_v4 = vsel %vm2318_vm3, %v2314_v20, 1326507024  ;;  %vm2448_vm6 = vcmp.gt.s32.totalorder %v2447_v55, 0  ;;  %v2203_v42 = vshrl.u32 %v7297_v60, 16  ;;  %v1395_v53 = vpop.f32.mrf.mxu2 }
 0x1a0   : > { %v7320_v15 = vadd.f32 %v1457_v50, %v1393_v5  ;;  %vm2316_vm9 = vcmp.lt.s32.totalorder %v7276_v9, 2  ;;  %v2319_v63 = vsel %vm2315_vm4, %v2299_v33, %v2302_v52  ;;  %v7326_v32 = vand.u32 65535, %v7292_v48 }
 0x1a1   : > { %4136 = vmatmul.f32.gmra.mxu1 %v5105_v13  ;;  %v2311_v13 = vor.u32 %v2310_v27, %v2309_v12  ;;  %10462 = vst [vmem:[#allocation81_spill] sm:$0xff] %v7308_v56  ;;  %v2320_v12 = vsel %vm2318_vm3, %v2308_v17, 2102212464  ;;  %v2327_v58 = vsel %vm2315_vm4, %v2305_v3, %v2308_v17  ;;  %v2449_v50 = vsel %vm2448_vm6, %v2447_v55, 0 }
 0x1a2   : > { %10463 = vst [vmem:[#allocation82_spill] sm:$0xff] %v7320_v15  ;;  %v2321_v20 = vsel %vm2317_vm5, %v2305_v3, %v2320_v12  ;;  %v7339_v33 = vmul.u32 %v10228_v59, %v7252_v37  ;;  %v7347_v23 = vshrl.u32 %v7292_v48, 16  ;;  %5023 = vpow2.f32 %v1493_v7 }
 0x1a3   : > { %v2324_v43 = vsel %vm2318_vm3, %v2311_v13, 920167782  ;;  %10464 = vst [vmem:[#allocation83_spill] sm:$0xff] %v7326_v32  ;;  %v2329_v5 = vsel %vm2317_vm5, %v2311_v13, %v2328_v4  ;;  %v1390_v55 = vadd.f32 %v7211_v54, %v6666_v16  ;;  %v2748_v13 = vand.u32 2139095040, %v7320_v15 }
 0x1a4   : > { %10465 = vst [vmem:[#allocation84_spill] sm:$0xff] %v7339_v33  ;;  %v2325_v12 = vsel %vm2317_vm5, %v2308_v17, %v2324_v43  ;;  %v7354_v4 = vsel %vm2316_vm9, %v2319_v63, %v2321_v20  ;;  %v7358_v59 = vsel %vm2316_vm9, %v2327_v58, %v2329_v5  ;;  %v1495_v54 = vmul.f32 1.442695, %v7076_v44 }
 0x1a5   : > { %10466 = vst [vmem:[#allocation85_spill] sm:$0xff] %v7347_v23  ;;  %v1266_v43 = vadd.f32 %v1265_v51, %v6815_v1  ;;  %v2749_v27 = vshrl.u32 %v2748_v13, 23  ;;  %v10471_v63 = vshrl.u32 %v7266_v46, 16  ;;  %v10473_v58 = vshll.u32 %v7308_v56, 16 }
 0x1a6   : > { %10467 = vst [vmem:[#allocation86_spill] sm:$0xff] %v7354_v4  ;;  %v7384_v9 = vmul.u32 %v2203_v42, %v7255_v34  ;;  %5025 = vpow2.f32 %v1495_v54 }
 0x1a7   : > { %10468 = vst [vmem:[#allocation87_spill] sm:$0xff] %v7358_v59  ;;  %v7373_v20 = vmul.u32 %v10471_v63, %v7255_v34  ;;  %v7378_v5 = vadd.s32 %v10473_v58, %v7339_v33  ;;  %v7400_v51 = vadd.f32 %v1330_v38, %v1266_v43  ;;  %v1333_v38 = vpop.f32.mrf.mxu1  ;;  %v1396_v43 = vadd.f32 %v1395_v53, %v6666_v16 }
 0x1a8   : > { %10476 = vst [vmem:[#allocation92_spill] sm:$0xff] %v7384_v9  ;;  %v7395_v40 = vpop.eup %5023  ;;  %v1460_v9 = vpop.f32.mrf.mxu3 }
 0x1a9   : > { %4139 = vmatmul.f32.gmra.mxu1 %v5106_v57  ;;  %v2323_v57 = vsel %vm2315_vm4, %v2302_v52, %v2305_v3  ;;  %v10469_v52 = vand.u32 2147483647, %v7194_v22  ;;  %v2451_v3 = vand.u32 31, %v2449_v50  ;;  %10472 = vst [vmem:[#allocation89_spill] sm:$0xff] %v7373_v20 }
 0x1aa   : > { %v7366_v7 = vsel %vm2316_vm9, %v2323_v57, %v2325_v12  ;;  %10474 = vst [vmem:[#allocation90_spill] sm:$0xff] %v7378_v5  ;;  %v4816_v12 = vadd.s32 4294967169, %v2749_v27  ;;  %v1268_v57 = vpop.f32.mrf.mxu0  ;;  %v7402_v27 = vshrl.u32 %v2449_v50, 5 }
 0x1ab   : > { %v7362_v17 = vand.u32 8388607, %v10469_v52  ;;  %10470 = vst [vmem:[#allocation88_spill] sm:$0xff] %v7366_v7  ;;  %v7381_v52 = vmul.u32 %v2203_v42, %v7252_v37  ;;  %v7393_v22 = vsub.s32 32, %v2451_v3  ;;  %v7398_v42 = vadd.f32 %v7236_v39, %v1390_v55 }
 0x1ac   : > { %10477 = vst [vmem:[#allocation93_spill] sm:$0xff] %v7395_v40  ;;  %v2755_v44 = vadd.s32 1, %v4816_v12  ;;  %v7405_v13 = vshll.u32 %v10423_v47, %v2451_v3  ;;  %v2457_v58 = vshll.u32 %v10417_v49, %v2451_v3  ;;  %v2460_v40 = vshll.u32 %v10418_v2, %v2451_v3  ;;  %v7432_v60 = vpop.eup %5025 }
 0x1ad   : > { %10475 = vst [vmem:[#allocation91_spill] sm:$0xff] %v7381_v52  ;;  %v7411_v54 = vshll.u32 %v10442_v29, %v2451_v3  ;;  %v2466_v39 = vshll.u32 %v10439_v10, %v2451_v3  ;;  %v2467_v50 = vshrl.u32 %v10440_v8, %v7393_v22  ;;  %v1269_v12 = vadd.f32 %v1268_v57, %v6815_v1 }
 0x1ae   : > { %10478 = vst [vmem:[#allocation94_spill] sm:$0xff] %v7398_v42  ;;  %vm2756_vm10 = vcmp.gt.s32.totalorder %v2755_v44, 0  ;;  %v2455_v63 = vshrl.u32 %v10417_v49, %v7393_v22  ;;  %v2458_v4 = vshrl.u32 %v10418_v2, %v7393_v22  ;;  %v2461_v48 = vshrl.u32 %v10442_v29, %v7393_v22 }
 0x1af   : > { %10479 = vst [vmem:[#allocation95_spill] sm:$0xff] %v7400_v51  ;;  %v2757_v55 = vsel %vm2756_vm10, %v2755_v44, 0  ;;  %v2464_v20 = vshrl.u32 %v10439_v10, %v7393_v22  ;;  %v10480_v44 = vand.u32 2147483647, %v7320_v15  ;;  %v7430_v57 = vadd.f32 %v1333_v38, %v1269_v12 }
 0x1b0   : > { %v2759_v3 = vand.u32 31, %v2757_v55  ;;  %v7428_v53 = vshrl.u32 %v2757_v55, 5  ;;  %10482 = vst [vmem:[#allocation97_spill] sm:$0xff] %v7432_v60  ;;  %vm2469_vm11 = vcmp.lt.s32.totalorder %v7402_v27, 1  ;;  %v2468_v33 = vor.u32 %v2467_v50, %v2466_v39 }
 0x1b1   : > { %v2752_v52 = vand.u32 8388607, %v10480_v44  ;;  %10481 = vst [vmem:[#allocation96_spill] sm:$0xff] %v7430_v57  ;;  %v7442_v44 = vadd.f32 %v1460_v9, %v1396_v43  ;;  %v2594_v38 = vand.u32 2139095040, %v7398_v42  ;;  %v2459_v35 = vor.u32 %v2458_v4, %v2457_v58 }
 0x1b2   : > { %v7435_v37 = vsub.s32 32, %v2759_v3  ;;  %v2762_v5 = vshll.u32 %v10423_v47, %v2759_v3  ;;  %v2765_v46 = vshll.u32 %v10417_v49, %v2759_v3  ;;  %v2768_v34 = vshll.u32 %v10418_v2, %v2759_v3 }
 0x1b3   : > { %v2771_v56 = vshll.u32 %v10442_v29, %v2759_v3  ;;  %v2774_v55 = vshll.u32 %v10439_v10, %v2759_v3  ;;  %10483 = vst [vmem:[#allocation98_spill] sm:$0xff] %v7442_v44  ;;  %v2753_v25 = vor.u32 8388608, %v2752_v52  ;;  %vm2777_vm12 = vcmp.lt.s32.totalorder %v7428_v53, 1 }
 0x1b4   : > { %v2763_v12 = vshrl.u32 %v10417_v49, %v7435_v37  ;;  %v2766_v60 = vshrl.u32 %v10418_v2, %v7435_v37  ;;  %v2769_v61 = vshrl.u32 %v10442_v29, %v7435_v37  ;;  %v2772_v39 = vshrl.u32 %v10439_v10, %v7435_v37 }
 0x1b5   : > { %v2775_v50 = vshrl.u32 %v10440_v8, %v7435_v37  ;;  %vm2780_vm13 = vcmp.lt.s32.totalorder %v7428_v53, 4  ;;  %vm2779_vm14 = vcmp.lt.s32.totalorder %v7428_v53, 3  ;;  %v2902_v52 = vand.u32 2139095040, %v7442_v44 }
 0x1b6   : > { %v7456_v9 = vor.u32 %v2763_v12, %v2762_v5  ;;  %v7458_v43 = vor.u32 %v2766_v60, %v2765_v46  ;;  %v7460_v3 = vor.u32 %v2769_v61, %v2768_v34  ;;  %v2773_v30 = vor.u32 %v2772_v39, %v2771_v56 }
 0x1b7   : > { %v2776_v36 = vor.u32 %v2775_v50, %v2774_v55  ;;  %vm2472_vm15 = vcmp.lt.s32.totalorder %v7402_v27, 4  ;;  %vm2778_vm0 = vcmp.lt.s32.totalorder %v7428_v53, 2  ;;  %v2462_v60 = vor.u32 %v2461_v48, %v2460_v40 }
 0x1b8   : > { %v2785_v61 = vsel %vm2777_vm12, %v7456_v9, %v7458_v43  ;;  %v2786_v34 = vsel %vm2780_vm13, %v2773_v30, 920167782  ;;  %v2789_v46 = vsel %vm2777_vm12, %v7458_v43, %v7460_v3  ;;  %v7484_v5 = vshll.u32 %v2753_v25, 8 }
 0x1b9   : > { %v2790_v31 = vsel %vm2780_vm13, %v2776_v36, 1326507024  ;;  %v2787_v56 = vsel %vm2779_vm14, %v7460_v3, %v2786_v34  ;;  %v2903_v40 = vshrl.u32 %v2902_v52, 23  ;;  %vm2471_vm1 = vcmp.lt.s32.totalorder %v7402_v27, 3 }
 0x1ba   : > { %v2791_v4 = vsel %vm2779_vm14, %v2773_v30, %v2790_v31  ;;  %v2482_v48 = vsel %vm2472_vm15, %v2468_v33, 1326507024  ;;  %v2595_v58 = vshrl.u32 %v2594_v38, 23  ;;  %v7491_v55 = vsel %vm2778_vm0, %v2785_v61, %v2787_v56 }
 0x1bb   : > { %v10484_v36 = vand.u32 65535, %v7358_v59  ;;  %v10486_v25 = vshrl.u32 %v7358_v59, 16  ;;  %v2465_v39 = vor.u32 %v2464_v20, %v7411_v54  ;;  %v7506_v33 = vsel %vm2778_vm0, %v2789_v46, %v2791_v4 }
 0x1bc   : > { %v2456_v52 = vor.u32 %v2455_v63, %v7405_v13  ;;  %vm2470_vm2 = vcmp.lt.s32.totalorder %v7402_v27, 2  ;;  %v2481_v61 = vsel %vm2469_vm11, %v2459_v35, %v2462_v60  ;;  %v2794_v20 = vand.u32 65535, %v7484_v5 }
 0x1bd   : > { %v7496_v12 = vmul.u32 %v10484_v36, %v7326_v32  ;;  %v7501_v30 = vmul.u32 %v10486_v25, %v7326_v32  ;;  %v10488_v38 = vmov %v10486_v25  ;;  %v2483_v34 = vsel %vm2471_vm1, %v2465_v39, %v2482_v48 }
 0x1be   : > { %v7511_v50 = vmul.u32 %v10488_v38, %v7347_v23  ;;  %v2819_v54 = vshrl.u32 %v7491_v55, 16  ;;  %v4819_v46 = vadd.s32 4294967169, %v2903_v40  ;;  %v10490_v31 = vshrl.u32 %v7366_v7, 16 }
 0x1bf   : > { %10485 = vst [vmem:[#allocation99_spill] sm:$0xff] %v7496_v12  ;;  %v4813_v4 = vadd.s32 4294967169, %v2595_v58  ;;  %v2797_v36 = vshrl.u32 %v7506_v33, 16  ;;  %v2453_v25 = vshrl.u32 %v10423_v47, %v7393_v22  ;;  %v2478_v40 = vsel %vm2472_vm15, %v2465_v39, 920167782  ;;  %v1271_v22 = vpop.f32.mrf.mxu0 }
 0x1c0   : > { %10487 = vst [vmem:[#allocation100_spill] sm:$0xff] %v7501_v30  ;;  %v7524_v56 = vmul.u32 %v10490_v31, %v7326_v32  ;;  %v10492_v13 = vmov %v10490_v31  ;;  %v10494_v38 = vor.u32 8388608, %v7362_v17  ;;  %v2477_v58 = vsel %vm2469_vm11, %v2456_v52, %v2459_v35 }
 0x1c1   : > { %10489 = vst [vmem:[#allocation101_spill] sm:$0xff] %v7511_v50  ;;  %v7529_v63 = vmul.u32 %v10492_v13, %v7347_v23  ;;  %v7547_v13 = vsel %vm2470_vm2, %v2481_v61, %v2483_v34  ;;  %v2818_v39 = vand.u32 65535, %v7491_v55  ;;  %v7552_v17 = vmul.u32 %v2819_v54, %v2794_v20 }
 0x1c2   : > { %10491 = vst [vmem:[#allocation102_spill] sm:$0xff] %v7524_v56  ;;  %v7539_v31 = vshll.u32 %v10494_v38, 8  ;;  %v2474_v56 = vsel %vm2472_vm15, %v2462_v60, 2102212464  ;;  %v2909_v38 = vadd.s32 1, %v4819_v46  ;;  %v2479_v32 = vsel %vm2471_vm1, %v2462_v60, %v2478_v40  ;;  %v1336_v40 = vpop.f32.mrf.mxu1 }
 0x1c3   : > { %10493 = vst [vmem:[#allocation103_spill] sm:$0xff] %v7529_v63  ;;  %v2795_v63 = vshrl.u32 %v7484_v5, 16  ;;  %v2601_v7 = vadd.s32 1, %v4813_v4  ;;  %v2796_v50 = vand.u32 65535, %v7506_v33  ;;  %v7557_v59 = vmul.u32 %v2797_v36, %v2794_v20 }
 0x1c4   : > { %10495 = vst [vmem:[#allocation104_spill] sm:$0xff] %v7539_v31  ;;  %v2473_v61 = vsel %vm2469_vm11, %v2453_v25, %v2456_v52  ;;  %v7562_v34 = vand.u32 65535, %v7539_v31  ;;  %v7565_v48 = vshrl.u32 %v7539_v31, 16  ;;  %v1272_v55 = vadd.f32 %v1271_v22, %v6815_v1 }
 0x1c5   : > { %10496 = vst [vmem:[#allocation105_spill] sm:$0xff] %v7547_v13  ;;  %v2475_v46 = vsel %vm2471_vm1, %v2459_v35, %v2474_v56  ;;  %v2489_v60 = vshrl.u32 %v7547_v13, 16  ;;  %v10499_v33 = vand.u32 2147483647, %v7398_v42  ;;  %vm2910_vm3 = vcmp.gt.s32.totalorder %v2909_v38, 0 }
 0x1c6   : > { %10497 = vst [vmem:[#allocation106_spill] sm:$0xff] %v7562_v34  ;;  %v7575_v52 = vsel %vm2470_vm2, %v2477_v58, %v2479_v32  ;;  %v2820_v25 = vmul.u32 %v2818_v39, %v2794_v20  ;;  %v7577_v23 = vmul.u32 %v2818_v39, %v2795_v63  ;;  %v2824_v14 = vshll.u32 %v7552_v17, 16 }
 0x1c7   : > { %10498 = vst [vmem:[#allocation107_spill] sm:$0xff] %v7565_v48  ;;  %v2598_v4 = vand.u32 8388607, %v10499_v33  ;;  %vm2602_vm4 = vcmp.gt.s32.totalorder %v2601_v7, 0  ;;  %v2798_v22 = vmul.u32 %v2796_v50, %v2794_v20  ;;  %v7580_v18 = vmul.u32 %v2796_v50, %v2795_v63 }
 0x1c8   : > { %10500 = vst [vmem:[#allocation108_spill] sm:$0xff] %v7575_v52  ;;  %v2802_v35 = vshll.u32 %v7557_v59, 16  ;;  %v10501_v56 = vshll.u32 %v7501_v30, 16  ;;  %v7590_v32 = vsel %vm2470_vm2, %v2473_v61, %v2475_v46  ;;  %v2911_v58 = vsel %vm2910_vm3, %v2909_v38, 0  ;;  %v4197_v38 = vld [vmem:[#allocation10 + $0x30] sm:$0xff] }
 0x1c9   : > { %10503 = vst [vmem:[#allocation110_spill] sm:$0xff] %v7590_v32  ;;  %v7592_v39 = vadd.f32 %v1336_v40, %v1272_v55  ;;  %v10266_v42 = vand.u32 65535, %v7547_v13  ;;  %v7596_v20 = vmul.u32 %v2489_v60, %v7562_v34  ;;  %v2511_v50 = vshrl.u32 %v7575_v52, 16  ;;  %4216 = vmatpush.msrb.mxu2 %v4197_v38  ;;  %4313 = vmatpush.msrb.mxu3 %v4197_v38 }
 0x1ca   : > { %v7586_v33 = vadd.s32 %v10501_v56, %v7496_v12  ;;  %v2599_v24 = vor.u32 8388608, %v2598_v4  ;;  %v2603_v62 = vsel %vm2602_vm4, %v2601_v7, 0  ;;  %vm7600_vm5 = vc.u32 %v2820_v25, %v2824_v14 }
 0x1cb   : > { %10504 = vst [vmem:[#allocation111_spill] sm:$0xff] %v7592_v39  ;;  %v7604_v27 = vadd.s32 %v2824_v14, %v2820_v25  ;;  %v2804_v61 = vshll.u32 %v7580_v18, 16  ;;  %vm2806_vm6 = vc.u32 %v2798_v22, %v2802_v35  ;;  %v2808_v55 = vadd.s32 %v2802_v35, %v2798_v22 }
 0x1cc   : > { %10502 = vst [vmem:[#allocation109_spill] sm:$0xff] %v7586_v33  ;;  %v2913_v46 = vand.u32 31, %v2911_v58  ;;  %v1497_v4 = vmul.f32 1.442695, %v7196_v11  ;;  %v2823_v30 = vmul.u32 %v2819_v54, %v2795_v63  ;;  %v7614_v14 = vmul.u32 %v10266_v42, %v7562_v34  ;;  %v1398_v54 = vpop.f32.mrf.mxu2 }
 0x1cd   : > { %10505 = vst [vmem:[#allocation112_spill] sm:$0xff] %v7596_v20  ;;  %v7616_v25 = vshll.u32 %v2599_v24, 8  ;;  %v2801_v33 = vmul.u32 %v2797_v36, %v2795_v63  ;;  %v10510_v22 = vmov 0   ;;  %v2605_v52 = vand.u32 31, %v2603_v62 }
 0x1ce   : > { %10508 = vst [vmem:[#allocation113_spill] sm:$0xff] %v7614_v14  ;;  %v2829_v35 = vsel %vm7600_vm5, 1, %v10510_v22  ;;  %v2807_v7 = vsel %vm2806_vm6, 1, %v10510_v22  ;;  %v10511_v11 = vshll.u32 %v7577_v23, 16  ;;  %v7627_v38 = vmul.u32 %v2489_v60, %v7565_v48 }
 0x1cf   : > { %10509 = vst [vmem:[#allocation114_spill] sm:$0xff] %v7616_v25  ;;  %v7630_v24 = vmul.u32 %v2511_v50, %v7562_v34  ;;  %vm2810_vm10 = vc.u32 %v2808_v55, %v2804_v61  ;;  %v7632_v63 = vsub.s32 32, %v2913_v46  ;;  %v7635_v36 = vmul.u32 %v2511_v50, %v7565_v48  ;;  %v1463_v50 = vpop.f32.mrf.mxu3 }
 0x1d0   : > { %vm2832_vm9 = vc.u32 %v7604_v27, %v10511_v11  ;;  %10512 = vst [vmem:[#allocation115_spill] sm:$0xff] %v7627_v38  ;;  %v7637_v56 = vshrl.u32 %v2603_v62, 5  ;;  %5027 = vpow2.f32 %v1497_v4  ;;  %v2831_v42 = vadd.s32 %v2829_v35, %v2823_v30 }
 0x1d1   : > { %10513 = vst [vmem:[#allocation116_spill] sm:$0xff] %v7630_v24  ;;  %v7640_v40 = vand.u32 65535, %v7616_v25  ;;  %v2809_v11 = vadd.s32 %v2807_v7, %v2801_v33  ;;  %v2833_v60 = vsel %vm2832_vm9, 1, %v10510_v22  ;;  %v1399_v32 = vadd.f32 %v1398_v54, %v6666_v16 }
 0x1d2   : > { %10514 = vst [vmem:[#allocation117_spill] sm:$0xff] %v7635_v36  ;;  %v10516_v61 = vshll.u32 %v7596_v20, 16  ;;  %v7649_v31 = vsub.s32 32, %v2605_v52  ;;  %v7652_v62 = vshrl.u32 %v7616_v25, 16  ;;  %v2811_v30 = vsel %vm2810_vm10, 1, %v10510_v22 }
 0x1d3   : > { %10515 = vst [vmem:[#allocation118_spill] sm:$0xff] %v7640_v40  ;;  %v7656_v4 = vshll.u32 %v10423_v47, %v2605_v52  ;;  %v2928_v7 = vshll.u32 %v10439_v10, %v2913_v46  ;;  %v2929_v35 = vshrl.u32 %v10440_v8, %v7632_v63  ;;  %v2803_v54 = vshrl.u32 %v7557_v59, 16 }
 0x1d4   : > { %v7647_v55 = vadd.s32 %v10516_v61, %v7614_v14  ;;  %10518 = vst [vmem:[#allocation120_spill] sm:$0xff] %v7652_v62  ;;  %v2825_v61 = vshrl.u32 %v7552_v17, 16  ;;  %v2835_v36 = vadd.s32 %v2833_v60, %v2831_v42  ;;  %v7664_v24 = vshrl.u32 %v2911_v58, 5 }
 0x1d5   : > { %v2813_v34 = vadd.s32 %v2811_v30, %v2809_v11  ;;  %v2926_v38 = vshrl.u32 %v10439_v10, %v7632_v63  ;;  %v7669_v13 = vadd.f32 %v1463_v50, %v1399_v32  ;;  %v2919_v48 = vshll.u32 %v10417_v49, %v2913_v46 }
 0x1d6   : > { %10517 = vst [vmem:[#allocation119_spill] sm:$0xff] %v7647_v55  ;;  %v2925_v55 = vshll.u32 %v10442_v29, %v2913_v46  ;;  %v7671_v33 = vpop.eup %5027  ;;  %v2920_v59 = vshrl.u32 %v10418_v2, %v7632_v63  ;;  %v2922_v17 = vshll.u32 %v10418_v2, %v2913_v46  ;;  %v2923_v42 = vshrl.u32 %v10442_v29, %v7632_v63 }
 0x1d7   : > { %10519 = vst [vmem:[#allocation121_spill] sm:$0xff] %v7669_v13  ;;  %v2611_v58 = vshll.u32 %v10417_v49, %v2605_v52  ;;  %v2827_v11 = vshrl.u32 %v7577_v23, 16  ;;  %v10521_v60 = vand.u32 2147483647, %v7442_v44  ;;  %v2930_v30 = vor.u32 %v2929_v35, %v2928_v7 }
 0x1d8   : > { %10520 = vst [vmem:[#allocation122_spill] sm:$0xff] %v7671_v33  ;;  %v2836_v50 = vadd.s32 %v2835_v36, %v2825_v61  ;;  %v2916_v33 = vshll.u32 %v10423_v47, %v2913_v46  ;;  %v2917_v14 = vshrl.u32 %v10417_v49, %v7632_v63  ;;  %vm2934_vm11 = vcmp.lt.s32.totalorder %v7664_v24, 4 }
 0x1d9   : > { %v2906_v32 = vand.u32 8388607, %v10521_v60  ;;  %v2614_v20 = vshll.u32 %v10418_v2, %v2605_v52  ;;  %v2805_v12 = vshrl.u32 %v7580_v18, 16  ;;  %v2814_v26 = vadd.s32 %v2813_v34, %v2803_v54 }
 0x1da   : > { %v2927_v0 = vor.u32 %v2926_v38, %v2925_v55  ;;  %v2761_v45 = vshrl.u32 %v10423_v47, %v7435_v37  ;;  %v7691_v19 = vor.u32 %v2920_v59, %v2919_v48  ;;  %v7693_v7 = vor.u32 %v2923_v42, %v2922_v17 }
 0x1db   : > { %v3056_v46 = vand.u32 2139095040, %v7669_v13  ;;  %v2907_v36 = vor.u32 8388608, %v2906_v32  ;;  %vm2931_vm15 = vcmp.lt.s32.totalorder %v7664_v24, 1  ;;  %vm2933_vm1 = vcmp.lt.s32.totalorder %v7664_v24, 3 }
 0x1dc   : > { %v2944_v35 = vsel %vm2934_vm11, %v2930_v30, 1326507024  ;;  %v2617_v18 = vshll.u32 %v10442_v29, %v2605_v52  ;;  %v2782_v37 = vsel %vm2780_vm13, %v7460_v3, 2102212464  ;;  %v2837_v48 = vadd.s32 %v2836_v50, %v2827_v11  ;;  %v4196_v50 = vld [vmem:[#allocation10 + $0x28] sm:$0xff] }
 0x1dd   : > { %v7704_v34 = vor.u32 %v2917_v14, %v2916_v33  ;;  %v7707_v38 = vshll.u32 %v10439_v10, %v2605_v52  ;;  %v7709_v55 = vadd.s32 %v2814_v26, %v2805_v12  ;;  %v10523_v54 = vshll.u32 %v7577_v23, 16  ;;  %4217 = vmatpush.msrb.mxu2 %v4196_v50  ;;  %4314 = vmatpush.msrb.mxu3 %v4196_v50 }
 0x1de   : > { %v2940_v59 = vsel %vm2934_vm11, %v2927_v0, 920167782  ;;  %vm2932_vm2 = vcmp.lt.s32.totalorder %v7664_v24, 2  ;;  %v2943_v3 = vsel %vm2931_vm15, %v7691_v19, %v7693_v7  ;;  %v2945_v52 = vsel %vm2933_vm1, %v2927_v0, %v2944_v35 }
 0x1df   : > { %10522 = vst [vmem:[#allocation123_spill] sm:$0xff] %v7709_v55  ;;  %v7714_v61 = vadd.s32 %v7604_v27, %v10523_v54  ;;  %v3057_v26 = vshrl.u32 %v3056_v46, 23  ;;  %v2609_v23 = vshrl.u32 %v10417_v49, %v7649_v31  ;;  %v2781_v12 = vsel %vm2777_vm12, %v2761_v45, %v7456_v9 }
 0x1e0   : > { %v2783_v27 = vsel %vm2779_vm14, %v7458_v43, %v2782_v37  ;;  %v7733_v14 = vshll.u32 %v2907_v36, 8  ;;  %v2841_v33 = vadd.s32 1, %v2837_v48  ;;  %v2939_v0 = vsel %vm2931_vm15, %v7704_v34, %v7691_v19 }
 0x1e1   : > { %10524 = vst [vmem:[#allocation124_spill] sm:$0xff] %v7714_v61  ;;  %v2941_v17 = vsel %vm2933_vm1, %v7693_v7, %v2940_v59  ;;  %v4822_v42 = vadd.s32 4294967169, %v3057_v26  ;;  %v7744_v45 = vshrl.u32 %v10423_v47, %v7649_v31  ;;  %v2612_v9 = vshrl.u32 %v10418_v2, %v7649_v31 }
 0x1e2   : > { %vm2840_vm12 = vc.u32 %v7709_v55, %v7714_v61  ;;  %v7752_v43 = vsel %vm2932_vm2, %v2943_v3, %v2945_v52  ;;  %v2615_v11 = vshrl.u32 %v10442_v29, %v7649_v31  ;;  %v2618_v60 = vshrl.u32 %v10439_v10, %v7649_v31 }
 0x1e3   : > { %v2784_v32 = vsel %vm2778_vm0, %v2781_v12, %v2783_v27  ;;  %v3063_v30 = vadd.s32 1, %v4822_v42  ;;  %v7761_v46 = vor.u32 %v2609_v23, %v7656_v4  ;;  %v7765_v36 = vshrl.u32 %v10440_v8, %v7649_v31 }
 0x1e4   : > { %v7769_v35 = vsel %vm2932_vm2, %v2939_v0, %v2941_v17  ;;  %v2950_v37 = vand.u32 65535, %v7752_v43  ;;  %v2842_v54 = vsel %vm2840_vm12, %v2841_v33, %v2837_v48  ;;  %v2948_v53 = vand.u32 65535, %v7733_v14 }
 0x1e5   : > { %v10284_v59 = vshrl.u32 %v7752_v43, 16  ;;  %vm3064_vm13 = vcmp.gt.s32.totalorder %v3063_v30, 0  ;;  %v7774_v4 = vor.u32 %v2612_v9, %v2611_v58  ;;  %v2838_v3 = vmul.u32 %v7484_v5, %v2784_v32 }
 0x1e6   : > { %v7778_v31 = vshrl.u32 %v7733_v14, 16  ;;  %v3065_v52 = vsel %vm3064_vm13, %v3063_v30, 0  ;;  %v7780_v26 = vor.u32 %v2615_v11, %v2614_v20  ;;  %v2973_v23 = vshrl.u32 %v7769_v35, 16 }
 0x1e7   : > { %v10286_v12 = vand.u32 2147483647, %v7669_v13  ;;  %v3067_v48 = vand.u32 31, %v3065_v52  ;;  %v7784_v27 = vor.u32 %v2618_v60, %v2617_v18  ;;  %v7786_v33 = vadd.s32 %v2842_v54, %v2838_v3 }
 0x1e8   : > { %v2952_v0 = vmul.u32 %v2950_v37, %v2948_v53  ;;  %v2972_v58 = vand.u32 65535, %v7769_v35  ;;  %v7791_v5 = vmul.u32 %v10284_v59, %v2948_v53  ;;  %v7798_v9 = vmul.u32 %v2950_v37, %v7778_v31 }
 0x1e9   : > { %v7793_v17 = vsub.s32 32, %v3067_v48  ;;  %v3070_v20 = vshll.u32 %v10423_v47, %v3067_v48  ;;  %v3073_v42 = vshll.u32 %v10417_v49, %v3067_v48  ;;  %v7800_v18 = vshrl.u32 %v3065_v52, 5 }
 0x1ea   : > { %v3076_v11 = vshll.u32 %v10418_v2, %v3067_v48  ;;  %v3079_v60 = vshll.u32 %v10442_v29, %v3067_v48  ;;  %vm2623_vm14 = vcmp.lt.s32.totalorder %v7637_v56, 1  ;;  %vm2626_vm0 = vcmp.lt.s32.totalorder %v7637_v56, 4 }
 0x1eb   : > { %v7806_v32 = vmul.u32 %v2973_v23, %v2948_v53  ;;  %v3060_v30 = vand.u32 8388607, %v10286_v12  ;;  %v3071_v50 = vshrl.u32 %v10417_v49, %v7793_v17  ;;  %v3074_v35 = vshrl.u32 %v10418_v2, %v7793_v17 }
 0x1ec   : > { %v2974_v37 = vmul.u32 %v2972_v58, %v2948_v53  ;;  %v3077_v54 = vshrl.u32 %v10442_v29, %v7793_v17  ;;  %v3080_v3 = vshrl.u32 %v10439_v10, %v7793_v17  ;;  %v3082_v52 = vshll.u32 %v10439_v10, %v3067_v48 }
 0x1ed   : > { %v2956_v59 = vshll.u32 %v7791_v5, 16  ;;  %v7820_v6 = vor.u32 %v3071_v50, %v3070_v20  ;;  %v7822_v12 = vor.u32 %v3074_v35, %v3073_v42  ;;  %v3083_v21 = vshrl.u32 %v10440_v8, %v7793_v17 }
 0x1ee   : > { %v7827_v28 = vmul.u32 %v2972_v58, %v7778_v31  ;;  %v7829_v53 = vor.u32 %v3077_v54, %v3076_v11  ;;  %v3081_v41 = vor.u32 %v3080_v3, %v3079_v60  ;;  %vm3085_vm3 = vcmp.lt.s32.totalorder %v7800_v18, 1 }
 0x1ef   : > { %v2978_v13 = vshll.u32 %v7806_v32, 16  ;;  %v3061_v48 = vor.u32 8388608, %v3060_v30  ;;  %v3084_v39 = vor.u32 %v3083_v21, %v3082_v52  ;;  %vm10297_vm4 = vcmp.lt.s32.totalorder %v7800_v18, 3 }
 0x1f0   : > { %v2844_v42 = vadd.s32 536870912, %v7786_v33  ;;  %v2958_v50 = vshll.u32 %v7798_v9, 16  ;;  %vm3088_vm5 = vcmp.lt.s32.totalorder %v7800_v18, 4  ;;  %vm7839_vm6 = vc.u32 %v2952_v0, %v2956_v59 }
 0x1f1   : > { %vm3086_vm9 = vcmp.lt.s32.totalorder %v7800_v18, 2  ;;  %v3093_v21 = vsel %vm3085_vm3, %v7820_v6, %v7822_v12  ;;  %v3094_v11 = vsel %vm3088_vm5, %v3081_v41, 920167782  ;;  %vm2625_vm10 = vcmp.lt.s32.totalorder %v7637_v56, 3 }
 0x1f2   : > { %v2962_v60 = vadd.s32 %v2956_v59, %v2952_v0  ;;  %v3095_v30 = vsel %vm10297_vm4, %v7829_v53, %v3094_v11  ;;  %v3097_v35 = vsel %vm3085_vm3, %v7822_v12, %v7829_v53  ;;  %v3098_v54 = vsel %vm3088_vm5, %v3084_v39, 1326507024  ;;  %v1401_v59 = vpop.f32.mrf.mxu2 }
 0x1f3   : > { %vm2982_vm12 = vc.u32 %v2974_v37, %v2978_v13  ;;  %v7861_v52 = vadd.s32 %v2978_v13, %v2974_v37  ;;  %v7863_v20 = vshll.u32 %v3061_v48, 8  ;;  %v2627_v0 = vsel %vm2623_vm14, %v7744_v45, %v7761_v46 }
 0x1f4   : > { %v2628_v11 = vsel %vm2626_vm0, %v7780_v26, 2102212464  ;;  %v7874_v39 = vsel %vm3086_vm9, %v3093_v21, %v3095_v30  ;;  %v3099_v13 = vsel %vm10297_vm4, %v3081_v41, %v3098_v54  ;;  %v7878_v37 = vshrl.u32 %v2844_v42, 30 }
 0x1f5   : > { %10527 = vst [vmem:[#allocation125_spill] sm:$0xff] %v7863_v20  ;;  %v10529_v48 = vshrl.u32 %v7752_v43, 16  ;;  %v2977_v44 = vmul.u32 %v2973_v23, %v7778_v31  ;;  %v7886_v45 = vsel %vm3086_vm9, %v3097_v35, %v3099_v13  ;;  %v2961_v21 = vsel %vm7839_vm6, 1, %v10510_v22  ;;  %v1466_v13 = vpop.f32.mrf.mxu3  ;;  %v1339_v23 = vpop.f32.mrf.mxu1 }
 0x1f6   : > { %10528 = vst [vmem:[#allocation126_spill] sm:$0xff] %v7878_v37  ;;  %vm7891_vm13 = vc.u32 %v2962_v60, %v2958_v50  ;;  %v2983_v41 = vsel %vm2982_vm12, 1, %v10510_v22  ;;  %v1402_v42 = vadd.f32 %v1401_v59, %v6666_v16  ;;  %vm2624_vm7 = vcmp.lt.s32.totalorder %v7637_v56, 2  ;;  %v1274_v50 = vpop.f32.mrf.mxu0 }
 0x1f7   : > { %v2955_v3 = vmul.u32 %v10529_v48, %v7778_v31  ;;  %v10532_v43 = vshll.u32 %v7827_v28, 16  ;;  %v3102_v31 = vand.u32 65535, %v7863_v20  ;;  %v7908_v60 = vsel %vm2623_vm14, %v7761_v46, %v7774_v4 }
 0x1f8   : > { %v7914_v35 = vsel %vm2623_vm14, %v7774_v4, %v7780_v26  ;;  %v2915_v54 = vshrl.u32 %v10423_v47, %v7632_v63  ;;  %v2936_v59 = vsel %vm2934_vm11, %v7693_v7, 2102212464  ;;  %v2846_v48 = vshll.u32 %v7878_v37, 30 }
 0x1f9   : > { %vm2986_vm4 = vc.u32 %v7861_v52, %v10532_v43  ;;  %v2963_v43 = vadd.s32 %v2961_v21, %v2955_v3  ;;  %v2965_v46 = vsel %vm7891_vm13, 1, %v10510_v22  ;;  %v2985_v58 = vadd.s32 %v2983_v41, %v2977_v44 }
 0x1fa   : > { %v2987_v15 = vsel %vm2986_vm4, 1, %v10510_v22  ;;  %v3103_v57 = vshrl.u32 %v7863_v20, 16  ;;  %v3104_v63 = vand.u32 65535, %v7886_v45  ;;  %v3126_v61 = vand.u32 65535, %v7874_v39 }
 0x1fb   : > { %v2629_v7 = vsel %vm2625_vm10, %v7774_v4, %v2628_v11  ;;  %v10533_v3 = vshrl.u32 %v7886_v45, 16  ;;  %v10534_v30 = vshrl.u32 %v7874_v39, 16  ;;  %v7940_v41 = vadd.f32 %v1466_v13, %v1402_v42 }
 0x1fc   : > { %v2632_v37 = vsel %vm2626_vm0, %v7784_v27, 920167782  ;;  %v2935_v55 = vsel %vm2931_vm15, %v2915_v54, %v7704_v34  ;;  %v2937_v4 = vsel %vm2933_vm1, %v7691_v19, %v2936_v59  ;;  %v2957_v11 = vshrl.u32 %v7791_v5, 16 }
 0x1fd   : > { %v7934_v21 = vmul.u32 %v10533_v3, %v3102_v31  ;;  %v7938_v44 = vmul.u32 %v10534_v30, %v3102_v31  ;;  %10535 = vst [vmem:[#allocation127_spill] sm:$0xff] %v7940_v41  ;;  %v2967_v3 = vadd.s32 %v2965_v46, %v2963_v43  ;;  %v2979_v30 = vshrl.u32 %v7806_v32, 16 }
 0x1fe   : > { %v2989_v51 = vadd.s32 %v2987_v15, %v2985_v58  ;;  %v1275_v42 = vadd.f32 %v1274_v50, %v6815_v1  ;;  %v7955_v13 = vsub.s32 %v7786_v33, %v2846_v48  ;;  %v7957_v20 = vmul.u32 %v3104_v63, %v3103_v57  ;;  %v4195_v58 = vld [vmem:[#allocation10 + $0x20] sm:$0xff]  ;;  %v1277_v46 = vpop.f32.mrf.mxu0 }
 0x1ff   : > { %v3128_v62 = vmul.u32 %v3126_v61, %v3102_v31  ;;  %v7959_v40 = vmul.u32 %v3126_v61, %v3103_v57  ;;  %v3106_v34 = vmul.u32 %v3104_v63, %v3102_v31  ;;  %v3110_v54 = vshll.u32 %v7934_v21, 16  ;;  %4218 = vmatpush.msrb.mxu2 %v4195_v58  ;;  %4315 = vmatpush.msrb.mxu3 %v4195_v58 }
 0x200   : > { %v3132_v19 = vshll.u32 %v7938_v44, 16  ;;  %v3210_v5 = vand.u32 2139095040, %v7940_v41  ;;  %v7966_v15 = vsel %vm2624_vm7, %v2627_v0, %v2629_v7  ;;  %v10537_v33 = vor.u32 %v7765_v36, %v7707_v38  ;;  %v1342_v7 = vpop.f32.mrf.mxu1 }
 0x201   : > { %10536 = vst [vmem:[#allocation128_spill] sm:$0xff] %v7966_v15  ;;  %v2959_v61 = vshrl.u32 %v7798_v9, 16  ;;  %v2981_v31 = vshrl.u32 %v7827_v28, 16  ;;  %v2968_v50 = vadd.s32 %v2967_v3, %v2957_v11  ;;  %v2990_v59 = vadd.s32 %v2989_v51, %v2979_v30  ;;  %v10554_v15 = vld [vmem:[#allocation123_spill] sm:$0xff] }
 0x202   : > { %v2636_v32 = vsel %vm2626_vm0, %v10537_v33, 1326507024  ;;  %v3211_v48 = vshrl.u32 %v3210_v5, 23  ;;  %v7975_v43 = vadd.f32 %v1339_v23, %v1275_v42  ;;  %vm2848_vm11 = vcmp.lt.s32.totalorder %v7955_v13, 0 }
 0x203   : > { %v7980_v38 = vsel %vm2932_vm2, %v2935_v55, %v2937_v4  ;;  %v3112_v36 = vshll.u32 %v7957_v20, 16  ;;  %v3134_v9 = vshll.u32 %v7959_v40, 16  ;;  %v3116_v0 = vadd.s32 %v3110_v54, %v3106_v34 }
 0x204   : > { %vm3136_vm15 = vc.u32 %v3128_v62, %v3132_v19  ;;  %v7984_v63 = vadd.s32 %v3132_v19, %v3128_v62  ;;  %v4825_v51 = vadd.s32 4294967169, %v3211_v48  ;;  %v2849_v23 = vsub.s32 0, %v7955_v13 }
 0x205   : > { %v10538_v11 = vshll.u32 %v7827_v28, 16  ;;  %vm3114_vm1 = vc.u32 %v3106_v34, %v3110_v54  ;;  %v1278_v24 = vadd.f32 %v1277_v46, %v6815_v1  ;;  %v7993_v55 = vadd.s32 %v2968_v50, %v2959_v61 }
 0x206   : > { %v2991_v4 = vadd.s32 %v2990_v59, %v2981_v31  ;;  %v10539_v30 = vshrl.u32 %v7874_v39, 16  ;;  %v3217_v62 = vadd.s32 1, %v4825_v51  ;;  %v10540_v19 = vshrl.u32 %v7886_v45, 16 }
 0x207   : > { %v7990_v3 = vadd.s32 %v7861_v52, %v10538_v11  ;;  %v3137_v33 = vsel %vm3136_vm15, 1, %v10510_v22  ;;  %v10307_v28 = vand.u32 2147483647, %v7940_v41  ;;  %v8001_v58 = vadd.f32 %v1342_v7, %v1278_v24  ;;  %v1404_v24 = vpop.f32.mrf.mxu2 }
 0x208   : > { %v3131_v42 = vmul.u32 %v10539_v30, %v3103_v57  ;;  %v3109_v5 = vmul.u32 %v10540_v19, %v3103_v57  ;;  %v3115_v52 = vsel %vm3114_vm1, 1, %v10510_v22  ;;  %vm3118_vm2 = vc.u32 %v3116_v0, %v3112_v36 }
 0x209   : > { %10541 = vst [vmem:[#allocation129_spill] sm:$0xff] %v8001_v58  ;;  %vm3140_vm14 = vc.u32 %v7984_v63, %v3134_v9  ;;  %vm3218_vm0 = vcmp.gt.s32.totalorder %v3217_v62, 0  ;;  %v2633_v39 = vsel %vm2625_vm10, %v7780_v26, %v2632_v37  ;;  %v2637_v57 = vsel %vm2625_vm10, %v7784_v27, %v2636_v32 }
 0x20a   : > { %v2992_v45 = vmul.u32 %v7733_v14, %v7980_v38  ;;  %v3219_v34 = vsel %vm3218_vm0, %v3217_v62, 0  ;;  %v8018_v54 = vsel %vm2848_vm11, %v2849_v23, %v7955_v13  ;;  %vm2994_vm4 = vc.u32 %v7993_v55, %v7990_v3 }
 0x20b   : > { %v3139_v61 = vadd.s32 %v3137_v33, %v3131_v42  ;;  %v3221_v31 = vand.u32 31, %v3219_v34  ;;  %v2995_v50 = vadd.s32 1, %v2991_v4  ;;  %v3117_v26 = vadd.s32 %v3115_v52, %v3109_v5 }
 0x20c   : > { %v3119_v37 = vsel %vm3118_vm2, 1, %v10510_v22  ;;  %v3141_v27 = vsel %vm3140_vm14, 1, %v10510_v22  ;;  %v3214_v14 = vand.u32 8388607, %v10307_v28  ;;  %v8026_v32 = vshrl.u32 %v3219_v34, 5 }
 0x20d   : > { %v8028_v59 = vsub.s32 32, %v3221_v31  ;;  %v3224_v48 = vshll.u32 %v10423_v47, %v3221_v31  ;;  %v3133_v46 = vshrl.u32 %v7938_v44, 16  ;;  %v3227_v38 = vshll.u32 %v10417_v49, %v3221_v31 }
 0x20e   : > { %v3230_v36 = vshll.u32 %v10418_v2, %v3221_v31  ;;  %v3233_v0 = vshll.u32 %v10442_v29, %v3221_v31  ;;  %v3111_v51 = vshrl.u32 %v7934_v21, 16  ;;  %v3143_v7 = vadd.s32 %v3141_v27, %v3139_v61 }
 0x20f   : > { %v3225_v23 = vshrl.u32 %v10417_v49, %v8028_v59  ;;  %v3236_v11 = vshll.u32 %v10439_v10, %v3221_v31  ;;  %v3121_v30 = vadd.s32 %v3119_v37, %v3117_v26  ;;  %v3228_v42 = vshrl.u32 %v10418_v2, %v8028_v59  ;;  %v1469_v37 = vpop.f32.mrf.mxu3 }
 0x210   : > { %v3231_v44 = vshrl.u32 %v10442_v29, %v8028_v59  ;;  %v3234_v62 = vshrl.u32 %v10439_v10, %v8028_v59  ;;  %v3215_v19 = vor.u32 8388608, %v3214_v14  ;;  %v3237_v21 = vshrl.u32 %v10440_v8, %v8028_v59 }
 0x211   : > { %v8045_v5 = vor.u32 %v3225_v23, %v3224_v48  ;;  %vm3239_vm6 = vcmp.lt.s32.totalorder %v8026_v32, 1  ;;  %v8050_v33 = vor.u32 %v3228_v42, %v3227_v38  ;;  %v1405_v61 = vadd.f32 %v1404_v24, %v6666_v16 }
 0x212   : > { %v8052_v52 = vor.u32 %v3231_v44, %v3230_v36  ;;  %v3235_v34 = vor.u32 %v3234_v62, %v3233_v0  ;;  %v2996_v31 = vsel %vm2994_vm4, %v2995_v50, %v2991_v4  ;;  %v3238_v26 = vor.u32 %v3237_v21, %v3236_v11 }
 0x213   : > { %vm3241_vm10 = vcmp.lt.s32.totalorder %v8026_v32, 3  ;;  %vm3242_vm12 = vcmp.lt.s32.totalorder %v8026_v32, 4  ;;  %v3113_v27 = vshrl.u32 %v7957_v20, 16  ;;  %vm3240_vm13 = vcmp.lt.s32.totalorder %v8026_v32, 2 }
 0x214   : > { %v3247_v14 = vsel %vm3239_vm6, %v8045_v5, %v8050_v33  ;;  %v3248_v48 = vsel %vm3242_vm12, %v3235_v34, 920167782  ;;  %v3135_v4 = vshrl.u32 %v7959_v40, 16  ;;  %v3144_v50 = vadd.s32 %v3143_v7, %v3133_v46 }
 0x215   : > { %v3249_v38 = vsel %vm3241_vm10, %v8052_v52, %v3248_v48  ;;  %v8072_v36 = vshll.u32 %v3215_v19, 8  ;;  %v3122_v20 = vadd.s32 %v3121_v30, %v3111_v51  ;;  %v3251_v0 = vsel %vm3239_vm6, %v8050_v33, %v8052_v52  ;;  %v4194_v30 = vld [vmem:[#allocation10 + $0x18] sm:$0xff] }
 0x216   : > { %v3252_v23 = vsel %vm3242_vm12, %v3238_v26, 1326507024  ;;  %v8080_v11 = vadd.f32 %v1469_v37, %v1405_v61  ;;  %v8085_v46 = vsel %vm2624_vm7, %v7908_v60, %v2633_v39  ;;  %v8090_v7 = vsel %vm2624_vm7, %v7914_v35, %v2637_v57  ;;  %4219 = vmatpush.msrb.mxu2 %v4194_v30  ;;  %4316 = vmatpush.msrb.mxu3 %v4194_v30  ;;  %v10555_v61 = vld [vmem:[#allocation124_spill] sm:$0xff] }
 0x217   : > { %10543 = vst [vmem:[#allocation131_spill] sm:$0xff] %v8085_v46  ;;  %v8094_v51 = vsel %vm3240_vm13, %v3247_v14, %v3249_v38  ;;  %v3253_v24 = vsel %vm3241_vm10, %v3235_v34, %v3252_v23  ;;  %v2851_v42 = vclz %v8018_v54  ;;  %v8099_v44 = vadd.s32 %v2996_v31, %v2992_v45 }
 0x218   : > { %10542 = vst [vmem:[#allocation130_spill] sm:$0xff] %v8080_v11  ;;  %v3069_v60 = vshrl.u32 %v10423_v47, %v7793_v17  ;;  %v8105_v56 = vsel %vm3240_vm13, %v3251_v0, %v3253_v24  ;;  %v3090_v35 = vsel %vm3088_vm5, %v7829_v53, 2102212464  ;;  %v3145_v39 = vadd.s32 %v3144_v50, %v3135_v4 }
 0x219   : > { %10544 = vst [vmem:[#allocation132_spill] sm:$0xff] %v8090_v7  ;;  %v3256_v57 = vand.u32 65535, %v8072_v36  ;;  %v3259_v54 = vshrl.u32 %v8105_v56, 16  ;;  %v8112_v45 = vadd.s32 %v3122_v20, %v3113_v27  ;;  %v8117_v17 = vadd.s32 %v7984_v63, %v3134_v9  ;;  %v10547_v20 = vld [vmem:[#allocation120_spill] sm:$0xff] }
 0x21a   : > { %v3281_v62 = vshrl.u32 %v8094_v51, 16  ;;  %v3364_v19 = vand.u32 2139095040, %v8080_v11  ;;  %v10308_v21 = vand.u32 65535, %v8090_v7  ;;  %v2643_v53 = vshrl.u32 %v8090_v7, 16 }
 0x21b   : > { %v2665_v34 = vshrl.u32 %v8085_v46, 16  ;;  %v4817_v31 = vadd.s32 4294967294, %v2851_v42  ;;  %v2998_v26 = vadd.s32 536870912, %v8099_v44  ;;  %v3089_v40 = vsel %vm3085_vm3, %v3069_v60, %v7820_v6  ;;  %v10546_v6 = vld [vmem:[#allocation118_spill] sm:$0xff] }
 0x21c   : > { %vm10545_vm7 = vcmp.lt.s32.totalorder %v7800_v18, 3  ;;  %v3149_v63 = vadd.s32 1, %v3145_v39  ;;  %v3257_v37 = vshrl.u32 %v8072_v36, 16  ;;  %v3258_v27 = vand.u32 65535, %v8105_v56 }
 0x21d   : > { %v3091_v9 = vsel %vm10545_vm7, %v7822_v12, %v3090_v35  ;;  %v8135_v14 = vmul.u32 %v3259_v54, %v3256_v57  ;;  %vm3148_vm5 = vc.u32 %v8112_v45, %v8117_v17  ;;  %v3280_v48 = vand.u32 65535, %v8094_v51 }
 0x21e   : > { %v8140_v4 = vmul.u32 %v3281_v62, %v3256_v57  ;;  %v3365_v50 = vshrl.u32 %v3364_v19, 23  ;;  %v8145_v38 = vmul.u32 %v10308_v21, %v10546_v6  ;;  %v8148_v12 = vmul.u32 %v2643_v53, %v10546_v6  ;;  %v10552_v21 = vld [vmem:[#allocation125_spill] sm:$0xff] }
 0x21f   : > { %v8151_v0 = vmul.u32 %v2643_v53, %v10547_v20  ;;  %v8155_v24 = vmul.u32 %v2665_v34, %v10546_v6  ;;  %vm4818_vm3 = vcmp.lt.s32.totalorder %v4817_v31, 0  ;;  %v8157_v51 = vshrl.u32 %v2998_v26, 30  ;;  %v4193_v6 = vld [vmem:[#allocation10 + $0x10] sm:$0xff] }
 0x220   : > { %v3092_v30 = vsel %vm3086_vm9, %v3089_v40, %v3091_v9  ;;  %v3150_v42 = vsel %vm3148_vm5, %v3149_v63, %v3145_v39  ;;  %v3260_v60 = vmul.u32 %v3258_v27, %v3256_v57  ;;  %v8161_v56 = vmul.u32 %v3258_v27, %v3257_v37  ;;  %v10553_v9 = vld [vmem:[#allocation95_spill] sm:$0xff]  ;;  %4220 = vmatpush.msrb.mxu2 %v4193_v6 }
 0x221   : > { %10548 = vst [vmem:[#allocation133_spill] sm:$0xff] %v8151_v0  ;;  %v3264_v35 = vshll.u32 %v8135_v14, 16  ;;  %v3282_v19 = vmul.u32 %v3280_v48, %v3256_v57  ;;  %v3286_v53 = vshll.u32 %v8140_v4, 16  ;;  %v4828_v28 = vadd.s32 4294967169, %v3365_v50  ;;  %4317 = vmatpush.msrb.mxu3 %v4193_v6 }
 0x222   : > { %10549 = vst [vmem:[#allocation134_spill] sm:$0xff] %v8155_v24  ;;  %v8168_v26 = vmul.u32 %v2665_v34, %v10547_v20  ;;  %v3146_v18 = vmul.u32 %v10552_v21, %v3092_v30  ;;  %v8171_v40 = vmul.u32 %v3280_v48, %v3257_v37  ;;  %v8173_v39 = vsel %vm4818_vm3, 0, %v4817_v31 }
 0x223   : > { %10550 = vst [vmem:[#allocation135_spill] sm:$0xff] %v8157_v51  ;;  %v8176_v63 = vmul.f32 1.442695, %v10553_v9  ;;  %v3000_v57 = vshll.u32 %v8157_v51, 30  ;;  %v3371_v27 = vadd.s32 1, %v4828_v28  ;;  %v8181_v50 = vadd.s32 %v10555_v61, %v10554_v15 }
 0x224   : > { %10551 = vst [vmem:[#allocation136_spill] sm:$0xff] %v8168_v26  ;;  %v8183_v23 = vadd.s32 %v3150_v42, %v3146_v18  ;;  %v3266_v34 = vshll.u32 %v8161_v56, 16  ;;  %v3270_v25 = vadd.s32 %v3264_v35, %v3260_v60  ;;  %vm3268_vm9 = vc.u32 %v3260_v60, %v3264_v35 }
 0x225   : > { %vm3290_vm11 = vc.u32 %v3282_v19, %v3286_v53  ;;  %v10556_v21 = vand.u32 2147483647, %v8080_v11  ;;  %vm3372_vm15 = vcmp.gt.s32.totalorder %v3371_v27, 0  ;;  %v10313_v30 = vshll.u32 %v8171_v40, 16 }
 0x226   : > { %v8190_v28 = vadd.s32 %v3286_v53, %v3282_v19  ;;  %v3373_v9 = vsel %vm3372_vm15, %v3371_v27, 0  ;;  %v8193_v15 = vsub.s32 %v8099_v44, %v3000_v57  ;;  %v3263_v61 = vmul.u32 %v3259_v54, %v3257_v37 }
 0x227   : > { %v3368_v31 = vand.u32 8388607, %v10556_v21  ;;  %v3285_v42 = vmul.u32 %v3281_v62, %v3257_v37  ;;  %v3375_v18 = vand.u32 31, %v3373_v9  ;;  %v3152_v60 = vadd.s32 536870912, %v8183_v23 }
 0x228   : > { %v3269_v35 = vsel %vm3268_vm9, 1, %v10510_v22  ;;  %vm3272_vm1 = vc.u32 %v3270_v25, %v3266_v34  ;;  %v3291_v21 = vsel %vm3290_vm11, 1, %v10510_v22  ;;  %vm3294_vm2 = vc.u32 %v8190_v28, %v10313_v30 }
 0x229   : > { %v3369_v51 = vor.u32 8388608, %v3368_v31  ;;  %v8198_v48 = vsub.s32 32, %v3375_v18  ;;  %v3378_v19 = vshll.u32 %v10423_v47, %v3375_v18  ;;  %v3381_v53 = vshll.u32 %v10417_v49, %v3375_v18 }
 0x22a   : > { %v8205_v44 = vshrl.u32 %v3373_v9, 5  ;;  %v3384_v54 = vshll.u32 %v10418_v2, %v3375_v18  ;;  %v3387_v62 = vshll.u32 %v10442_v29, %v3375_v18  ;;  %v3271_v25 = vadd.s32 %v3269_v35, %v3263_v61 }
 0x22b   : > { %v3293_v37 = vadd.s32 %v3291_v21, %v3285_v42  ;;  %v3379_v57 = vshrl.u32 %v10417_v49, %v8198_v48  ;;  %v3382_v27 = vshrl.u32 %v10418_v2, %v8198_v48  ;;  %v3273_v34 = vsel %vm3272_vm1, 1, %v10510_v22 }
 0x22c   : > { %v3385_v31 = vshrl.u32 %v10442_v29, %v8198_v48  ;;  %v3388_v9 = vshrl.u32 %v10439_v10, %v8198_v48  ;;  %v3390_v30 = vshll.u32 %v10439_v10, %v3375_v18  ;;  %v3295_v26 = vsel %vm3294_vm2, 1, %v10510_v22 }
 0x22d   : > { %v8220_v61 = vor.u32 %v3379_v57, %v3378_v19  ;;  %v8222_v42 = vor.u32 %v3382_v27, %v3381_v53  ;;  %v8224_v35 = vshll.u32 %v3369_v51, 8  ;;  %v3391_v24 = vshrl.u32 %v10440_v8, %v8198_v48 }
 0x22e   : > { %v8226_v21 = vor.u32 %v3385_v31, %v3384_v54  ;;  %v3389_v11 = vor.u32 %v3388_v9, %v3387_v62  ;;  %vm3393_vm14 = vcmp.lt.s32.totalorder %v8205_v44, 1  ;;  %v8231_v46 = vshrl.u32 %v3152_v60, 30 }
 0x22f   : > { %v3287_v18 = vshrl.u32 %v8140_v4, 16  ;;  %vm3395_vm0 = vcmp.lt.s32.totalorder %v8205_v44, 3  ;;  %vm3396_vm4 = vcmp.lt.s32.totalorder %v8205_v44, 4  ;;  %v3265_v19 = vshrl.u32 %v8135_v14, 16 }
 0x230   : > { %10557 = vst [vmem:[#allocation125_spill] sm:$0xff] %v8231_v46  ;;  %v3392_v51 = vor.u32 %v3391_v24, %v3390_v30  ;;  %vm3394_vm7 = vcmp.lt.s32.totalorder %v8205_v44, 2  ;;  %v3401_v53 = vsel %vm3393_vm14, %v8220_v61, %v8222_v42  ;;  %v3275_v54 = vadd.s32 %v3273_v34, %v3271_v25  ;;  %v1407_v34 = vpop.f32.mrf.mxu2 }
 0x231   : > { %v3297_v62 = vadd.s32 %v3295_v26, %v3293_v37  ;;  %v3402_v60 = vsel %vm3396_vm4, %v3389_v11, 920167782  ;;  %v3405_v4 = vsel %vm3393_vm14, %v8222_v42, %v8226_v21  ;;  %v3410_v30 = vand.u32 65535, %v8224_v35 }
 0x232   : > { %v3403_v14 = vsel %vm3395_vm0, %v8226_v21, %v3402_v60  ;;  %v3406_v24 = vsel %vm3396_vm4, %v3392_v51, 1326507024  ;;  %v3411_v25 = vshrl.u32 %v8224_v35, 16  ;;  %v3223_v37 = vshrl.u32 %v10423_v47, %v8028_v59 }
 0x233   : > { %v3404_v57 = vsel %vm3394_vm7, %v3401_v53, %v3403_v14  ;;  %v3407_v27 = vsel %vm3395_vm0, %v3389_v11, %v3406_v24  ;;  %v3267_v31 = vshrl.u32 %v8161_v56, 16  ;;  %v3289_v26 = vshrl.u32 %v8171_v40, 16 }
 0x234   : > { %v3408_v9 = vsel %vm3394_vm7, %v3405_v4, %v3407_v27  ;;  %v3434_v51 = vand.u32 65535, %v3404_v57  ;;  %v3435_v60 = vshrl.u32 %v3404_v57, 16  ;;  %v3298_v0 = vadd.s32 %v3297_v62, %v3287_v18  ;;  %v1472_v27 = vpop.f32.mrf.mxu3 }
 0x235   : > { %v3412_v7 = vand.u32 65535, %v3408_v9  ;;  %v3413_v59 = vshrl.u32 %v3408_v9, 16  ;;  %v3276_v53 = vadd.s32 %v3275_v54, %v3265_v19  ;;  %v1408_v11 = vadd.f32 %v1407_v34, %v6666_v16 }
 0x236   : > { %v3437_v14 = vmul.u32 %v3435_v60, %v3410_v30  ;;  %v8266_v20 = vmul.u32 %v3434_v51, %v3411_v25  ;;  %v3243_v56 = vsel %vm3239_vm6, %v3223_v37, %v8045_v5  ;;  %v3436_v57 = vmul.u32 %v3434_v51, %v3410_v30 }
 0x237   : > { %v3414_v4 = vmul.u32 %v3412_v7, %v3410_v30  ;;  %v8272_v24 = vmul.u32 %v3413_v59, %v3410_v30  ;;  %v3244_v18 = vsel %vm3242_vm12, %v8052_v52, 2102212464  ;;  %v10558_v6 = vshll.u32 %v8171_v40, 16  ;;  %v1280_v30 = vpop.f32.mrf.mxu0 }
 0x238   : > { %v8282_v54 = vmul.u32 %v3412_v7, %v3411_v25  ;;  %v3440_v62 = vshll.u32 %v3437_v14, 16  ;;  %v3299_v34 = vadd.s32 %v3298_v0, %v3289_v26  ;;  %v3439_v37 = vmul.u32 %v3435_v60, %v3411_v25  ;;  %v1410_v44 = vpop.f32.mrf.mxu2 }
 0x239   : > { %v8280_v19 = vadd.s32 %v8190_v28, %v10558_v6  ;;  %v3418_v5 = vshll.u32 %v8272_v24, 16  ;;  %v3442_v9 = vshll.u32 %v8266_v20, 16  ;;  %v8286_v51 = vadd.s32 %v3276_v53, %v3267_v31 }
 0x23a   : > { %v3417_v41 = vmul.u32 %v3413_v59, %v3411_v25  ;;  %v3420_v52 = vshll.u32 %v8282_v54, 16  ;;  %v8289_v58 = vadd.f32 %v1472_v27, %v1408_v11  ;;  %vm3444_vm12 = vc.u32 %v3436_v57, %v3440_v62  ;;  %v1345_v11 = vpop.f32.mrf.mxu1 }
 0x23b   : > { %vm3422_vm6 = vc.u32 %v3414_v4, %v3418_v5  ;;  %v3424_v40 = vadd.s32 %v3418_v5, %v3414_v4  ;;  %v3446_v7 = vadd.s32 %v3440_v62, %v3436_v57  ;;  %v3245_v0 = vsel %vm3241_vm10, %v8050_v33, %v3244_v18 }
 0x23c   : > { %10559 = vst [vmem:[#allocation95_spill] sm:$0xff] %v8289_v58  ;;  %v3423_v28 = vsel %vm3422_vm6, 1, %v10510_v22  ;;  %v3445_v26 = vsel %vm3444_vm12, 1, %v10510_v22  ;;  %v1281_v31 = vadd.f32 %v1280_v30, %v6815_v1  ;;  %v3303_v60 = vadd.s32 1, %v3299_v34 }
 0x23d   : > { %vm3426_vm5 = vc.u32 %v3424_v40, %v3420_v52  ;;  %v3447_v25 = vadd.s32 %v3445_v26, %v3439_v37  ;;  %vm3448_vm3 = vc.u32 %v3446_v7, %v3442_v9  ;;  %v2855_v59 = vsub.s32 32, %v8173_v39 }
 0x23e   : > { %vm3302_vm9 = vc.u32 %v8286_v51, %v8280_v19  ;;  %v3425_v53 = vadd.s32 %v3423_v28, %v3417_v41  ;;  %v3449_v33 = vsel %vm3448_vm3, 1, %v10510_v22  ;;  %v10560_v4 = vsub.s32 4294967266, %v8173_v39 }
 0x23f   : > { %v3246_v27 = vsel %vm3240_vm13, %v3243_v56, %v3245_v0  ;;  %v3427_v18 = vsel %vm3426_vm5, 1, %v10510_v22  ;;  %v3518_v6 = vand.u32 2139095040, %v8289_v58  ;;  %vm3002_vm10 = vcmp.lt.s32.totalorder %v8193_v15, 0 }
 0x240   : > { %v2860_v57 = vadd.s32 127, %v10560_v4  ;;  %v3003_v62 = vsub.s32 0, %v8193_v15  ;;  %v3441_v5 = vshrl.u32 %v3437_v14, 16  ;;  %v3451_v37 = vadd.s32 %v3449_v33, %v3447_v25 }
 0x241   : > { %v10561_v41 = vshll.u32 %v8231_v46, 30  ;;  %v3304_v52 = vsel %vm3302_vm9, %v3303_v60, %v3299_v34  ;;  %v3519_v40 = vshrl.u32 %v3518_v6, 23  ;;  %v8316_v28 = vadd.f32 %v1345_v11, %v1281_v31 }
 0x242   : > { %v3300_v32 = vmul.u32 %v8072_v36, %v3246_v27  ;;  %v3419_v56 = vshrl.u32 %v8272_v24, 16  ;;  %v3429_v0 = vadd.s32 %v3427_v18, %v3425_v53  ;;  %v10324_v26 = vand.u32 2147483647, %v8289_v58 }
 0x243   : > { %v8314_v30 = vsub.s32 %v8183_v23, %v10561_v41  ;;  %10562 = vst [vmem:[#allocation123_spill] sm:$0xff] %v8316_v28  ;;  %v10563_v14 = vshll.u32 %v8148_v12, 16  ;;  %v2856_v23 = vshll.u32 %v7955_v13, %v8173_v39  ;;  %v2857_v34 = vshrl.u32 %v8181_v50, %v2855_v59 }
 0x244   : > { %v4831_v60 = vadd.s32 4294967169, %v3519_v40  ;;  %v2861_v31 = vshll.u32 %v2860_v57, 23  ;;  %v8329_v33 = vadd.s32 %v3304_v52, %v3300_v32  ;;  %v3443_v36 = vshrl.u32 %v8266_v20, 16 }
 0x245   : > { %v8324_v25 = vadd.s32 %v10563_v14, %v8145_v38  ;;  %v3452_v24 = vadd.s32 %v3451_v37, %v3441_v5  ;;  %v3004_v53 = vsel %vm3002_vm10, %v3003_v62, %v8193_v15  ;;  %v3157_v11 = vsub.s32 0, %v8314_v30 }
 0x246   : > { %v3377_v4 = vshrl.u32 %v10423_v47, %v8198_v48  ;;  %v3525_v27 = vadd.s32 1, %v4831_v60  ;;  %vm3156_vm13 = vcmp.lt.s32.totalorder %v8314_v30, 0  ;;  %v3421_v13 = vshrl.u32 %v8282_v54, 16  ;;  %v4192_v60 = vld [vmem:[#allocation10 + $0x8] sm:$0xff] }
 0x247   : > { %v3430_v39 = vadd.s32 %v3429_v0, %v3419_v56  ;;  %v3522_v50 = vand.u32 8388607, %v10324_v26  ;;  %v8342_v59 = vor.u32 %v2857_v34, %v2856_v23  ;;  %v8346_v57 = vadd.s32 %v7990_v3, %v7993_v55  ;;  %4221 = vmatpush.msrb.mxu2 %v4192_v60  ;;  %4318 = vmatpush.msrb.mxu3 %v4192_v60 }
 0x248   : > { %v3398_v18 = vsel %vm3396_vm4, %v8226_v21, 2102212464  ;;  %vm3526_vm11 = vcmp.gt.s32.totalorder %v3525_v27, 0  ;;  %v8351_v48 = vor.u32 4788187, %v2861_v31  ;;  %v3306_v6 = vadd.s32 536870912, %v8329_v33 }
 0x249   : > { %v3453_v54 = vadd.s32 %v3452_v24, %v3443_v36  ;;  %v3527_v62 = vsel %vm3526_vm11, %v3525_v27, 0  ;;  %v3005_v5 = vclz %v3004_v53  ;;  %v3158_v37 = vsel %vm3156_vm13, %v3157_v11, %v8314_v30 }
 0x24a   : > { %v3397_v41 = vsel %vm3393_vm14, %v3377_v4, %v8220_v61  ;;  %v3529_v3 = vand.u32 31, %v3527_v62  ;;  %v3399_v55 = vsel %vm3395_vm0, %v8222_v42, %v3398_v18  ;;  %v8361_v21 = vadd.s32 %v3430_v39, %v3421_v13 }
 0x24b   : > { %v8365_v52 = vadd.s32 %v3446_v7, %v3442_v9  ;;  %v3523_v40 = vor.u32 8388608, %v3522_v50  ;;  %v8372_v14 = vshrl.u32 %v3306_v6, 30  ;;  %v3457_v23 = vadd.s32 1, %v3453_v54 }
 0x24c   : > { %v8367_v32 = vsub.s32 32, %v3529_v3  ;;  %v3532_v56 = vshll.u32 %v10423_v47, %v3529_v3  ;;  %v3535_v0 = vshll.u32 %v10417_v49, %v3529_v3  ;;  %v3538_v61 = vshll.u32 %v10418_v2, %v3529_v3 }
 0x24d   : > { %10564 = vst [vmem:[#allocation124_spill] sm:$0xff] %v8372_v14  ;;  %v3541_v42 = vshll.u32 %v10442_v29, %v3529_v3  ;;  %v3544_v34 = vshll.u32 %v10439_v10, %v3529_v3  ;;  %v8376_v20 = vshrl.u32 %v3527_v62, 5  ;;  %v3400_v36 = vsel %vm3394_vm7, %v3397_v41, %v3399_v55 }
 0x24e   : > { %v3533_v9 = vshrl.u32 %v10417_v49, %v8367_v32  ;;  %v3536_v7 = vshrl.u32 %v10418_v2, %v8367_v32  ;;  %v3539_v31 = vshrl.u32 %v10442_v29, %v8367_v32  ;;  %vm3456_vm15 = vc.u32 %v8361_v21, %v8365_v52 }
 0x24f   : > { %v3542_v24 = vshrl.u32 %v10439_v10, %v8367_v32  ;;  %v3545_v53 = vshrl.u32 %v10440_v8, %v8367_v32  ;;  %v8398_v13 = vshll.u32 %v3523_v40, 8  ;;  %v4820_v39 = vadd.s32 4294967294, %v3005_v5 }
 0x250   : > { %v8392_v11 = vor.u32 %v3533_v9, %v3532_v56  ;;  %v8394_v4 = vor.u32 %v3536_v7, %v3535_v0  ;;  %v8396_v27 = vor.u32 %v3539_v31, %v3538_v61  ;;  %v3159_v50 = vclz %v3158_v37 }
 0x251   : > { %v3543_v18 = vor.u32 %v3542_v24, %v3541_v42  ;;  %v3546_v6 = vor.u32 %v3545_v53, %v3544_v34  ;;  %v3458_v62 = vsel %vm3456_vm15, %v3457_v23, %v3453_v54  ;;  %vm3547_vm1 = vcmp.lt.s32.totalorder %v8376_v20, 1 }
 0x252   : > { %vm3549_vm2 = vcmp.lt.s32.totalorder %v8376_v20, 3  ;;  %vm3550_vm14 = vcmp.lt.s32.totalorder %v8376_v20, 4  ;;  %v3308_v41 = vshll.u32 %v8372_v14, 30  ;;  %v3454_v3 = vmul.u32 %v8224_v35, %v3400_v36  ;;  %v1475_v35 = vpop.f32.mrf.mxu3 }
 0x253   : > { %vm3548_vm0 = vcmp.lt.s32.totalorder %v8376_v20, 2  ;;  %v1411_v55 = vadd.f32 %v1410_v44, %v6666_v16  ;;  %v3555_v5 = vsel %vm3547_vm1, %v8392_v11, %v8394_v4  ;;  %v3556_v54 = vsel %vm3550_vm14, %v3543_v18, 920167782 }
 0x254   : > { %v3559_v37 = vsel %vm3547_vm1, %v8394_v4, %v8396_v27  ;;  %v3564_v40 = vand.u32 65535, %v8398_v13  ;;  %v8418_v56 = vadd.s32 %v3458_v62, %v3454_v3  ;;  %v3557_v0 = vsel %vm3549_vm2, %v8396_v27, %v3556_v54 }
 0x255   : > { %v3560_v61 = vsel %vm3550_vm14, %v3546_v6, 1326507024  ;;  %v3565_v23 = vshrl.u32 %v8398_v13, 16  ;;  %vm4821_vm4 = vcmp.lt.s32.totalorder %v4820_v39, 0  ;;  %v4823_v42 = vadd.s32 4294967294, %v3159_v50 }
 0x256   : > { %v3558_v34 = vsel %vm3548_vm0, %v3555_v5, %v3557_v0  ;;  %v3561_v60 = vsel %vm3549_vm2, %v3543_v18, %v3560_v61  ;;  %v8432_v36 = vadd.f32 %v1475_v35, %v1411_v55  ;;  %v2865_v24 = vcvt.s32.f32 %v8342_v59 }
 0x257   : > { %v3562_v9 = vsel %vm3548_vm0, %v3559_v37, %v3561_v60  ;;  %v3588_v7 = vand.u32 65535, %v3558_v34  ;;  %v3589_v31 = vshrl.u32 %v3558_v34, 16  ;;  %v8436_v53 = vsub.s32 %v8329_v33, %v3308_v41 }
 0x258   : > { %10565 = vst [vmem:[#allocation137_spill] sm:$0xff] %v8432_v36  ;;  %v3566_v44 = vand.u32 65535, %v3562_v9  ;;  %v3567_v50 = vshrl.u32 %v3562_v9, 16  ;;  %v8438_v6 = vsel %vm4821_vm4, 0, %v4820_v39  ;;  %v3460_v62 = vadd.s32 536870912, %v8418_v56 }
 0x259   : > { %v3591_v3 = vmul.u32 %v3589_v31, %v3564_v40  ;;  %v8441_v18 = vmul.u32 %v3588_v7, %v3565_v23  ;;  %v2863_v5 = vand.u32 2147483647, %v8351_v48  ;;  %vm4824_vm7 = vcmp.lt.s32.totalorder %v4823_v42, 0 }
 0x25a   : > { %v3568_v54 = vmul.u32 %v3566_v44, %v3564_v40  ;;  %v3569_v37 = vmul.u32 %v3567_v50, %v3564_v40  ;;  %v3570_v55 = vmul.u32 %v3566_v44, %v3565_v23  ;;  %v3590_v35 = vmul.u32 %v3588_v7, %v3564_v40 }
 0x25b   : > { %v3594_v59 = vshll.u32 %v3591_v3, 16  ;;  %v3672_v33 = vand.u32 2139095040, %v8432_v36  ;;  %v3009_v41 = vsub.s32 32, %v8438_v6  ;;  %v3311_v39 = vsub.s32 0, %v8436_v53 }
 0x25c   : > { %v3571_v0 = vmul.u32 %v3567_v50, %v3565_v23  ;;  %v3572_v61 = vshll.u32 %v3569_v37, 16  ;;  %vm3310_vm6 = vcmp.lt.s32.totalorder %v8436_v53, 0  ;;  %v8448_v34 = vshrl.u32 %v3460_v62, 30 }
 0x25d   : > { %v3574_v60 = vshll.u32 %v3570_v55, 16  ;;  %v3596_v48 = vshll.u32 %v8441_v18, 16  ;;  %v8451_v9 = vsel %vm4824_vm7, 0, %v4823_v42  ;;  %v3593_v7 = vmul.u32 %v3589_v31, %v3565_v23 }
 0x25e   : > { %10566 = vst [vmem:[#allocation138_spill] sm:$0xff] %v8448_v34  ;;  %vm3576_vm12 = vc.u32 %v3568_v54, %v3572_v61  ;;  %v3578_v40 = vadd.s32 %v3572_v61, %v3568_v54  ;;  %vm3598_vm5 = vc.u32 %v3590_v35, %v3594_v59  ;;  %v3600_v26 = vadd.s32 %v3594_v59, %v3590_v35 }
 0x25f   : > { %v3577_v44 = vsel %vm3576_vm12, 1, %v10510_v22  ;;  %v3673_v1 = vshrl.u32 %v3672_v33, 23  ;;  %v3312_v50 = vsel %vm3310_vm6, %v3311_v39, %v8436_v53  ;;  %v3573_v28 = vshrl.u32 %v3569_v37, 16 }
 0x260   : > { %v3579_v14 = vadd.s32 %v3577_v44, %v3571_v0  ;;  %vm3580_vm3 = vc.u32 %v3578_v40, %v3574_v60  ;;  %v3462_v62 = vshll.u32 %v8448_v34, 30  ;;  %v3599_v42 = vsel %vm3598_vm5, 1, %v10510_v22 }
 0x261   : > { %v3581_v46 = vsel %vm3580_vm3, 1, %v10510_v22  ;;  %vm3602_vm9 = vc.u32 %v3600_v26, %v3596_v48  ;;  %v3575_v58 = vshrl.u32 %v3570_v55, 16  ;;  %v3595_v23 = vshrl.u32 %v3591_v3, 16  ;;  %v4191_v3 = vld [vmem:[#allocation10] sm:$0xff] }
 0x262   : > { %v3583_v54 = vadd.s32 %v3581_v46, %v3579_v14  ;;  %v3601_v31 = vadd.s32 %v3599_v42, %v3593_v7  ;;  %v3013_v61 = vsub.s32 4294967266, %v8438_v6  ;;  %v3167_v35 = vsub.s32 4294967266, %v8451_v9  ;;  %4222 = vmatpush.msrb.mxu2 %v4191_v3  ;;  %4319 = vmatpush.msrb.mxu3 %v4191_v3 }
 0x263   : > { %v3603_v59 = vsel %vm3602_vm9, 1, %v10510_v22  ;;  %v4834_v37 = vadd.s32 4294967169, %v3673_v1  ;;  %v3531_v33 = vshrl.u32 %v10423_v47, %v8367_v32  ;;  %v3597_v0 = vshrl.u32 %v8441_v18, 16 }
 0x264   : > { %v3584_v39 = vadd.s32 %v3583_v54, %v3573_v28  ;;  %v3605_v60 = vadd.s32 %v3603_v59, %v3601_v31  ;;  %v3313_v40 = vclz %v3312_v50  ;;  %v8465_v55 = vsub.s32 %v8418_v56, %v3462_v62  ;;  %v10567_v50 = vld [vmem:[#allocation96_spill] sm:$0xff] }
 0x265   : > { %v3552_v46 = vsel %vm3550_vm14, %v8396_v27, 2102212464  ;;  %v3679_v14 = vadd.s32 1, %v4834_v37  ;;  %5029 = vpow2.f32 %v8176_v63  ;;  %v8473_v7 = vadd.s32 %v3600_v26, %v3596_v48 }
 0x266   : > { %v8471_v1 = vadd.s32 %v3584_v39, %v3575_v58  ;;  %v3606_v28 = vadd.s32 %v3605_v60, %v3595_v23  ;;  %v8475_v32 = vmul.f32 %v2865_v24, %v2863_v5  ;;  %v3010_v56 = vshll.u32 %v8193_v15, %v8438_v6  ;;  %v1413_v15 = vpop.f32.mrf.mxu2  ;;  %v10569_v39 = vld [vmem:[#allocation82_spill] sm:$0xff] }
 0x267   : > { %v3011_v18 = vshrl.u32 %v8346_v57, %v3009_v41  ;;  %vm3680_vm10 = vcmp.gt.s32.totalorder %v3679_v14, 0  ;;  %v3014_v27 = vadd.s32 127, %v3013_v61  ;;  %v3551_v63 = vsel %vm3547_vm1, %v3531_v33, %v8392_v11  ;;  %v1478_v33 = vpop.f32.mrf.mxu3 }
 0x268   : > { %v3553_v58 = vsel %vm3549_vm2, %v8394_v4, %v3552_v46  ;;  %v3607_v26 = vadd.s32 %v3606_v28, %v3597_v0  ;;  %v3168_v48 = vadd.s32 127, %v3167_v35  ;;  %v4826_v24 = vadd.s32 4294967294, %v3313_v40 }
 0x269   : > { %v3465_v5 = vsub.s32 0, %v8465_v55  ;;  %v3681_v44 = vsel %vm3680_vm10, %v3679_v14, 0  ;;  %vm3464_vm13 = vcmp.lt.s32.totalorder %v8465_v55, 0  ;;  %vm3610_vm11 = vc.u32 %v8471_v1, %v8473_v7 }
 0x26a   : > { %v3611_v57 = vadd.s32 1, %v3607_v26  ;;  %v3683_v6 = vand.u32 31, %v3681_v44  ;;  %v2867_v11 = vxor.u32 2147483648, %v8475_v32  ;;  %v8491_v41 = vor.u32 %v3011_v18, %v3010_v56 }
 0x26b   : > { %v8494_v4 = vmul.f32 1.442695, %v10567_v50  ;;  %v3554_v62 = vsel %vm3548_vm0, %v3551_v63, %v3553_v58  ;;  %v8498_v42 = vpop.eup %5029  ;;  %v3015_v54 = vshll.u32 %v3014_v27, 23  ;;  %v3147_v23 = vadd.s32 %v8117_v17, %v8112_v45 }
 0x26c   : > { %10568 = vst [vmem:[#allocation96_spill] sm:$0xff] %v8498_v42  ;;  %v8502_v31 = vsub.s32 32, %v3683_v6  ;;  %v1414_v61 = vadd.f32 %v1413_v15, %v6666_v16  ;;  %v3163_v35 = vsub.s32 32, %v8451_v9  ;;  %vm4827_vm15 = vcmp.lt.s32.totalorder %v4826_v24, 0 }
 0x26d   : > { %v3466_v59 = vsel %vm3464_vm13, %v3465_v5, %v8465_v55  ;;  %v3612_v37 = vsel %vm3610_vm11, %v3611_v57, %v3607_v26  ;;  %vm2747_vm1 = vcmp.lt.s32.totalorder %v10569_v39, 0  ;;  %v3169_v20 = vshll.u32 %v3168_v48, 23 }
 0x26e   : > { %v3608_v0 = vmul.u32 %v8398_v13, %v3554_v62  ;;  %v10332_v60 = vand.u32 2147483647, %v8432_v36  ;;  %v8510_v40 = vshrl.u32 %v3681_v44, 5  ;;  %v3695_v45 = vshll.u32 %v10442_v29, %v3683_v6  ;;  %v10632_v36 = vld [vmem:[#allocation55_spill] sm:$0xff] }
 0x26f   : > { %v3696_v16 = vshrl.u32 %v10439_v10, %v8502_v31  ;;  %v3698_v17 = vshll.u32 %v10439_v10, %v3683_v6  ;;  %v3699_v46 = vshrl.u32 %v10440_v8, %v8502_v31  ;;  %v8518_v14 = vsel %vm4827_vm15, 0, %v4826_v24 }
 0x270   : > { %v3467_v3 = vclz %v3466_v59  ;;  %v8520_v28 = vadd.s32 %v3612_v37, %v3608_v0  ;;  %v8522_v13 = vadd.f32 %v1478_v33, %v1414_v61  ;;  %v3689_v56 = vshll.u32 %v10417_v49, %v3683_v6 }
 0x271   : > { %v3690_v18 = vshrl.u32 %v10418_v2, %v8502_v31  ;;  %v3692_v27 = vshll.u32 %v10418_v2, %v3683_v6  ;;  %v3693_v63 = vshrl.u32 %v10442_v29, %v8502_v31  ;;  %v3016_v58 = vor.u32 4788187, %v3015_v54 }
 0x272   : > { %10570 = vst [vmem:[#allocation139_spill] sm:$0xff] %v8522_v13  ;;  %v3686_v26 = vshll.u32 %v10423_v47, %v3683_v6  ;;  %v3687_v48 = vshrl.u32 %v10417_v49, %v8502_v31  ;;  %v3700_v24 = vor.u32 %v3699_v46, %v3698_v17  ;;  %v10571_v5 = vand.u32 2147483647, %v10569_v39 }
 0x273   : > { %v10572_v44 = vmov 0  ;;  %v3165_v15 = vshrl.u32 %v3147_v23, %v3163_v35  ;;  %v3676_v57 = vand.u32 8388607, %v10332_v60  ;;  %v3697_v50 = vor.u32 %v3696_v16, %v3695_v45 }
 0x274   : > { %vm8535_vm2 = vcmp.le.f32.partialorder %v10571_v5, 0.7853982  ;;  %vm3704_vm14 = vcmp.lt.s32.totalorder %v8510_v40, 4  ;;  %v3164_v6 = vshll.u32 %v8314_v30, %v8451_v9  ;;  %v3170_v62 = vor.u32 4788187, %v3169_v20  ;;  %v10577_v5 = vld [vmem:[#allocation98_spill] sm:$0xff] }
 0x275   : > { %v10573_v44 = vsel %vm8535_vm2, 4294967295, %v10572_v44  ;;  %v3321_v54 = vsub.s32 4294967266, %v8518_v14  ;;  %v4829_v61 = vadd.s32 4294967294, %v3467_v3  ;;  %v3614_v59 = vadd.s32 536870912, %v8520_v28 }
 0x276   : > { %10574 = vst [vmem:[#allocation140_spill] sm:$0xff] %v10573_v44  ;;  %v8546_v37 = vor.u32 %v3690_v18, %v3689_v56  ;;  %v8548_v33 = vor.u32 %v3693_v63, %v3692_v27  ;;  %v3826_v23 = vand.u32 2139095040, %v8522_v13  ;;  %v8551_v35 = vor.u32 %v3687_v48, %v3686_v26 }
 0x277   : > { %vm3701_vm0 = vcmp.lt.s32.totalorder %v8510_v40, 1  ;;  %vm3703_vm4 = vcmp.lt.s32.totalorder %v8510_v40, 3  ;;  %v3714_v30 = vsel %vm3704_vm14, %v3700_v24, 1326507024  ;;  %v2868_v9 = vsel %vm2747_vm1, %v2867_v11, %v8475_v32 }
 0x278   : > { %v3166_v20 = vor.u32 %v3165_v15, %v3164_v6  ;;  %v3677_v0 = vor.u32 8388608, %v3676_v57  ;;  %v3710_v45 = vsel %vm3704_vm14, %v3697_v50, 920167782  ;;  %v3017_v16 = vand.u32 2147483647, %v3016_v58  ;;  %v10578_v57 = vld [vmem:[#allocation111_spill] sm:$0xff] }
 0x279   : > { %v3019_v17 = vcvt.s32.f32 %v8491_v41  ;;  %v3171_v46 = vand.u32 2147483647, %v3170_v62  ;;  %vm4830_vm7 = vcmp.lt.s32.totalorder %v4829_v61, 0  ;;  %v3322_v3 = vadd.s32 127, %v3321_v54 }
 0x27a   : > { %vm3702_vm6 = vcmp.lt.s32.totalorder %v8510_v40, 2  ;;  %v3713_v56 = vsel %vm3701_vm0, %v8546_v37, %v8548_v33  ;;  %v3715_v32 = vsel %vm3703_vm4, %v3697_v50, %v3714_v30  ;;  %v8570_v11 = vshrl.u32 %v3614_v59, 30 }
 0x27b   : > { %v3709_v41 = vsel %vm3701_vm0, %v8551_v35, %v8546_v37  ;;  %v3711_v18 = vsel %vm3703_vm4, %v8548_v33, %v3710_v45  ;;  %v3827_v27 = vshrl.u32 %v3826_v23, 23  ;;  %v3173_v63 = vcvt.s32.f32 %v3166_v20  ;;  %v10579_v20 = vld [vmem:[#allocation121_spill] sm:$0xff] }
 0x27c   : > { %10575 = vst [vmem:[#allocation141_spill] sm:$0xff] %v8570_v11  ;;  %v3317_v58 = vsub.s32 32, %v8518_v14  ;;  %v8580_v26 = vsel %vm4830_vm7, 0, %v4829_v61  ;;  %v8582_v48 = vshll.u32 %v3677_v0, 8  ;;  %v8587_v24 = vsel %vm8535_vm2, %v10569_v39, %v2868_v9 }
 0x27d   : > { %10576 = vst [vmem:[#allocation142_spill] sm:$0xff] %v8587_v24  ;;  %vm10353_vm12 = vcmp.lt.s32.totalorder %v10577_v5, 0  ;;  %v3020_v15 = vmul.f32 %v3019_v17, %v3017_v16  ;;  %v1503_v50 = vmul.f32 1.442695, %v10578_v57  ;;  %v8593_v6 = vsel %vm3702_vm6, %v3713_v56, %v3715_v32 }
 0x27e   : > { %v3174_v62 = vmul.f32 %v3173_v63, %v3171_v46  ;;  %v3301_v54 = vadd.s32 %v8280_v19, %v8286_v51  ;;  %v3323_v61 = vshll.u32 %v3322_v3, 23  ;;  %v8599_v59 = vsel %vm3702_vm6, %v3709_v41, %v3711_v18 }
 0x27f   : > { %5031 = vpow2.f32 %v8494_v4  ;;  %v3475_v23 = vsub.s32 4294967266, %v8580_v26  ;;  %v3616_v30 = vshll.u32 %v8570_v11, 30  ;;  %v4837_v9 = vadd.s32 4294967169, %v3827_v27 }
 0x280   : > { %vm10341_vm5 = vcmp.lt.s32.totalorder %v10579_v20, 0  ;;  %v3319_v0 = vshrl.u32 %v3301_v54, %v3317_v58  ;;  %v3718_v45 = vand.u32 65535, %v8582_v48  ;;  %v3721_v16 = vshrl.u32 %v8593_v6, 16 }
 0x281   : > { %v8609_v19 = vmul.f32 %v8587_v24, %v8587_v24  ;;  %v10581_v51 = vand.u32 2147483647, %v10577_v5  ;;  %v10582_v4 = vmov 0  ;;  %5033 = vpow2.f32 %v1503_v50  ;;  %v10603_v24 = vld [vmem:[#allocation127_spill] sm:$0xff] }
 0x282   : > { %v1505_v17 = vmul.f32 1.442695, %v7975_v43  ;;  %v3743_v46 = vshrl.u32 %v8599_v59, 16  ;;  %v3021_v3 = vxor.u32 2147483648, %v3020_v15  ;;  %v10585_v56 = vand.u32 2147483647, %v10579_v20 }
 0x283   : > { %10580 = vst [vmem:[#allocation111_spill] sm:$0xff] %v8609_v19  ;;  %vm8613_vm3 = vcmp.le.f32.partialorder %v10581_v51, 0.7853982  ;;  %v10586_v32 = vmov 0  ;;  %v3175_v41 = vxor.u32 2147483648, %v3174_v62  ;;  %v3318_v18 = vshll.u32 %v8436_v53, %v8518_v14  ;;  %v10629_v19 = vld [vmem:[#allocation54_spill] sm:$0xff] }
 0x284   : > { %v10583_v4 = vsel %vm8613_vm3, 4294967295, %v10582_v4  ;;  %vm8621_vm9 = vcmp.le.f32.partialorder %v10585_v56, 0.7853982  ;;  %v3324_v27 = vor.u32 4788187, %v3323_v61  ;;  %v3471_v63 = vsub.s32 32, %v8580_v26 }
 0x285   : > { %10584 = vst [vmem:[#allocation143_spill] sm:$0xff] %v10583_v4  ;;  %v10587_v32 = vsel %vm8621_vm9, 4294967295, %v10586_v32  ;;  %v3476_v58 = vadd.s32 127, %v3475_v23  ;;  %v8629_v57 = vsub.s32 %v8520_v28, %v3616_v30  ;;  %v3833_v43 = vadd.s32 1, %v4837_v9  ;;  %v8635_v60 = vpop.eup %5031 }
 0x286   : > { %10588 = vst [vmem:[#allocation144_spill] sm:$0xff] %v10587_v32  ;;  %v3320_v50 = vor.u32 %v3319_v0, %v3318_v18  ;;  %v3719_v54 = vshrl.u32 %v8582_v48, 16  ;;  %v3720_v51 = vand.u32 65535, %v8593_v6  ;;  %v8633_v56 = vmul.u32 %v3721_v16, %v3718_v45 }
 0x287   : > { %10589 = vst [vmem:[#allocation145_spill] sm:$0xff] %v8635_v60  ;;  %v3455_v53 = vadd.s32 %v8365_v52, %v8361_v21  ;;  %v3742_v14 = vand.u32 65535, %v8599_v59  ;;  %v8640_v61 = vmul.u32 %v3743_v46, %v3718_v45  ;;  %vm3834_vm10 = vcmp.gt.s32.totalorder %v3833_v43, 0  ;;  %v8646_v9 = vpop.eup %5033 }
 0x288   : > { %v3022_v28 = vsel %vm10353_vm12, %v3021_v3, %v3020_v15  ;;  %v3176_v23 = vsel %vm10341_vm5, %v3175_v41, %v3174_v62  ;;  %v3325_v30 = vand.u32 2147483647, %v3324_v27  ;;  %v3835_v6 = vsel %vm3834_vm10, %v3833_v43, 0  ;;  %10590 = vst [vmem:[#allocation146_spill] sm:$0xff] %v8646_v9 }
 0x289   : > { %v3473_v0 = vshrl.u32 %v3455_v53, %v3471_v63  ;;  %v3477_v18 = vshll.u32 %v3476_v58, 23  ;;  %vm3618_vm13 = vcmp.lt.s32.totalorder %v8629_v57, 0  ;;  %v3619_v21 = vsub.s32 0, %v8629_v57  ;;  %v10592_v63 = vld [vmem:[#allocation129_spill] sm:$0xff] }
 0x28a   : > { %v3722_v52 = vmul.u32 %v3720_v51, %v3718_v45  ;;  %v8650_v59 = vmul.u32 %v3720_v51, %v3719_v54  ;;  %v3726_v60 = vshll.u32 %v8633_v56, 16  ;;  %v3837_v11 = vand.u32 31, %v3835_v6 }
 0x28b   : > { %v3327_v15 = vcvt.s32.f32 %v3320_v50  ;;  %v3744_v3 = vmul.u32 %v3742_v14, %v3718_v45  ;;  %v8653_v42 = vmul.u32 %v3742_v14, %v3719_v54  ;;  %v3748_v62 = vshll.u32 %v8640_v61, 16 }
 0x28c   : > { %v8659_v41 = vsel %vm8613_vm3, %v10577_v5, %v3022_v28  ;;  %5035 = vpow2.f32 %v1505_v17  ;;  %v3472_v27 = vshll.u32 %v8465_v55, %v8580_v26  ;;  %v8664_v58 = vmul.f32 1.442695, %v10592_v63  ;;  %v10628_v5 = vld [vmem:[#allocation35_spill] sm:$0xff] }
 0x28d   : > { %10591 = vst [vmem:[#allocation147_spill] sm:$0xff] %v8659_v41  ;;  %v8669_v45 = vsel %vm8621_vm9, %v10579_v20, %v3176_v23  ;;  %v8671_v43 = vmul.f32 %v3327_v15, %v3325_v30  ;;  %v3620_v50 = vsel %vm3618_vm13, %v3619_v21, %v8629_v57  ;;  %v8676_v51 = vsub.s32 32, %v3837_v11 }
 0x28e   : > { %10593 = vst [vmem:[#allocation129_spill] sm:$0xff] %v8664_v58  ;;  %v8678_v17 = vor.u32 %v3473_v0, %v3472_v27  ;;  %v8680_v53 = vor.u32 4788187, %v3477_v18  ;;  %v3728_v55 = vshll.u32 %v8650_v59, 16  ;;  %v3732_v26 = vadd.s32 %v3726_v60, %v3722_v52  ;;  %v10600_v27 = vld [vmem:[#allocation62_spill] sm:$0xff] }
 0x28f   : > { %10594 = vst [vmem:[#allocation148_spill] sm:$0xff] %v8669_v45  ;;  %vm3730_vm11 = vc.u32 %v3722_v52, %v3726_v60  ;;  %v10335_v14 = vshll.u32 %v8653_v42, 16  ;;  %vm3752_vm15 = vc.u32 %v3744_v3, %v3748_v62  ;;  %v8684_v28 = vadd.s32 %v3748_v62, %v3744_v3  ;;  %v10639_v45 = vld [vmem:[#allocation42_spill] sm:$0xff] }
 0x290   : > { %v3621_v23 = vclz %v3620_v50  ;;  %v3725_v30 = vmul.u32 %v3721_v16, %v3719_v54  ;;  %v3747_v15 = vmul.u32 %v3743_v46, %v3719_v54  ;;  %v3849_v63 = vshll.u32 %v10442_v29, %v3837_v11 }
 0x291   : > { %v3850_v0 = vshrl.u32 %v10439_v10, %v8676_v51  ;;  %v3852_v18 = vshll.u32 %v10439_v10, %v3837_v11  ;;  %v3853_v60 = vshrl.u32 %v10440_v8, %v8676_v51  ;;  %v3731_v3 = vsel %vm3730_vm11, 1, %v10510_v22  ;;  %v10605_v10 = vld [vmem:[#allocation22_spill] sm:$0xff] }
 0x292   : > { %v8693_v52 = vpop.eup %5035  ;;  %vm8696_vm7 = vc.u32 %v3732_v26, %v3728_v55  ;;  %v3753_v16 = vsel %vm3752_vm15, 1, %v10510_v22  ;;  %v8701_v46 = vshrl.u32 %v3835_v6, 5  ;;  %vm8706_vm10 = vc.u32 %v8684_v28, %v10335_v14  ;;  %v8713_v55 = vpop.f32.mrf.mxu0 }
 0x293   : > { %10595 = vst [vmem:[#allocation149_spill] sm:$0xff] %v8693_v52  ;;  %v3840_v8 = vshll.u32 %v10423_v47, %v3837_v11  ;;  %v3843_v54 = vshll.u32 %v10417_v49, %v3837_v11  ;;  %v1642_v50 = vmul.f32 -0.001358992, %v10600_v27  ;;  %v3841_v26 = vshrl.u32 %v10417_v49, %v8676_v51 }
 0x294   : > { %10601 = vst [vmem:[#allocation62_spill] sm:$0xff] %v8713_v55  ;;  %v3844_v6 = vshrl.u32 %v10418_v2, %v8676_v51  ;;  %v3846_v21 = vshll.u32 %v10418_v2, %v3837_v11  ;;  %v3847_v14 = vshrl.u32 %v10442_v29, %v8676_v51  ;;  %v3329_v52 = vxor.u32 2147483648, %v8671_v43 }
 0x295   : > { %v3481_v58 = vcvt.s32.f32 %v8678_v17  ;;  %v3851_v9 = vor.u32 %v3850_v0, %v3849_v63  ;;  %v3854_v34 = vor.u32 %v3853_v60, %v3852_v18  ;;  %v3479_v32 = vand.u32 2147483647, %v8680_v53 }
 0x296   : > { %v4832_v55 = vadd.s32 4294967294, %v3621_v23  ;;  %v10602_v20 = vand.u32 2147483647, %v8522_v13  ;;  %vm3858_vm13 = vcmp.lt.s32.totalorder %v8701_v46, 4  ;;  %vm10352_vm11 = vcmp.lt.s32.totalorder %v10603_v24, 0  ;;  %v10626_v13 = vld [vmem:[#allocation41_spill] sm:$0xff] }
 0x297   : > { %v3733_v2 = vadd.s32 %v3731_v3, %v3725_v30  ;;  %v3735_v29 = vsel %vm8696_vm7, 1, %v10510_v22  ;;  %v3755_v11 = vadd.s32 %v3753_v16, %v3747_v15  ;;  %v3757_v17 = vsel %vm8706_vm10, 1, %v10510_v22  ;;  %v8773_v16 = vld [vmem:[%s10163_s5] ss:$0 sm:$0xff] }
 0x298   : > { %v3830_v49 = vand.u32 8388607, %v10602_v20  ;;  %v8735_v63 = vor.u32 %v3841_v26, %v3840_v8  ;;  %v8737_v53 = vor.u32 %v3844_v6, %v3843_v54  ;;  %v8739_v23 = vor.u32 %v3847_v14, %v3846_v21  ;;  %v10608_v6 = vld [vmem:[#allocation33_spill] sm:$0xff] }
 0x299   : > { %v1643_v20 = vadd.f32 0.041655596, %v1642_v50  ;;  %vm3855_vm15 = vcmp.lt.s32.totalorder %v8701_v46, 1  ;;  %vm3857_vm5 = vcmp.lt.s32.totalorder %v8701_v46, 3  ;;  %v3864_v30 = vsel %vm3858_vm13, %v3851_v9, 920167782 }
 0x29a   : > { %v3868_v15 = vsel %vm3858_vm13, %v3854_v34, 1326507024  ;;  %v3685_v0 = vshrl.u32 %v10423_v47, %v8502_v31  ;;  %v3706_v18 = vsel %vm3704_vm14, %v8548_v33, 2102212464  ;;  %v3749_v14 = vshrl.u32 %v8640_v61, 16  ;;  %v10606_v50 = vld [vmem:[#allocation31_spill] sm:$0xff] }
 0x29b   : > { %v3831_v21 = vor.u32 8388608, %v3830_v49  ;;  %v3727_v60 = vshrl.u32 %v8633_v56, 16  ;;  %v3737_v3 = vadd.s32 %v3735_v29, %v3733_v2  ;;  %v3759_v62 = vadd.s32 %v3757_v17, %v3755_v11  ;;  %v4030_v29 = vpop.f32.mrf.mxu0 }
 0x29c   : > { %vm3856_vm7 = vcmp.lt.s32.totalorder %v8701_v46, 2  ;;  %v3863_v34 = vsel %vm3855_vm15, %v8735_v63, %v8737_v53  ;;  %v3865_v31 = vsel %vm3857_vm5, %v8739_v23, %v3864_v30  ;;  %v3867_v33 = vsel %vm3855_vm15, %v8737_v53, %v8739_v23 }
 0x29d   : > { %v3869_v56 = vsel %vm3857_vm5, %v3851_v9, %v3868_v15  ;;  %v8768_v61 = vmul.f32 %v3481_v58, %v3479_v32  ;;  %vm4833_vm14 = vcmp.lt.s32.totalorder %v4832_v55, 0  ;;  %v1637_v8 = vsub.s32 4, %v10605_v10 }
 0x29e   : > { %v1644_v54 = vmul.f32 %v1643_v20, %v10600_v27  ;;  %v10607_v26 = vshll.u32 %v10606_v50, 16  ;;  %v3705_v32 = vsel %vm3701_vm0, %v3685_v0, %v8551_v35  ;;  %v3707_v9 = vsel %vm3703_vm4, %v8546_v37, %v3706_v18 }
 0x29f   : > { %10604 = vst [vmem:[#allocation150_spill] sm:$0xff] %v8768_v61  ;;  %v3751_v58 = vshrl.u32 %v8653_v42, 16  ;;  %v8791_v2 = vshll.u32 %v3831_v21, 8  ;;  %v3760_v11 = vadd.s32 %v3759_v62, %v3749_v14  ;;  %v3866_v17 = vsel %vm3856_vm7, %v3863_v34, %v3865_v31  ;;  %v10612_v21 = vld [vmem:[#allocation20_spill] sm:$0xff] }
 0x2a0   : > { %vm8780_vm10 = vc.u32 %v10608_v6, %v10607_v26  ;;  %v8797_v20 = vsel %vm3856_vm7, %v3867_v33, %v3869_v56  ;;  %v1649_v30 = vmul.f32 -0.00019511016, %v10600_v27  ;;  %v8803_v35 = vsel %vm10352_vm11, %v3329_v52, %v8671_v43  ;;  %v8836_v6 = vpop.f32.mrf.mxu1 }
 0x2a1   : > { %10611 = vst [vmem:[#allocation22_spill] sm:$0xff] %v8803_v35  ;;  %v8805_v37 = vsel %vm4833_vm14, 0, %v4832_v55  ;;  %v3729_v15 = vshrl.u32 %v8650_v59, 16  ;;  %v3738_v0 = vadd.s32 %v3737_v3, %v3727_v60  ;;  %v8810_v14 = vadd.f32 %v8773_v16, %v4030_v29 }
 0x2a2   : > { %vm10613_vm0 = vcmp.lt.s32.totalorder %v10612_v21, 0  ;;  %v1645_v34 = vadd.f32 -0.4999988, %v1644_v54  ;;  %v8817_v31 = vsel %vm3702_vm6, %v3705_v32, %v3707_v9  ;;  %v3872_v43 = vand.u32 65535, %v8791_v2  ;;  %10617 = vst [vmem:[#allocation20_spill] sm:$0xff] %v8836_v6 }
 0x2a3   : > { %v1638_v62 = vsel %vm10613_vm0, %v1637_v8, %v10605_v10  ;;  %v10342_v52 = vshrl.u32 %v8797_v20, 16  ;;  %v3897_v59 = vshrl.u32 %v3866_v17, 16  ;;  %v3609_v55 = vadd.s32 %v8473_v7, %v8471_v1 }
 0x2a4   : > { %v3625_v60 = vsub.s32 32, %v8805_v37  ;;  %v3761_v3 = vadd.s32 %v3760_v11, %v3751_v58  ;;  %v1650_v33 = vadd.f32 0.008332121, %v1649_v30  ;;  %v8824_v56 = vadd.s32 %v3738_v0, %v3729_v15 }
 0x2a5   : > { %v10615_v10 = vshll.u32 %v8653_v42, 16  ;;  %v8832_v8 = vshrl.u32 %v8791_v2, 16  ;;  %v3896_v54 = vand.u32 65535, %v3866_v17  ;;  %v3874_v1 = vand.u32 65535, %v8797_v20 }
 0x2a6   : > { %10614 = vst [vmem:[#allocation31_spill] sm:$0xff] %v8824_v56  ;;  %v1646_v7 = vmul.f32 %v1645_v34, %v10600_v27  ;;  %v1651_v32 = vmul.f32 %v1650_v33, %v10600_v27  ;;  %v8846_v9 = vmul.u32 %v10342_v52, %v3872_v43  ;;  %v8848_v58 = vmul.u32 %v3897_v59, %v3872_v43  ;;  %v10619_v33 = vld [vmem:[#allocation32_spill] sm:$0xff] }
 0x2a7   : > { %v8829_v40 = vadd.s32 %v8684_v28, %v10615_v10  ;;  %v8850_v29 = vshrl.u32 %v3609_v55, %v3625_v60  ;;  %v3765_v11 = vadd.s32 1, %v3761_v3  ;;  %v1640_v30 = vsel %vm7059_vm8, 0, %v1638_v62  ;;  %v10620_v10 = vld [vmem:[#allocation27_spill] sm:$0xff]  ;;  %v10623_v52 = vld [vmem:[#allocation28_spill] sm:$0xff] }
 0x2a8   : > { %v1652_v15 = vadd.f32 -0.16666654, %v1651_v32  ;;  %v3898_v0 = vmul.u32 %v3896_v54, %v3872_v43  ;;  %v8857_v34 = vmul.u32 %v3896_v54, %v8832_v8  ;;  %v10621_v18 = vand.u32 65535, %v10620_v10 }
 0x2a9   : > { %10616 = vst [vmem:[#allocation33_spill] sm:$0xff] %v8829_v40  ;;  %vm3764_vm4 = vc.u32 %v8824_v56, %v8829_v40  ;;  %v3876_v28 = vmul.u32 %v3874_v1, %v3872_v43  ;;  %v1647_v26 = vadd.f32 1.0, %v1646_v7  ;;  %v1729_v62 = vsel %vm8780_vm10, 1, %v10510_v22  ;;  %v10622_v43 = vld [vmem:[#allocation34_spill] sm:$0xff] }
 0x2aa   : > { %v1722_v42 = vmul.u32 %v10621_v18, %v10619_v33  ;;  %v1653_v55 = vmul.f32 %v1652_v15, %v10600_v27  ;;  %v8867_v60 = vmul.u32 %v3874_v1, %v8832_v8  ;;  %v3880_v32 = vshll.u32 %v8846_v9, 16  ;;  %v10624_v27 = vld [vmem:[#allocation29_spill] sm:$0xff] }
 0x2ab   : > { %v3902_v54 = vshll.u32 %v8848_v58, 16  ;;  %vm1656_vm8 = vweird.f32 %v10612_v21  ;;  %v3766_v10 = vsel %vm3764_vm4, %v3765_v11, %v3761_v3  ;;  %v1731_v7 = vadd.s32 %v1729_v62, %v10622_v43  ;;  %v10630_v62 = vld [vmem:[#allocation51_spill] sm:$0xff] }
 0x2ac   : > { %v1726_v17 = vshll.u32 %v1722_v42, 16  ;;  %v1654_v18 = vadd.f32 1.0, %v1653_v55  ;;  %v10625_v15 = vand.u32 65535, %v10624_v27  ;;  %v1657_v49 = vand.u32 3, %v1640_v30  ;;  %v10649_v30 = vld [vmem:[#allocation68_spill] sm:$0xff] }
 0x2ad   : > { %v1746_v44 = vshll.u32 %v10628_v5, 16  ;;  %v3901_v39 = vmul.u32 %v3897_v59, %v8832_v8  ;;  %v1663_v11 = vxor.u32 2147483648, %v1647_v26  ;;  %v10631_v43 = vshll.u32 %v10630_v62, 16 }
 0x2ae   : > { %v1742_v6 = vmul.u32 %v10625_v15, %v10623_v52  ;;  %vm1732_vm6 = vc.u32 %v10626_v13, %v1726_v17  ;;  %v10627_v1 = vmov %v10625_v15  ;;  %v1655_v3 = vmul.f32 %v1654_v18, %v10629_v19  ;;  %v4095_v17 = vpop.f32.mrf.mxu1 }
 0x2af   : > { %v1744_v4 = vmul.u32 %v10627_v1, %v10619_v33  ;;  %v1733_v55 = vsel %vm1732_vm6, 1, %v10510_v22  ;;  %vm8887_vm14 = vc.u32 %v10632_v36, %v10631_v43  ;;  %v3882_v13 = vshll.u32 %v8867_v60, 16 }
 0x2b0   : > { %vm8892_vm10 = vc.u32 %v3876_v28, %v3880_v32  ;;  %vm8897_vm0 = vc.u32 %v3898_v0, %v3902_v54  ;;  %v1660_v33 = vxor.u32 2147483648, %v1655_v3  ;;  %v1725_v18 = vshrl.u32 %v10606_v50, 16 }
 0x2b1   : > { %v1735_v36 = vadd.s32 %v1733_v55, %v1731_v7  ;;  %vm1750_vm4 = vc.u32 %v1742_v6, %v1746_v44  ;;  %vm1659_vm6 = vcmp.eq.s32.totalorder %v1657_v49, 0  ;;  %vm1662_vm11 = vcmp.eq.s32.totalorder %v1657_v49, 2 }
 0x2b2   : > { %v4096_v27 = vadd.f32 %v4095_v17, %v8810_v14  ;;  %v1748_v15 = vshll.u32 %v1744_v4, 16  ;;  %vm1658_vm12 = vcmp.lt.s32.totalorder %v1657_v49, 2  ;;  %v1661_v1 = vsel %vm1659_vm6, %v1647_v26, %v1660_v33  ;;  %v10640_v14 = vld [vmem:[#allocation37_spill] sm:$0xff] }
 0x2b3   : > { %v1664_v43 = vsel %vm1662_vm11, %v1663_v11, %v1655_v3  ;;  %v1751_v59 = vsel %vm1750_vm4, 1, %v10510_v22  ;;  %v8904_v40 = vadd.s32 %v3902_v54, %v3898_v0  ;;  %v1752_v35 = vadd.s32 %v1746_v44, %v1742_v6  ;;  %v10643_v6 = vld [vmem:[#allocation44_spill] sm:$0xff] }
 0x2b4   : > { %v1665_v56 = vsel %vm1658_vm12, %v1661_v1, %v1664_v43  ;;  %v4143_v61 = vmax.f32 %v4096_v27, 0.0  ;;  %v1727_v7 = vshrl.u32 %v1722_v42, 16  ;;  %v1736_v55 = vadd.s32 %v1735_v36, %v1725_v18  ;;  %v10667_v18 = vld [vmem:[#allocation75_spill] sm:$0xff] }
 0x2b5   : > { %v1666_v50 = vsel %vm1656_vm8, nan, %v1665_v56  ;;  %v1753_v41 = vadd.s32 %v1751_v59, %v10639_v45  ;;  %v3886_v24 = vadd.s32 %v3880_v32, %v3876_v28  ;;  %v1747_v26 = vshrl.u32 %v10628_v5, 16  ;;  %v10642_v56 = vld [vmem:[#allocation47_spill] sm:$0xff] }
 0x2b6   : > { %v4159_v17 = vmul.f32 %v10640_v14, %v1666_v50  ;;  %vm1754_vm11 = vc.u32 %v1752_v35, %v1748_v15  ;;  %v10641_v0 = vshrl.u32 %v8797_v20, 16  ;;  %v3907_v44 = vsel %vm8897_vm0, 1, %v10510_v22 }
 0x2b7   : > { %v1755_v21 = vsel %vm1754_vm11, 1, %v10510_v22  ;;  %v10644_v42 = vand.u32 65535, %v10643_v6  ;;  %v10645_v28 = vshll.u32 %v8857_v34, 16  ;;  %v1749_v32 = vshrl.u32 %v1744_v4, 16 }
 0x2b8   : > { %v3879_v54 = vmul.u32 %v10641_v0, %v8832_v8  ;;  %v8926_v5 = vadd.f32 %v4159_v17, %v4143_v61  ;;  %v1757_v20 = vadd.s32 %v1755_v21, %v1753_v41  ;;  %v3885_v8 = vsel %vm8892_vm10, 1, %v10510_v22  ;;  %v10647_v41 = vld [vmem:[#allocation67_spill] sm:$0xff] }
 0x2b9   : > { %v8921_v45 = vmul.u32 %v10644_v42, %v10642_v56  ;;  %vm3910_vm12 = vc.u32 %v8904_v40, %v10645_v28  ;;  %v8931_v49 = vadd.s32 %v1736_v55, %v1727_v7  ;;  %v8933_v3 = vadd.s32 %v1752_v35, %v1748_v15  ;;  %v10656_v15 = vld [vmem:[#allocation56_spill] sm:$0xff] }
 0x2ba   : > { %v10646_v59 = vmul.u32 %v8582_v48, %v8817_v31  ;;  %vm3888_vm8 = vc.u32 %v3886_v24, %v3882_v13  ;;  %v3909_v61 = vadd.s32 %v3907_v44, %v3901_v39  ;;  %4223 = vmatmul.f32.vlgmr.msrb.gmra.mxu2 %v8926_v5  ;;  %v1758_v4 = vadd.s32 %v1757_v20, %v1747_v26  ;;  %v10652_v31 = vld [vmem:[#allocation58_spill] sm:$0xff]  ;;  %v10653_v24 = vld [vmem:[#allocation45_spill] sm:$0xff]  ;;  %v10654_v39 = vld [vmem:[#allocation43_spill] sm:$0xff] }
 0x2bb   : > { %v1880_v11 = vshll.u32 %v8921_v45, 16  ;;  %v10648_v33 = vshll.u32 %v10647_v41, 16  ;;  %v3911_v35 = vsel %vm3910_vm12, 1, %v10510_v22  ;;  %v1883_v48 = vsel %vm8887_vm14, 1, %v10510_v22  ;;  %v10658_v55 = vld [vmem:[#allocation52_spill] sm:$0xff] }
 0x2bc   : > { %v8939_v19 = vadd.s32 %v3766_v10, %v10646_v59  ;;  %v10655_v10 = vand.u32 65535, %v10654_v39  ;;  %v3887_v36 = vadd.s32 %v3885_v8, %v3879_v54  ;;  %v1759_v27 = vadd.s32 %v1758_v4, %v1749_v32  ;;  %v10660_v8 = vld [vmem:[#allocation30_spill] sm:$0xff] }
 0x2bd   : > { %vm8945_vm10 = vc.u32 %v10649_v30, %v10648_v33  ;;  %vm1886_vm0 = vc.u32 %v10652_v31, %v1880_v11  ;;  %v1885_v1 = vadd.s32 %v1883_v48, %v10656_v15  ;;  %v3889_v50 = vsel %vm3888_vm8, 1, %v10510_v22  ;;  %v10663_v33 = vld [vmem:[#allocation61_spill] sm:$0xff]  ;;  %v10664_v30 = vld [vmem:[#allocation59_spill] sm:$0xff] }
 0x2be   : > { %v1896_v13 = vmul.u32 %v10655_v10, %v10653_v24  ;;  %v1887_v43 = vsel %vm1886_vm0, 1, %v10510_v22  ;;  %vm1762_vm4 = vc.u32 %v8931_v49, %v8933_v3  ;;  %v10657_v52 = vmov %v10655_v10 }
 0x2bf   : > { %v1898_v7 = vmul.u32 %v10657_v52, %v10642_v56  ;;  %v1900_v14 = vshll.u32 %v10658_v55, 16  ;;  %v3839_v17 = vshrl.u32 %v10423_v47, %v8676_v51  ;;  %v3903_v26 = vshrl.u32 %v8848_v58, 16  ;;  %v10659_v58 = vld [vmem:[#allocation26_spill] sm:$0xff] }
 0x2c0   : > { %v3913_v0 = vadd.s32 %v3911_v35, %v3909_v61  ;;  %v1763_v54 = vadd.s32 1, %v1759_v27  ;;  %v3881_v44 = vshrl.u32 %v8846_v9, 16  ;;  %v1879_v21 = vshrl.u32 %v10630_v62, 16  ;;  %v10662_v61 = vld [vmem:[#allocation57_spill] sm:$0xff] }
 0x2c1   : > { %v1889_v6 = vadd.s32 %v1887_v43, %v1885_v1  ;;  %vm1904_vm14 = vc.u32 %v1896_v13, %v1900_v14  ;;  %v3891_v42 = vadd.s32 %v3889_v50, %v3887_v36  ;;  %v1902_v32 = vshll.u32 %v1898_v7, 16 }
 0x2c2   : > { %v1764_v28 = vsel %vm1762_vm4, %v1763_v54, %v1759_v27  ;;  %v1905_v56 = vsel %vm1904_vm14, 1, %v10510_v22  ;;  %v3768_v20 = vadd.s32 536870912, %v8939_v19  ;;  %v3860_v47 = vsel %vm3858_vm13, %v8739_v23, 2102212464 }
 0x2c3   : > { %v3905_v51 = vshrl.u32 %v8857_v34, 16  ;;  %v10661_v9 = vmul.u32 %v10659_v58, %v10660_v8  ;;  %v3914_v62 = vadd.s32 %v3913_v0, %v3903_v26  ;;  %v1906_v59 = vadd.s32 %v1900_v14, %v1896_v13 }
 0x2c4   : > { %v1907_v4 = vadd.s32 %v1905_v56, %v10662_v61  ;;  %v10665_v35 = vand.u32 65535, %v10664_v30  ;;  %v3883_v31 = vshrl.u32 %v8867_v60, 16  ;;  %v1881_v23 = vshrl.u32 %v8921_v45, 16 }
 0x2c5   : > { %v1765_v11 = vadd.s32 %v1764_v28, %v10661_v9  ;;  %v1890_v39 = vadd.s32 %v1889_v6, %v1879_v21  ;;  %v3892_v10 = vadd.s32 %v3891_v42, %v3881_v44  ;;  %v1901_v36 = vshrl.u32 %v10658_v55, 16  ;;  %v10669_v42 = vld [vmem:[#allocation70_spill] sm:$0xff]  ;;  %v10672_v9 = vld [vmem:[#allocation60_spill] sm:$0xff] }
 0x2c6   : > { %v8984_v48 = vmul.u32 %v10665_v35, %v10663_v33  ;;  %vm1908_vm13 = vc.u32 %v1906_v59, %v1902_v32  ;;  %v8990_v13 = vshrl.u32 %v3768_v20, 30  ;;  %v3859_v15 = vsel %vm3855_vm15, %v3839_v17, %v8735_v63 }
 0x2c7   : > { %v1766_v24 = vadd.s32 536870912, %v1765_v11  ;;  %v1909_v60 = vsel %vm1908_vm13, 1, %v10510_v22  ;;  %v3915_v43 = vadd.s32 %v3914_v62, %v3905_v51  ;;  %v1903_v50 = vshrl.u32 %v1898_v7, 16  ;;  %v10674_v62 = vld [vmem:[#allocation71_spill] sm:$0xff] }
 0x2c8   : > { %v2034_v27 = vshll.u32 %v8984_v48, 16  ;;  %v1911_v45 = vadd.s32 %v1909_v60, %v1907_v4  ;;  %v2037_v52 = vsel %vm8945_vm10, 1, %v10510_v22  ;;  %v3861_v55 = vsel %vm3857_vm5, %v8737_v53, %v3860_v47  ;;  %v10670_v47 = vld [vmem:[#allocation64_spill] sm:$0xff] }
 0x2c9   : > { %v8995_v1 = vshrl.u32 %v1766_v24, 30  ;;  %v9005_v26 = vadd.s32 %v1890_v39, %v1881_v23  ;;  %v9007_v63 = vadd.s32 %v1906_v59, %v1902_v32  ;;  %v9009_v17 = vadd.s32 %v3892_v10, %v3883_v31  ;;  %v10676_v10 = vld [vmem:[#allocation21_spill] sm:$0xff] }
 0x2ca   : > { %v10666_v0 = vshll.u32 %v8857_v34, 16  ;;  %v1912_v54 = vadd.s32 %v1911_v45, %v1901_v36  ;;  %vm2040_vm15 = vc.u32 %v10667_v18, %v2034_v27  ;;  %v10668_v44 = vsub.s32 4294967266, %v8805_v37 }
 0x2cb   : > { %v1768_v14 = vshll.u32 %v8995_v1, 30  ;;  %v3770_v53 = vshll.u32 %v8990_v13, 30  ;;  %v2039_v28 = vadd.s32 %v2037_v52, %v10669_v42  ;;  %v3862_v32 = vsel %vm3856_vm7, %v3859_v15, %v3861_v55  ;;  %v10683_v42 = vld [vmem:[#allocation84_spill] sm:$0xff] }
 0x2cc   : > { %v9014_v7 = vadd.s32 %v8904_v40, %v10666_v0  ;;  %v9019_v21 = vadd.s32 127, %v10668_v44  ;;  %v3919_v56 = vadd.s32 1, %v3915_v43  ;;  %v1913_v34 = vadd.s32 %v1912_v54, %v1903_v50 }
 0x2cd   : > { %v1769_v6 = vsub.s32 %v1765_v11, %v1768_v14  ;;  %v2041_v40 = vsel %vm2040_vm15, 1, %v10510_v22  ;;  %vm1916_vm6 = vc.u32 %v9005_v26, %v9007_v63  ;;  %v10671_v51 = vand.u32 65535, %v10670_v47 }
 0x2ce   : > { %vm3918_vm11 = vc.u32 %v9009_v17, %v9014_v7  ;;  %v1917_v8 = vadd.s32 1, %v1913_v34  ;;  %v2054_v59 = vshll.u32 %v10674_v62, 16  ;;  %v10675_v61 = vshll.u32 %v8629_v57, %v8805_v37  ;;  %v10677_v57 = vld [vmem:[#allocation40_spill] sm:$0xff] }
 0x2cf   : > { %vm1770_vm5 = vcmp.lt.s32.totalorder %v1769_v6, 0  ;;  %v1771_v20 = vsub.s32 0, %v1769_v6  ;;  %v2052_v58 = vmul.u32 %v10671_v51, %v10663_v33  ;;  %v10673_v46 = vmov %v10671_v51  ;;  %v10678_v37 = vld [vmem:[#allocation48_spill] sm:$0xff] }
 0x2d0   : > { %v2050_v11 = vmul.u32 %v10673_v46, %v10672_v9  ;;  %v9041_v4 = vor.u32 %v8850_v29, %v10675_v61  ;;  %v2033_v35 = vshrl.u32 %v10647_v41, 16  ;;  %v2043_v33 = vadd.s32 %v2041_v40, %v2039_v28  ;;  %v10687_v61 = vld [vmem:[#allocation76_spill] sm:$0xff] }
 0x2d1   : > { %v1772_v30 = vsel %vm1770_vm5, %v1771_v20, %v1769_v6  ;;  %v3631_v31 = vshll.u32 %v9019_v21, 23  ;;  %v9046_v24 = vsub.s32 %v8939_v19, %v3770_v53  ;;  %v1918_v39 = vsel %vm1916_vm6, %v1917_v8, %v1913_v34  ;;  %v4033_v19 = vpop.f32.mrf.mxu0  ;;  %v10681_v21 = vld [vmem:[#allocation81_spill] sm:$0xff] }
 0x2d2   : > { %v1773_v23 = vclz %v1772_v30  ;;  %vm1669_vm7 = vcmp.lt.s32.totalorder %v10676_v10, 0  ;;  %v3916_v36 = vmul.u32 %v8791_v2, %v3862_v32  ;;  %v3920_v27 = vsel %vm3918_vm11, %v3919_v56, %v3915_v43  ;;  %v10680_v43 = vld [vmem:[#allocation72_spill] sm:$0xff] }
 0x2d3   : > { %v10679_v29 = vmul.u32 %v10677_v57, %v10678_v37  ;;  %v2056_v60 = vshll.u32 %v2052_v58, 16  ;;  %v1761_v41 = vadd.s32 %v8933_v3, %v8931_v49  ;;  %vm2058_vm12 = vc.u32 %v2050_v11, %v2054_v59  ;;  %v4098_v37 = vpop.f32.mrf.mxu1 }
 0x2d4   : > { %v4796_v50 = vadd.s32 4294967294, %v1773_v23  ;;  %v2060_v45 = vadd.s32 %v2054_v59, %v2050_v11  ;;  %v2035_v55 = vshrl.u32 %v8984_v48, 16  ;;  %v2044_v14 = vadd.s32 %v2043_v33, %v2033_v35 }
 0x2d5   : > { %v1919_v15 = vadd.s32 %v1918_v39, %v10679_v29  ;;  %v2059_v0 = vsel %vm2058_vm12, 1, %v10510_v22  ;;  %v2055_v2 = vshrl.u32 %v10674_v62, 16  ;;  %v1791_v44 = vsub.s32 4, %v8995_v1 }
 0x2d6   : > { %vm4797_vm8 = vcmp.lt.s32.totalorder %v4796_v50, 0  ;;  %v2061_v54 = vadd.s32 %v2059_v0, %v10680_v43  ;;  %vm2062_vm10 = vc.u32 %v2060_v45, %v2056_v60  ;;  %v10682_v53 = vshll.u32 %v10681_v21, 16 }
 0x2d7   : > { %v1920_v52 = vadd.s32 536870912, %v1919_v15  ;;  %v1776_v18 = vsel %vm4797_vm8, 0, %v4796_v50  ;;  %v2063_v3 = vsel %vm2062_vm10, 1, %v10510_v22  ;;  %v2057_v56 = vshrl.u32 %v2052_v58, 16  ;;  %v10686_v58 = vld [vmem:[#allocation74_spill] sm:$0xff] }
 0x2d8   : > { %vm9066_vm0 = vc.u32 %v10683_v42, %v10682_v53  ;;  %v1777_v28 = vsub.s32 32, %v1776_v18  ;;  %v1781_v32 = vsub.s32 4294967266, %v1776_v18  ;;  %v2065_v34 = vadd.s32 %v2063_v3, %v2061_v54 }
 0x2d9   : > { %v9060_v49 = vshrl.u32 %v1920_v52, 30  ;;  %v3773_v40 = vsub.s32 0, %v9046_v24  ;;  %v9072_v47 = vadd.s32 %v2044_v14, %v2035_v55  ;;  %v9074_v51 = vadd.s32 %v2060_v45, %v2056_v60  ;;  %v4036_v50 = vpop.f32.mrf.mxu0 }
 0x2da   : > { %v1778_v8 = vshll.u32 %v1769_v6, %v1776_v18  ;;  %v1779_v9 = vshrl.u32 %v1761_v41, %v1777_v28  ;;  %v1782_v46 = vadd.s32 127, %v1781_v32  ;;  %v2066_v11 = vadd.s32 %v2065_v34, %v2055_v2  ;;  %v10695_v34 = vld [vmem:[#allocation23_spill] sm:$0xff] }
 0x2db   : > { %v1922_v20 = vshll.u32 %v9060_v49, 30  ;;  %vm3772_vm4 = vcmp.lt.s32.totalorder %v9046_v24, 0  ;;  %v9077_v62 = vadd.s32 %v3920_v27, %v3916_v36  ;;  %v10688_v30 = vand.u32 65535, %v10687_v61  ;;  %v10699_v61 = vld [vmem:[#allocation73_spill] sm:$0xff] }
 0x2dc   : > { %v1780_v33 = vor.u32 %v1779_v9, %v1778_v8  ;;  %v1783_v23 = vshll.u32 %v1782_v46, 23  ;;  %v1792_v6 = vsel %vm1669_vm7, %v1791_v44, %v8995_v1  ;;  %v2067_v39 = vadd.s32 %v2066_v11, %v2057_v56  ;;  %v10693_v44 = vld [vmem:[#allocation63_spill] sm:$0xff]  ;;  %v10696_v9 = vld [vmem:[#allocation90_spill] sm:$0xff] }
 0x2dd   : > { %v9079_v59 = vsub.s32 %v1919_v15, %v1922_v20  ;;  %v9084_v35 = vmul.u32 %v10688_v30, %v10686_v58  ;;  %v4034_v57 = vadd.f32 %v8773_v16, %v4033_v19  ;;  %vm2070_vm13 = vc.u32 %v9072_v47, %v9074_v51  ;;  %v10700_v30 = vld [vmem:[#allocation80_spill] sm:$0xff] }
 0x2de   : > { %v9095_v27 = vsel %vm3772_vm4, %v3773_v40, %v9046_v24  ;;  %v10689_v29 = vand.u32 2147483647, %v10676_v10  ;;  %v1784_v1 = vor.u32 4788187, %v1783_v23  ;;  %v2071_v60 = vadd.s32 1, %v2067_v39 }
 0x2df   : > { %vm1924_vm14 = vcmp.lt.s32.totalorder %v9079_v59, 0  ;;  %v1925_v36 = vsub.s32 0, %v9079_v59  ;;  %v9103_v41 = vor.u32 4788187, %v3631_v31  ;;  %v2188_v52 = vshll.u32 %v9084_v35, 16  ;;  %v10692_v31 = vld [vmem:[#allocation53_spill] sm:$0xff] }
 0x2e0   : > { %vm9099_vm15 = vcmp.le.f32.partialorder %v10689_v29, 0.7853982  ;;  %v1785_v55 = vand.u32 2147483647, %v1784_v1  ;;  %v1787_v14 = vcvt.s32.f32 %v1780_v33  ;;  %v2072_v2 = vsel %vm2070_vm13, %v2071_v60, %v2067_v39  ;;  %v10702_v33 = vld [vmem:[#allocation91_spill] sm:$0xff]  ;;  %v10704_v60 = vld [vmem:[#allocation89_spill] sm:$0xff] }
 0x2e1   : > { %v1794_v45 = vsel %vm9099_vm15, 0, %v1792_v6  ;;  %v1926_v19 = vsel %vm1924_vm14, %v1925_v36, %v9079_v59  ;;  %v3775_v43 = vclz %v9095_v27  ;;  %v9111_v54 = vadd.s32 536870912, %v9077_v62 }
 0x2e2   : > { %v1927_v0 = vclz %v1926_v19  ;;  %v9113_v18 = vadd.f32 %v4098_v37, %v4034_v57  ;;  %v10694_v3 = vmul.u32 %v10692_v31, %v10693_v44  ;;  %v9119_v42 = vadd.f32 %v8773_v16, %v4036_v50 }
 0x2e3   : > { %v1788_v28 = vmul.f32 %v1787_v14, %v1785_v55  ;;  %v1915_v32 = vadd.s32 %v9007_v63, %v9005_v26  ;;  %vm1823_vm5 = vcmp.lt.s32.totalorder %v10695_v34, 0  ;;  %v9124_v40 = vand.u32 3, %v1794_v45 }
 0x2e4   : > { %v2073_v53 = vadd.s32 %v2072_v2, %v10694_v3  ;;  %v4799_v56 = vadd.s32 4294967294, %v1927_v0  ;;  %v2191_v8 = vsel %vm9066_vm0, 1, %v10510_v22  ;;  %vm9130_vm6 = vc.u32 %v10696_v9, %v2188_v52 }
 0x2e5   : > { %v1789_v11 = vxor.u32 2147483648, %v1788_v28  ;;  %v10701_v26 = vand.u32 65535, %v10700_v30  ;;  %v2208_v23 = vshll.u32 %v10702_v33, 16  ;;  %v1945_v39 = vsub.s32 4, %v9060_v49 }
 0x2e6   : > { %v2074_v20 = vadd.s32 536870912, %v2073_v53  ;;  %vm4800_vm11 = vcmp.lt.s32.totalorder %v4799_v56, 0  ;;  %v2193_v50 = vadd.s32 %v2191_v8, %v10704_v60  ;;  %v10705_v14 = vand.u32 2147483647, %v10695_v34 }
 0x2e7   : > { %v2204_v63 = vmul.u32 %v10701_v26, %v10699_v61  ;;  %v1930_v6 = vsel %vm4800_vm11, 0, %v4799_v56  ;;  %v10703_v48 = vmov %v10701_v26  ;;  %v1790_v37 = vsel %vm1669_vm7, %v1789_v11, %v1788_v28 }
 0x2e8   : > { %v9139_v57 = vshrl.u32 %v2074_v20, 30  ;;  %v9144_v36 = vmul.u32 %v10703_v48, %v10686_v58  ;;  %v1931_v29 = vsub.s32 32, %v1930_v6  ;;  %v1935_v1 = vsub.s32 4294967266, %v1930_v6 }
 0x2e9   : > { %v9152_v45 = vsel %vm9099_vm15, %v10676_v10, %v1790_v37  ;;  %v1932_v19 = vshll.u32 %v9079_v59, %v1930_v6  ;;  %v2195_v58 = vsel %vm9130_vm6, 1, %v10510_v22  ;;  %vm9163_vm7 = vcmp.le.f32.partialorder %v10705_v14, 0.7853982  ;;  %v10708_v6 = vld [vmem:[#allocation92_spill] sm:$0xff] }
 0x2ea   : > { %v2076_v52 = vshll.u32 %v9139_v57, 30  ;;  %v1795_v55 = vmul.f32 %v9152_v45, %v9152_v45  ;;  %v1933_v15 = vshrl.u32 %v1915_v32, %v1931_v29  ;;  %v1936_v2 = vadd.s32 127, %v1935_v1 }
 0x2eb   : > { %vm2212_vm12 = vc.u32 %v2204_v63, %v2208_v23  ;;  %v2187_v59 = vshrl.u32 %v10681_v21, 16  ;;  %v2210_v44 = vshll.u32 %v9144_v36, 16  ;;  %v2197_v46 = vadd.s32 %v2195_v58, %v2193_v50 }
 0x2ec   : > { %v9167_v31 = vsub.s32 %v2073_v53, %v2076_v52  ;;  %v2213_v3 = vsel %vm2212_vm12, 1, %v10510_v22  ;;  %v1796_v28 = vmul.f32 -0.001358992, %v1795_v55  ;;  %v1803_v56 = vmul.f32 -0.00019511016, %v1795_v55 }
 0x2ed   : > { %v1934_v20 = vor.u32 %v1933_v15, %v1932_v19  ;;  %v1937_v8 = vshll.u32 %v1936_v2, 23  ;;  %v2214_v32 = vadd.s32 %v2208_v23, %v2204_v63  ;;  %v1946_v21 = vsel %vm1823_vm5, %v1945_v39, %v9060_v49 }
 0x2ee   : > { %vm2078_vm8 = vcmp.lt.s32.totalorder %v9167_v31, 0  ;;  %v2079_v9 = vsub.s32 0, %v9167_v31  ;;  %v1797_v11 = vadd.f32 0.041655596, %v1796_v28  ;;  %v1804_v61 = vadd.f32 0.008332121, %v1803_v56 }
 0x2ef   : > { %v1938_v53 = vor.u32 4788187, %v1937_v8  ;;  %v1941_v30 = vcvt.s32.f32 %v1934_v20  ;;  %v2215_v48 = vadd.s32 %v2213_v3, %v10708_v6  ;;  %vm2216_vm10 = vc.u32 %v2214_v32, %v2210_v44  ;;  %v10709_v8 = vld [vmem:[#allocation100_spill] sm:$0xff] }
 0x2f0   : > { %v2080_v26 = vsel %vm2078_vm8, %v2079_v9, %v9167_v31  ;;  %v1798_v37 = vmul.f32 %v1797_v11, %v1795_v55  ;;  %v1805_v29 = vmul.f32 %v1804_v61, %v1795_v55  ;;  %v2189_v50 = vshrl.u32 %v9084_v35, 16  ;;  %v10725_v11 = vld [vmem:[#allocation109_spill] sm:$0xff] }
 0x2f1   : > { %v1939_v1 = vand.u32 2147483647, %v1938_v53  ;;  %v2081_v60 = vclz %v2080_v26  ;;  %v2198_v63 = vadd.s32 %v2197_v46, %v2187_v59  ;;  %v2209_v23 = vshrl.u32 %v10702_v33, 16  ;;  %v10711_v46 = vld [vmem:[#allocation99_spill] sm:$0xff] }
 0x2f2   : > { %v2217_v19 = vsel %vm2216_vm10, 1, %v10510_v22  ;;  %v4144_v52 = vmax.f32 %v9113_v18, 0.0  ;;  %v1799_v49 = vadd.f32 -0.4999988, %v1798_v37  ;;  %v1806_v39 = vadd.f32 -0.16666654, %v1805_v29 }
 0x2f3   : > { %v1942_v58 = vmul.f32 %v1941_v30, %v1939_v1  ;;  %vm1813_vm0 = vcmp.eq.s32.totalorder %v9124_v40, 0  ;;  %vm1816_vm4 = vcmp.eq.s32.totalorder %v9124_v40, 2  ;;  %v1948_v14 = vsel %vm9163_vm7, 0, %v1946_v21  ;;  %v10714_v29 = vld [vmem:[#allocation25_spill] sm:$0xff] }
 0x2f4   : > { %v4802_v15 = vadd.s32 4294967294, %v2081_v60  ;;  %v2219_v2 = vadd.s32 %v2217_v19, %v2215_v48  ;;  %v1800_v35 = vmul.f32 %v1799_v49, %v1795_v55  ;;  %v1807_v59 = vmul.f32 %v1806_v39, %v1795_v55  ;;  %v10715_v49 = vld [vmem:[#allocation85_spill] sm:$0xff]  ;;  %v10716_v39 = vld [vmem:[#allocation87_spill] sm:$0xff] }
 0x2f5   : > { %vm1812_vm14 = vcmp.lt.s32.totalorder %v9124_v40, 2  ;;  %v1943_v33 = vxor.u32 2147483648, %v1942_v58  ;;  %v2211_v3 = vshrl.u32 %v9144_v36, 16  ;;  %vm1810_vm13 = vweird.f32 %v10676_v10 }
 0x2f6   : > { %vm4803_vm15 = vcmp.lt.s32.totalorder %v4802_v15, 0  ;;  %v9190_v28 = vadd.s32 %v2198_v63, %v2189_v50  ;;  %v9192_v56 = vadd.s32 %v2214_v32, %v2210_v44  ;;  %v2220_v20 = vadd.s32 %v2219_v2, %v2209_v23 }
 0x2f7   : > { %v10710_v9 = vshll.u32 %v10709_v8, 16  ;;  %v1801_v55 = vadd.f32 1.0, %v1800_v35  ;;  %v1808_v61 = vadd.f32 1.0, %v1807_v59  ;;  %v1944_v36 = vsel %vm1823_vm5, %v1943_v33, %v1942_v58 }
 0x2f8   : > { %v2084_v53 = vsel %vm4803_vm15, 0, %v4802_v15  ;;  %v9206_v21 = vsel %vm9163_vm7, %v10695_v34, %v1944_v36  ;;  %v2069_v44 = vadd.s32 %v9074_v51, %v9072_v47  ;;  %v2221_v37 = vadd.s32 %v2220_v20, %v2211_v3 }
 0x2f9   : > { %vm9197_vm6 = vc.u32 %v10711_v46, %v10710_v9  ;;  %v2085_v32 = vsub.s32 32, %v2084_v53  ;;  %v2089_v30 = vsub.s32 4294967266, %v2084_v53  ;;  %v1809_v26 = vmul.f32 %v1808_v61, %v9152_v45 }
 0x2fa   : > { %v1817_v6 = vxor.u32 2147483648, %v1801_v55  ;;  %v1949_v48 = vmul.f32 %v9206_v21, %v9206_v21  ;;  %vm1977_vm5 = vcmp.lt.s32.totalorder %v10714_v29, 0  ;;  %v9214_v1 = vand.u32 3, %v1948_v14 }
 0x2fb   : > { %v2086_v0 = vshll.u32 %v9167_v31, %v2084_v53  ;;  %v2087_v60 = vshrl.u32 %v2069_v44, %v2085_v32  ;;  %v2090_v50 = vadd.s32 127, %v2089_v30  ;;  %v1814_v63 = vxor.u32 2147483648, %v1809_v26  ;;  %v10721_v53 = vld [vmem:[#allocation69_spill] sm:$0xff] }
 0x2fc   : > { %v1950_v23 = vmul.f32 -0.001358992, %v1949_v48  ;;  %v1957_v47 = vmul.f32 -0.00019511016, %v1949_v48  ;;  %vm2224_vm11 = vc.u32 %v9190_v28, %v9192_v56  ;;  %v2225_v19 = vadd.s32 1, %v2221_v37  ;;  %v10722_v44 = vld [vmem:[#allocation77_spill] sm:$0xff] }
 0x2fd   : > { %v2088_v51 = vor.u32 %v2087_v60, %v2086_v0  ;;  %v2091_v45 = vshll.u32 %v2090_v50, 23  ;;  %v10717_v58 = vand.u32 65535, %v10716_v39  ;;  %v1815_v14 = vsel %vm1813_vm0, %v1801_v55, %v1814_v63  ;;  %v4101_v63 = vpop.f32.mrf.mxu1 }
 0x2fe   : > { %v1818_v31 = vsel %vm1816_vm4, %v1817_v6, %v1809_v26  ;;  %v1951_v2 = vadd.f32 0.041655596, %v1950_v23  ;;  %v1958_v35 = vadd.f32 0.008332121, %v1957_v47  ;;  %v10718_v59 = vand.u32 2147483647, %v10714_v29 }
 0x2ff   : > { %v9222_v15 = vmul.u32 %v10717_v58, %v10715_v49  ;;  %v1819_v3 = vsel %vm1812_vm14, %v1815_v14, %v1818_v31  ;;  %v2092_v20 = vor.u32 4788187, %v2091_v45  ;;  %v2099_v9 = vsub.s32 4, %v9139_v57  ;;  %v10724_v26 = vld [vmem:[#allocation38_spill] sm:$0xff] }
 0x300   : > { %vm9230_vm7 = vcmp.le.f32.partialorder %v10718_v59, 0.7853982  ;;  %v2226_v46 = vsel %vm2224_vm11, %v2225_v19, %v2221_v37  ;;  %v1820_v55 = vsel %vm1810_vm13, nan, %v1819_v3  ;;  %v1952_v61 = vmul.f32 %v1951_v2, %v1949_v48  ;;  %v4039_v19 = vpop.f32.mrf.mxu0 }
 0x301   : > { %v1959_v36 = vmul.f32 %v1958_v35, %v1949_v48  ;;  %v10723_v32 = vmul.u32 %v10721_v53, %v10722_v44  ;;  %v4160_v6 = vmul.f32 %v10724_v26, %v1820_v55  ;;  %v2093_v0 = vand.u32 2147483647, %v2092_v20  ;;  %v10726_v35 = vld [vmem:[#allocation101_spill] sm:$0xff]  ;;  %v10727_v44 = vld [vmem:[#allocation88_spill] sm:$0xff] }
 0x302   : > { %v2095_v60 = vcvt.s32.f32 %v2088_v51  ;;  %v2342_v40 = vshll.u32 %v9222_v15, 16  ;;  %v9245_v50 = vshrl.u32 %v9111_v54, 30  ;;  %v1953_v37 = vadd.f32 -0.4999988, %v1952_v61 }
 0x303   : > { %v2227_v30 = vadd.s32 %v2226_v46, %v10723_v32  ;;  %v1960_v23 = vadd.f32 -0.16666654, %v1959_v36  ;;  %v9249_v47 = vadd.f32 %v4160_v6, %v4144_v52  ;;  %vm1967_vm12 = vcmp.eq.s32.totalorder %v9214_v1, 0 }
 0x304   : > { %v2096_v45 = vmul.f32 %v2095_v60, %v2093_v0  ;;  %v2345_v51 = vsel %vm9197_vm6, 1, %v10510_v22  ;;  %v1954_v39 = vmul.f32 %v1953_v37, %v1949_v48  ;;  %vm1966_vm8 = vcmp.lt.s32.totalorder %v9214_v1, 2 }
 0x305   : > { %v2228_v10 = vadd.s32 536870912, %v2227_v30  ;;  %v1961_v58 = vmul.f32 %v1960_v23, %v1949_v48  ;;  %v2100_v54 = vsel %vm1977_vm5, %v2099_v9, %v9139_v57  ;;  %4226 = vmatmul.f32.gmra.mxu2 %v9249_v47  ;;  %v4102_v18 = vadd.f32 %v4101_v63, %v9119_v42 }
 0x306   : > { %vm1964_vm10 = vweird.f32 %v10695_v34  ;;  %vm1970_vm0 = vcmp.eq.s32.totalorder %v9214_v1, 2  ;;  %v2097_v52 = vxor.u32 2147483648, %v2096_v45  ;;  %vm2348_vm4 = vc.u32 %v10725_v11, %v2342_v40  ;;  %v10729_v40 = vld [vmem:[#allocation83_spill] sm:$0xff] }
 0x307   : > { %v9259_v14 = vshrl.u32 %v2228_v10, 30  ;;  %v1955_v48 = vadd.f32 1.0, %v1954_v39  ;;  %v1962_v31 = vadd.f32 1.0, %v1961_v58  ;;  %v2347_v59 = vadd.s32 %v2345_v51, %v10726_v35  ;;  %v10731_v10 = vld [vmem:[#allocation102_spill] sm:$0xff]  ;;  %v10732_v51 = vld [vmem:[#allocation112_spill] sm:$0xff]  ;;  %v10734_v39 = vld [vmem:[#allocation113_spill] sm:$0xff] }
 0x308   : > { %v4040_v57 = vadd.f32 %v8773_v16, %v4039_v19  ;;  %v2098_v3 = vsel %vm1977_vm5, %v2097_v52, %v2096_v45  ;;  %v2102_v42 = vsel %vm9230_vm7, 0, %v2100_v54  ;;  %v2349_v20 = vsel %vm2348_vm4, 1, %v10510_v22  ;;  %v10745_v58 = vld [vmem:[#allocation108_spill] sm:$0xff] }
 0x309   : > { %v2230_v2 = vshll.u32 %v9259_v14, 30  ;;  %v1963_v9 = vmul.f32 %v1962_v31, %v9206_v21  ;;  %v1971_v46 = vxor.u32 2147483648, %v1955_v48  ;;  %v9278_v55 = vsel %vm9230_vm7, %v10714_v29, %v2098_v3  ;;  %v10737_v3 = vld [vmem:[#allocation39_spill] sm:$0xff] }
 0x30a   : > { %v4145_v36 = vmax.f32 %v4102_v18, 0.0  ;;  %v2103_v16 = vmul.f32 %v9278_v55, %v9278_v55  ;;  %v2341_v53 = vshrl.u32 %v10709_v8, 16  ;;  %v10728_v32 = vand.u32 65535, %v10727_v44  ;;  %v4104_v18 = vpop.f32.mrf.mxu1 }
 0x30b   : > { %v9280_v61 = vsub.s32 %v2227_v30, %v2230_v2  ;;  %v1968_v21 = vxor.u32 2147483648, %v1963_v9  ;;  %v2351_v6 = vadd.s32 %v2349_v20, %v2347_v59  ;;  %v9292_v60 = vand.u32 3, %v2102_v42 }
 0x30c   : > { %v9288_v26 = vmul.u32 %v10728_v32, %v10715_v49  ;;  %v2104_v0 = vmul.f32 -0.001358992, %v2103_v16  ;;  %v2111_v30 = vmul.f32 -0.00019511016, %v2103_v16  ;;  %v10730_v63 = vmov %v10728_v32 }
 0x30d   : > { %vm2232_vm14 = vcmp.lt.s32.totalorder %v9280_v61, 0  ;;  %v2233_v33 = vsub.s32 0, %v9280_v61  ;;  %v2358_v37 = vmul.u32 %v10730_v63, %v10729_v40  ;;  %v1969_v8 = vsel %vm1967_vm12, %v1955_v48, %v1968_v21 }
 0x30e   : > { %v1972_v49 = vsel %vm1970_vm0, %v1971_v46, %v1963_v9  ;;  %v2362_v45 = vshll.u32 %v10731_v10, 16  ;;  %v10733_v19 = vshll.u32 %v10732_v51, 16  ;;  %v2105_v52 = vadd.f32 0.041655596, %v2104_v0 }
 0x30f   : > { %v2234_v23 = vsel %vm2232_vm14, %v2233_v33, %v9280_v61  ;;  %v1973_v54 = vsel %vm1966_vm8, %v1969_v8, %v1972_v49  ;;  %v2112_v11 = vadd.f32 0.008332121, %v2111_v30  ;;  %v2343_v2 = vshrl.u32 %v9222_v15, 16  ;;  %v10738_v30 = vld [vmem:[#allocation103_spill] sm:$0xff] }
 0x310   : > { %vm9306_vm13 = vc.u32 %v10734_v39, %v10733_v19  ;;  %v2235_v48 = vclz %v2234_v23  ;;  %v1974_v31 = vsel %vm1964_vm10, nan, %v1973_v54  ;;  %v2352_v35 = vadd.s32 %v2351_v6, %v2341_v53 }
 0x311   : > { %v2364_v59 = vshll.u32 %v9288_v26, 16  ;;  %v4161_v42 = vmul.f32 %v10737_v3, %v1974_v31  ;;  %v2106_v20 = vmul.f32 %v2105_v52, %v2103_v16  ;;  %v2113_v9 = vmul.f32 %v2112_v11, %v2103_v16  ;;  %v10739_v52 = vld [vmem:[#allocation107_spill] sm:$0xff]  ;;  %v10740_v11 = vld [vmem:[#allocation105_spill] sm:$0xff] }
 0x312   : > { %v4805_v46 = vadd.s32 4294967294, %v2235_v48  ;;  %v9317_v44 = vadd.f32 %v4104_v18, %v4040_v57  ;;  %v2223_v1 = vadd.s32 %v9192_v56, %v9190_v28  ;;  %vm2366_vm15 = vc.u32 %v2358_v37, %v2362_v45 }
 0x313   : > { %v2368_v32 = vadd.s32 %v2362_v45, %v2358_v37  ;;  %v9321_v21 = vadd.f32 %v4161_v42, %v4145_v36  ;;  %v2107_v34 = vadd.f32 -0.4999988, %v2106_v20  ;;  %v2114_v33 = vadd.f32 -0.16666654, %v2113_v9 }
 0x314   : > { %vm4806_vm6 = vcmp.lt.s32.totalorder %v4805_v46, 0  ;;  %v2363_v53 = vshrl.u32 %v10731_v10, 16  ;;  %v2367_v6 = vsel %vm2366_vm15, 1, %v10510_v22  ;;  %vm2120_vm11 = vcmp.lt.s32.totalorder %v9292_v60, 2 }
 0x315   : > { %v2238_v15 = vsel %vm4806_vm6, 0, %v4805_v46  ;;  %vm2370_vm5 = vc.u32 %v2368_v32, %v2364_v59  ;;  %4229 = vmatmul.f32.gmra.mxu2 %v9321_v21  ;;  %v2108_v57 = vmul.f32 %v2107_v34, %v2103_v16  ;;  %v2115_v0 = vmul.f32 %v2114_v33, %v2103_v16  ;;  %v10744_v33 = vld [vmem:[#allocation119_spill] sm:$0xff] }
 0x316   : > { %v2239_v28 = vsub.s32 32, %v2238_v15  ;;  %v9327_v56 = vadd.s32 %v2352_v35, %v2343_v2  ;;  %vm2118_vm7 = vweird.f32 %v10714_v29  ;;  %v2243_v36 = vsub.s32 4294967266, %v2238_v15  ;;  %v10742_v2 = vld [vmem:[#allocation36_spill] sm:$0xff] }
 0x317   : > { %v2369_v40 = vadd.s32 %v2367_v6, %v10738_v30  ;;  %v2371_v63 = vsel %vm2370_vm5, 1, %v10510_v22  ;;  %v9332_v37 = vadd.s32 %v2368_v32, %v2364_v59  ;;  %v2109_v8 = vadd.f32 1.0, %v2108_v57  ;;  %v10743_v32 = vld [vmem:[#allocation115_spill] sm:$0xff] }
 0x318   : > { %v2116_v49 = vadd.f32 1.0, %v2115_v0  ;;  %v2240_v23 = vshll.u32 %v9280_v61, %v2238_v15  ;;  %v2241_v10 = vshrl.u32 %v2223_v1, %v2239_v28  ;;  %vm2121_vm12 = vcmp.eq.s32.totalorder %v9292_v60, 0  ;;  %v4042_v28 = vpop.f32.mrf.mxu0 }
 0x319   : > { %v2244_v16 = vadd.s32 127, %v2243_v36  ;;  %v2365_v45 = vshrl.u32 %v9288_v26, 16  ;;  %v2373_v19 = vadd.s32 %v2371_v63, %v2369_v40  ;;  %v2125_v54 = vxor.u32 2147483648, %v2109_v8  ;;  %v10747_v40 = vld [vmem:[#allocation106_spill] sm:$0xff] }
 0x31a   : > { %v2117_v39 = vmul.f32 %v2116_v49, %v9278_v55  ;;  %v2242_v18 = vor.u32 %v2241_v10, %v2240_v23  ;;  %v10741_v48 = vand.u32 65535, %v10740_v11  ;;  %vm2131_vm8 = vcmp.lt.s32.totalorder %v10742_v2, 0  ;;  %v10749_v49 = vld [vmem:[#allocation116_spill] sm:$0xff] }
 0x31b   : > { %vm2124_vm10 = vcmp.eq.s32.totalorder %v9292_v60, 2  ;;  %v2245_v61 = vshll.u32 %v2244_v16, 23  ;;  %v2374_v35 = vadd.s32 %v2373_v19, %v2363_v53  ;;  %v2499_v26 = vsel %vm9306_vm13, 1, %v10510_v22 }
 0x31c   : > { %v9341_v31 = vmul.u32 %v10741_v48, %v10739_v52  ;;  %v4146_v59 = vmax.f32 %v9317_v44, 0.0  ;;  %v2122_v55 = vxor.u32 2147483648, %v2117_v39  ;;  %vm2378_vm0 = vc.u32 %v9327_v56, %v9332_v37  ;;  %v9391_v48 = vld [vmem:[%s10163_s5] ss:$0 sm:$0xff] }
 0x31d   : > { %v2126_v42 = vsel %vm2124_vm10, %v2125_v54, %v2117_v39  ;;  %v2246_v20 = vor.u32 4788187, %v2245_v61  ;;  %v2249_v9 = vcvt.s32.f32 %v2242_v18  ;;  %v2375_v46 = vadd.s32 %v2374_v35, %v2365_v45  ;;  %v10753_v45 = vld [vmem:[#allocation50_spill] sm:$0xff] }
 0x31e   : > { %v2496_v3 = vshll.u32 %v9341_v31, 16  ;;  %v2123_v1 = vsel %vm2121_vm12, %v2109_v8, %v2122_v55  ;;  %v2501_v34 = vadd.s32 %v2499_v26, %v10743_v32  ;;  %v10746_v44 = vand.u32 65535, %v10745_v58  ;;  %v10758_v55 = vld [vmem:[#allocation79_spill] sm:$0xff] }
 0x31f   : > { %v2127_v53 = vsel %vm2120_vm11, %v2123_v1, %v2126_v42  ;;  %v2247_v6 = vand.u32 2147483647, %v2246_v20  ;;  %v2379_v57 = vadd.s32 1, %v2375_v46  ;;  %v2253_v30 = vsub.s32 4, %v9259_v14  ;;  %v4107_v1 = vpop.f32.mrf.mxu1 }
 0x320   : > { %vm2502_vm4 = vc.u32 %v10744_v33, %v2496_v3  ;;  %v2514_v15 = vmul.u32 %v10746_v44, %v10739_v52  ;;  %v2128_v36 = vsel %vm2118_vm7, nan, %v2127_v53  ;;  %v10748_v63 = vmov %v10746_v44  ;;  %v10759_v3 = vld [vmem:[#allocation86_spill] sm:$0xff] }
 0x321   : > { %v2503_v0 = vsel %vm2502_vm4, 1, %v10510_v22  ;;  %v2512_v8 = vmul.u32 %v10748_v63, %v10747_v40  ;;  %v2516_v23 = vshll.u32 %v10749_v49, 16  ;;  %v10750_v10 = vshll.u32 %v8148_v12, 16 }
 0x322   : > { %v3924_v16 = vshll.u32 %v9245_v50, 30  ;;  %v4162_v29 = vmul.f32 %v10753_v45, %v2128_v36  ;;  %v10754_v19 = vand.u32 2147483647, %v10742_v2  ;;  %v2250_v54 = vmul.f32 %v2249_v9, %v2247_v6 }
 0x323   : > { %vm9372_vm14 = vc.u32 %v8145_v38, %v10750_v10  ;;  %v2380_v18 = vsel %vm2378_vm0, %v2379_v57, %v2375_v46  ;;  %v2495_v38 = vshrl.u32 %v10732_v51, 16  ;;  %v2505_v52 = vadd.s32 %v2503_v0, %v2501_v34  ;;  %v10762_v0 = vld [vmem:[#allocation120_spill] sm:$0xff] }
 0x324   : > { %vm9380_vm13 = vcmp.le.f32.partialorder %v10754_v19, 0.7853982  ;;  %v2518_v11 = vshll.u32 %v2514_v15, 16  ;;  %v4043_v61 = vadd.f32 %v9391_v48, %v4042_v28  ;;  %v9394_v35 = vadd.f32 %v4162_v29, %v4146_v59  ;;  %v10763_v28 = vld [vmem:[#allocation132_spill] sm:$0xff] }
 0x325   : > { %v2251_v26 = vxor.u32 2147483648, %v2250_v54  ;;  %v10760_v42 = vmul.u32 %v10758_v55, %v10759_v3  ;;  %v2254_v51 = vsel %vm2131_vm8, %v2253_v30, %v9259_v14  ;;  %v2497_v9 = vshrl.u32 %v9341_v31, 16  ;;  %v10761_v31 = vld [vmem:[#allocation117_spill] sm:$0xff] }
 0x326   : > { %10757 = vst [vmem:[#allocation49_spill] sm:$0xff] %v9394_v35  ;;  %vm2520_vm15 = vc.u32 %v2512_v8, %v2516_v23  ;;  %v2522_v46 = vadd.s32 %v2516_v23, %v2512_v8  ;;  %4232 = vmatmul.f32.gmra.mxu2 %v9394_v35  ;;  %v2517_v34 = vshrl.u32 %v10749_v49, 16  ;;  %v2506_v14 = vadd.s32 %v2505_v52, %v2495_v38 }
 0x327   : > { %v2381_v20 = vadd.s32 %v2380_v18, %v10760_v42  ;;  %v2252_v59 = vsel %vm2131_vm8, %v2251_v26, %v2250_v54  ;;  %v2521_v33 = vsel %vm2520_vm15, 1, %v10510_v22  ;;  %v10764_v36 = vand.u32 65535, %v10763_v28 }
 0x328   : > { %v9411_v58 = vsel %vm9380_vm13, %v10742_v2, %v2252_v59  ;;  %v2523_v44 = vadd.s32 %v2521_v33, %v10761_v31  ;;  %vm2524_vm6 = vc.u32 %v2522_v46, %v2518_v11  ;;  %v9425_v40 = vsub.s32 %v9077_v62, %v3924_v16  ;;  %v10769_v31 = vld [vmem:[#allocation131_spill] sm:$0xff] }
 0x329   : > { %v2382_v32 = vadd.s32 536870912, %v2381_v20  ;;  %v2257_v53 = vmul.f32 %v9411_v58, %v9411_v58  ;;  %v2525_v57 = vsel %vm2524_vm6, 1, %v10510_v22  ;;  %v9422_v30 = vmul.u32 %v10764_v36, %v10762_v0  ;;  %v10771_v36 = vld [vmem:[#allocation104_spill] sm:$0xff] }
 0x32a   : > { %v9427_v63 = vadd.f32 %v4107_v1, %v4043_v61  ;;  %v2519_v8 = vshrl.u32 %v2514_v15, 16  ;;  %v2527_v49 = vadd.s32 %v2525_v57, %v2523_v44  ;;  %v2256_v23 = vsel %vm9380_vm13, 0, %v2254_v51 }
 0x32b   : > { %v9416_v6 = vshrl.u32 %v2382_v32, 30  ;;  %v2258_v10 = vmul.f32 -0.001358992, %v2257_v53  ;;  %v2265_v45 = vmul.f32 -0.00019511016, %v2257_v53  ;;  %v9432_v19 = vadd.s32 %v2506_v14, %v2497_v9  ;;  %v10767_v9 = vld [vmem:[#allocation133_spill] sm:$0xff] }
 0x32c   : > { %v9434_v54 = vadd.s32 %v2522_v46, %v2518_v11  ;;  %v2528_v18 = vadd.s32 %v2527_v49, %v2517_v34  ;;  %v2650_v38 = vshll.u32 %v9422_v30, 16  ;;  %v9439_v62 = vadd.s32 4294967294, %v3775_v43  ;;  %v10768_v14 = vld [vmem:[#allocation118_spill] sm:$0xff] }
 0x32d   : > { %v2384_v29 = vshll.u32 %v9416_v6, 30  ;;  %v2259_v15 = vadd.f32 0.041655596, %v2258_v10  ;;  %v2266_v16 = vadd.f32 0.008332121, %v2265_v45  ;;  %v9443_v39 = vand.u32 3, %v2256_v23 }
 0x32e   : > { %v2529_v61 = vadd.s32 %v2528_v18, %v2519_v8  ;;  %v2653_v26 = vsel %vm9372_vm14, 1, %v10510_v22  ;;  %vm9449_vm5 = vc.u32 %v8324_v25, %v2650_v38  ;;  %v3927_v3 = vsub.s32 0, %v9425_v40  ;;  %v10772_v8 = vld [vmem:[#allocation110_spill] sm:$0xff] }
 0x32f   : > { %v9441_v52 = vsub.s32 %v2381_v20, %v2384_v29  ;;  %v2260_v55 = vmul.f32 %v2259_v15, %v2257_v53  ;;  %v2267_v27 = vmul.f32 %v2266_v16, %v2257_v53  ;;  %v4147_v42 = vmax.f32 %v9427_v63, 0.0 }
 0x330   : > { %vm2532_vm7 = vc.u32 %v9432_v19, %v9434_v54  ;;  %v2533_v60 = vadd.s32 1, %v2529_v61  ;;  %v2655_v46 = vadd.s32 %v2653_v26, %v10767_v9  ;;  %vm4836_vm12 = vcmp.lt.s32.totalorder %v9439_v62, 0 }
 0x331   : > { %vm2386_vm11 = vcmp.lt.s32.totalorder %v9441_v52, 0  ;;  %v2387_v43 = vsub.s32 0, %v9441_v52  ;;  %v2261_v20 = vadd.f32 -0.4999988, %v2260_v55  ;;  %v2268_v51 = vadd.f32 -0.16666654, %v2267_v27 }
 0x332   : > { %vm2275_vm8 = vcmp.eq.s32.totalorder %v9443_v39, 0  ;;  %vm2278_vm10 = vcmp.eq.s32.totalorder %v9443_v39, 2  ;;  %v2657_v59 = vsel %vm9449_vm5, 1, %v10510_v22  ;;  %vm3926_vm0 = vcmp.lt.s32.totalorder %v9425_v40, 0 }
 0x333   : > { %v2388_v25 = vsel %vm2386_vm11, %v2387_v43, %v9441_v52  ;;  %v2262_v32 = vmul.f32 %v2261_v20, %v2257_v53  ;;  %v2269_v34 = vmul.f32 %v2268_v51, %v2257_v53  ;;  %vm2274_vm4 = vcmp.lt.s32.totalorder %v9443_v39, 2  ;;  %v10775_v53 = vld [vmem:[#allocation134_spill] sm:$0xff] }
 0x334   : > { %v2389_v1 = vclz %v2388_v25  ;;  %v2534_v33 = vsel %vm2532_vm7, %v2533_v60, %v2529_v61  ;;  %v10770_v44 = vand.u32 65535, %v10769_v31  ;;  %vm2272_vm14 = vweird.f32 %v10742_v2  ;;  %v10781_v31 = vld [vmem:[#allocation136_spill] sm:$0xff] }
 0x335   : > { %v10773_v49 = vmul.u32 %v10771_v36, %v10772_v8  ;;  %v2670_v29 = vshll.u32 %v10775_v53, 16  ;;  %v2263_v18 = vadd.f32 1.0, %v2262_v32  ;;  %v2270_v38 = vadd.f32 1.0, %v2269_v34  ;;  %v10782_v8 = vld [vmem:[#allocation46_spill] sm:$0xff] }
 0x336   : > { %v2666_v57 = vmul.u32 %v10770_v44, %v10768_v14  ;;  %v4808_v28 = vadd.s32 4294967294, %v2389_v1  ;;  %v10774_v10 = vmov %v10770_v44  ;;  %v2649_v15 = vshrl.u32 %v8148_v12, 16 }
 0x337   : > { %v2535_v23 = vadd.s32 %v2534_v33, %v10773_v49  ;;  %v9479_v45 = vmul.u32 %v10774_v10, %v10762_v0  ;;  %v2659_v16 = vadd.s32 %v2657_v59, %v2655_v46  ;;  %v2377_v61 = vadd.s32 %v9332_v37, %v9327_v56  ;;  %v10776_v37 = vld [vmem:[#allocation127_spill] sm:$0xff]  ;;  %v10780_v33 = vld [vmem:[#allocation130_spill] sm:$0xff] }
 0x338   : > { %vm4809_vm13 = vcmp.lt.s32.totalorder %v4808_v28, 0  ;;  %v2271_v55 = vmul.f32 %v2270_v38, %v9411_v58  ;;  %v2279_v27 = vxor.u32 2147483648, %v2263_v18  ;;  %vm2674_vm15 = vc.u32 %v2666_v57, %v2670_v29 }
 0x339   : > { %v2536_v26 = vadd.s32 536870912, %v2535_v23  ;;  %v2672_v11 = vshll.u32 %v9479_v45, 16  ;;  %v2392_v43 = vsel %vm4809_vm13, 0, %v4808_v28  ;;  %v2651_v51 = vshrl.u32 %v9422_v30, 16 }
 0x33a   : > { %v2393_v0 = vsub.s32 32, %v2392_v43  ;;  %v2397_v60 = vsub.s32 4294967266, %v2392_v43  ;;  %v2276_v12 = vxor.u32 2147483648, %v2271_v55  ;;  %v2660_v25 = vadd.s32 %v2659_v16, %v2649_v15 }
 0x33b   : > { %v9487_v20 = vshrl.u32 %v2536_v26, 30  ;;  %v2675_v9 = vsel %vm2674_vm15, 1, %v10510_v22  ;;  %v2676_v56 = vadd.s32 %v2670_v29, %v2666_v57  ;;  %v10777_v46 = vand.u32 2147483647, %v10776_v37 }
 0x33c   : > { %v2394_v58 = vshll.u32 %v9441_v52, %v2392_v43  ;;  %v2395_v59 = vshrl.u32 %v2377_v61, %v2393_v0  ;;  %v2398_v32 = vadd.s32 127, %v2397_v60  ;;  %vm3363_vm5 = vcmp.lt.s32.totalorder %v10780_v33, 0 }
 0x33d   : > { %vm9493_vm6 = vcmp.le.f32.partialorder %v10777_v46, 0.7853982  ;;  %v2538_v34 = vshll.u32 %v9487_v20, 30  ;;  %v2277_v30 = vsel %vm2275_vm8, %v2263_v18, %v2276_v12  ;;  %v2280_v14 = vsel %vm2278_vm10, %v2279_v27, %v2271_v55  ;;  %v10787_v12 = vld [vmem:[#allocation22_spill] sm:$0xff] }
 0x33e   : > { %v2677_v44 = vadd.s32 %v2675_v9, %v10781_v31  ;;  %vm2678_vm11 = vc.u32 %v2676_v56, %v2672_v11  ;;  %v2281_v57 = vsel %vm2274_vm4, %v2277_v30, %v2280_v14  ;;  %v2396_v28 = vor.u32 %v2395_v59, %v2394_v58  ;;  %v10788_v46 = vld [vmem:[#allocation150_spill] sm:$0xff]  ;;  %v10790_v14 = vld [vmem:[#allocation31_spill] sm:$0xff]  ;;  %v10791_v31 = vld [vmem:[#allocation33_spill] sm:$0xff] }
 0x33f   : > { %v2399_v52 = vshll.u32 %v2398_v32, 23  ;;  %v9507_v36 = vsub.s32 %v2535_v23, %v2538_v34  ;;  %vm2285_vm7 = vcmp.lt.s32.totalorder %v10782_v8, 0  ;;  %v9513_v49 = vsel %vm4836_vm12, 0, %v9439_v62  ;;  %v10783_v23 = vld [vmem:[#allocation65_spill] sm:$0xff] }
 0x340   : > { %v2282_v10 = vsel %vm2272_vm14, nan, %v2281_v57  ;;  %v2671_v29 = vshrl.u32 %v10775_v53, 16  ;;  %v2679_v18 = vsel %vm2678_vm11, 1, %v10510_v22  ;;  %v3928_v39 = vsel %vm3926_vm0, %v3927_v3, %v9425_v40  ;;  %v10785_v3 = vld [vmem:[#allocation147_spill] sm:$0xff] }
 0x341   : > { %v4163_v38 = vmul.f32 %v10783_v23, %v2282_v10  ;;  %v2400_v15 = vor.u32 4788187, %v2399_v52  ;;  %vm2540_vm8 = vcmp.lt.s32.totalorder %v9507_v36, 0  ;;  %v2541_v62 = vsub.s32 0, %v9507_v36 }
 0x342   : > { %v9527_v16 = vadd.s32 %v2660_v25, %v2651_v51  ;;  %v2673_v2 = vshrl.u32 %v9479_v45, 16  ;;  %v2681_v53 = vadd.s32 %v2679_v18, %v2677_v44  ;;  %v2403_v26 = vcvt.s32.f32 %v2396_v28  ;;  %v10786_v51 = vld [vmem:[#allocation148_spill] sm:$0xff] }
 0x343   : > { %v9532_v22 = vadd.f32 %v4163_v38, %v4147_v42  ;;  %v2401_v61 = vand.u32 2147483647, %v2400_v15  ;;  %v9534_v55 = vadd.s32 %v2676_v56, %v2672_v11  ;;  %v9538_v27 = vmul.f32 %v10785_v3, %v10785_v3 }
 0x344   : > { %v3633_v43 = vand.u32 2147483647, %v9103_v41  ;;  %v2542_v0 = vsel %vm2540_vm8, %v2541_v62, %v9507_v36  ;;  %v2682_v60 = vadd.s32 %v2681_v53, %v2671_v29  ;;  %v9544_v45 = vmul.f32 %v10786_v51, %v10786_v51 }
 0x345   : > { %10784 = vst [vmem:[#allocation32_spill] sm:$0xff] %v9532_v22  ;;  %v3783_v63 = vsub.s32 4294967266, %v9513_v49  ;;  %4235 = vmatmul.f32.gmra.mxu2 %v9532_v22  ;;  %v2404_v42 = vmul.f32 %v2403_v26, %v2401_v61  ;;  %v2543_v11 = vclz %v2542_v0  ;;  %v9552_v25 = vsel %vm9493_vm6, %v10776_v37, %v10787_v12 }
 0x346   : > { %v3635_v41 = vcvt.s32.f32 %v9041_v4  ;;  %v3929_v9 = vclz %v3928_v39  ;;  %v2683_v56 = vadd.s32 %v2682_v60, %v2673_v2  ;;  %v10789_v58 = vxor.u32 2147483648, %v10788_v46  ;;  %v10798_v2 = vld [vmem:[#allocation95_spill] sm:$0xff] }
 0x347   : > { %v2405_v32 = vxor.u32 2147483648, %v2404_v42  ;;  %v4811_v34 = vadd.s32 4294967294, %v2543_v11  ;;  %vm2686_vm12 = vc.u32 %v9527_v16, %v9534_v55  ;;  %v3763_v44 = vadd.s32 %v10791_v31, %v10790_v14  ;;  %v10800_v11 = vld [vmem:[#allocation128_spill] sm:$0xff] }
 0x348   : > { %v3484_v59 = vsel %vm3363_vm5, %v10789_v58, %v10788_v46  ;;  %v3636_v30 = vmul.f32 %v3635_v41, %v3633_v43  ;;  %v3779_v57 = vsub.s32 32, %v9513_v49  ;;  %v2687_v4 = vadd.s32 1, %v2683_v56 }
 0x349   : > { %v10792_v28 = vand.u32 2147483647, %v10780_v33  ;;  %v3784_v10 = vadd.s32 127, %v3783_v63  ;;  %v10795_v29 = vand.u32 2147483647, %v10782_v8  ;;  %v2406_v39 = vsel %vm2285_vm7, %v2405_v32, %v2404_v42  ;;  %v10799_v42 = vld [vmem:[#allocation114_spill] sm:$0xff] }
 0x34a   : > { %vm4812_vm4 = vcmp.lt.s32.totalorder %v4811_v34, 0  ;;  %v4838_v23 = vadd.s32 4294967294, %v3929_v9  ;;  %v2688_v62 = vsel %vm2686_vm12, %v2687_v4, %v2683_v56  ;;  %vm10361_vm14 = vcmp.lt.s32.totalorder %v10798_v2, 0 }
 0x34b   : > { %vm9567_vm10 = vcmp.le.f32.partialorder %v10792_v28, 0.7853982  ;;  %vm9573_vm0 = vcmp.le.f32.partialorder %v10795_v29, 0.7853982  ;;  %v2546_v15 = vsel %vm4812_vm4, 0, %v4811_v34  ;;  %v2531_v61 = vadd.s32 %v9434_v54, %v9432_v19 }
 0x34c   : > { %v9582_v38 = vsel %vm9573_vm0, %v10782_v8, %v2406_v39  ;;  %v2547_v26 = vsub.s32 32, %v2546_v15  ;;  %v2551_v43 = vsub.s32 4294967266, %v2546_v15  ;;  %v3781_v0 = vshrl.u32 %v3763_v44, %v3779_v57  ;;  %v10802_v57 = vld [vmem:[#allocation66_spill] sm:$0xff]  ;;  %v4045_v39 = vpop.f32.mrf.mxu0 }
 0x34d   : > { %v2411_v53 = vmul.f32 %v9582_v38, %v9582_v38  ;;  %v2407_v60 = vsub.s32 4, %v9416_v6  ;;  %v2548_v63 = vshll.u32 %v9507_v36, %v2546_v15  ;;  %v10801_v12 = vmul.u32 %v10799_v42, %v10800_v11 }
 0x34e   : > { %v2549_v46 = vshrl.u32 %v2531_v61, %v2547_v26  ;;  %v2552_v58 = vadd.s32 127, %v2551_v43  ;;  %v3780_v32 = vshll.u32 %v9046_v24, %v9513_v49  ;;  %v3785_v34 = vshll.u32 %v3784_v10, 23 }
 0x34f   : > { %v2689_v41 = vadd.s32 %v2688_v62, %v10801_v12  ;;  %v2412_v9 = vmul.f32 -0.001358992, %v2411_v53  ;;  %v2419_v56 = vmul.f32 -0.00019511016, %v2411_v53  ;;  %vm4839_vm13 = vcmp.lt.s32.totalorder %v4838_v23, 0 }
 0x350   : > { %v2550_v31 = vor.u32 %v2549_v46, %v2548_v63  ;;  %v2553_v44 = vshll.u32 %v2552_v58, 23  ;;  %vm2439_vm15 = vcmp.lt.s32.totalorder %v10802_v57, 0  ;;  %v9599_v36 = vmul.f32 %v9552_v25, %v9552_v25 }
 0x351   : > { %v2690_v19 = vadd.s32 536870912, %v2689_v41  ;;  %v2413_v54 = vadd.f32 0.041655596, %v2412_v9  ;;  %v2420_v14 = vadd.f32 0.008332121, %v2419_v56  ;;  %v3637_v4 = vxor.u32 2147483648, %v3636_v30 }
 0x352   : > { %v3782_v28 = vor.u32 %v3781_v0, %v3780_v32  ;;  %v2408_v24 = vsel %vm2285_vm7, %v2407_v60, %v9416_v6  ;;  %v2554_v15 = vor.u32 4788187, %v2553_v44  ;;  %v9609_v62 = vsel %vm9567_vm10, %v10780_v33, %v3484_v59 }
 0x353   : > { %v9601_v29 = vshrl.u32 %v2690_v19, 30  ;;  %v2414_v49 = vmul.f32 %v2413_v54, %v2411_v53  ;;  %v2421_v10 = vmul.f32 %v2420_v14, %v2411_v53  ;;  %v3786_v61 = vor.u32 4788187, %v3785_v34 }
 0x354   : > { %v9612_v26 = vsel %vm4839_vm13, 0, %v4838_v23  ;;  %v2555_v42 = vand.u32 2147483647, %v2554_v15  ;;  %v2557_v11 = vcvt.s32.f32 %v2550_v31  ;;  %v9617_v6 = vsel %vm10361_vm14, %v3637_v4, %v3636_v30  ;;  %v4110_v23 = vpop.f32.mrf.mxu1 }
 0x355   : > { %v2692_v43 = vshll.u32 %v9601_v29, 30  ;;  %v2415_v0 = vadd.f32 -0.4999988, %v2414_v49  ;;  %v2422_v63 = vadd.f32 -0.16666654, %v2421_v10  ;;  %v4046_v60 = vadd.f32 %v9391_v48, %v4045_v39 }
 0x356   : > { %v2410_v59 = vsel %vm9573_vm0, 0, %v2408_v24  ;;  %v3789_v9 = vcvt.s32.f32 %v3782_v28  ;;  %v2558_v58 = vmul.f32 %v2557_v11, %v2555_v42  ;;  %v3787_v32 = vand.u32 2147483647, %v3786_v61  ;;  %v4048_v42 = vpop.f32.mrf.mxu0 }
 0x357   : > { %v9622_v12 = vsub.s32 %v2689_v41, %v2692_v43  ;;  %v2416_v56 = vmul.f32 %v2415_v0, %v2411_v53  ;;  %v2423_v46 = vmul.f32 %v2422_v63, %v2411_v53  ;;  %v3937_v34 = vsub.s32 4294967266, %v9612_v26 }
 0x358   : > { %v2427_v14 = vand.u32 3, %v2410_v59  ;;  %v2559_v31 = vxor.u32 2147483648, %v2558_v58  ;;  %v3917_v18 = vadd.s32 %v9014_v7, %v9009_v17  ;;  %v4111_v41 = vadd.f32 %v4110_v23, %v4046_v60  ;;  %v10809_v23 = vld [vmem:[#allocation137_spill] sm:$0xff] }
 0x359   : > { %vm2694_vm11 = vcmp.lt.s32.totalorder %v9622_v12, 0  ;;  %v2695_v30 = vsub.s32 0, %v9622_v12  ;;  %v2417_v19 = vadd.f32 1.0, %v2416_v56  ;;  %v2424_v54 = vadd.f32 1.0, %v2423_v46 }
 0x35a   : > { %v10803_v44 = vand.u32 2147483647, %v10802_v57  ;;  %v2560_v24 = vsel %vm2439_vm15, %v2559_v31, %v2558_v58  ;;  %v3790_v10 = vmul.f32 %v3789_v9, %v3787_v32  ;;  %v3938_v15 = vadd.s32 127, %v3937_v34 }
 0x35b   : > { %v2696_v4 = vsel %vm2694_vm11, %v2695_v30, %v9622_v12  ;;  %v2425_v28 = vmul.f32 %v2424_v54, %v9582_v38  ;;  %v2433_v39 = vxor.u32 2147483648, %v2417_v19  ;;  %vm2426_vm8 = vweird.f32 %v10782_v8 }
 0x35c   : > { %vm9631_vm7 = vcmp.le.f32.partialorder %v10803_v44, 0.7853982  ;;  %v2697_v49 = vclz %v2696_v4  ;;  %v10806_v7 = vand.u32 2147483647, %v10798_v2  ;;  %vm2432_vm0 = vcmp.eq.s32.totalorder %v2427_v14, 2  ;;  %v4113_v4 = vpop.f32.mrf.mxu1 }
 0x35d   : > { %v9643_v17 = vsel %vm9631_vm7, %v10802_v57, %v2560_v24  ;;  %v2430_v38 = vxor.u32 2147483648, %v2425_v28  ;;  %v4148_v63 = vmax.f32 %v4111_v41, 0.0  ;;  %vm2428_vm4 = vcmp.lt.s32.totalorder %v2427_v14, 2  ;;  %v10810_v41 = vld [vmem:[#allocation78_spill] sm:$0xff] }
 0x35e   : > { %vm9647_vm12 = vcmp.le.f32.partialorder %v10806_v7, 0.7853982  ;;  %v2565_v43 = vmul.f32 %v9643_v17, %v9643_v17  ;;  %v4814_v0 = vadd.s32 4294967294, %v2697_v49  ;;  %vm2429_vm13 = vcmp.eq.s32.totalorder %v2427_v14, 0  ;;  %v10811_v7 = vld [vmem:[#allocation111_spill] sm:$0xff] }
 0x35f   : > { %v2434_v11 = vsel %vm2432_vm0, %v2433_v39, %v2425_v28  ;;  %v2431_v60 = vsel %vm2429_vm13, %v2417_v19, %v2430_v38  ;;  %vm3671_vm14 = vcmp.lt.s32.totalorder %v10809_v23, 0  ;;  %v2561_v46 = vsub.s32 4, %v9487_v20 }
 0x360   : > { %v2566_v59 = vmul.f32 -0.001358992, %v2565_v43  ;;  %v2573_v9 = vmul.f32 -0.00019511016, %v2565_v43  ;;  %vm4815_vm11 = vcmp.lt.s32.totalorder %v4814_v0, 0  ;;  %v2435_v56 = vsel %vm2428_vm4, %v2431_v60, %v2434_v11 }
 0x361   : > { %v2685_v58 = vadd.s32 %v9534_v55, %v9527_v16  ;;  %v2700_v32 = vsel %vm4815_vm11, 0, %v4814_v0  ;;  %v2436_v34 = vsel %vm2426_vm8, nan, %v2435_v56  ;;  %v3933_v19 = vsub.s32 32, %v9612_v26 }
 0x362   : > { %v2567_v30 = vadd.f32 0.041655596, %v2566_v59  ;;  %v2574_v54 = vadd.f32 0.008332121, %v2573_v9  ;;  %v2701_v14 = vsub.s32 32, %v2700_v32  ;;  %v3939_v31 = vshll.u32 %v3938_v15, 23 }
 0x363   : > { %v4164_v44 = vmul.f32 %v10810_v41, %v2436_v34  ;;  %v2705_v28 = vsub.s32 4294967266, %v2700_v32  ;;  %v2881_v38 = vmul.f32 -0.00019511016, %v10811_v7  ;;  %v2562_v8 = vsel %vm2439_vm15, %v2561_v46, %v9487_v20 }
 0x364   : > { %v2568_v39 = vmul.f32 %v2567_v30, %v2565_v43  ;;  %v2575_v24 = vmul.f32 %v2574_v54, %v2565_v43  ;;  %v2703_v49 = vshrl.u32 %v2685_v58, %v2701_v14  ;;  %v2702_v55 = vshll.u32 %v9622_v12, %v2700_v32  ;;  %v10813_v12 = vld [vmem:[#allocation94_spill] sm:$0xff]  ;;  %v9685_v14 = vpop.f32.mrf.mxu0 }
 0x365   : > { %v9662_v16 = vadd.f32 %v4164_v44, %v4148_v63  ;;  %v2706_v0 = vadd.s32 127, %v2705_v28  ;;  %v9670_v15 = vmul.f32 %v9609_v62, %v9609_v62  ;;  %v3791_v11 = vxor.u32 2147483648, %v3790_v10 }
 0x366   : > { %v2569_v60 = vadd.f32 -0.4999988, %v2568_v39  ;;  %v2576_v59 = vadd.f32 -0.16666654, %v2575_v24  ;;  %v9676_v63 = vsel %vm9647_vm12, %v10798_v2, %v9617_v6  ;;  %v3935_v9 = vshrl.u32 %v3917_v18, %v3933_v19 }
 0x367   : > { %10812 = vst [vmem:[#allocation27_spill] sm:$0xff] %v9662_v16  ;;  %4238 = vmatmul.f32.gmra.mxu2 %v9662_v16  ;;  %v2704_v20 = vor.u32 %v2703_v49, %v2702_v55  ;;  %v2707_v56 = vshll.u32 %v2706_v0, 23  ;;  %vm2593_vm15 = vcmp.lt.s32.totalorder %v10813_v12, 0  ;;  %v2564_v46 = vsel %vm9631_vm7, 0, %v2562_v8  ;;  %v9699_v55 = vpop.f32.mrf.mxu1 }
 0x368   : > { %v2570_v58 = vmul.f32 %v2569_v60, %v2565_v43  ;;  %v2577_v32 = vmul.f32 %v2576_v59, %v2565_v43  ;;  %v2882_v34 = vadd.f32 0.008332121, %v2881_v38  ;;  %v3934_v30 = vshll.u32 %v9425_v40, %v9612_v26 }
 0x369   : > { %v3940_v54 = vor.u32 4788187, %v3939_v31  ;;  %v4049_v6 = vadd.f32 %v9391_v48, %v4048_v42  ;;  %v2708_v18 = vor.u32 4788187, %v2707_v56  ;;  %v3792_v19 = vsel %vm3671_vm14, %v3791_v11, %v3790_v10  ;;  %v10817_v11 = vld [vmem:[#allocation126_spill] sm:$0xff] }
 0x36a   : > { %v2571_v41 = vadd.f32 1.0, %v2570_v58  ;;  %v2578_v44 = vadd.f32 1.0, %v2577_v32  ;;  %v2874_v53 = vmul.f32 -0.001358992, %v10811_v7  ;;  %v10814_v28 = vand.u32 2147483647, %v10809_v23 }
 0x36b   : > { %v3936_v40 = vor.u32 %v3935_v9, %v3934_v30  ;;  %v2581_v26 = vand.u32 3, %v2564_v46  ;;  %v2709_v31 = vand.u32 2147483647, %v2708_v18  ;;  %v2711_v42 = vcvt.s32.f32 %v2704_v20 }
 0x36c   : > { %vm9692_vm7 = vcmp.le.f32.partialorder %v10814_v28, 0.7853982  ;;  %v2579_v39 = vmul.f32 %v2578_v44, %v9643_v17  ;;  %v2587_v24 = vxor.u32 2147483648, %v2571_v41  ;;  %v2883_v49 = vmul.f32 %v2882_v34, %v10811_v7  ;;  %v10822_v28 = vld [vmem:[#allocation135_spill] sm:$0xff] }
 0x36d   : > { %v3035_v10 = vmul.f32 -0.00019511016, %v9538_v27  ;;  %v3941_v38 = vand.u32 2147483647, %v3940_v54  ;;  %v4114_v8 = vadd.f32 %v4113_v4, %v4049_v6  ;;  %v2712_v0 = vmul.f32 %v2711_v42, %v2709_v31  ;;  %v10821_v6 = vld [vmem:[#allocation82_spill] sm:$0xff]  ;;  %v10823_v31 = vld [vmem:[#allocation93_spill] sm:$0xff] }
 0x36e   : > { %v2869_v60 = vsub.s32 4, %v10817_v11  ;;  %vm2580_vm8 = vweird.f32 %v10802_v57  ;;  %v2584_v59 = vxor.u32 2147483648, %v2579_v39  ;;  %v10818_v9 = vand.u32 2147483647, %v10813_v12 }
 0x36f   : > { %v2875_v17 = vadd.f32 0.041655596, %v2874_v53  ;;  %vm2582_vm4 = vcmp.lt.s32.totalorder %v2581_v26, 2  ;;  %vm2583_vm13 = vcmp.eq.s32.totalorder %v2581_v26, 0  ;;  %vm2586_vm11 = vcmp.eq.s32.totalorder %v2581_v26, 2 }
 0x370   : > { %vm9705_vm0 = vcmp.le.f32.partialorder %v10818_v9, 0.7853982  ;;  %v2713_v56 = vxor.u32 2147483648, %v2712_v0  ;;  %v2585_v4 = vsel %vm2583_vm13, %v2571_v41, %v2584_v59  ;;  %v2588_v46 = vsel %vm2586_vm11, %v2587_v24, %v2579_v39  ;;  %v9724_v39 = vpop.f32.mrf.mxu0 }
 0x371   : > { %v2884_v58 = vadd.f32 -0.16666654, %v2883_v49  ;;  %v3036_v32 = vadd.f32 0.008332121, %v3035_v10  ;;  %v4149_v34 = vmax.f32 %v4114_v8, 0.0  ;;  %v2589_v30 = vsel %vm2582_vm4, %v2585_v4, %v2588_v46 }
 0x372   : > { %v2714_v54 = vsel %vm2593_vm15, %v2713_v56, %v2712_v0  ;;  %v2870_v18 = vsel %vm2747_vm1, %v2869_v60, %v10817_v11  ;;  %v2590_v44 = vsel %vm2580_vm8, nan, %v2589_v30  ;;  %v2876_v41 = vmul.f32 %v2875_v17, %v10811_v7 }
 0x373   : > { %v9719_v53 = vsel %vm9705_vm0, %v10813_v12, %v2714_v54  ;;  %v3023_v26 = vsub.s32 4, %v10822_v28  ;;  %v4165_v42 = vmul.f32 %v10823_v31, %v2590_v44  ;;  %v2715_v24 = vsub.s32 4, %v9601_v29  ;;  %v9751_v54 = vpop.f32.mrf.mxu1 }
 0x374   : > { %v2719_v49 = vmul.f32 %v9719_v53, %v9719_v53  ;;  %v3028_v57 = vmul.f32 -0.001358992, %v9538_v27  ;;  %v9733_v10 = vsel %vm9692_vm7, %v10809_v23, %v3792_v19  ;;  %v3943_v8 = vcvt.s32.f32 %v3936_v40  ;;  %v10826_v19 = vld [vmem:[#allocation98_spill] sm:$0xff] }
 0x375   : > { %v2885_v0 = vmul.f32 %v2884_v58, %v10811_v7  ;;  %v3037_v11 = vmul.f32 %v3036_v32, %v9538_v27  ;;  %v9737_v60 = vadd.f32 %v4165_v42, %v4149_v34  ;;  %v3189_v17 = vmul.f32 -0.00019511016, %v9544_v45 }
 0x376   : > { %v2720_v59 = vmul.f32 -0.001358992, %v2719_v49  ;;  %v2727_v9 = vmul.f32 -0.00019511016, %v2719_v49  ;;  %v9740_v56 = vmul.f32 %v3943_v8, %v3941_v38  ;;  %v2872_v46 = vsel %vm8535_vm2, 0, %v2870_v18 }
 0x377   : > { %10824 = vst [vmem:[#allocation34_spill] sm:$0xff] %v9737_v60  ;;  %v2877_v30 = vadd.f32 -0.4999988, %v2876_v41  ;;  %vm10827_vm1 = vcmp.lt.s32.totalorder %v10826_v19, 0  ;;  %4241 = vmatmul.f32.gmra.mxu2 %v9737_v60  ;;  %v2716_v58 = vsel %vm2593_vm15, %v2715_v24, %v9601_v29  ;;  %v3029_v38 = vadd.f32 0.041655596, %v3028_v57 }
 0x378   : > { %v3024_v40 = vsel %vm10827_vm1, %v3023_v26, %v10822_v28  ;;  %v2721_v32 = vadd.f32 0.041655596, %v2720_v59  ;;  %v2728_v34 = vadd.f32 0.008332121, %v2727_v9  ;;  %v9755_v44 = vmul.f32 %v9676_v63, %v9676_v63 }
 0x379   : > { %v9759_v18 = vmul.f32 %v9733_v10, %v9733_v10  ;;  %v2886_v41 = vadd.f32 1.0, %v2885_v0  ;;  %v3038_v28 = vadd.f32 -0.16666654, %v3037_v11  ;;  %v9761_v42 = vand.u32 3, %v2872_v46 }
 0x37a   : > { %v2722_v26 = vmul.f32 %v2721_v32, %v2719_v49  ;;  %v2729_v31 = vmul.f32 %v2728_v34, %v2719_v49  ;;  %v3190_v29 = vadd.f32 0.008332121, %v3189_v17  ;;  %v2718_v57 = vsel %vm9705_vm0, 0, %v2716_v58  ;;  %v10829_v17 = vld [vmem:[#allocation142_spill] sm:$0xff] }
 0x37b   : > { %v2878_v8 = vmul.f32 %v2877_v30, %v10811_v7  ;;  %v3026_v9 = vsel %vm8613_vm3, 0, %v3024_v40  ;;  %v3030_v0 = vmul.f32 %v3029_v38, %v9538_v27  ;;  %v3182_v11 = vmul.f32 -0.001358992, %v9544_v45  ;;  %v9777_v30 = vpop.f32.mrf.mxu0  ;;  %v9788_v16 = vpop.f32.mrf.mxu1 }
 0x37c   : > { %v2723_v4 = vadd.f32 -0.4999988, %v2722_v26  ;;  %v2730_v60 = vadd.f32 -0.16666654, %v2729_v31  ;;  %v4052_v46 = vadd.f32 %v9391_v48, %v9685_v14  ;;  %v2887_v32 = vmul.f32 %v2886_v41, %v10829_v17 }
 0x37d   : > { %v3039_v34 = vmul.f32 %v3038_v28, %v9538_v27  ;;  %v3343_v20 = vmul.f32 -0.00019511016, %v9599_v36  ;;  %vm2891_vm2 = vcmp.eq.s32.totalorder %v9761_v42, 0  ;;  %v3191_v40 = vmul.f32 %v3190_v29, %v9544_v45 }
 0x37e   : > { %v2724_v58 = vmul.f32 %v2723_v4, %v2719_v49  ;;  %v2731_v7 = vmul.f32 %v2730_v60, %v2719_v49  ;;  %vm2734_vm3 = vweird.f32 %v10813_v12  ;;  %v2735_v38 = vand.u32 3, %v2718_v57  ;;  %v10830_v4 = vld [vmem:[#allocation125_spill] sm:$0xff] }
 0x37f   : > { %v2879_v26 = vadd.f32 1.0, %v2878_v8  ;;  %vm2894_vm15 = vcmp.eq.s32.totalorder %v9761_v42, 2  ;;  %v9782_v14 = vand.u32 3, %v3026_v9  ;;  %vm2890_vm8 = vcmp.lt.s32.totalorder %v9761_v42, 2 }
 0x380   : > { %v2725_v41 = vadd.f32 1.0, %v2724_v58  ;;  %v2732_v28 = vadd.f32 1.0, %v2731_v7  ;;  %v3031_v31 = vadd.f32 -0.4999988, %v3030_v0  ;;  %v3183_v49 = vadd.f32 0.041655596, %v3182_v11 }
 0x381   : > { %v2892_v60 = vxor.u32 2147483648, %v2887_v32  ;;  %v3040_v59 = vadd.f32 1.0, %v3039_v34  ;;  %v3177_v17 = vsub.s32 4, %v10830_v4  ;;  %v3344_v24 = vadd.f32 0.008332121, %v3343_v20 }
 0x382   : > { %v4117_v29 = vadd.f32 %v9699_v55, %v4052_v46  ;;  %v2733_v57 = vmul.f32 %v2732_v28, %v9719_v53  ;;  %v2741_v8 = vxor.u32 2147483648, %v2725_v41  ;;  %v3192_v9 = vadd.f32 -0.16666654, %v3191_v40 }
 0x383   : > { %v4055_v58 = vadd.f32 %v9391_v48, %v9724_v39  ;;  %vm2736_vm0 = vcmp.lt.s32.totalorder %v2735_v38, 2  ;;  %vm2737_vm4 = vcmp.eq.s32.totalorder %v2735_v38, 0  ;;  %vm2888_vm13 = vweird.f32 %v10821_v6 }
 0x384   : > { %v2895_v0 = vxor.u32 2147483648, %v2879_v26  ;;  %v2738_v11 = vxor.u32 2147483648, %v2733_v57  ;;  %v3032_v34 = vmul.f32 %v3031_v31, %v9538_v27  ;;  %v3184_v20 = vmul.f32 %v3183_v49, %v9544_v45  ;;  %v10831_v49 = vld [vmem:[#allocation121_spill] sm:$0xff] }
 0x385   : > { %v3336_v55 = vmul.f32 -0.001358992, %v9599_v36  ;;  %vm2740_vm11 = vcmp.eq.s32.totalorder %v2735_v38, 2  ;;  %v2893_v53 = vsel %vm2891_vm2, %v2879_v26, %v2892_v60  ;;  %v3041_v46 = vmul.f32 %v3040_v59, %v10785_v3 }
 0x386   : > { %v3345_v39 = vmul.f32 %v3344_v24, %v9599_v36  ;;  %v2739_v7 = vsel %vm2737_vm4, %v2725_v41, %v2738_v11  ;;  %v2742_v40 = vsel %vm2740_vm11, %v2741_v8, %v2733_v57  ;;  %v3193_v28 = vmul.f32 %v3192_v9, %v9544_v45  ;;  %v4060_v41 = vpop.f32.mrf.mxu0  ;;  %v10833_v57 = vld [vmem:[#allocation139_spill] sm:$0xff]  ;;  %v10834_v8 = vld [vmem:[#allocation97_spill] sm:$0xff] }
 0x387   : > { %v3497_v22 = vmul.f32 -0.00019511016, %v9670_v15  ;;  %v4150_v35 = vmax.f32 %v4117_v29, 0.0  ;;  %v2743_v27 = vsel %vm2736_vm0, %v2739_v7, %v2742_v40  ;;  %v2896_v31 = vsel %vm2894_vm15, %v2895_v0, %v2887_v32 }
 0x388   : > { %vm10832_vm1 = vcmp.lt.s32.totalorder %v10831_v49, 0  ;;  %v2744_v3 = vsel %vm2734_vm3, nan, %v2743_v27  ;;  %v3033_v24 = vadd.f32 1.0, %v3032_v34  ;;  %v3185_v60 = vadd.f32 -0.4999988, %v3184_v20  ;;  %v10836_v20 = vld [vmem:[#allocation124_spill] sm:$0xff] }
 0x389   : > { %v3178_v26 = vsel %vm10832_vm1, %v3177_v17, %v10830_v4  ;;  %v3337_v59 = vadd.f32 0.041655596, %v3336_v55  ;;  %vm3825_vm2 = vcmp.lt.s32.totalorder %v10833_v57, 0  ;;  %v4166_v29 = vmul.f32 %v10834_v8, %v2744_v3 }
 0x38a   : > { %v2897_v38 = vsel %vm2890_vm8, %v2893_v53, %v2896_v31  ;;  %v4120_v32 = vadd.f32 %v9751_v54, %v4055_v58  ;;  %v3346_v9 = vadd.f32 -0.16666654, %v3345_v39  ;;  %vm3044_vm15 = vcmp.lt.s32.totalorder %v9782_v14, 2  ;;  %v4125_v58 = vpop.f32.mrf.mxu1  ;;  %v10837_v31 = vld [vmem:[#allocation122_spill] sm:$0xff] }
 0x38b   : > { %v3046_v4 = vxor.u32 2147483648, %v3041_v46  ;;  %v3194_v17 = vadd.f32 1.0, %v3193_v28  ;;  %v3498_v12 = vadd.f32 0.008332121, %v3497_v22  ;;  %v9816_v0 = vadd.f32 %v4166_v29, %v4150_v35 }
 0x38c   : > { %v3180_v34 = vsel %vm8621_vm9, 0, %v3178_v26  ;;  %v3331_v55 = vsub.s32 4, %v10836_v20  ;;  %v3490_v7 = vmul.f32 -0.001358992, %v9670_v15  ;;  %v2898_v42 = vsel %vm2888_vm13, nan, %v2897_v38 }
 0x38d   : > { %v3049_v53 = vxor.u32 2147483648, %v3033_v24  ;;  %v3186_v54 = vmul.f32 %v3185_v60, %v9544_v45  ;;  %v3338_v39 = vmul.f32 %v3337_v59, %v9599_v36  ;;  %4244 = vmatmul.f32.gmra.mxu2 %v9816_v0  ;;  %v4151_v35 = vmax.f32 %v4120_v32, 0.0 }
 0x38e   : > { %v4058_v22 = vadd.f32 %v9391_v48, %v9777_v30  ;;  %vm3045_vm9 = vcmp.eq.s32.totalorder %v9782_v14, 0  ;;  %v3347_v40 = vmul.f32 %v3346_v9, %v9599_v36  ;;  %v3195_v6 = vmul.f32 %v3194_v17, %v10786_v51  ;;  %v4063_v11 = vpop.f32.mrf.mxu0 }
 0x38f   : > { %v3047_v28 = vsel %vm3045_vm9, %v3033_v24, %v3046_v4  ;;  %v3499_v27 = vmul.f32 %v3498_v12, %v9670_v15  ;;  %v3651_v45 = vmul.f32 -0.00019511016, %v9755_v44  ;;  %v4167_v26 = vmul.f32 %v10837_v31, %v2898_v42 }
 0x390   : > { %vm3048_vm3 = vcmp.eq.s32.totalorder %v9782_v14, 2  ;;  %v3197_v3 = vand.u32 3, %v3180_v34  ;;  %v3491_v60 = vadd.f32 0.041655596, %v3490_v7  ;;  %v3187_v8 = vadd.f32 1.0, %v3186_v54  ;;  %v10843_v14 = vld [vmem:[#allocation138_spill] sm:$0xff] }
 0x391   : > { %v3050_v59 = vsel %vm3048_vm3, %v3049_v53, %v3041_v46  ;;  %vm10838_vm8 = vcmp.lt.s32.totalorder %v10776_v37, 0  ;;  %v3339_v29 = vadd.f32 -0.4999988, %v3338_v39  ;;  %v10839_v24 = vand.u32 2147483647, %v10833_v57 }
 0x392   : > { %v3332_v30 = vsel %vm10838_vm8, %v3331_v55, %v10836_v20  ;;  %v9845_v38 = vadd.f32 %v4167_v26, %v4151_v35  ;;  %v3051_v32 = vsel %vm3044_vm15, %v3047_v28, %v3050_v59  ;;  %v4123_v9 = vadd.f32 %v9788_v16, %v4058_v22  ;;  %v4128_v22 = vpop.f32.mrf.mxu1 }
 0x393   : > { %vm9841_vm0 = vcmp.le.f32.partialorder %v10839_v24, 0.7853982  ;;  %v3348_v46 = vadd.f32 1.0, %v3347_v40  ;;  %v10842_v4 = vxor.u32 2147483648, %v9740_v56  ;;  %v3200_v12 = vxor.u32 2147483648, %v3195_v6 }
 0x394   : > { %v3500_v34 = vadd.f32 -0.16666654, %v3499_v27  ;;  %v3652_v20 = vadd.f32 0.008332121, %v3651_v45  ;;  %vm3042_vm4 = vweird.f32 %v10826_v19  ;;  %v3334_v55 = vsel %vm9493_vm6, 0, %v3332_v30  ;;  %v10844_v27 = vld [vmem:[#allocation96_spill] sm:$0xff] }
 0x395   : > { %v3946_v17 = vsel %vm3825_vm2, %v10842_v4, %v9740_v56  ;;  %v3485_v7 = vsub.s32 4, %v10843_v14  ;;  %v3492_v16 = vmul.f32 %v3491_v60, %v9670_v15  ;;  %v3052_v42 = vsel %vm3042_vm4, nan, %v3051_v32  ;;  %4247 = vmatmul.f32.gmra.mxu2 %v9845_v38 }
 0x396   : > { %v3203_v53 = vxor.u32 2147483648, %v3187_v8  ;;  %v3340_v54 = vmul.f32 %v3339_v29, %v9599_v36  ;;  %v3644_v39 = vmul.f32 -0.001358992, %v9755_v44  ;;  %v4152_v56 = vmax.f32 %v4123_v9, 0.0 }
 0x397   : > { %v4061_v35 = vadd.f32 %v9391_v48, %v4060_v41  ;;  %vm3199_vm13 = vcmp.eq.s32.totalorder %v3197_v3, 0  ;;  %v3349_v19 = vmul.f32 %v3348_v46, %v9552_v25  ;;  %vm3198_vm11 = vcmp.lt.s32.totalorder %v3197_v3, 2 }
 0x398   : > { %v3201_v1 = vsel %vm3199_vm13, %v3187_v8, %v3200_v12  ;;  %v3501_v40 = vmul.f32 %v3500_v34, %v9670_v15  ;;  %v3653_v28 = vmul.f32 %v3652_v20, %v9755_v44  ;;  %v4168_v45 = vmul.f32 %v10844_v27, %v3052_v42  ;;  %v4066_v12 = vpop.f32.mrf.mxu0 }
 0x399   : > { %vm3202_vm6 = vcmp.eq.s32.totalorder %v3197_v3, 2  ;;  %v3351_v36 = vand.u32 3, %v3334_v55  ;;  %v3493_v31 = vadd.f32 -0.4999988, %v3492_v16  ;;  %v3341_v60 = vadd.f32 1.0, %v3340_v54 }
 0x39a   : > { %v3204_v26 = vsel %vm3202_vm6, %v3203_v53, %v3195_v6  ;;  %v3486_v41 = vsel %vm3363_vm5, %v3485_v7, %v10843_v14  ;;  %v3645_v59 = vadd.f32 0.041655596, %v3644_v39  ;;  %v9871_v25 = vadd.f32 %v4168_v45, %v4152_v56  ;;  %v10846_v7 = vld [vmem:[#allocation145_spill] sm:$0xff]  ;;  %v4131_v39 = vpop.f32.mrf.mxu1 }
 0x39b   : > { %v3205_v8 = vsel %vm3198_vm11, %v3201_v1, %v3204_v26  ;;  %v4126_v30 = vadd.f32 %v4125_v58, %v4061_v35  ;;  %v3354_v29 = vxor.u32 2147483648, %v3349_v19  ;;  %v9876_v24 = vsel %vm9841_vm0, %v10833_v57, %v3946_v17  ;;  %v9906_v26 = vld [vmem:[%s10163_s5] ss:$0 sm:$0xff] }
 0x39c   : > { %vm3196_vm1 = vweird.f32 %v10831_v49  ;;  %v3502_v3 = vadd.f32 1.0, %v3501_v40  ;;  %v3654_v6 = vadd.f32 -0.16666654, %v3653_v28  ;;  %v4064_v32 = vadd.f32 %v9391_v48, %v4063_v11  ;;  %v10845_v11 = vld [vmem:[#allocation141_spill] sm:$0xff] }
 0x39d   : > { %vm3352_vm15 = vcmp.lt.s32.totalorder %v3351_v36, 2  ;;  %vm3353_vm9 = vcmp.eq.s32.totalorder %v3351_v36, 0  ;;  %v3494_v9 = vmul.f32 %v3493_v31, %v9670_v15  ;;  %v3206_v46 = vsel %vm3196_vm1, nan, %v3205_v8  ;;  %4250 = vmatmul.f32.gmra.mxu2 %v9871_v25 }
 0x39e   : > { %v3357_v4 = vxor.u32 2147483648, %v3341_v60  ;;  %v3488_v58 = vsel %vm9567_vm10, 0, %v3486_v41  ;;  %v3646_v34 = vmul.f32 %v3645_v59, %v9755_v44  ;;  %v4153_v17 = vmax.f32 %v4126_v30, 0.0 }
 0x39f   : > { %v3355_v49 = vsel %vm3353_vm9, %v3341_v60, %v3354_v29  ;;  %vm3356_vm5 = vcmp.eq.s32.totalorder %v3351_v36, 2  ;;  %v3798_v20 = vmul.f32 -0.001358992, %v9759_v18  ;;  %v3503_v48 = vmul.f32 %v3502_v3, %v9609_v62 }
 0x3a0   : > { %v3639_v55 = vsub.s32 4, %v10845_v11  ;;  %v3655_v15 = vmul.f32 %v3654_v6, %v9755_v44  ;;  %v3805_v14 = vmul.f32 -0.00019511016, %v9759_v18  ;;  %v4169_v52 = vmul.f32 %v10846_v7, %v3206_v46 }
 0x3a1   : > { %v4129_v16 = vadd.f32 %v4128_v22, %v4064_v32  ;;  %v3495_v42 = vadd.f32 1.0, %v3494_v9  ;;  %v3505_v53 = vand.u32 3, %v3488_v58  ;;  %v3358_v54 = vsel %vm3356_vm5, %v3357_v4, %v3349_v19  ;;  %v4069_v32 = vpop.f32.mrf.mxu0  ;;  %v10848_v4 = vld [vmem:[#allocation146_spill] sm:$0xff] }
 0x3a2   : > { %v3647_v56 = vadd.f32 -0.4999988, %v3646_v34  ;;  %v3799_v35 = vadd.f32 0.041655596, %v3798_v20  ;;  %v3806_v1 = vadd.f32 0.008332121, %v3805_v14  ;;  %v9893_v40 = vmul.f32 %v9876_v24, %v9876_v24  ;;  %v4134_v7 = vpop.f32.mrf.mxu1 }
 0x3a3   : > { %v9895_v62 = vadd.f32 %v4169_v52, %v4153_v17  ;;  %vm3350_vm10 = vweird.f32 %v10776_v37  ;;  %v3359_v28 = vsel %vm3352_vm15, %v3355_v49, %v3358_v54  ;;  %v3508_v27 = vxor.u32 2147483648, %v3503_v48 }
 0x3a4   : > { %vm10847_vm3 = vcmp.lt.s32.totalorder %v10798_v2, 0  ;;  %v3656_v19 = vadd.f32 1.0, %v3655_v15  ;;  %v3807_v45 = vmul.f32 %v3806_v1, %v9759_v18  ;;  %v4154_v31 = vmax.f32 %v4129_v16, 0.0 }
 0x3a5   : > { %v3640_v22 = vsel %vm10847_vm3, %v3639_v55, %v10845_v11  ;;  %v4067_v60 = vadd.f32 %v9906_v26, %v4066_v12  ;;  %vm3506_vm8 = vcmp.lt.s32.totalorder %v3505_v53, 2  ;;  %v3511_v37 = vxor.u32 2147483648, %v3495_v42  ;;  %4253 = vmatmul.f32.gmra.mxu2 %v9895_v62 }
 0x3a6   : > { %v3360_v36 = vsel %vm3350_vm10, nan, %v3359_v28  ;;  %v3648_v41 = vmul.f32 %v3647_v56, %v9755_v44  ;;  %v3800_v59 = vmul.f32 %v3799_v35, %v9759_v18  ;;  %v3808_v8 = vadd.f32 -0.16666654, %v3807_v45  ;;  %v4224_v28 = vpop.f32.mrf.mxu2 }
 0x3a7   : > { %vm3507_vm4 = vcmp.eq.s32.totalorder %v3505_v53, 0  ;;  %v3642_v30 = vsel %vm9647_vm12, 0, %v3640_v22  ;;  %v3952_v29 = vmul.f32 -0.001358992, %v9893_v40  ;;  %v3959_v3 = vmul.f32 -0.00019511016, %v9893_v40 }
 0x3a8   : > { %v3509_v6 = vsel %vm3507_vm4, %v3495_v42, %v3508_v27  ;;  %v3657_v9 = vmul.f32 %v3656_v19, %v9676_v63  ;;  %v3793_v46 = vsub.s32 4, %v8990_v13  ;;  %v3809_v44 = vmul.f32 %v3808_v8, %v9759_v18  ;;  %v10849_v42 = vld [vmem:[#allocation129_spill] sm:$0xff] }
 0x3a9   : > { %v4170_v12 = vmul.f32 %v10848_v4, %v3360_v36  ;;  %vm3510_vm13 = vcmp.eq.s32.totalorder %v3505_v53, 2  ;;  %v4132_v58 = vadd.f32 %v4131_v39, %v4067_v60  ;;  %v3960_v34 = vadd.f32 0.008332121, %v3959_v3 }
 0x3aa   : > { %v3512_v17 = vsel %vm3510_vm13, %v3511_v37, %v3503_v48  ;;  %v3649_v61 = vadd.f32 1.0, %v3648_v41  ;;  %v3801_v49 = vadd.f32 -0.4999988, %v3800_v59  ;;  %v3953_v20 = vadd.f32 0.041655596, %v3952_v29  ;;  %v4072_v37 = vpop.f32.mrf.mxu0 }
 0x3ab   : > { %v9920_v11 = vadd.f32 %v4170_v12, %v4154_v31  ;;  %v3513_v55 = vsel %vm3506_vm8, %v3509_v6, %v3512_v17  ;;  %v3659_v15 = vand.u32 3, %v3642_v30  ;;  %v3961_v63 = vmul.f32 %v3960_v34, %v9893_v40  ;;  %v10851_v6 = vld [vmem:[#allocation123_spill] sm:$0xff]  ;;  %v4137_v34 = vpop.f32.mrf.mxu1 }
 0x3ac   : > { %v3662_v14 = vxor.u32 2147483648, %v3657_v9  ;;  %v3794_v52 = vsel %vm3671_vm14, %v3793_v46, %v8990_v13  ;;  %v3810_v16 = vadd.f32 1.0, %v3809_v44  ;;  %5037 = vpow2.f32 %v10849_v42  ;;  %v10852_v46 = vld [vmem:[#allocation24_spill] sm:$0xff]  ;;  %v10853_v44 = vld [vmem:[#allocation62_spill] sm:$0xff] }
 0x3ad   : > { %vm3504_vm12 = vweird.f32 %v10780_v33  ;;  %v3962_v48 = vadd.f32 -0.16666654, %v3961_v63  ;;  %v3665_v39 = vxor.u32 2147483648, %v3649_v61  ;;  %v3802_v53 = vmul.f32 %v3801_v49, %v9759_v18  ;;  %4256 = vmatmul.f32.gmra.mxu2 %v9920_v11  ;;  %v10850_v18 = vld [vmem:[#allocation149_spill] sm:$0xff]  ;;  %v10854_v63 = vld [vmem:[#allocation20_spill] sm:$0xff] }
 0x3ae   : > { %v3514_v54 = vsel %vm3504_vm12, nan, %v3513_v55  ;;  %v3954_v56 = vmul.f32 %v3953_v20, %v9893_v40  ;;  %v4155_v35 = vmax.f32 %v4132_v58, 0.0  ;;  %v4070_v1 = vadd.f32 %v9906_v26, %v4069_v32  ;;  %v4227_v20 = vpop.f32.mrf.mxu2 }
 0x3af   : > { %vm3661_vm11 = vcmp.eq.s32.totalorder %v3659_v15, 0  ;;  %v3796_v13 = vsel %vm9692_vm7, 0, %v3794_v52  ;;  %v3811_v33 = vmul.f32 %v3810_v16, %v9733_v10  ;;  %v3963_v22 = vmul.f32 %v3962_v48, %v9893_v40 }
 0x3b0   : > { %v3663_v27 = vsel %vm3661_vm11, %v3649_v61, %v3662_v14  ;;  %v9938_v19 = vsub.f32 %v8926_v5, %v4224_v28  ;;  %v4171_v45 = vmul.f32 %v10850_v18, %v3514_v54  ;;  %vm3660_vm14 = vcmp.lt.s32.totalorder %v3659_v15, 2 }
 0x3b1   : > { %vm3664_vm6 = vcmp.eq.s32.totalorder %v3659_v15, 2  ;;  %v3947_v31 = vsub.s32 4, %v9245_v50  ;;  %v3803_v36 = vadd.f32 1.0, %v3802_v53  ;;  %v3955_v43 = vadd.f32 -0.4999988, %v3954_v56 }
 0x3b2   : > { %v3666_v60 = vsel %vm3664_vm6, %v3665_v39, %v3657_v9  ;;  %v4288_v41 = vmul.f32 %v9938_v19, %v9938_v19  ;;  %v5038_v59 = vpop.eup %5037  ;;  %v9944_v10 = vadd.f32 %v4171_v45, %v4155_v35  ;;  %v4135_v30 = vadd.f32 %v4134_v7, %v4070_v1 }
 0x3b3   : > { %v3667_v8 = vsel %vm3660_vm14, %v3663_v27, %v3666_v60  ;;  %v3813_v5 = vand.u32 3, %v3796_v13  ;;  %v3816_v29 = vxor.u32 2147483648, %v3811_v33  ;;  %v3964_v3 = vadd.f32 1.0, %v3963_v22 }
 0x3b4   : > { %4320 = vmatmul.f32.vlgmr.msrb.gmra.mxu3 %v4288_v41  ;;  %v1509_v32 = vmul.f32 1.442695, %v10851_v6  ;;  %v1284_v9 = vadd.f32 %v10853_v44, %v10852_v46  ;;  %vm3658_vm7 = vweird.f32 %v10798_v2  ;;  %v3948_v4 = vsel %vm3825_vm2, %v3947_v31, %v9245_v50  ;;  %v10855_v41 = vld [vmem:[#allocation49_spill] sm:$0xff]  ;;  %v10857_v46 = vld [vmem:[#allocation27_spill] sm:$0xff] }
 0x3b5   : > { %v3668_v12 = vsel %vm3658_vm7, nan, %v3667_v8  ;;  %v3819_v58 = vxor.u32 2147483648, %v3803_v36  ;;  %v3956_v17 = vmul.f32 %v3955_v43, %v9893_v40  ;;  %4259 = vmatmul.f32.gmra.mxu2 %v9944_v10  ;;  %v4156_v61 = vmax.f32 %v4135_v30, 0.0 }
 0x3b6   : > { %v4073_v49 = vadd.f32 %v9906_v26, %v4072_v37  ;;  %vm3815_vm1 = vcmp.eq.s32.totalorder %v3813_v5, 0  ;;  %v3950_v2 = vsel %vm9841_vm0, 0, %v3948_v4  ;;  %v3965_v15 = vmul.f32 %v3964_v3, %v9876_v24  ;;  %v4075_v24 = vpop.f32.mrf.mxu0  ;;  %v4230_v28 = vpop.f32.mrf.mxu2 }
 0x3b7   : > { %v3817_v55 = vsel %vm3815_vm1, %v3803_v36, %v3816_v29  ;;  %v9960_v50 = vsub.f32 %v9249_v47, %v4227_v20  ;;  %5039 = vpow2.f32 %v1509_v32  ;;  %v1349_v14 = vadd.f32 %v10854_v63, %v1284_v9 }
 0x3b8   : > { %v4172_v40 = vmul.f32 %v5038_v59, %v3668_v12  ;;  %vm3818_vm2 = vcmp.eq.s32.totalorder %v3813_v5, 2  ;;  %vm3814_vm15 = vcmp.lt.s32.totalorder %v3813_v5, 2  ;;  %v3957_v52 = vadd.f32 1.0, %v3956_v17  ;;  %v10858_v12 = vld [vmem:[#allocation34_spill] sm:$0xff] }
 0x3b9   : > { %v3820_v7 = vsel %vm3818_vm2, %v3819_v58, %v3811_v33  ;;  %v4289_v16 = vmul.f32 %v9960_v50, %v9960_v50  ;;  %v4138_v48 = vadd.f32 %v4137_v34, %v4073_v49  ;;  %v3967_v54 = vand.u32 3, %v3950_v2  ;;  %v4140_v33 = vpop.f32.mrf.mxu1 }
 0x3ba   : > { %v9965_v42 = vadd.f32 %v4172_v40, %v4156_v61  ;;  %v3821_v51 = vsel %vm3814_vm15, %v3817_v55, %v3820_v7  ;;  %v3970_v39 = vxor.u32 2147483648, %v3965_v15  ;;  %vm3812_vm0 = vweird.f32 %v10809_v23 }
 0x3bb   : > { %v1511_v47 = vmul.f32 1.442695, %v1349_v14  ;;  %v3822_v53 = vsel %vm3812_vm0, nan, %v3821_v51  ;;  %v3973_v56 = vxor.u32 2147483648, %v3957_v52  ;;  %v4157_v1 = vmax.f32 %v4138_v48, 0.0 }
 0x3bc   : > { %4323 = vmatmul.f32.gmra.mxu3 %v4289_v16  ;;  %v4076_v13 = vadd.f32 %v9906_v26, %v4075_v24  ;;  %vm3969_vm9 = vcmp.eq.s32.totalorder %v3967_v54, 0  ;;  %v9971_v22 = vsub.f32 %v9321_v21, %v4230_v28  ;;  %vm3972_vm5 = vcmp.eq.s32.totalorder %v3967_v54, 2 }
 0x3bd   : > { %v5040_v35 = vpop.eup %5039  ;;  %4262 = vmatmul.f32.gmra.mxu2 %v9965_v42  ;;  %v3971_v27 = vsel %vm3969_vm9, %v3957_v52, %v3970_v39  ;;  %5041 = vpow2.f32 %v1511_v47  ;;  %vm3968_vm10 = vcmp.lt.s32.totalorder %v3967_v54, 2  ;;  %v3974_v23 = vsel %vm3972_vm5, %v3973_v56, %v3965_v15 }
 0x3be   : > { %v4173_v18 = vmul.f32 %v5040_v35, %v3822_v53  ;;  %v4290_v45 = vmul.f32 %v9971_v22, %v9971_v22  ;;  %v3975_v60 = vsel %vm3968_vm10, %v3971_v27, %v3974_v23  ;;  %v4141_v37 = vadd.f32 %v4140_v33, %v4076_v13  ;;  %v4233_v36 = vpop.f32.mrf.mxu2 }
 0x3bf   : > { %vm3966_vm3 = vweird.f32 %v10833_v57  ;;  %v9980_v59 = vsub.f32 %v10855_v41, %v4233_v36  ;;  %v10856_v57 = vld [vmem:[#allocation32_spill] sm:$0xff] }
 0x3c0   : > { %v9975_v31 = vadd.f32 %v4173_v18, %v4157_v1  ;;  %v3976_v26 = vsel %vm3966_vm3, nan, %v3975_v60  ;;  %v4158_v21 = vmax.f32 %v4141_v37, 0.0  ;;  %v10049_v36 = vld [vmem:[%s10166_s8] ss:$0 sm:$0xff] }
 0x3c1   : > { %v4291_v30 = vmul.f32 %v9980_v59, %v9980_v59 }
 0x3c3   : > { %v5042_v43 = vpop.eup %5041 }
 0x3c4   : > { %4326 = vmatmul.f32.gmra.mxu3 %v4290_v45  ;;  %v4174_v8 = vmul.f32 %v5042_v43, %v3976_v26 }
 0x3c5   : > { %4265 = vmatmul.f32.gmra.mxu2 %v9975_v31 }
 0x3c6   : > { %v9984_v5 = vadd.f32 %v4174_v8, %v4158_v21 }
 0x3c8   : > { %v4236_v29 = vpop.f32.mrf.mxu2 }
 0x3c9   : > { %v9988_v3 = vsub.f32 %v10856_v57, %v4236_v29 }
 0x3cb   : > { %v4292_v6 = vmul.f32 %v9988_v3, %v9988_v3 }
 0x3cc   : > { %4329 = vmatmul.f32.gmra.mxu3 %v4291_v30 }
 0x3cd   : > { %4268 = vmatmul.f32.gmra.mxu2 %v9984_v5 }
 0x3d4   : > { %4332 = vmatmul.f32.gmra.mxu3 %v4292_v6 }
 0x3ea   : > { %v4239_v32 = vpop.f32.mrf.mxu2 }
 0x3eb   : > { %v9993_v44 = vsub.f32 %v10857_v46, %v4239_v32 }
 0x3ed   : > { %v4293_v9 = vmul.f32 %v9993_v44, %v9993_v44 }
 0x3ef   : > { %4335 = vmatmul.f32.gmra.mxu3 %v4293_v9 }
 0x3fa   : > { %v4242_v4 = vpop.f32.mrf.mxu2 }
 0x3fb   : > { %v9998_v58 = vsub.f32 %v10858_v12, %v4242_v4 }
 0x3fd   : > { %v4294_v34 = vmul.f32 %v9998_v58, %v9998_v58 }
 0x3ff   : > { %4338 = vmatmul.f32.gmra.mxu3 %v4294_v34 }
 0x410   : > { %v4245_v17 = vpop.f32.mrf.mxu2 }
 0x411   : > { %v10003_v61 = vsub.f32 %v9816_v0, %v4245_v17 }
 0x413   : > { %v4295_v49 = vmul.f32 %v10003_v61, %v10003_v61 }
 0x415   : > { %4341 = vmatmul.f32.gmra.mxu3 %v4295_v49 }
 0x418   : > { %v4248_v20 = vpop.f32.mrf.mxu2 }
 0x419   : > { %v10008_v55 = vsub.f32 %v9845_v38, %v4248_v20 }
 0x41b   : > { %v4296_v2 = vmul.f32 %v10008_v55, %v10008_v55 }
 0x41d   : > { %4344 = vmatmul.f32.gmra.mxu3 %v4296_v2 }
 0x420   : > { %v4251_v15 = vpop.f32.mrf.mxu2 }
 0x421   : > { %v10013_v63 = vsub.f32 %v9871_v25, %v4251_v15 }
 0x423   : > { %v4297_v0 = vmul.f32 %v10013_v63, %v10013_v63 }
 0x425   : > { %4347 = vmatmul.f32.gmra.mxu3 %v4297_v0 }
 0x428   : > { %v4254_v14 = vpop.f32.mrf.mxu2 }
 0x429   : > { %v10018_v40 = vsub.f32 %v9895_v62, %v4254_v14 }
 0x42b   : > { %v4298_v38 = vmul.f32 %v10018_v40, %v10018_v40 }
 0x42d   : > { %4350 = vmatmul.f32.gmra.mxu3 %v4298_v38 }
 0x430   : > { %v4257_v7 = vpop.f32.mrf.mxu2 }
 0x431   : > { %v10023_v52 = vsub.f32 %v9920_v11, %v4257_v7 }
 0x433   : > { %v4299_v25 = vmul.f32 %v10023_v52, %v10023_v52 }
 0x435   : > { %4353 = vmatmul.f32.gmra.mxu3 %v4299_v25 }
 0x437   : > { %v4321_v16 = vpop.f32.mrf.mxu3 }
 0x438   : > { %v4322_v51 = vadd.f32 1e-05, %v4321_v16  ;;  %v4260_v48 = vpop.f32.mrf.mxu2 }
 0x439   : > { %v10028_v54 = vsub.f32 %v9944_v10, %v4260_v48 }
 0x43a   : > { %5043 = vrsqrt.f32 %v4322_v51  ;;  %vm4375_vm4 = vweird.f32 %v4322_v51 }
 0x43b   : > { %v4300_v62 = vmul.f32 %v10028_v54, %v10028_v54 }
 0x43d   : > { %4356 = vmatmul.f32.gmra.mxu3 %v4300_v62 }
 0x43f   : > { %v4324_v24 = vpop.f32.mrf.mxu3 }
 0x440   : > { %v5044_v39 = vpop.eup %5043  ;;  %v4325_v47 = vadd.f32 1e-05, %v4324_v24  ;;  %v4263_v53 = vpop.f32.mrf.mxu2 }
 0x441   : > { %v4370_v11 = vmul.f32 %v5044_v39, %v4322_v51  ;;  %v10033_v56 = vsub.f32 %v9965_v42, %v4263_v53  ;;  %vm4376_vm8 = vweird.f32 %v5044_v39  ;;  %v10040_v42 = vld [vmem:[%s10165_s7] ss:$0 sm:$0xff] }
 0x442   : > { %5045 = vrsqrt.f32 %v4325_v47  ;;  %vm4377_vm13 = vmor %vm4375_vm4, %vm4376_vm8  ;;  %vm4385_vm11 = vweird.f32 %v4325_v47 }
 0x443   : > { %v4371_v35 = vmul.f32 %v5044_v39, %v4370_v11  ;;  %v4301_v1 = vmul.f32 %v10033_v56, %v10033_v56 }
 0x445   : > { %v4372_v13 = vmul.f32 0.5, %v4371_v35  ;;  %4359 = vmatmul.f32.gmra.mxu3 %v4301_v1 }
 0x447   : > { %v4373_v10 = vsub.f32 1.5, %v4372_v13  ;;  %v4327_v28 = vpop.f32.mrf.mxu3 }
 0x448   : > { %v5046_v27 = vpop.eup %5045  ;;  %v4328_v33 = vadd.f32 1e-05, %v4327_v28  ;;  %v4266_v45 = vpop.f32.mrf.mxu2 }
 0x449   : > { %v4374_v18 = vmul.f32 %v5044_v39, %v4373_v10  ;;  %v4380_v23 = vmul.f32 %v5046_v27, %v4325_v47  ;;  %v10043_v60 = vsub.f32 %v9975_v31, %v4266_v45  ;;  %vm4386_vm12 = vweird.f32 %v5046_v27 }
 0x44a   : > { %5047 = vrsqrt.f32 %v4328_v33  ;;  %vm4387_vm14 = vmor %vm4385_vm11, %vm4386_vm12  ;;  %vm4395_vm7 = vweird.f32 %v4328_v33 }
 0x44b   : > { %v4378_v37 = vsel %vm4377_vm13, %v5044_v39, %v4374_v18  ;;  %v4381_v26 = vmul.f32 %v5046_v27, %v4380_v23  ;;  %v4302_v43 = vmul.f32 %v10043_v60, %v10043_v60 }
 0x44c   : > { %v4529_v21 = vmul.f32 %v4378_v37, %v9938_v19 }
 0x44d   : > { %v4382_v41 = vmul.f32 0.5, %v4381_v26  ;;  %4362 = vmatmul.f32.gmra.mxu3 %v4302_v43 }
 0x44e   : > { %v4549_v8 = vmul.f32 %v10040_v42, %v4529_v21 }
 0x44f   : > { %v4383_v30 = vsub.f32 1.5, %v4382_v41  ;;  %v4330_v31 = vpop.f32.mrf.mxu3 }
 0x450   : > { %v5048_v29 = vpop.eup %5047  ;;  %v4569_v57 = vadd.f32 %v10049_v36, %v4549_v8  ;;  %v4331_v19 = vadd.f32 1e-05, %v4330_v31  ;;  %v4269_v46 = vpop.f32.mrf.mxu2 }
 0x451   : > { %v4384_v6 = vmul.f32 %v5046_v27, %v4383_v30  ;;  %v4390_v32 = vmul.f32 %v5048_v29, %v4328_v33  ;;  %v10060_v9 = vsub.f32 %v9984_v5, %v4269_v46  ;;  %vm4396_vm6 = vweird.f32 %v5048_v29 }
 0x452   : > { %4585 = vst [vmem:[%s10056_s26] sm:$0xff] %v4569_v57  ;;  %5049 = vrsqrt.f32 %v4331_v19  ;;  %vm4397_vm1 = vmor %vm4395_vm7, %vm4396_vm6  ;;  %vm4405_vm15 = vweird.f32 %v4331_v19 }
 0x453   : > { %v4388_v4 = vsel %vm4387_vm14, %v5046_v27, %v4384_v6  ;;  %v4391_v12 = vmul.f32 %v5048_v29, %v4390_v32  ;;  %v4303_v17 = vmul.f32 %v10060_v9, %v10060_v9 }
 0x454   : > { %v4530_v34 = vmul.f32 %v4388_v4, %v9960_v50 }
 0x455   : > { %v4392_v49 = vmul.f32 0.5, %v4391_v12  ;;  %4365 = vmatmul.f32.gmra.mxu3 %v4303_v17 }
 0x456   : > { %v4550_v20 = vmul.f32 %v10040_v42, %v4530_v34 }
 0x457   : > { %v4393_v2 = vsub.f32 1.5, %v4392_v49  ;;  %v4333_v15 = vpop.f32.mrf.mxu3 }
 0x458   : > { %v5050_v0 = vpop.eup %5049  ;;  %v4570_v14 = vadd.f32 %v10049_v36, %v4550_v20  ;;  %v4334_v5 = vadd.f32 1e-05, %v4333_v15 }
 0x459   : > { %v4394_v38 = vmul.f32 %v5048_v29, %v4393_v2  ;;  %v4400_v7 = vmul.f32 %v5050_v0, %v4331_v19  ;;  %vm4406_vm2 = vweird.f32 %v5050_v0 }
 0x45a   : > { %4586 = vst [vmem:[%s10056_s26 + $0x8] sm:$0xff] %v4570_v14  ;;  %5051 = vrsqrt.f32 %v4334_v5  ;;  %vm4407_vm0 = vmor %vm4405_vm15, %vm4406_vm2  ;;  %vm4415_vm5 = vweird.f32 %v4334_v5 }
 0x45b   : > { %v4398_v50 = vsel %vm4397_vm1, %v5048_v29, %v4394_v38  ;;  %v4401_v25 = vmul.f32 %v5050_v0, %v4400_v7 }
 0x45c   : > { %v4531_v16 = vmul.f32 %v4398_v50, %v9971_v22 }
 0x45d   : > { %v4402_v51 = vmul.f32 0.5, %v4401_v25 }
 0x45e   : > { %v4551_v48 = vmul.f32 %v10040_v42, %v4531_v16 }
 0x45f   : > { %v4403_v62 = vsub.f32 1.5, %v4402_v51 }
 0x460   : > { %v5052_v24 = vpop.eup %5051  ;;  %v4571_v39 = vadd.f32 %v10049_v36, %v4551_v48 }
 0x461   : > { %v4404_v47 = vmul.f32 %v5050_v0, %v4403_v62  ;;  %v4410_v11 = vmul.f32 %v5052_v24, %v4334_v5  ;;  %vm4416_vm9 = vweird.f32 %v5052_v24 }
 0x462   : > { %4587 = vst [vmem:[%s10056_s26 + $0x10] sm:$0xff] %v4571_v39  ;;  %vm4417_vm10 = vmor %vm4415_vm5, %vm4416_vm9 }
 0x463   : > { %v4408_v53 = vsel %vm4407_vm0, %v5050_v0, %v4404_v47  ;;  %v4411_v35 = vmul.f32 %v5052_v24, %v4410_v11 }
 0x464   : > { %v4532_v1 = vmul.f32 %v4408_v53, %v9980_v59 }
 0x465   : > { %v4412_v22 = vmul.f32 0.5, %v4411_v35 }
 0x466   : > { %v4552_v13 = vmul.f32 %v10040_v42, %v4532_v1 }
 0x467   : > { %v4413_v10 = vsub.f32 1.5, %v4412_v22 }
 0x468   : > { %v4572_v28 = vadd.f32 %v10049_v36, %v4552_v13 }
 0x469   : > { %v4414_v27 = vmul.f32 %v5052_v24, %v4413_v10 }
 0x46a   : > { %4588 = vst [vmem:[%s10056_s26 + $0x18] sm:$0xff] %v4572_v28 }
 0x46b   : > { %v4418_v33 = vsel %vm4417_vm10, %v5052_v24, %v4414_v27 }
 0x46c   : > { %v4533_v18 = vmul.f32 %v4418_v33, %v9988_v3 }
 0x46e   : > { %v4553_v23 = vmul.f32 %v10040_v42, %v4533_v18 }
 0x470   : > { %v4573_v45 = vadd.f32 %v10049_v36, %v4553_v23 }
 0x472   : > { %4589 = vst [vmem:[%s10056_s26 + $0x20] sm:$0xff] %v4573_v45  ;;  %v4336_v59 = vpop.f32.mrf.mxu3 }
 0x473   : > { %v4337_v37 = vadd.f32 1e-05, %v4336_v59 }
 0x475   : > { %5053 = vrsqrt.f32 %v4337_v37  ;;  %vm4425_vm8 = vweird.f32 %v4337_v37 }
 0x47b   : > { %v5054_v26 = vpop.eup %5053 }
 0x47c   : > { %v4420_v21 = vmul.f32 %v5054_v26, %v4337_v37  ;;  %vm4426_vm3 = vweird.f32 %v5054_v26 }
 0x47d   : > { %vm4427_vm4 = vmor %vm4425_vm8, %vm4426_vm3 }
 0x47e   : > { %v4421_v43 = vmul.f32 %v5054_v26, %v4420_v21 }
 0x480   : > { %v4422_v41 = vmul.f32 0.5, %v4421_v43 }
 0x482   : > { %v4423_v8 = vsub.f32 1.5, %v4422_v41  ;;  %v4339_v30 = vpop.f32.mrf.mxu3 }
 0x483   : > { %v4340_v31 = vadd.f32 1e-05, %v4339_v30 }
 0x484   : > { %v4424_v29 = vmul.f32 %v5054_v26, %v4423_v8 }
 0x485   : > { %5055 = vrsqrt.f32 %v4340_v31  ;;  %vm4435_vm12 = vweird.f32 %v4340_v31 }
 0x486   : > { %v4428_v3 = vsel %vm4427_vm4, %v5054_v26, %v4424_v29 }
 0x487   : > { %v4534_v57 = vmul.f32 %v4428_v3, %v9993_v44 }
 0x489   : > { %v4554_v19 = vmul.f32 %v10040_v42, %v4534_v57 }
 0x48b   : > { %v5056_v6 = vpop.eup %5055  ;;  %v4574_v32 = vadd.f32 %v10049_v36, %v4554_v19 }
 0x48c   : > { %v4430_v46 = vmul.f32 %v5056_v6, %v4340_v31  ;;  %vm4436_vm13 = vweird.f32 %v5056_v6 }
 0x48d   : > { %4590 = vst [vmem:[%s10056_s26 + $0x28] sm:$0xff] %v4574_v32  ;;  %vm4437_vm11 = vmor %vm4435_vm12, %vm4436_vm13 }
 0x48e   : > { %v4431_v4 = vmul.f32 %v5056_v6, %v4430_v46 }
 0x490   : > { %v4432_v12 = vmul.f32 0.5, %v4431_v4 }
 0x492   : > { %v4433_v34 = vsub.f32 1.5, %v4432_v12 }
 0x494   : > { %v4434_v17 = vmul.f32 %v5056_v6, %v4433_v34 }
 0x496   : > { %v4438_v49 = vsel %vm4437_vm11, %v5056_v6, %v4434_v17 }
 0x497   : > { %v4535_v20 = vmul.f32 %v4438_v49, %v9998_v58 }
 0x498   : > { %v4342_v2 = vpop.f32.mrf.mxu3 }
 0x499   : > { %v4343_v44 = vadd.f32 1e-05, %v4342_v2  ;;  %v4555_v15 = vmul.f32 %v10040_v42, %v4535_v20 }
 0x49b   : > { %5057 = vrsqrt.f32 %v4343_v44  ;;  %v4575_v0 = vadd.f32 %v10049_v36, %v4555_v15  ;;  %vm4445_vm6 = vweird.f32 %v4343_v44 }
 0x49d   : > { %4591 = vst [vmem:[%s10056_s26 + $0x30] sm:$0xff] %v4575_v0 }
 0x4a0   : > { %v4345_v14 = vpop.f32.mrf.mxu3 }
 0x4a1   : > { %v5058_v5 = vpop.eup %5057  ;;  %v4346_v38 = vadd.f32 1e-05, %v4345_v14 }
 0x4a2   : > { %v4440_v7 = vmul.f32 %v5058_v5, %v4343_v44  ;;  %vm4446_vm14 = vweird.f32 %v5058_v5 }
 0x4a3   : > { %5059 = vrsqrt.f32 %v4346_v38  ;;  %vm4447_vm7 = vmor %vm4445_vm6, %vm4446_vm14  ;;  %vm4455_vm2 = vweird.f32 %v4346_v38 }
 0x4a4   : > { %v4441_v50 = vmul.f32 %v5058_v5, %v4440_v7 }
 0x4a6   : > { %v4442_v25 = vmul.f32 0.5, %v4441_v50 }
 0x4a8   : > { %v4443_v16 = vsub.f32 1.5, %v4442_v25  ;;  %v4348_v51 = vpop.f32.mrf.mxu3 }
 0x4a9   : > { %v5060_v48 = vpop.eup %5059  ;;  %v4349_v58 = vadd.f32 1e-05, %v4348_v51 }
 0x4aa   : > { %v4444_v62 = vmul.f32 %v5058_v5, %v4443_v16  ;;  %v4450_v24 = vmul.f32 %v5060_v48, %v4346_v38  ;;  %vm4456_vm1 = vweird.f32 %v5060_v48 }
 0x4ab   : > { %5061 = vrsqrt.f32 %v4349_v58  ;;  %vm4457_vm15 = vmor %vm4455_vm2, %vm4456_vm1  ;;  %vm4465_vm9 = vweird.f32 %v4349_v58 }
 0x4ac   : > { %v4448_v39 = vsel %vm4447_vm7, %v5058_v5, %v4444_v62  ;;  %v4451_v47 = vmul.f32 %v5060_v48, %v4450_v24 }
 0x4ad   : > { %v4536_v11 = vmul.f32 %v4448_v39, %v10003_v61 }
 0x4ae   : > { %v4452_v53 = vmul.f32 0.5, %v4451_v47 }
 0x4af   : > { %v4556_v35 = vmul.f32 %v10040_v42, %v4536_v11 }
 0x4b0   : > { %v4453_v1 = vsub.f32 1.5, %v4452_v53  ;;  %v4351_v22 = vpop.f32.mrf.mxu3 }
 0x4b1   : > { %v5062_v13 = vpop.eup %5061  ;;  %v4576_v10 = vadd.f32 %v10049_v36, %v4556_v35  ;;  %v4352_v28 = vadd.f32 1e-05, %v4351_v22 }
 0x4b2   : > { %v4454_v27 = vmul.f32 %v5060_v48, %v4453_v1  ;;  %v4460_v33 = vmul.f32 %v5062_v13, %v4349_v58  ;;  %vm4466_vm0 = vweird.f32 %v5062_v13 }
 0x4b3   : > { %4592 = vst [vmem:[%s10056_s26 + $0x38] sm:$0xff] %v4576_v10  ;;  %5063 = vrsqrt.f32 %v4352_v28  ;;  %vm4467_vm5 = vmor %vm4465_vm9, %vm4466_vm0  ;;  %vm4475_vm3 = vweird.f32 %v4352_v28 }
 0x4b4   : > { %v4458_v18 = vsel %vm4457_vm15, %v5060_v48, %v4454_v27  ;;  %v4461_v23 = vmul.f32 %v5062_v13, %v4460_v33 }
 0x4b5   : > { %v4537_v61 = vmul.f32 %v4458_v18, %v10008_v55 }
 0x4b6   : > { %v4462_v45 = vmul.f32 0.5, %v4461_v23 }
 0x4b7   : > { %v4557_v59 = vmul.f32 %v10040_v42, %v4537_v61 }
 0x4b8   : > { %v4463_v37 = vsub.f32 1.5, %v4462_v45  ;;  %v4354_v26 = vpop.f32.mrf.mxu3 }
 0x4b9   : > { %v5064_v21 = vpop.eup %5063  ;;  %v4577_v43 = vadd.f32 %v10049_v36, %v4557_v59  ;;  %v4355_v41 = vadd.f32 1e-05, %v4354_v26 }
 0x4ba   : > { %v4464_v8 = vmul.f32 %v5062_v13, %v4463_v37  ;;  %v4470_v30 = vmul.f32 %v5064_v21, %v4352_v28  ;;  %vm4476_vm10 = vweird.f32 %v5064_v21 }
 0x4bb   : > { %4593 = vst [vmem:[%s10056_s26 + $0x40] sm:$0xff] %v4577_v43  ;;  %5065 = vrsqrt.f32 %v4355_v41  ;;  %vm4477_vm8 = vmor %vm4475_vm3, %vm4476_vm10  ;;  %vm4485_vm13 = vweird.f32 %v4355_v41 }
 0x4bc   : > { %v4468_v31 = vsel %vm4467_vm5, %v5062_v13, %v4464_v8  ;;  %v4471_v29 = vmul.f32 %v5064_v21, %v4470_v30 }
 0x4bd   : > { %v4538_v55 = vmul.f32 %v4468_v31, %v10013_v63 }
 0x4be   : > { %v4472_v3 = vmul.f32 0.5, %v4471_v29 }
 0x4bf   : > { %v4558_v57 = vmul.f32 %v10040_v42, %v4538_v55 }
 0x4c0   : > { %v4473_v19 = vsub.f32 1.5, %v4472_v3  ;;  %v4357_v6 = vpop.f32.mrf.mxu3 }
 0x4c1   : > { %v5066_v32 = vpop.eup %5065  ;;  %v4578_v46 = vadd.f32 %v10049_v36, %v4558_v57  ;;  %v4358_v4 = vadd.f32 1e-05, %v4357_v6 }
 0x4c2   : > { %v4474_v12 = vmul.f32 %v5064_v21, %v4473_v19  ;;  %v4480_v34 = vmul.f32 %v5066_v32, %v4355_v41  ;;  %vm4486_vm4 = vweird.f32 %v5066_v32 }
 0x4c3   : > { %4594 = vst [vmem:[%s10056_s26 + $0x48] sm:$0xff] %v4578_v46  ;;  %5067 = vrsqrt.f32 %v4358_v4  ;;  %vm4487_vm12 = vmor %vm4485_vm13, %vm4486_vm4  ;;  %vm4495_vm14 = vweird.f32 %v4358_v4 }
 0x4c4   : > { %v4478_v17 = vsel %vm4477_vm8, %v5064_v21, %v4474_v12  ;;  %v4481_v49 = vmul.f32 %v5066_v32, %v4480_v34 }
 0x4c5   : > { %v4539_v63 = vmul.f32 %v4478_v17, %v10018_v40 }
 0x4c6   : > { %v4482_v20 = vmul.f32 0.5, %v4481_v49 }
 0x4c7   : > { %v4559_v2 = vmul.f32 %v10040_v42, %v4539_v63 }
 0x4c8   : > { %v4483_v44 = vsub.f32 1.5, %v4482_v20  ;;  %v4360_v15 = vpop.f32.mrf.mxu3 }
 0x4c9   : > { %v5068_v0 = vpop.eup %5067  ;;  %v4579_v14 = vadd.f32 %v10049_v36, %v4559_v2  ;;  %v4361_v5 = vadd.f32 1e-05, %v4360_v15 }
 0x4ca   : > { %v4484_v38 = vmul.f32 %v5066_v32, %v4483_v44  ;;  %v4490_v7 = vmul.f32 %v5068_v0, %v4358_v4  ;;  %vm4496_vm11 = vweird.f32 %v5068_v0 }
 0x4cb   : > { %4595 = vst [vmem:[%s10056_s26 + $0x50] sm:$0xff] %v4579_v14  ;;  %5069 = vrsqrt.f32 %v4361_v5  ;;  %vm4497_vm6 = vmor %vm4495_vm14, %vm4496_vm11  ;;  %vm4505_vm1 = vweird.f32 %v4361_v5 }
 0x4cc   : > { %v4488_v50 = vsel %vm4487_vm12, %v5066_v32, %v4484_v38  ;;  %v4491_v25 = vmul.f32 %v5068_v0, %v4490_v7 }
 0x4cd   : > { %v4540_v40 = vmul.f32 %v4488_v50, %v10023_v52 }
 0x4ce   : > { %v4492_v16 = vmul.f32 0.5, %v4491_v25 }
 0x4cf   : > { %v4560_v51 = vmul.f32 %v10040_v42, %v4540_v40 }
 0x4d0   : > { %v4493_v48 = vsub.f32 1.5, %v4492_v16  ;;  %v4363_v58 = vpop.f32.mrf.mxu3 }
 0x4d1   : > { %v5070_v62 = vpop.eup %5069  ;;  %v4580_v24 = vadd.f32 %v10049_v36, %v4560_v51  ;;  %v4364_v39 = vadd.f32 1e-05, %v4363_v58 }
 0x4d2   : > { %v4494_v47 = vmul.f32 %v5068_v0, %v4493_v48  ;;  %v4500_v11 = vmul.f32 %v5070_v62, %v4361_v5  ;;  %vm4506_vm7 = vweird.f32 %v5070_v62 }
 0x4d3   : > { %4596 = vst [vmem:[%s10056_s26 + $0x58] sm:$0xff] %v4580_v24  ;;  %5071 = vrsqrt.f32 %v4364_v39  ;;  %vm4507_vm2 = vmor %vm4505_vm1, %vm4506_vm7  ;;  %vm4515_vm0 = vweird.f32 %v4364_v39 }
 0x4d4   : > { %v4498_v53 = vsel %vm4497_vm6, %v5068_v0, %v4494_v47  ;;  %v4501_v35 = vmul.f32 %v5070_v62, %v4500_v11 }
 0x4d5   : > { %v4541_v52 = vmul.f32 %v4498_v53, %v10028_v54 }
 0x4d6   : > { %v4502_v1 = vmul.f32 0.5, %v4501_v35 }
 0x4d7   : > { %v4561_v22 = vmul.f32 %v10040_v42, %v4541_v52 }
 0x4d8   : > { %v4503_v13 = vsub.f32 1.5, %v4502_v1  ;;  %v4366_v10 = vpop.f32.mrf.mxu3 }
 0x4d9   : > { %v5072_v28 = vpop.eup %5071  ;;  %v4581_v27 = vadd.f32 %v10049_v36, %v4561_v22  ;;  %v4367_v33 = vadd.f32 1e-05, %v4366_v10 }
 0x4da   : > { %v4504_v18 = vmul.f32 %v5070_v62, %v4503_v13  ;;  %v4510_v23 = vmul.f32 %v5072_v28, %v4364_v39  ;;  %vm4516_vm15 = vweird.f32 %v5072_v28 }
 0x4db   : > { %4597 = vst [vmem:[%s10056_s26 + $0x60] sm:$0xff] %v4581_v27  ;;  %5073 = vrsqrt.f32 %v4367_v33  ;;  %vm4517_vm9 = vmor %vm4515_vm0, %vm4516_vm15  ;;  %vm4525_vm10 = vweird.f32 %v4367_v33 }
 0x4dc   : > { %v4508_v61 = vsel %vm4507_vm2, %v5070_v62, %v4504_v18  ;;  %v4511_v45 = vmul.f32 %v5072_v28, %v4510_v23 }
 0x4dd   : > { %v4542_v54 = vmul.f32 %v4508_v61, %v10033_v56 }
 0x4de   : > { %v4512_v59 = vmul.f32 0.5, %v4511_v45 }
 0x4df   : > { %v4562_v37 = vmul.f32 %v10040_v42, %v4542_v54 }
 0x4e0   : > { %v4513_v26 = vsub.f32 1.5, %v4512_v59 }
 0x4e1   : > { %v5074_v21 = vpop.eup %5073  ;;  %v4582_v43 = vadd.f32 %v10049_v36, %v4562_v37 }
 0x4e2   : > { %v4514_v41 = vmul.f32 %v5072_v28, %v4513_v26  ;;  %v4520_v8 = vmul.f32 %v5074_v21, %v4367_v33  ;;  %vm4526_vm5 = vweird.f32 %v5074_v21 }
 0x4e3   : > { %4598 = vst [vmem:[%s10056_s26 + $0x68] sm:$0xff] %v4582_v43  ;;  %vm4527_vm3 = vmor %vm4525_vm10, %vm4526_vm5 }
 0x4e4   : > { %v4518_v30 = vsel %vm4517_vm9, %v5072_v28, %v4514_v41  ;;  %v4521_v31 = vmul.f32 %v5074_v21, %v4520_v8 }
 0x4e5   : > { %v4543_v56 = vmul.f32 %v4518_v30, %v10043_v60 }
 0x4e6   : > { %v4522_v29 = vmul.f32 0.5, %v4521_v31 }
 0x4e7   : > { %v4563_v55 = vmul.f32 %v10040_v42, %v4543_v56 }
 0x4e8   : > { %v4523_v3 = vsub.f32 1.5, %v4522_v29 }
 0x4e9   : > { %v4583_v57 = vadd.f32 %v10049_v36, %v4563_v55 }
 0x4ea   : > { %v4524_v19 = vmul.f32 %v5074_v21, %v4523_v3 }
 0x4eb   : > { %4599 = vst [vmem:[%s10056_s26 + $0x70] sm:$0xff] %v4583_v57 }
 0x4ec   : > { %v4528_v60 = vsel %vm4527_vm3, %v5074_v21, %v4524_v19 }
 0x4ed   : > { %v4544_v6 = vmul.f32 %v4528_v60, %v10060_v9 }
 0x4ef   : > { %v4564_v32 = vmul.f32 %v10040_v42, %v4544_v6 }
 0x4f1   : > { %v4584_v46 = vadd.f32 %v10049_v36, %v4564_v32 }
 0x4f3   : > { %4600 = vst [vmem:[%s10056_s26 + $0x78] sm:$0xff] %v4584_v46 }
 0x4f4   : > { %5286 = shalt.err (!%p5283_p11)
}
 0x4f5   : > { %s5354_s18 = smov 128   ;;  %s5355_s17 = smov 8  }
 0x4f6   : > { %4864 = dma.vmem_to_hbm [thread:$0]  (%p5495_p7), %s4615_s28, 2048, %s4617_s13, %s4602_s15, %s5354_s18, %s5354_s18, %s5355_s17  }
 0x4f7 PF: > { %s4631_s4 = sand.u32 1, %s5325_s30   ;;  %p10859_p12 = scmp.ge.s32.totalorder %s5337_s12, 2 }
 0x4f8   : > { %s4632_s21 = scalar_lea.sflag [#allocation4], %s4631_s4 }
 0x4f9   : > { %p4884_p13 = pnand %p10859_p12, %p5441_p6 }
 0x4fb   : > { %p4885_p0 = pneg %p4884_p13 }
 0x4fd   : > { %5320 = dma.done.wait (%p4885_p0), %s4632_s21, 2048  }
 0x4fe   : > { %5322 = vsyncadd (%p4885_p0), %s4632_s21, 4294965248  ;;  %s10860_s12 = sld [smem:[#allocation18_spill]]  ;;  %s10863_s30 = smov %s5329_s10 }
 0x4ff   : > { %s10861_s24 = sld [smem:[#allocation17_spill]] }
 0x500   : > { %s10862_s11 = sld [smem:[#allocation19_spill]] }
 0x504   : > { %p26_p3 = scmp.ge.s32.totalorder %s10860_s12, 4  }
 0x505   : > { %s10864_s10 = smov %s10861_s24 }
 0x506   :  { %28 = sbr.rel (!%p26_p3) target bundleno = 13 (0xd), region = 126 }
 0x50b   :  { %4638 = vsyncpa [#allocation3], 1 }
 0x50c   :  { %4640 = vsyncpa [#allocation3 + $0x1], 1 }
 0x50d   :  { %4641 = vsyncpa [#allocation6], 1 }
 0x50e   :  { %4643 = vsyncpa [#allocation6 + $0x1], 1 }
 0x50f   :  { %4644 = vsyncpa [#allocation9], 1 }
 0x510   :  { %4645 = vsyncpa [#allocation4], 1 }
 0x511   :  { %4647 = vsyncpa [#allocation4 + $0x1], 1 }

</bundles_post_ra>
